<compile_context>
chip_gen: v7x
topology: tpu7x:2x2x1
jax: 0.10.0
libtpu: 0.0.40
codegen_flags: <defaults>
</compile_context>

<pallas_src>
import jax
import jax.numpy as jnp
from jax.experimental import pallas as pl
from jax.experimental.pallas import tpu as pltpu


# ---------------------------------------------------------------------------
# In-kernel helpers
# ---------------------------------------------------------------------------
def _conv3x3(src_ref, w_ref, h, w):
    """3x3 SAME conv of the (h+2, w+2, c_in) halo tile behind `src_ref` as a single MXU
    matmul: build the (h*w, 9*c_in) im2col slab from 9 shifted tap views, then contract
    it against the pre-flattened (9*c_in, c_out) weight (fp32 accumulation)."""
    c_in = src_ref.shape[-1]
    taps = [src_ref[dh:dh + h, dw:dw + w, :].reshape(h * w, c_in)
            for dh in range(3) for dw in range(3)]
    slab = jnp.concatenate(taps, axis=-1)                      # (h*w, 9*c_in), bf16
    return jnp.dot(slab, w_ref[...], preferred_element_type=jnp.float32)


def _store_with_halo(dst_ref, val):
    """Write `val` (h, w, c) into the interior of the (h+2, w+2, c) halo scratch and
    refresh its 1-wide zero border. The border rewrite is tiny and keeps the scratch
    state correct under any megacore split of the batch axis (per-core scratch never
    sees a program_id==0 init on the second core)."""
    h, w, c = val.shape
    zrow = jnp.zeros((1, w + 2, c), dst_ref.dtype)
    zcol = jnp.zeros((h, 1, c), dst_ref.dtype)
    dst_ref[0:1, :, :] = zrow
    dst_ref[h + 1:h + 2, :, :] = zrow
    dst_ref[1:h + 1, 0:1, :] = zcol
    dst_ref[1:h + 1, w + 1:w + 2, :] = zcol
    dst_ref[1:h + 1, 1:w + 1, :] = val


# ---------------------------------------------------------------------------
# Fused kernel: stem conv + residual block + global average pool (one image/step)
# ---------------------------------------------------------------------------
def extractor_kernel(x_ref,                    # (h+2, w+2, c_in) bf16, pre-padded halo
                     w0_ref, s0_ref, b0_ref,   # stem   : (9*c_in, c), (1, c), (1, c)
                     w1_ref, s1_ref, b1_ref,   # block a: (9*c,    c), (1, c), (1, c)
                     w2_ref, s2_ref, b2_ref,   # block b: (9*c,    c), (1, c), (1, c)
                     out_ref,                  # (1, c) f32 pooled features
                     x1_ref, y_ref):           # (h+2, w+2, c) bf16 halo scratch
    h, w = x_ref.shape[0] - 2, x_ref.shape[1] - 2
    c = w0_ref.shape[-1]
    inv_hw = 1.0 / (h * w)

    # stem: conv3x3 + folded BN + ReLU
    a = _conv3x3(x_ref, w0_ref, h, w)
    a = jnp.maximum(a * s0_ref[...] + b0_ref[...], 0.0)
    _store_with_halo(x1_ref, a.astype(x1_ref.dtype).reshape(h, w, c))

    # residual block, first conv: conv3x3 + folded BN + ReLU
    a = _conv3x3(x1_ref, w1_ref, h, w)
    a = jnp.maximum(a * s1_ref[...] + b1_ref[...], 0.0)
    _store_with_halo(y_ref, a.astype(y_ref.dtype).reshape(h, w, c))

    # second conv + BN + residual add + ReLU + global average pool (fused epilogue)
    a = _conv3x3(y_ref, w2_ref, h, w)
    a = a * s2_ref[...] + b2_ref[...]
    resid = x1_ref[1:h + 1, 1:w + 1, :].reshape(h * w, c).astype(jnp.float32)
    a = jnp.maximum(a + resid, 0.0)
    out_ref[...] = jnp.sum(a, axis=0, keepdims=True) * inv_hw


# ---------------------------------------------------------------------------
# Wrapper
# ---------------------------------------------------------------------------
def extractor_forward(params, x_nchw):
    n, c_in, h, w = x_nchw.shape
    c = params["stem_w"].shape[-1]

    # NCHW (PyTorch) -> NHWC bf16, plus a one-time spatial pad so the BlockSpec delivers
    # the 3x3 halo tile directly (no in-kernel staging / zeroing for the stem input).
    x = jnp.transpose(x_nchw, (0, 2, 3, 1)).astype(jnp.bfloat16)
    x = jnp.pad(x, ((0, 0), (1, 1), (1, 1), (0, 0)))

    const2d = lambda i: (0, 0)                    # weights / scales stay VMEM-resident
    pooled = pl.pallas_call(
        extractor_kernel,
        out_shape=jax.ShapeDtypeStruct((n, 1, c), jnp.float32),
        grid=(n,),
        in_specs=[
            pl.BlockSpec((None, h + 2, w + 2, c_in), lambda i: (i, 0, 0, 0)),
            pl.BlockSpec((9 * c_in, c), const2d),
            pl.BlockSpec((1, c), const2d),
            pl.BlockSpec((1, c), const2d),
            pl.BlockSpec((9 * c, c), const2d),
            pl.BlockSpec((1, c), const2d),
            pl.BlockSpec((1, c), const2d),
            pl.BlockSpec((9 * c, c), const2d),
            pl.BlockSpec((1, c), const2d),
            pl.BlockSpec((1, c), const2d),
        ],
        out_specs=pl.BlockSpec((None, 1, c), lambda i: (i, 0, 0)),
        scratch_shapes=[
            pltpu.VMEM((h + 2, w + 2, c), jnp.bfloat16),   # x1 (stem output, + residual)
            pltpu.VMEM((h + 2, w + 2, c), jnp.bfloat16),   # y  (block conv1 output)
        ],
        compiler_params=pltpu.CompilerParams(
            dimension_semantics=("parallel",),   # batch axis: pipeline + v7x 2-TC split
        ),
    )(x,
      params["stem_w"], *params["stem_bn"],
      params["b1_w"], *params["b1_bn"],
      params["b2_w"], *params["b2_bn"])

    # torch.squeeze(torch.squeeze(x, 2), 2): (N, C, 1, 1) -> (N, C)
    return pooled.reshape(n, c)


# ---------------------------------------------------------------------------
# Parameter construction (deterministic, synthetic)
# ---------------------------------------------------------------------------
def _fold_bn(gamma, beta, mean, var, eps=1e-5):
    scale = gamma / jnp.sqrt(var + eps)
    return scale, beta - mean * scale


def make_params(key, c_in, c_mid):
    ks = jax.random.split(key, 12)

    def conv_w(k, cin, cout):
        w = jax.random.normal(k, (9, cin, cout), jnp.float32) * 0.1
        # Pre-flattened im2col weight: rows [t*cin:(t+1)*cin] correspond to tap t=dh*3+dw,
        # matching the in-kernel tap concatenation order.
        return w.reshape(9 * cin, cout).astype(jnp.bfloat16)

    def bn(k0, k1, k2, c):
        gamma = 1.0 + 0.1 * jax.random.normal(k0, (c,), jnp.float32)
        beta = 0.1 * jax.random.normal(k1, (c,), jnp.float32)
        mean = 0.1 * jax.random.normal(k2, (c,), jnp.float32)
        var = jnp.ones((c,), jnp.float32)
        scale, bias = _fold_bn(gamma, beta, mean, var)
        return scale.reshape(1, c), bias.reshape(1, c)

    return {
        "stem_w": conv_w(ks[0], c_in, c_mid),
        "stem_bn": bn(ks[1], ks[2], ks[3], c_mid),
        "b1_w": conv_w(ks[4], c_mid, c_mid),
        "b1_bn": bn(ks[5], ks[6], ks[7], c_mid),
        "b2_w": conv_w(ks[8], c_mid, c_mid),
        "b2_bn": bn(ks[9], ks[10], ks[11], c_mid),
    }


if __name__ == "__main__":
    key = jax.random.PRNGKey(0)
    k_param, k_x = jax.random.split(key)

    N, C_IN, H, W = 2, 4, 16, 16
    C_MID = 16

    params = make_params(k_param, C_IN, C_MID)
    x = jax.random.normal(k_x, (N, C_IN, H, W), jnp.float32)

    fwd = jax.jit(extractor_forward)
    feats = jax.block_until_ready(fwd(params, x))

    assert feats.shape == (N, C_MID), feats.shape
    assert bool(jnp.all(jnp.isfinite(feats)))
    print("KERNEL_OK")
</pallas_src>

<mosaic_0001>
module attributes {stable_mosaic.version = 11 : i64} {
  func.func @extractor_kernel(%arg0: i32, %arg1: memref<1x18x18x4xbf16, #tpu.memory_space<vmem>>, %arg2: memref<36x16xbf16, #tpu.memory_space<vmem>>, %arg3: memref<1x16xf32, #tpu.memory_space<vmem>>, %arg4: memref<1x16xf32, #tpu.memory_space<vmem>>, %arg5: memref<144x16xbf16, #tpu.memory_space<vmem>>, %arg6: memref<1x16xf32, #tpu.memory_space<vmem>>, %arg7: memref<1x16xf32, #tpu.memory_space<vmem>>, %arg8: memref<144x16xbf16, #tpu.memory_space<vmem>>, %arg9: memref<1x16xf32, #tpu.memory_space<vmem>>, %arg10: memref<1x16xf32, #tpu.memory_space<vmem>>, %arg11: memref<1x1x16xf32, #tpu.memory_space<vmem>>, %arg12: memref<18x18x16xbf16, #tpu.memory_space<vmem>>, %arg13: memref<18x18x16xbf16, #tpu.memory_space<vmem>>) attributes {dimension_semantics = [#tpu.dimension_semantics<parallel>], iteration_bounds = array<i64: 2>, scalar_prefetch = 0 : i64, scratch_operands = 2 : i64, tpu.core_type = #tpu.core_type<tc>, window_params = [{transform_indices = @transform_0, window_bounds = array<i64: 1, 18, 18, 4>}, {pipeline_mode = #tpu.pipeline_mode<synchronous>, transform_indices = @transform_1, window_bounds = array<i64: 36, 16>}, {pipeline_mode = #tpu.pipeline_mode<synchronous>, transform_indices = @transform_2, window_bounds = array<i64: 1, 16>}, {pipeline_mode = #tpu.pipeline_mode<synchronous>, transform_indices = @transform_3, window_bounds = array<i64: 1, 16>}, {pipeline_mode = #tpu.pipeline_mode<synchronous>, transform_indices = @transform_4, window_bounds = array<i64: 144, 16>}, {pipeline_mode = #tpu.pipeline_mode<synchronous>, transform_indices = @transform_5, window_bounds = array<i64: 1, 16>}, {pipeline_mode = #tpu.pipeline_mode<synchronous>, transform_indices = @transform_6, window_bounds = array<i64: 1, 16>}, {pipeline_mode = #tpu.pipeline_mode<synchronous>, transform_indices = @transform_7, window_bounds = array<i64: 144, 16>}, {pipeline_mode = #tpu.pipeline_mode<synchronous>, transform_indices = @transform_8, window_bounds = array<i64: 1, 16>}, {pipeline_mode = #tpu.pipeline_mode<synchronous>, transform_indices = @transform_9, window_bounds = array<i64: 1, 16>}, {transform_indices = @transform_10, window_bounds = array<i64: 1, 1, 16>}]} {
    %c0 = arith.constant 0 : index
    %c0_0 = arith.constant 0 : index
    %c0_1 = arith.constant 0 : index
    %c0_2 = arith.constant 0 : index
    %0 = vector.load %arg1[%c0, %c0_0, %c0_1, %c0_2] : memref<1x18x18x4xbf16, #tpu.memory_space<vmem>>, vector<1x16x16x4xbf16>
    %1 = vector.shape_cast %0 : vector<1x16x16x4xbf16> to vector<16x16x4xbf16>
    %2 = vector.shape_cast %1 : vector<16x16x4xbf16> to vector<256x4xbf16>
    %c0_3 = arith.constant 0 : index
    %c0_4 = arith.constant 0 : index
    %c1 = arith.constant 1 : index
    %c0_5 = arith.constant 0 : index
    %3 = vector.load %arg1[%c0_3, %c0_4, %c1, %c0_5] : memref<1x18x18x4xbf16, #tpu.memory_space<vmem>>, vector<1x16x16x4xbf16>
    %4 = vector.shape_cast %3 : vector<1x16x16x4xbf16> to vector<16x16x4xbf16>
    %5 = vector.shape_cast %4 : vector<16x16x4xbf16> to vector<256x4xbf16>
    %c0_6 = arith.constant 0 : index
    %c0_7 = arith.constant 0 : index
    %c2 = arith.constant 2 : index
    %c0_8 = arith.constant 0 : index
    %6 = vector.load %arg1[%c0_6, %c0_7, %c2, %c0_8] : memref<1x18x18x4xbf16, #tpu.memory_space<vmem>>, vector<1x16x16x4xbf16>
    %7 = vector.shape_cast %6 : vector<1x16x16x4xbf16> to vector<16x16x4xbf16>
    %8 = vector.shape_cast %7 : vector<16x16x4xbf16> to vector<256x4xbf16>
    %c0_9 = arith.constant 0 : index
    %c1_10 = arith.constant 1 : index
    %c0_11 = arith.constant 0 : index
    %c0_12 = arith.constant 0 : index
    %9 = vector.load %arg1[%c0_9, %c1_10, %c0_11, %c0_12] : memref<1x18x18x4xbf16, #tpu.memory_space<vmem>>, vector<1x16x16x4xbf16>
    %10 = vector.shape_cast %9 : vector<1x16x16x4xbf16> to vector<16x16x4xbf16>
    %11 = vector.shape_cast %10 : vector<16x16x4xbf16> to vector<256x4xbf16>
    %c0_13 = arith.constant 0 : index
    %c1_14 = arith.constant 1 : index
    %c1_15 = arith.constant 1 : index
    %c0_16 = arith.constant 0 : index
    %12 = vector.load %arg1[%c0_13, %c1_14, %c1_15, %c0_16] : memref<1x18x18x4xbf16, #tpu.memory_space<vmem>>, vector<1x16x16x4xbf16>
    %13 = vector.shape_cast %12 : vector<1x16x16x4xbf16> to vector<16x16x4xbf16>
    %14 = vector.shape_cast %13 : vector<16x16x4xbf16> to vector<256x4xbf16>
    %c0_17 = arith.constant 0 : index
    %c1_18 = arith.constant 1 : index
    %c2_19 = arith.constant 2 : index
    %c0_20 = arith.constant 0 : index
    %15 = vector.load %arg1[%c0_17, %c1_18, %c2_19, %c0_20] : memref<1x18x18x4xbf16, #tpu.memory_space<vmem>>, vector<1x16x16x4xbf16>
    %16 = vector.shape_cast %15 : vector<1x16x16x4xbf16> to vector<16x16x4xbf16>
    %17 = vector.shape_cast %16 : vector<16x16x4xbf16> to vector<256x4xbf16>
    %c0_21 = arith.constant 0 : index
    %c2_22 = arith.constant 2 : index
    %c0_23 = arith.constant 0 : index
    %c0_24 = arith.constant 0 : index
    %18 = vector.load %arg1[%c0_21, %c2_22, %c0_23, %c0_24] : memref<1x18x18x4xbf16, #tpu.memory_space<vmem>>, vector<1x16x16x4xbf16>
    %19 = vector.shape_cast %18 : vector<1x16x16x4xbf16> to vector<16x16x4xbf16>
    %20 = vector.shape_cast %19 : vector<16x16x4xbf16> to vector<256x4xbf16>
    %c0_25 = arith.constant 0 : index
    %c2_26 = arith.constant 2 : index
    %c1_27 = arith.constant 1 : index
    %c0_28 = arith.constant 0 : index
    %21 = vector.load %arg1[%c0_25, %c2_26, %c1_27, %c0_28] : memref<1x18x18x4xbf16, #tpu.memory_space<vmem>>, vector<1x16x16x4xbf16>
    %22 = vector.shape_cast %21 : vector<1x16x16x4xbf16> to vector<16x16x4xbf16>
    %23 = vector.shape_cast %22 : vector<16x16x4xbf16> to vector<256x4xbf16>
    %c0_29 = arith.constant 0 : index
    %c2_30 = arith.constant 2 : index
    %c2_31 = arith.constant 2 : index
    %c0_32 = arith.constant 0 : index
    %24 = vector.load %arg1[%c0_29, %c2_30, %c2_31, %c0_32] : memref<1x18x18x4xbf16, #tpu.memory_space<vmem>>, vector<1x16x16x4xbf16>
    %25 = vector.shape_cast %24 : vector<1x16x16x4xbf16> to vector<16x16x4xbf16>
    %26 = vector.shape_cast %25 : vector<16x16x4xbf16> to vector<256x4xbf16>
    %27 = tpu.concatenate %2, %5, %8, %11, %14, %17, %20, %23, %26 in 1 : vector<256x4xbf16>, vector<256x4xbf16>, vector<256x4xbf16>, vector<256x4xbf16>, vector<256x4xbf16>, vector<256x4xbf16>, vector<256x4xbf16>, vector<256x4xbf16>, vector<256x4xbf16> -> vector<256x36xbf16>
    %c0_33 = arith.constant 0 : index
    %c0_34 = arith.constant 0 : index
    %28 = vector.load %arg2[%c0_33, %c0_34] : memref<36x16xbf16, #tpu.memory_space<vmem>>, vector<36x16xbf16>
    %cst = arith.constant dense<0.000000e+00> : vector<256x16xf32>
    %29 = tpu.matmul %27, %28, %cst {dimension_numbers = #tpu.dot_dimension_numbers<[1], [0], [0], [1], [0, 0, 1, 1], [], []>} : vector<256x36xbf16>, vector<36x16xbf16>, vector<256x16xf32> -> vector<256x16xf32>
    %c0_35 = arith.constant 0 : index
    %c0_36 = arith.constant 0 : index
    %30 = vector.load %arg3[%c0_35, %c0_36] : memref<1x16xf32, #tpu.memory_space<vmem>>, vector<1x16xf32>
    %31 = vector.broadcast %30 : vector<1x16xf32> to vector<256x16xf32>
    %32 = arith.mulf %29, %31 : vector<256x16xf32>
    %c0_37 = arith.constant 0 : index
    %c0_38 = arith.constant 0 : index
    %33 = vector.load %arg4[%c0_37, %c0_38] : memref<1x16xf32, #tpu.memory_space<vmem>>, vector<1x16xf32>
    %34 = vector.broadcast %33 : vector<1x16xf32> to vector<256x16xf32>
    %35 = arith.addf %32, %34 : vector<256x16xf32>
    %cst_39 = arith.constant 0.000000e+00 : f32
    %36 = vector.broadcast %cst_39 : f32 to vector<256x16xf32>
    %37 = arith.maximumf %35, %36 : vector<256x16xf32>
    %38 = arith.truncf %37 : vector<256x16xf32> to vector<256x16xbf16>
    %39 = vector.shape_cast %38 : vector<256x16xbf16> to vector<16x16x16xbf16>
    %cst_40 = arith.constant 0.000000e+00 : bf16
    %40 = vector.broadcast %cst_40 : bf16 to vector<1x18x16xbf16>
    %cst_41 = arith.constant 0.000000e+00 : bf16
    %41 = vector.broadcast %cst_41 : bf16 to vector<16x1x16xbf16>
    %c0_42 = arith.constant 0 : index
    %c0_43 = arith.constant 0 : index
    %c0_44 = arith.constant 0 : index
    %42 = vector.load %arg12[%c0_42, %c0_43, %c0_44] : memref<18x18x16xbf16, #tpu.memory_space<vmem>>, vector<1x18x16xbf16>
    tpu.vector_store %arg12[%c0_42, %c0_43, %c0_44], %40 {strides = array<i32>} : memref<18x18x16xbf16, #tpu.memory_space<vmem>>, vector<1x18x16xbf16>,
    %c17 = arith.constant 17 : index
    %c0_45 = arith.constant 0 : index
    %c0_46 = arith.constant 0 : index
    %43 = vector.load %arg12[%c17, %c0_45, %c0_46] : memref<18x18x16xbf16, #tpu.memory_space<vmem>>, vector<1x18x16xbf16>
    tpu.vector_store %arg12[%c17, %c0_45, %c0_46], %40 {strides = array<i32>} : memref<18x18x16xbf16, #tpu.memory_space<vmem>>, vector<1x18x16xbf16>,
    %c1_47 = arith.constant 1 : index
    %c0_48 = arith.constant 0 : index
    %c0_49 = arith.constant 0 : index
    %44 = vector.load %arg12[%c1_47, %c0_48, %c0_49] : memref<18x18x16xbf16, #tpu.memory_space<vmem>>, vector<16x1x16xbf16>
    tpu.vector_store %arg12[%c1_47, %c0_48, %c0_49], %41 {strides = array<i32>} : memref<18x18x16xbf16, #tpu.memory_space<vmem>>, vector<16x1x16xbf16>,
    %c1_50 = arith.constant 1 : index
    %c17_51 = arith.constant 17 : index
    %c0_52 = arith.constant 0 : index
    %45 = vector.load %arg12[%c1_50, %c17_51, %c0_52] : memref<18x18x16xbf16, #tpu.memory_space<vmem>>, vector<16x1x16xbf16>
    tpu.vector_store %arg12[%c1_50, %c17_51, %c0_52], %41 {strides = array<i32>} : memref<18x18x16xbf16, #tpu.memory_space<vmem>>, vector<16x1x16xbf16>,
    %c1_53 = arith.constant 1 : index
    %c1_54 = arith.constant 1 : index
    %c0_55 = arith.constant 0 : index
    %46 = vector.load %arg12[%c1_53, %c1_54, %c0_55] : memref<18x18x16xbf16, #tpu.memory_space<vmem>>, vector<16x16x16xbf16>
    tpu.vector_store %arg12[%c1_53, %c1_54, %c0_55], %39 {strides = array<i32>} : memref<18x18x16xbf16, #tpu.memory_space<vmem>>, vector<16x16x16xbf16>,
    %c0_56 = arith.constant 0 : index
    %c0_57 = arith.constant 0 : index
    %c0_58 = arith.constant 0 : index
    %47 = vector.load %arg12[%c0_56, %c0_57, %c0_58] : memref<18x18x16xbf16, #tpu.memory_space<vmem>>, vector<16x16x16xbf16>
    %48 = vector.shape_cast %47 : vector<16x16x16xbf16> to vector<256x16xbf16>
    %c0_59 = arith.constant 0 : index
    %c1_60 = arith.constant 1 : index
    %c0_61 = arith.constant 0 : index
    %49 = vector.load %arg12[%c0_59, %c1_60, %c0_61] : memref<18x18x16xbf16, #tpu.memory_space<vmem>>, vector<16x16x16xbf16>
    %50 = vector.shape_cast %49 : vector<16x16x16xbf16> to vector<256x16xbf16>
    %c0_62 = arith.constant 0 : index
    %c2_63 = arith.constant 2 : index
    %c0_64 = arith.constant 0 : index
    %51 = vector.load %arg12[%c0_62, %c2_63, %c0_64] : memref<18x18x16xbf16, #tpu.memory_space<vmem>>, vector<16x16x16xbf16>
    %52 = vector.shape_cast %51 : vector<16x16x16xbf16> to vector<256x16xbf16>
    %c1_65 = arith.constant 1 : index
    %c0_66 = arith.constant 0 : index
    %c0_67 = arith.constant 0 : index
    %53 = vector.load %arg12[%c1_65, %c0_66, %c0_67] : memref<18x18x16xbf16, #tpu.memory_space<vmem>>, vector<16x16x16xbf16>
    %54 = vector.shape_cast %53 : vector<16x16x16xbf16> to vector<256x16xbf16>
    %c1_68 = arith.constant 1 : index
    %c1_69 = arith.constant 1 : index
    %c0_70 = arith.constant 0 : index
    %55 = vector.load %arg12[%c1_68, %c1_69, %c0_70] : memref<18x18x16xbf16, #tpu.memory_space<vmem>>, vector<16x16x16xbf16>
    %56 = vector.shape_cast %55 : vector<16x16x16xbf16> to vector<256x16xbf16>
    %c1_71 = arith.constant 1 : index
    %c2_72 = arith.constant 2 : index
    %c0_73 = arith.constant 0 : index
    %57 = vector.load %arg12[%c1_71, %c2_72, %c0_73] : memref<18x18x16xbf16, #tpu.memory_space<vmem>>, vector<16x16x16xbf16>
    %58 = vector.shape_cast %57 : vector<16x16x16xbf16> to vector<256x16xbf16>
    %c2_74 = arith.constant 2 : index
    %c0_75 = arith.constant 0 : index
    %c0_76 = arith.constant 0 : index
    %59 = vector.load %arg12[%c2_74, %c0_75, %c0_76] : memref<18x18x16xbf16, #tpu.memory_space<vmem>>, vector<16x16x16xbf16>
    %60 = vector.shape_cast %59 : vector<16x16x16xbf16> to vector<256x16xbf16>
    %c2_77 = arith.constant 2 : index
    %c1_78 = arith.constant 1 : index
    %c0_79 = arith.constant 0 : index
    %61 = vector.load %arg12[%c2_77, %c1_78, %c0_79] : memref<18x18x16xbf16, #tpu.memory_space<vmem>>, vector<16x16x16xbf16>
    %62 = vector.shape_cast %61 : vector<16x16x16xbf16> to vector<256x16xbf16>
    %c2_80 = arith.constant 2 : index
    %c2_81 = arith.constant 2 : index
    %c0_82 = arith.constant 0 : index
    %63 = vector.load %arg12[%c2_80, %c2_81, %c0_82] : memref<18x18x16xbf16, #tpu.memory_space<vmem>>, vector<16x16x16xbf16>
    %64 = vector.shape_cast %63 : vector<16x16x16xbf16> to vector<256x16xbf16>
    %65 = tpu.concatenate %48, %50, %52, %54, %56, %58, %60, %62, %64 in 1 : vector<256x16xbf16>, vector<256x16xbf16>, vector<256x16xbf16>, vector<256x16xbf16>, vector<256x16xbf16>, vector<256x16xbf16>, vector<256x16xbf16>, vector<256x16xbf16>, vector<256x16xbf16> -> vector<256x144xbf16>
    %c0_83 = arith.constant 0 : index
    %c0_84 = arith.constant 0 : index
    %66 = vector.load %arg5[%c0_83, %c0_84] : memref<144x16xbf16, #tpu.memory_space<vmem>>, vector<144x16xbf16>
    %cst_85 = arith.constant dense<0.000000e+00> : vector<256x16xf32>
    %67 = tpu.matmul %65, %66, %cst_85 {dimension_numbers = #tpu.dot_dimension_numbers<[1], [0], [0], [1], [0, 0, 1, 1], [], []>} : vector<256x144xbf16>, vector<144x16xbf16>, vector<256x16xf32> -> vector<256x16xf32>
    %c0_86 = arith.constant 0 : index
    %c0_87 = arith.constant 0 : index
    %68 = vector.load %arg6[%c0_86, %c0_87] : memref<1x16xf32, #tpu.memory_space<vmem>>, vector<1x16xf32>
    %69 = vector.broadcast %68 : vector<1x16xf32> to vector<256x16xf32>
    %70 = arith.mulf %67, %69 : vector<256x16xf32>
    %c0_88 = arith.constant 0 : index
    %c0_89 = arith.constant 0 : index
    %71 = vector.load %arg7[%c0_88, %c0_89] : memref<1x16xf32, #tpu.memory_space<vmem>>, vector<1x16xf32>
    %72 = vector.broadcast %71 : vector<1x16xf32> to vector<256x16xf32>
    %73 = arith.addf %70, %72 : vector<256x16xf32>
    %cst_90 = arith.constant 0.000000e+00 : f32
    %74 = vector.broadcast %cst_90 : f32 to vector<256x16xf32>
    %75 = arith.maximumf %73, %74 : vector<256x16xf32>
    %76 = arith.truncf %75 : vector<256x16xf32> to vector<256x16xbf16>
    %77 = vector.shape_cast %76 : vector<256x16xbf16> to vector<16x16x16xbf16>
    %cst_91 = arith.constant 0.000000e+00 : bf16
    %78 = vector.broadcast %cst_91 : bf16 to vector<1x18x16xbf16>
    %cst_92 = arith.constant 0.000000e+00 : bf16
    %79 = vector.broadcast %cst_92 : bf16 to vector<16x1x16xbf16>
    %c0_93 = arith.constant 0 : index
    %c0_94 = arith.constant 0 : index
    %c0_95 = arith.constant 0 : index
    %80 = vector.load %arg13[%c0_93, %c0_94, %c0_95] : memref<18x18x16xbf16, #tpu.memory_space<vmem>>, vector<1x18x16xbf16>
    tpu.vector_store %arg13[%c0_93, %c0_94, %c0_95], %78 {strides = array<i32>} : memref<18x18x16xbf16, #tpu.memory_space<vmem>>, vector<1x18x16xbf16>,
    %c17_96 = arith.constant 17 : index
    %c0_97 = arith.constant 0 : index
    %c0_98 = arith.constant 0 : index
    %81 = vector.load %arg13[%c17_96, %c0_97, %c0_98] : memref<18x18x16xbf16, #tpu.memory_space<vmem>>, vector<1x18x16xbf16>
    tpu.vector_store %arg13[%c17_96, %c0_97, %c0_98], %78 {strides = array<i32>} : memref<18x18x16xbf16, #tpu.memory_space<vmem>>, vector<1x18x16xbf16>,
    %c1_99 = arith.constant 1 : index
    %c0_100 = arith.constant 0 : index
    %c0_101 = arith.constant 0 : index
    %82 = vector.load %arg13[%c1_99, %c0_100, %c0_101] : memref<18x18x16xbf16, #tpu.memory_space<vmem>>, vector<16x1x16xbf16>
    tpu.vector_store %arg13[%c1_99, %c0_100, %c0_101], %79 {strides = array<i32>} : memref<18x18x16xbf16, #tpu.memory_space<vmem>>, vector<16x1x16xbf16>,
    %c1_102 = arith.constant 1 : index
    %c17_103 = arith.constant 17 : index
    %c0_104 = arith.constant 0 : index
    %83 = vector.load %arg13[%c1_102, %c17_103, %c0_104] : memref<18x18x16xbf16, #tpu.memory_space<vmem>>, vector<16x1x16xbf16>
    tpu.vector_store %arg13[%c1_102, %c17_103, %c0_104], %79 {strides = array<i32>} : memref<18x18x16xbf16, #tpu.memory_space<vmem>>, vector<16x1x16xbf16>,
    %c1_105 = arith.constant 1 : index
    %c1_106 = arith.constant 1 : index
    %c0_107 = arith.constant 0 : index
    %84 = vector.load %arg13[%c1_105, %c1_106, %c0_107] : memref<18x18x16xbf16, #tpu.memory_space<vmem>>, vector<16x16x16xbf16>
    tpu.vector_store %arg13[%c1_105, %c1_106, %c0_107], %77 {strides = array<i32>} : memref<18x18x16xbf16, #tpu.memory_space<vmem>>, vector<16x16x16xbf16>,
    %c0_108 = arith.constant 0 : index
    %c0_109 = arith.constant 0 : index
    %c0_110 = arith.constant 0 : index
    %85 = vector.load %arg13[%c0_108, %c0_109, %c0_110] : memref<18x18x16xbf16, #tpu.memory_space<vmem>>, vector<16x16x16xbf16>
    %86 = vector.shape_cast %85 : vector<16x16x16xbf16> to vector<256x16xbf16>
    %c0_111 = arith.constant 0 : index
    %c1_112 = arith.constant 1 : index
    %c0_113 = arith.constant 0 : index
    %87 = vector.load %arg13[%c0_111, %c1_112, %c0_113] : memref<18x18x16xbf16, #tpu.memory_space<vmem>>, vector<16x16x16xbf16>
    %88 = vector.shape_cast %87 : vector<16x16x16xbf16> to vector<256x16xbf16>
    %c0_114 = arith.constant 0 : index
    %c2_115 = arith.constant 2 : index
    %c0_116 = arith.constant 0 : index
    %89 = vector.load %arg13[%c0_114, %c2_115, %c0_116] : memref<18x18x16xbf16, #tpu.memory_space<vmem>>, vector<16x16x16xbf16>
    %90 = vector.shape_cast %89 : vector<16x16x16xbf16> to vector<256x16xbf16>
    %c1_117 = arith.constant 1 : index
    %c0_118 = arith.constant 0 : index
    %c0_119 = arith.constant 0 : index
    %91 = vector.load %arg13[%c1_117, %c0_118, %c0_119] : memref<18x18x16xbf16, #tpu.memory_space<vmem>>, vector<16x16x16xbf16>
    %92 = vector.shape_cast %91 : vector<16x16x16xbf16> to vector<256x16xbf16>
    %c1_120 = arith.constant 1 : index
    %c1_121 = arith.constant 1 : index
    %c0_122 = arith.constant 0 : index
    %93 = vector.load %arg13[%c1_120, %c1_121, %c0_122] : memref<18x18x16xbf16, #tpu.memory_space<vmem>>, vector<16x16x16xbf16>
    %94 = vector.shape_cast %93 : vector<16x16x16xbf16> to vector<256x16xbf16>
    %c1_123 = arith.constant 1 : index
    %c2_124 = arith.constant 2 : index
    %c0_125 = arith.constant 0 : index
    %95 = vector.load %arg13[%c1_123, %c2_124, %c0_125] : memref<18x18x16xbf16, #tpu.memory_space<vmem>>, vector<16x16x16xbf16>
    %96 = vector.shape_cast %95 : vector<16x16x16xbf16> to vector<256x16xbf16>
    %c2_126 = arith.constant 2 : index
    %c0_127 = arith.constant 0 : index
    %c0_128 = arith.constant 0 : index
    %97 = vector.load %arg13[%c2_126, %c0_127, %c0_128] : memref<18x18x16xbf16, #tpu.memory_space<vmem>>, vector<16x16x16xbf16>
    %98 = vector.shape_cast %97 : vector<16x16x16xbf16> to vector<256x16xbf16>
    %c2_129 = arith.constant 2 : index
    %c1_130 = arith.constant 1 : index
    %c0_131 = arith.constant 0 : index
    %99 = vector.load %arg13[%c2_129, %c1_130, %c0_131] : memref<18x18x16xbf16, #tpu.memory_space<vmem>>, vector<16x16x16xbf16>
    %100 = vector.shape_cast %99 : vector<16x16x16xbf16> to vector<256x16xbf16>
    %c2_132 = arith.constant 2 : index
    %c2_133 = arith.constant 2 : index
    %c0_134 = arith.constant 0 : index
    %101 = vector.load %arg13[%c2_132, %c2_133, %c0_134] : memref<18x18x16xbf16, #tpu.memory_space<vmem>>, vector<16x16x16xbf16>
    %102 = vector.shape_cast %101 : vector<16x16x16xbf16> to vector<256x16xbf16>
    %103 = tpu.concatenate %86, %88, %90, %92, %94, %96, %98, %100, %102 in 1 : vector<256x16xbf16>, vector<256x16xbf16>, vector<256x16xbf16>, vector<256x16xbf16>, vector<256x16xbf16>, vector<256x16xbf16>, vector<256x16xbf16>, vector<256x16xbf16>, vector<256x16xbf16> -> vector<256x144xbf16>
    %c0_135 = arith.constant 0 : index
    %c0_136 = arith.constant 0 : index
    %104 = vector.load %arg8[%c0_135, %c0_136] : memref<144x16xbf16, #tpu.memory_space<vmem>>, vector<144x16xbf16>
    %cst_137 = arith.constant dense<0.000000e+00> : vector<256x16xf32>
    %105 = tpu.matmul %103, %104, %cst_137 {dimension_numbers = #tpu.dot_dimension_numbers<[1], [0], [0], [1], [0, 0, 1, 1], [], []>} : vector<256x144xbf16>, vector<144x16xbf16>, vector<256x16xf32> -> vector<256x16xf32>
    %c0_138 = arith.constant 0 : index
    %c0_139 = arith.constant 0 : index
    %106 = vector.load %arg9[%c0_138, %c0_139] : memref<1x16xf32, #tpu.memory_space<vmem>>, vector<1x16xf32>
    %107 = vector.broadcast %106 : vector<1x16xf32> to vector<256x16xf32>
    %108 = arith.mulf %105, %107 : vector<256x16xf32>
    %c0_140 = arith.constant 0 : index
    %c0_141 = arith.constant 0 : index
    %109 = vector.load %arg10[%c0_140, %c0_141] : memref<1x16xf32, #tpu.memory_space<vmem>>, vector<1x16xf32>
    %110 = vector.broadcast %109 : vector<1x16xf32> to vector<256x16xf32>
    %111 = arith.addf %108, %110 : vector<256x16xf32>
    %c1_142 = arith.constant 1 : index
    %c1_143 = arith.constant 1 : index
    %c0_144 = arith.constant 0 : index
    %112 = vector.load %arg12[%c1_142, %c1_143, %c0_144] : memref<18x18x16xbf16, #tpu.memory_space<vmem>>, vector<16x16x16xbf16>
    %113 = vector.shape_cast %112 : vector<16x16x16xbf16> to vector<256x16xbf16>
    %114 = arith.extf %113 : vector<256x16xbf16> to vector<256x16xf32>
    %115 = arith.addf %111, %114 : vector<256x16xf32>
    %cst_145 = arith.constant 0.000000e+00 : f32
    %116 = vector.broadcast %cst_145 : f32 to vector<256x16xf32>
    %117 = arith.maximumf %115, %116 : vector<256x16xf32>
    %cst_146 = arith.constant dense<0.000000e+00> : vector<16xf32>
    %118 = vector.multi_reduction <add>, %117, %cst_146 [0] : vector<256x16xf32> to vector<16xf32>
    %119 = vector.shape_cast %118 : vector<16xf32> to vector<1x16xf32>
    %cst_147 = arith.constant 3.906250e-03 : f32
    %120 = vector.broadcast %cst_147 : f32 to vector<1x16xf32>
    %121 = arith.mulf %119, %120 : vector<1x16xf32>
    %c0_148 = arith.constant 0 : index
    %c0_149 = arith.constant 0 : index
    %c0_150 = arith.constant 0 : index
    %122 = vector.load %arg11[%c0_148, %c0_149, %c0_150] : memref<1x1x16xf32, #tpu.memory_space<vmem>>, vector<1x1x16xf32>
    %123 = vector.shape_cast %122 : vector<1x1x16xf32> to vector<1x16xf32>
    %124 = vector.shape_cast %121 : vector<1x16xf32> to vector<1x1x16xf32>
    tpu.vector_store %arg11[%c0_148, %c0_149, %c0_150], %124 {strides = array<i32>} : memref<1x1x16xf32, #tpu.memory_space<vmem>>, vector<1x1x16xf32>,
    return
  }
  func.func @transform_0(%arg0: i32) -> (i32, i32, i32, i32) {
    %c0_i32 = arith.constant 0 : i32
    %c0_i32_0 = arith.constant 0 : i32
    %c0_i32_1 = arith.constant 0 : i32
    %c0_i32_2 = arith.constant 0 : i32
    return %arg0, %c0_i32, %c0_i32_0, %c0_i32_1 : i32, i32, i32, i32
  }
  func.func @transform_1(%arg0: i32) -> (i32, i32) {
    %c0_i32 = arith.constant 0 : i32
    %c0_i32_0 = arith.constant 0 : i32
    %c0_i32_1 = arith.constant 0 : i32
    return %c0_i32, %c0_i32_0 : i32, i32
  }
  func.func @transform_2(%arg0: i32) -> (i32, i32) {
    %c0_i32 = arith.constant 0 : i32
    %c0_i32_0 = arith.constant 0 : i32
    %c0_i32_1 = arith.constant 0 : i32
    return %c0_i32, %c0_i32_0 : i32, i32
  }
  func.func @transform_3(%arg0: i32) -> (i32, i32) {
    %c0_i32 = arith.constant 0 : i32
    %c0_i32_0 = arith.constant 0 : i32
    %c0_i32_1 = arith.constant 0 : i32
    return %c0_i32, %c0_i32_0 : i32, i32
  }
  func.func @transform_4(%arg0: i32) -> (i32, i32) {
    %c0_i32 = arith.constant 0 : i32
    %c0_i32_0 = arith.constant 0 : i32
    %c0_i32_1 = arith.constant 0 : i32
    return %c0_i32, %c0_i32_0 : i32, i32
  }
  func.func @transform_5(%arg0: i32) -> (i32, i32) {
    %c0_i32 = arith.constant 0 : i32
    %c0_i32_0 = arith.constant 0 : i32
    %c0_i32_1 = arith.constant 0 : i32
    return %c0_i32, %c0_i32_0 : i32, i32
  }
  func.func @transform_6(%arg0: i32) -> (i32, i32) {
    %c0_i32 = arith.constant 0 : i32
    %c0_i32_0 = arith.constant 0 : i32
    %c0_i32_1 = arith.constant 0 : i32
    return %c0_i32, %c0_i32_0 : i32, i32
  }
  func.func @transform_7(%arg0: i32) -> (i32, i32) {
    %c0_i32 = arith.constant 0 : i32
    %c0_i32_0 = arith.constant 0 : i32
    %c0_i32_1 = arith.constant 0 : i32
    return %c0_i32, %c0_i32_0 : i32, i32
  }
  func.func @transform_8(%arg0: i32) -> (i32, i32) {
    %c0_i32 = arith.constant 0 : i32
    %c0_i32_0 = arith.constant 0 : i32
    %c0_i32_1 = arith.constant 0 : i32
    return %c0_i32, %c0_i32_0 : i32, i32
  }
  func.func @transform_9(%arg0: i32) -> (i32, i32) {
    %c0_i32 = arith.constant 0 : i32
    %c0_i32_0 = arith.constant 0 : i32
    %c0_i32_1 = arith.constant 0 : i32
    return %c0_i32, %c0_i32_0 : i32, i32
  }
  func.func @transform_10(%arg0: i32) -> (i32, i32, i32) {
    %c0_i32 = arith.constant 0 : i32
    %c0_i32_0 = arith.constant 0 : i32
    %c0_i32_1 = arith.constant 0 : i32
    return %arg0, %c0_i32, %c0_i32_0 : i32, i32, i32
  }
}

</mosaic_0001>

<bundles_post_ra>
// kernel: extractor_forward.1
= control target key start
LH: loop header
LB: loop body
LE: loop exit
PB: predicated region body
PF: predicated region fallthrough
CT: control target
= control target key end

     0   :  { %15 = vsyncpa [#allocation5], 0  ;;  %s19614_s0 = inlined_call_operand.vmem [shape: bf16[2,18,18,4], index: 0, kind: input, shape index: {}]   ;;  %s19615_s1 = inlined_call_operand.vmem [shape: bf16[36,16], index: 1, kind: input, shape index: {}]   ;;  %s19616_s2 = inlined_call_operand.vmem [shape: f32[1,16], index: 2, kind: input, shape index: {}]   ;;  %s19617_s3 = inlined_call_operand.vmem [shape: f32[1,16], index: 3, kind: input, shape index: {}]   ;;  %s19618_s4 = inlined_call_operand.vmem [shape: bf16[144,16], index: 4, kind: input, shape index: {}]   ;;  %s19619_s5 = inlined_call_operand.vmem [shape: f32[1,16], index: 5, kind: input, shape index: {}]   ;;  %s19620_s6 = inlined_call_operand.vmem [shape: f32[1,16], index: 6, kind: input, shape index: {}]   ;;  %s19621_s7 = inlined_call_operand.vmem [shape: bf16[144,16], index: 7, kind: input, shape index: {}]   ;;  %s19622_s8 = inlined_call_operand.vmem [shape: f32[1,16], index: 8, kind: input, shape index: {}]   ;;  %s19623_s9 = inlined_call_operand.vmem [shape: f32[1,16], index: 9, kind: input, shape index: {}]   ;;  %s19624_s10 = inlined_call_operand.hbm [shape: f32[2,1,16], index: 10, kind: output, shape index: {}]  }
   0x1   :  { %17 = vsyncpa [#allocation5 + $0x1], 0  ;;  %s13280_s13 = smov 0   ;;  %s13282_s14 = smov 0  }
   0x2   :  { %s13284_s15 = smov 0   ;;  %s13286_s16 = smov 0  }
   0x3 LB: > { %s13301_s17 = sadd.s32 4294967295, %s13208_s16   ;;  %s11833_s18 = sadd.s32 4294967294, %s13208_s16   ;;  %s13208_s16 = sphi %s13286_s16, %s20043_s16   ;;  %s13204_s15 = sphi %s13284_s15, %s20042_s15   ;;  %s13200_s14 = sphi %s13282_s14, %s20041_s14   ;;  %s13196_s13 = sphi %s13280_s13, %s20040_s13  }
   0x4   : > { %s13305_s19 = sadd.s32 1, %s13208_s16   ;;  %s245_s20 = sadd.s32 1, %s13204_s15 }
   0x5   : > { %s242_s21 = ssub.s32 %s13208_s16, %s13305_s19  ;;  %p255_p0 = scmp.ne.s32.totalorder %s13204_s15, %s13200_s14 }
   0x6   : > { %p243_p1 = scmp.eq.s32.totalorder %s242_s21, 0  ;;  %p256_p2 = scmp.eq.s32.totalorder %s13301_s17, 1 }
   0x7   : > { %p261_p3 = scmp.ne.s32.totalorder %s13200_s14, %s13196_s13  ;;  %p262_p4 = scmp.eq.s32.totalorder %s11833_s18, 1 }
   0x8   : > { %s13316_s22 = scalar_select %p243_p1, %s13204_s15, %s245_s20  }
   0x9   : > { %p13318_p5 = por %p256_p2, %p255_p0  ;;  %p13322_p6 = por %p262_p4, %p261_p3 }
   0xa   : > { %p11836_p7 = scmp.ge.s32.totalorder %s13208_s16, 1  ;;  %p315_p8 = scmp.lt.s32.totalorder %s13208_s16, 3 }
   0xc   : > { %p316_p9 = pnand %p11836_p7, %p315_p8 }
   0xe   : > { %319 = sbr.rel (%p316_p9) target bundleno = 1773 (0x6ed), region = 60 }
  0x15   : > { %p352_p10 = scmp.lt.s32.totalorder %s13301_s17, 1  ;;  %vm857_vm0 = vcmask 1042432   ;;  %vm858_vm1 = vcmask 1046532   ;;  %s13210_s30 = smov 12   ;;  %vm406_vm3 = vsmask.f32 3328 }
  0x16   : > { %vm13357_vm2 = vmor %vm857_vm0, %vm858_vm1  ;;  %vm407_vm4 = vsmask.f32 7440  ;;  %s13211_s11 = smov 20   ;;  %s13212_s12 = smov 8   ;;  %vm2926_vm6 = vcmask 31744   ;;  %vm2975_vm7 = vcmask 64512  }
  0x17   : > { %s353_s25 = scalar_select %p352_p10, %s13301_s17, 1  ;;  %vm13401_vm5 = vmor %vm406_vm3, %vm407_vm4  ;;  %vm3008_vm8 = vcmask 97280   ;;  %vm3041_vm9 = vcmask 130048   ;;  %vm3074_vm10 = vcmask 162816   ;;  %vm3107_vm11 = vcmask 195584  }
  0x18   : > { %s13213_s18 = smov 4   ;;  %s13214_s20 = smov 16   ;;  %vm19627_vm12 = vcmask 228352   ;;  %vm3259_vm13 = vcmask 1041408   ;;  %vm19629_vm14 = vcmask 261120   ;;  %vm19628_vm15 = vcmask 293888  }
  0x19   : > { %s12813_s26 = smul.u32 216, %s353_s25  ;;  %s13215_s21 = smov 24   ;;  %vm3550_vm0 = vcmask 125952   ;;  %vm19626_vm1 = vcmask 122880   ;;  %vm19625_vm3 = vsmask.f32 256 }
  0x1a   : > { %s13216_s25 = smov 28   ;;  %s13217_s28 = smov 32   ;;  %vm3611_vm4 = vsmask.f32 7938 }
  0x1b   : > { %s13333_s29 = scalar_lea.vmem %s19614_s0, %s12813_s26  ;;  %s13221_s27 = smov 80  }
  0x1c   : > { %v11856_v0 = vld [vmem:[%s13333_s29 + $0x18] sm:$0xf]  ;;  %v13337_v1 = vld [vmem:[%s13333_s29 + $0x1c] sm:$0xf]  ;;  %v11854_v2 = vld [vmem:[%s13333_s29 + $0xc] sm:$0xf] }
  0x1d   : > { %v1055_v3 = vshll.u32 %v13337_v1, 16  ;;  %v1059_v4 = vshrl.u32 %v13337_v1, 16  ;;  %v12063_v5 = vcombine.low %v11856_v0, %v13337_v1  ;;  %v1046_v6 = vshrl.u32 %v11856_v0, 16  ;;  %v13344_v7 = vld [vmem:[%s13333_s29 + $0x10] sm:$0xf]  ;;  %s350_s26 = sand.u32 1, %s13200_s14  }
  0x1e   : > { %v1049_v8 = vshll.u32 %v11856_v0, 16  ;;  %v1031_v9 = vshll.u32 %v13344_v7, 16  ;;  %v1035_v10 = vshrl.u32 %v13344_v7, 16  ;;  %v12062_v11 = vcombine.low %v11854_v2, %v13344_v7  ;;  %v13350_v12 = vld [vmem:[%s13333_s29 + $0x14] sm:$0x1] }
  0x1f   : > { %v13352_v13 = vrot.slane %v1059_v4, 4  ;;  %2480 = vrot.lane.b32.xlu1 %v12063_v5, %s13210_s30  ;;  %v1048_v14 = vrot.slane %v1046_v6, 4  ;;  %v1022_v15 = vshrl.u32 %v11854_v2, 16  ;;  %v1025_v16 = vshll.u32 %v11854_v2, 16  ;;  %v11902_v18 = vld [vmem:[%s13333_s29 + $0xc] sm:$0xe] }
  0x20   : > { %v1051_v19 = vrot.slane %v1049_v8, 5  ;;  %v13362_v20 = vrot.slane %v1035_v10, 4  ;;  %2478 = vrot.lane.b32.xlu0 %v12062_v11, %s13210_s30  ;;  %v11918_v21 = vrot.slane %v11902_v18, 9  ;;  %v1471_v22 = vrot.slane %v13344_v7, 5  ;;  %v359_v23 = vld [vmem:[%s13333_s29 + $0x4] sm:$0xf] }
  0x21   : > { %v1024_v24 = vrot.slane %v1022_v15, 4  ;;  %v1027_v25 = vrot.slane %v1025_v16, 5  ;;  %v1474_v26 = vrot.slane %v13350_v12, 5  ;;  %v390_v27 = vld [vmem:[%s13333_s29 + $0x8] sm:$0x1]  ;;  %v862_v28 = vrot.slane %v359_v23, 5 }
  0x22   : > { %v1052_v29 = vor.u32 %v1051_v19, %v1048_v14  ;;  %v1472_v30 = vsel %vm13357_vm2, %v11918_v21, %v1471_v22  ;;  %v1473_v31 = vrot.slane %v1471_v22, 4  ;;  %v793_v32 = vld [vmem:[%s13333_s29] sm:$0xe]  ;;  %v865_v33 = vrot.slane %v390_v27, 5  ;;  %v361_v34 = vld [vmem:[%s13333_s29 + $0x10] sm:$0xf] }
  0x23   : > { %v1028_v35 = vor.u32 %v1027_v25, %v1024_v24  ;;  %v11838_v36 = vrot.slane %v793_v32, 9  ;;  %v864_v37 = vrot.slane %v862_v28, 4  ;;  %v391_v38 = vld [vmem:[%s13333_s29 + $0x14] sm:$0x1]  ;;  %v794_v39 = vld [vmem:[%s13333_s29 + $0xc] sm:$0xe] }
  0x24   : > { %v13375_v40 = vrot.slane %v1052_v29, 4  ;;  %v1475_v41 = vsel %vm13357_vm2, %v1473_v31, %v1474_v26  ;;  %v11839_v42 = vrot.slane %v794_v39, 9  ;;  %v869_v43 = vrot.slane %v361_v34, 5  ;;  %v358_v44 = vld [vmem:[%s13333_s29] sm:$0xf] }
  0x25   : > { %v13380_v45 = vrot.slane %v1028_v35, 4  ;;  %v12094_v46 = vcombine.low %v1472_v30, %v1475_v41  ;;  %v863_v47 = vsel %vm13357_vm2, %v11838_v36, %v862_v28  ;;  %v866_v48 = vsel %vm13357_vm2, %v864_v37, %v865_v33  ;;  %v11903_v49 = vld [vmem:[%s13333_s29 + $0x18] sm:$0xe]  ;;  %v11887_v58 = vld [vmem:[%s13333_s29 + $0x20] sm:$0x1] }
  0x26   : > { %v12046_v50 = vcombine.low %v863_v47, %v866_v48  ;;  %v870_v51 = vsel %vm13357_vm2, %v11839_v42, %v869_v43  ;;  %v871_v52 = vrot.slane %v869_v43, 4  ;;  %v872_v53 = vrot.slane %v391_v38, 5  ;;  %v360_v63 = vld [vmem:[%s13333_s29 + $0xc] sm:$0xf]  ;;  %v11936_v42 = vld [vmem:[%s13333_s29 + $0x24] sm:$0xf] }
  0x27   : > { %2638 = vrot.lane.b32.xlu0 %v12094_v46, %s13211_s11  ;;  %v410_v54 = vshrl.u32 %v358_v44, 16  ;;  %v413_v55 = vshll.u32 %v358_v44, 16  ;;  %v419_v56 = vshll.u32 %v359_v23, 16  ;;  %v423_v57 = vshrl.u32 %v359_v23, 16 }
  0x28   : > { %2382 = vrot.lane.b32.xlu1 %v12046_v50, %s13212_s12  ;;  %v873_v59 = vsel %vm13357_vm2, %v871_v52, %v872_v53  ;;  %v429_v60 = vshll.u32 %v390_v27, 16  ;;  %v11919_v61 = vrot.slane %v11903_v49, 9  ;;  %v1478_v62 = vrot.slane %v13337_v1, 5 }
  0x29   : > { %v12047_v0 = vcombine.low %v870_v51, %v873_v59  ;;  %v412_v2 = vrot.slane %v410_v54, 4  ;;  %v415_v4 = vrot.slane %v413_v55, 5  ;;  %v421_v5 = vrot.slane %v419_v56, 5  ;;  %v11934_v51 = vld [vmem:[%s13333_s29 + $0x18] sm:$0xf] }
  0x2a   : > { %v425_v6 = vrot.slane %v423_v57, 4  ;;  %v431_v8 = vrot.slane %v429_v60, 5  ;;  %v1479_v10 = vsel %vm13357_vm2, %v11919_v61, %v1478_v62  ;;  %v1480_v11 = vrot.slane %v1478_v62, 4  ;;  %v11967_v62 = vld [vmem:[%s13333_s29 + $0x2c] sm:$0x1] }
  0x2b   : > { %v416_v14 = vor.u32 %v415_v4, %v412_v2  ;;  %v1481_v15 = vrot.slane %v11887_v58, 5  ;;  %v434_v16 = vshrl.u32 %v360_v63, 16  ;;  %v437_v18 = vshll.u32 %v360_v63, 16 }
  0x2c   : > { %2384 = vrot.lane.b32.xlu1 %v12047_v0, %s13212_s12  ;;  %v426_v21 = vor.u32 %v425_v6, %v421_v5  ;;  %v443_v22 = vshll.u32 %v361_v34, 16  ;;  %v447_v23 = vshrl.u32 %v361_v34, 16  ;;  %v453_v24 = vshll.u32 %v391_v38, 16 }
  0x2d   : > { %v417_v25 = vrot.slane %v416_v14, 4  ;;  %v1482_v26 = vsel %vm13357_vm2, %v1480_v11, %v1481_v15  ;;  %v436_v27 = vrot.slane %v434_v16, 4  ;;  %v439_v28 = vrot.slane %v437_v18, 5  ;;  %v11983_v14 = vld [vmem:[%s13333_s29 + $0x24] sm:$0xe] }
  0x2e   : > { %v427_v29 = vrot.slane %v426_v21, 4  ;;  %v12095_v30 = vcombine.low %v1479_v10, %v1482_v26  ;;  %v445_v31 = vrot.slane %v443_v22, 5  ;;  %v449_v32 = vrot.slane %v447_v23, 4  ;;  %v11982_v26 = vld [vmem:[%s13333_s29 + $0x18] sm:$0xe] }
  0x2f   : > { %v422_v33 = vsel %vm13401_vm5, %v417_v25, %v421_v5  ;;  %v440_v35 = vor.u32 %v439_v28, %v436_v27  ;;  %v455_v36 = vrot.slane %v453_v24, 5  ;;  %v1057_v34 = vrot.slane %v1055_v3, 5  ;;  %v13422_v3 = vld [vmem:[%s13333_s29 + $0x28] sm:$0xf]  ;;  %v11966_v5 = vld [vmem:[%s13333_s29 + $0x20] sm:$0x1] }
  0x30   : > { %v432_v37 = vsel %vm13401_vm5, %v427_v29, %v431_v8  ;;  %2640 = vrot.lane.b32.xlu1 %v12095_v30, %s13211_s11  ;;  %v450_v38 = vor.u32 %v449_v32, %v445_v31  ;;  %v1065_v39 = vshll.u32 %v11887_v58, 16  ;;  %v1033_v41 = vrot.slane %v1031_v9, 5 }
  0x31   : > { %v12030_v43 = vcombine.low %v422_v33, %v432_v37  ;;  %v441_v44 = vrot.slane %v440_v35, 4  ;;  %v1058_v46 = vsel %vm13401_vm5, %v13375_v40, %v1057_v34  ;;  %v1062_v1 = vor.u32 %v13352_v13, %v1057_v34 }
  0x32   : > { %v451_v47 = vrot.slane %v450_v38, 4  ;;  %v1067_v48 = vrot.slane %v1065_v39, 5  ;;  %v1034_v7 = vsel %vm13401_vm5, %v13380_v45, %v1033_v41  ;;  %v1038_v9 = vor.u32 %v13362_v20, %v1033_v41  ;;  %v11935_v20 = vld [vmem:[%s13333_s29 + $0x1c] sm:$0xf] }
  0x33   : > { %2302 = vrot.lane.b32.xlu0 %v12030_v43, %s13213_s18  ;;  %v446_v49 = vsel %vm13401_vm5, %v441_v44, %v445_v31  ;;  %v1063_v40 = vrot.slane %v1062_v1, 4  ;;  %v1041_v13 = vshll.u32 %v13350_v12, 16  ;;  %v1655_v50 = vshrl.u32 %v11936_v42, 16 }
  0x34   : > { %v456_v52 = vsel %vm13401_vm5, %v451_v47, %v455_v36  ;;  %v1039_v53 = vrot.slane %v1038_v9, 4  ;;  %v1658_v54 = vshll.u32 %v11936_v42, 16  ;;  %v1668_v45 = vshrl.u32 %v13422_v3, 16  ;;  %v364_v36 = vld [vmem:[%s13333_s29 + $0x24] sm:$0xf] }
  0x35   : > { %v12031_v55 = vcombine.low %v446_v49, %v456_v52  ;;  %v1068_v56 = vsel %vm13401_vm5, %v1063_v40, %v1067_v48  ;;  %v1043_v57 = vrot.slane %v1041_v13, 5  ;;  %v1657_v58 = vrot.slane %v1655_v50, 4  ;;  %v365_v47 = vld [vmem:[%s13333_s29 + $0x28] sm:$0xf]  ;;  %v13468_v13 = vld [vmem:[%s13333_s29 + $0x2c] sm:$0x1] }
  0x36   : > { %v12079_v59 = vcombine.low %v1058_v46, %v1068_v56  ;;  %v1660_v12 = vrot.slane %v1658_v54, 5  ;;  %v12111_v60 = vcombine.low %v11936_v42, %v13422_v3  ;;  %v1631_v61 = vshrl.u32 %v11934_v51, 16  ;;  %v362_v50 = vld [vmem:[%s13333_s29 + $0x18] sm:$0xf] }
  0x37   : > { %2304 = vrot.lane.b32.xlu0 %v12031_v55, %s13213_s18  ;;  %v1044_v63 = vsel %vm13401_vm5, %v1039_v53, %v1043_v57  ;;  %v1634_v0 = vshll.u32 %v11934_v51, 16  ;;  %v1644_v2 = vshrl.u32 %v11935_v20, 16  ;;  %v12110_v4 = vcombine.low %v11934_v51, %v11935_v20 }
  0x38   : > { %2560 = vrot.lane.b32.xlu1 %v12079_v59, %s13214_s20  ;;  %v12078_v6 = vcombine.low %v1034_v7, %v1044_v63  ;;  %v1633_v8 = vrot.slane %v1631_v61, 4  ;;  %v1661_v10 = vor.u32 %v1660_v12, %v1657_v58  ;;  %v1664_v11 = vshll.u32 %v13422_v3, 16 }
  0x39   : > { %v1636_v15 = vrot.slane %v1634_v0, 5  ;;  %v1670_v16 = vrot.slane %v1668_v45, 4  ;;  %v1674_v18 = vshll.u32 %v11967_v62, 16  ;;  %v1640_v21 = vshll.u32 %v11935_v20, 16  ;;  %v13474_v45 = vld [vmem:[%s13333_s29 + $0x1c] sm:$0xf] }
  0x3a   : > { %v1662_v22 = vrot.slane %v1661_v10, 4  ;;  %v1666_v23 = vrot.slane %v1664_v11, 5  ;;  %v1646_v24 = vrot.slane %v1644_v2, 4  ;;  %v1650_v25 = vshll.u32 %v11966_v5, 16 }
  0x3b   : > { %2558 = vrot.lane.b32.xlu0 %v12078_v6, %s13214_s20  ;;  %v1676_v27 = vrot.slane %v1674_v18, 5  ;;  %v1637_v28 = vor.u32 %v1636_v15, %v1633_v8  ;;  %v1642_v29 = vrot.slane %v1640_v21, 5  ;;  %v11999_v30 = vrot.slane %v11983_v14, 9  ;;  %v12885_v18 = vld [vmem:[%s19615_s1] sm:$0xff]  }
  0x3c   : > { %2736 = vrot.lane.b32.xlu1 %v12111_v60, %s13215_s21  ;;  %v1667_v31 = vsel %vm13401_vm5, %v1662_v22, %v1666_v23  ;;  %v1671_v32 = vor.u32 %v1670_v16, %v1666_v23  ;;  %v1652_v33 = vrot.slane %v1650_v25, 5  ;;  %v2087_v35 = vrot.slane %v13422_v3, 5  ;;  %v13481_v60 = vld [vmem:[%s13333_s29 + $0x20] sm:$0x1]  ;;  %v795_v25 = vld [vmem:[%s13333_s29 + $0x18] sm:$0xe]  ;;  %12767 = vmatprep.subr.bf16.mxu0 %v12885_v18 }
  0x3d   : > { %v1638_v34 = vrot.slane %v1637_v28, 4  ;;  %v1647_v37 = vor.u32 %v1646_v24, %v1642_v29  ;;  %v2090_v38 = vrot.slane %v11967_v62, 5  ;;  %v11998_v39 = vrot.slane %v11982_v26, 9  ;;  %12768 = vmatpush3.bf16.msra.mxu0 %v12885_v18  ;;  %12805 = vmatprep.subr.bf16.mxu1 %v12885_v18 }
  0x3e   : > { %v1672_v41 = vrot.slane %v1671_v32, 4  ;;  %v2088_v42 = vsel %vm13357_vm2, %v11999_v30, %v2087_v35  ;;  %v2089_v43 = vrot.slane %v2087_v35, 4  ;;  %v2080_v44 = vrot.slane %v11935_v20, 5  ;;  %12808 = vmatpush3.bf16.msra.mxu1 %v12885_v18  ;;  %v11904_v18 = vld [vmem:[%s13333_s29 + $0x24] sm:$0xe] }
  0x3f   : > { %2734 = vrot.lane.b32.xlu0 %v12110_v4, %s13215_s21  ;;  %v1643_v46 = vsel %vm13401_vm5, %v1638_v34, %v1642_v29  ;;  %v1648_v1 = vrot.slane %v1647_v37, 4  ;;  %v2083_v3 = vrot.slane %v11966_v5, 5  ;;  %v482_v48 = vshrl.u32 %v364_v36, 16  ;;  %v796_v4 = vld [vmem:[%s13333_s29 + $0x24] sm:$0xe] }
  0x40   : > { %v1677_v7 = vsel %vm13401_vm5, %v1672_v41, %v1676_v27  ;;  %v2091_v9 = vsel %vm13357_vm2, %v2089_v43, %v2090_v38  ;;  %v2081_v49 = vsel %vm13357_vm2, %v11998_v39, %v2080_v44  ;;  %v2082_v40 = vrot.slane %v2080_v44, 4  ;;  %v13501_v38 = vld [vmem:[%s13333_s29 + $0x30] sm:$0xf]  ;;  %v12888_v39 = vld [vmem:[%s19615_s1 + $0x8] sm:$0xff]  }
  0x41   : > { %v12127_v51 = vcombine.low %v1667_v31, %v1677_v7  ;;  %v1653_v52 = vsel %vm13401_vm5, %v1648_v1, %v1652_v33  ;;  %v12143_v53 = vcombine.low %v2088_v42, %v2091_v9  ;;  %v484_v54 = vrot.slane %v482_v48, 4  ;;  %v13513_v1 = vld [vmem:[%s13333_s29 + $0x24] sm:$0xf]  ;;  %12769 = vmatprep.subr.bf16.mxu0 %v12888_v39  ;;  %12806 = vmatprep.subr.bf16.mxu1 %v12888_v39 }
  0x42   : > { %v12126_v20 = vcombine.low %v1643_v46, %v1653_v52  ;;  %v2084_v55 = vsel %vm13357_vm2, %v2082_v40, %v2083_v3  ;;  %v485_v56 = vshll.u32 %v364_v36, 16  ;;  %v491_v57 = vshll.u32 %v365_v47, 16  ;;  %v11861_v46 = vld [vmem:[%s13333_s29 + $0x34] sm:$0xf]  ;;  %12770 = vmatpush3.bf16.msra.mxu0 %v12888_v39  ;;  %12809 = vmatpush3.bf16.msra.mxu1 %v12888_v39 }
  0x43   : > { %2816 = vrot.lane.b32.xlu1 %v12127_v51, %s13216_s25  ;;  %v12142_v58 = vcombine.low %v2081_v49, %v2084_v55  ;;  %v495_v59 = vshrl.u32 %v365_v47, 16  ;;  %v501_v12 = vshll.u32 %v13468_v13, 16  ;;  %v458_v61 = vshrl.u32 %v362_v50, 16 }
  0x44   : > { %2814 = vrot.lane.b32.xlu0 %v12126_v20, %s13216_s25  ;;  %v487_v62 = vrot.slane %v485_v56, 5  ;;  %v493_v63 = vrot.slane %v491_v57, 5  ;;  %v461_v0 = vshll.u32 %v362_v50, 16  ;;  %v467_v2 = vshll.u32 %v13474_v45, 16  ;;  %v13524_v50 = vld [vmem:[%s13333_s29 + $0x28] sm:$0xf] }
  0x45   : > { %v497_v5 = vrot.slane %v495_v59, 4  ;;  %v503_v6 = vrot.slane %v501_v12, 5  ;;  %v460_v8 = vrot.slane %v458_v61, 4  ;;  %v471_v10 = vshrl.u32 %v13474_v45, 16 }
  0x46   : > { %v488_v11 = vor.u32 %v487_v62, %v484_v54  ;;  %v463_v14 = vrot.slane %v461_v0, 5  ;;  %v469_v15 = vrot.slane %v467_v2, 5  ;;  %v477_v16 = vshll.u32 %v13481_v60, 16  ;;  %v11905_v62 = vld [vmem:[%s13333_s29 + $0x30] sm:$0xe] }
  0x47   : > { %2896 = vrot.lane.b32.xlu1 %v12143_v53, %s13217_s28  ;;  %v498_v21 = vor.u32 %v497_v5, %v493_v63  ;;  %v473_v22 = vrot.slane %v471_v10, 4  ;;  %v11841_v23 = vrot.slane %v796_v4, 9  ;;  %v883_v24 = vrot.slane %v365_v47, 5 }
  0x48   : > { %2894 = vrot.lane.b32.xlu0 %v12142_v58, %s13217_s28  ;;  %v489_v26 = vrot.slane %v488_v11, 4  ;;  %v464_v27 = vor.u32 %v463_v14, %v460_v8  ;;  %v479_v28 = vrot.slane %v477_v16, 5  ;;  %v886_v29 = vrot.slane %v13468_v13, 5  ;;  %v11888_v58 = vld [vmem:[%s13333_s29 + $0x2c] sm:$0x1] }
  0x49   : > { %v499_v30 = vrot.slane %v498_v21, 4  ;;  %v474_v31 = vor.u32 %v473_v22, %v469_v15  ;;  %v884_v32 = vsel %vm13357_vm2, %v11841_v23, %v883_v24  ;;  %v885_v33 = vrot.slane %v883_v24, 4 }
  0x4a   : > { %v494_v35 = vsel %vm13401_vm5, %v489_v26, %v493_v63  ;;  %v465_v36 = vrot.slane %v464_v27, 4  ;;  %v11840_v34 = vrot.slane %v795_v25, 9  ;;  %v876_v37 = vrot.slane %v13474_v45, 5  ;;  %v11889_v45 = vld [vmem:[%s13333_s29 + $0x38] sm:$0x1] }
  0x4b   : > { %v504_v41 = vsel %vm13401_vm5, %v499_v30, %v503_v6  ;;  %v475_v42 = vrot.slane %v474_v31, 4  ;;  %v887_v43 = vsel %vm13357_vm2, %v885_v33, %v886_v29  ;;  %v879_v44 = vrot.slane %v13481_v60, 5  ;;  %v13546_v29 = vld [vmem:[%s13333_s29 + $0x3c] sm:$0xf] }
  0x4c   : > { %v12033_v3 = vcombine.low %v494_v35, %v504_v41  ;;  %v470_v47 = vsel %vm13401_vm5, %v465_v36, %v469_v15  ;;  %v12049_v48 = vcombine.low %v884_v32, %v887_v43  ;;  %v877_v7 = vsel %vm13357_vm2, %v11840_v34, %v876_v37  ;;  %v11941_v41 = vld [vmem:[%s13333_s29 + $0x40] sm:$0xf] }
  0x4d   : > { %v480_v9 = vsel %vm13401_vm5, %v475_v42, %v479_v28  ;;  %v878_v49 = vrot.slane %v876_v37, 4  ;;  %v1094_v40 = vshrl.u32 %v13501_v38, 16  ;;  %v1097_v13 = vshll.u32 %v13501_v38, 16 }
  0x4e   : > { %2308 = vrot.lane.b32.xlu1 %v12033_v3, %s13213_s18  ;;  %v12032_v51 = vcombine.low %v470_v47, %v480_v9  ;;  %v1107_v52 = vshrl.u32 %v11861_v46, 16  ;;  %v12065_v53 = vcombine.low %v13501_v38, %v11861_v46  ;;  %v1070_v54 = vshrl.u32 %v13513_v1, 16  ;;  %v11938_v47 = vld [vmem:[%s13333_s29 + $0x30] sm:$0xf] }
  0x4f   : > { %v880_v20 = vsel %vm13357_vm2, %v878_v49, %v879_v44  ;;  %v1096_v55 = vrot.slane %v1094_v40, 4  ;;  %v1099_v56 = vrot.slane %v1097_v13, 5  ;;  %v1073_v57 = vshll.u32 %v13513_v1, 16 }
  0x50   : > { %2306 = vrot.lane.b32.xlu0 %v12032_v51, %s13213_s18  ;;  %v12048_v59 = vcombine.low %v877_v7, %v880_v20  ;;  %v1072_v12 = vrot.slane %v1070_v54, 4  ;;  %v1083_v60 = vshrl.u32 %v13524_v50, 16  ;;  %v12064_v61 = vcombine.low %v13513_v1, %v13524_v50 }
  0x51   : > { %v1075_v63 = vrot.slane %v1073_v57, 5  ;;  %v1100_v0 = vor.u32 %v1099_v56, %v1096_v55  ;;  %v1103_v2 = vshll.u32 %v11861_v46, 16  ;;  %v1109_v4 = vrot.slane %v1107_v52, 4  ;;  %v11968_v56 = vld [vmem:[%s13333_s29 + $0x38] sm:$0x1] }
  0x52   : > { %2388 = vrot.lane.b32.xlu1 %v12049_v48, %s13212_s12  ;;  %v1113_v5 = vshll.u32 %v11889_v45, 16  ;;  %v1079_v6 = vshll.u32 %v13524_v50, 16  ;;  %v1085_v8 = vrot.slane %v1083_v60, 4  ;;  %v1089_v10 = vshll.u32 %v11888_v58, 16  ;;  %v11939_v48 = vld [vmem:[%s13333_s29 + $0x34] sm:$0xf] }
  0x53   : > { %v1101_v11 = vrot.slane %v1100_v0, 4  ;;  %v1105_v14 = vrot.slane %v1103_v2, 5  ;;  %v1076_v15 = vor.u32 %v1075_v63, %v1072_v12  ;;  %v11921_v16 = vrot.slane %v11905_v62, 9  ;;  %v11985_v60 = vld [vmem:[%s13333_s29 + $0x3c] sm:$0xe] }
  0x54   : > { %2386 = vrot.lane.b32.xlu0 %v12048_v59, %s13212_s12  ;;  %v1115_v21 = vrot.slane %v1113_v5, 5  ;;  %v1081_v22 = vrot.slane %v1079_v6, 5  ;;  %v1091_v23 = vrot.slane %v1089_v10, 5  ;;  %v1492_v24 = vrot.slane %v11861_v46, 5 }
  0x55   : > { %v1106_v25 = vsel %vm13401_vm5, %v1101_v11, %v1105_v14  ;;  %v1110_v26 = vor.u32 %v1109_v4, %v1105_v14  ;;  %v1077_v27 = vrot.slane %v1076_v15, 4  ;;  %v1495_v28 = vrot.slane %v11889_v45, 5 }
  0x56   : > { %2484 = vrot.lane.b32.xlu1 %v12065_v53, %s13210_s30  ;;  %v1086_v30 = vor.u32 %v1085_v8, %v1081_v22  ;;  %v1493_v31 = vsel %vm13357_vm2, %v11921_v16, %v1492_v24  ;;  %v1494_v32 = vrot.slane %v1492_v24, 4  ;;  %v11920_v33 = vrot.slane %v11904_v18, 9  ;;  %v11969_v53 = vld [vmem:[%s13333_s29 + $0x44] sm:$0x1]  ;;  %v11984_v8 = vld [vmem:[%s13333_s29 + $0x30] sm:$0xe] }
  0x57   : > { %v1111_v35 = vrot.slane %v1110_v26, 4  ;;  %v1082_v36 = vsel %vm13401_vm5, %v1077_v27, %v1081_v22  ;;  %v1485_v34 = vrot.slane %v13524_v50, 5  ;;  %v1488_v37 = vrot.slane %v11888_v58, 5 }
  0x58   : > { %2482 = vrot.lane.b32.xlu0 %v12064_v61, %s13210_s30  ;;  %v1087_v38 = vrot.slane %v1086_v30, 4  ;;  %v1496_v39 = vsel %vm13357_vm2, %v1494_v32, %v1495_v28  ;;  %v1703_v42 = vshrl.u32 %v13546_v29, 16  ;;  %v1706_v43 = vshll.u32 %v13546_v29, 16 }
  0x59   : > { %v1116_v44 = vsel %vm13401_vm5, %v1111_v35, %v1115_v21  ;;  %v12097_v46 = vcombine.low %v1493_v31, %v1496_v39  ;;  %v1486_v1 = vsel %vm13357_vm2, %v11920_v33, %v1485_v34  ;;  %v1487_v3 = vrot.slane %v1485_v34, 4 }
  0x5a   : > { %v12081_v7 = vcombine.low %v1106_v25, %v1116_v44  ;;  %v1092_v9 = vsel %vm13401_vm5, %v1087_v38, %v1091_v23  ;;  %v1705_v49 = vrot.slane %v1703_v42, 4  ;;  %v1708_v40 = vrot.slane %v1706_v43, 5  ;;  %v368_v23 = vld [vmem:[%s13333_s29 + $0x3c] sm:$0xf]  ;;  %v395_v42 = vld [vmem:[%s13333_s29 + $0x44] sm:$0x1] }
  0x5b   : > { %v12080_v13 = vcombine.low %v1082_v36, %v1092_v9  ;;  %v1489_v50 = vsel %vm13357_vm2, %v1487_v3, %v1488_v37  ;;  %v1716_v51 = vshrl.u32 %v11941_v41, 16  ;;  %v12113_v52 = vcombine.low %v13546_v29, %v11941_v41  ;;  %v369_v36 = vld [vmem:[%s13333_s29 + $0x40] sm:$0xf]  ;;  %v366_v43 = vld [vmem:[%s13333_s29 + $0x30] sm:$0xf] }
  0x5c   : > { %2564 = vrot.lane.b32.xlu1 %v12081_v7, %s13214_s20  ;;  %v12096_v54 = vcombine.low %v1486_v1, %v1489_v50  ;;  %v1679_v45 = vshrl.u32 %v11938_v47, 16  ;;  %v1682_v20 = vshll.u32 %v11938_v47, 16  ;;  %v1692_v55 = vshrl.u32 %v11939_v48, 16 }
  0x5d   : > { %2562 = vrot.lane.b32.xlu0 %v12080_v13, %s13214_s20  ;;  %v12112_v57 = vcombine.low %v11938_v47, %v11939_v48  ;;  %v1709_v58 = vor.u32 %v1708_v40, %v1705_v49  ;;  %v1712_v59 = vshll.u32 %v11941_v41, 16  ;;  %v1718_v12 = vrot.slane %v1716_v51, 4  ;;  %v367_v47 = vld [vmem:[%s13333_s29 + $0x34] sm:$0xf]  ;;  %v394_v51 = vld [vmem:[%s13333_s29 + $0x38] sm:$0x1] }
  0x5e   : > { %v1681_v61 = vrot.slane %v1679_v45, 4  ;;  %v1684_v62 = vrot.slane %v1682_v20, 5  ;;  %v1722_v63 = vshll.u32 %v11969_v53, 16  ;;  %v1688_v0 = vshll.u32 %v11939_v48, 16 }
  0x5f   : > { %v1710_v2 = vrot.slane %v1709_v58, 4  ;;  %v1714_v4 = vrot.slane %v1712_v59, 5  ;;  %v1694_v5 = vrot.slane %v1692_v55, 4  ;;  %v1698_v6 = vshll.u32 %v11968_v56, 16  ;;  %v798_v55 = vld [vmem:[%s13333_s29 + $0x3c] sm:$0xe] }
  0x60   : > { %2644 = vrot.lane.b32.xlu1 %v12097_v46, %s13211_s11  ;;  %v1724_v10 = vrot.slane %v1722_v63, 5  ;;  %v1685_v11 = vor.u32 %v1684_v62, %v1681_v61  ;;  %v1690_v14 = vrot.slane %v1688_v0, 5  ;;  %v12001_v15 = vrot.slane %v11985_v60, 9 }
  0x61   : > { %2642 = vrot.lane.b32.xlu0 %v12096_v54, %s13211_s11  ;;  %v1715_v16 = vsel %vm13401_vm5, %v1710_v2, %v1714_v4  ;;  %v1719_v18 = vor.u32 %v1718_v12, %v1714_v4  ;;  %v1700_v21 = vrot.slane %v1698_v6, 5  ;;  %v2101_v22 = vrot.slane %v11941_v41, 5 }
  0x62   : > { %v1686_v24 = vrot.slane %v1685_v11, 4  ;;  %v1695_v25 = vor.u32 %v1694_v5, %v1690_v14  ;;  %v2104_v26 = vrot.slane %v11969_v53, 5  ;;  %v12000_v27 = vrot.slane %v11984_v8, 9  ;;  %v797_v5 = vld [vmem:[%s13333_s29 + $0x30] sm:$0xe] }
  0x63   : > { %v1720_v28 = vrot.slane %v1719_v18, 4  ;;  %v2102_v29 = vsel %vm13357_vm2, %v12001_v15, %v2101_v22  ;;  %v2103_v30 = vrot.slane %v2101_v22, 4  ;;  %v2094_v31 = vrot.slane %v11939_v48, 5 }
  0x64   : > { %2740 = vrot.lane.b32.xlu1 %v12113_v52, %s13215_s21  ;;  %v1691_v32 = vsel %vm13401_vm5, %v1686_v24, %v1690_v14  ;;  %v1696_v33 = vrot.slane %v1695_v25, 4  ;;  %v2097_v35 = vrot.slane %v11968_v56, 5  ;;  %v530_v34 = vshrl.u32 %v368_v23, 16  ;;  %v11864_v25 = vld [vmem:[%s13333_s29 + $0x48] sm:$0xf] }
  0x65   : > { %2738 = vrot.lane.b32.xlu0 %v12112_v57, %s13215_s21  ;;  %v1725_v37 = vsel %vm13401_vm5, %v1720_v28, %v1724_v10  ;;  %v2105_v38 = vsel %vm13357_vm2, %v2103_v30, %v2104_v26  ;;  %v2095_v39 = vsel %vm13357_vm2, %v12000_v27, %v2094_v31  ;;  %v2096_v41 = vrot.slane %v2094_v31, 4  ;;  %v11865_v30 = vld [vmem:[%s13333_s29 + $0x4c] sm:$0xf]  ;;  %v11862_v31 = vld [vmem:[%s13333_s29 + $0x3c] sm:$0xf] }
  0x66   : > { %v12129_v44 = vcombine.low %v1715_v16, %v1725_v37  ;;  %v1701_v46 = vsel %vm13401_vm5, %v1696_v33, %v1700_v21  ;;  %v12145_v1 = vcombine.low %v2102_v29, %v2105_v38  ;;  %v532_v3 = vrot.slane %v530_v34, 4 }
  0x67   : > { %v12128_v48 = vcombine.low %v1691_v32, %v1701_v46  ;;  %v2098_v7 = vsel %vm13357_vm2, %v2096_v41, %v2097_v35  ;;  %v533_v9 = vshll.u32 %v368_v23, 16  ;;  %v539_v49 = vshll.u32 %v369_v36, 16  ;;  %v11863_v41 = vld [vmem:[%s13333_s29 + $0x40] sm:$0xf] }
  0x68   : > { %2820 = vrot.lane.b32.xlu1 %v12129_v44, %s13216_s25  ;;  %v12144_v40 = vcombine.low %v2095_v39, %v2098_v7  ;;  %v543_v13 = vshrl.u32 %v369_v36, 16  ;;  %v549_v50 = vshll.u32 %v395_v42, 16  ;;  %v506_v52 = vshrl.u32 %v366_v43, 16 }
  0x69   : > { %2818 = vrot.lane.b32.xlu0 %v12128_v48, %s13216_s25  ;;  %v535_v53 = vrot.slane %v533_v9, 5  ;;  %v541_v54 = vrot.slane %v539_v49, 5  ;;  %v509_v45 = vshll.u32 %v366_v43, 16  ;;  %v515_v20 = vshll.u32 %v367_v47, 16  ;;  %v11890_v9 = vld [vmem:[%s13333_s29 + $0x44] sm:$0x1] }
  0x6a   : > { %v545_v56 = vrot.slane %v543_v13, 4  ;;  %v551_v57 = vrot.slane %v549_v50, 5  ;;  %v508_v58 = vrot.slane %v506_v52, 4  ;;  %v519_v59 = vshrl.u32 %v367_v47, 16 }
  0x6b   : > { %v536_v12 = vor.u32 %v535_v53, %v532_v3  ;;  %v511_v60 = vrot.slane %v509_v45, 5  ;;  %v517_v61 = vrot.slane %v515_v20, 5  ;;  %v525_v62 = vshll.u32 %v394_v51, 16 }
  0x6c   : > { %2900 = vrot.lane.b32.xlu1 %v12145_v1, %s13217_s28  ;;  %v546_v63 = vor.u32 %v545_v56, %v541_v54  ;;  %v521_v0 = vrot.slane %v519_v59, 4  ;;  %v11843_v2 = vrot.slane %v798_v55, 9  ;;  %v897_v4 = vrot.slane %v369_v36, 5  ;;  %v11891_v1 = vld [vmem:[%s13333_s29 + $0x50] sm:$0x1] }
  0x6d   : > { %2898 = vrot.lane.b32.xlu0 %v12144_v40, %s13217_s28  ;;  %v537_v6 = vrot.slane %v536_v12, 4  ;;  %v512_v8 = vor.u32 %v511_v60, %v508_v58  ;;  %v527_v10 = vrot.slane %v525_v62, 5  ;;  %v900_v11 = vrot.slane %v395_v42, 5 }
  0x6e   : > { %v547_v14 = vrot.slane %v546_v63, 4  ;;  %v522_v15 = vor.u32 %v521_v0, %v517_v61  ;;  %v898_v16 = vsel %vm13357_vm2, %v11843_v2, %v897_v4  ;;  %v899_v18 = vrot.slane %v897_v4, 4 }
  0x6f   : > { %v542_v21 = vsel %vm13401_vm5, %v537_v6, %v541_v54  ;;  %v513_v22 = vrot.slane %v512_v8, 4  ;;  %v11842_v23 = vrot.slane %v797_v5, 9  ;;  %v890_v24 = vrot.slane %v367_v47, 5 }
  0x70   : > { %v552_v26 = vsel %vm13401_vm5, %v547_v14, %v551_v57  ;;  %v523_v27 = vrot.slane %v522_v15, 4  ;;  %v901_v28 = vsel %vm13357_vm2, %v899_v18, %v900_v11  ;;  %v893_v29 = vrot.slane %v394_v51, 5  ;;  %v11907_v51 = vld [vmem:[%s13333_s29 + $0x48] sm:$0xe] }
  0x71   : > { %v12035_v32 = vcombine.low %v542_v21, %v552_v26  ;;  %v518_v33 = vsel %vm13401_vm5, %v513_v22, %v517_v61  ;;  %v12051_v35 = vcombine.low %v898_v16, %v901_v28  ;;  %v891_v36 = vsel %vm13357_vm2, %v11842_v23, %v890_v24  ;;  %v11906_v61 = vld [vmem:[%s13333_s29 + $0x3c] sm:$0xe] }
  0x72   : > { %v528_v34 = vsel %vm13401_vm5, %v523_v27, %v527_v10  ;;  %v892_v37 = vrot.slane %v890_v24, 4  ;;  %v1142_v38 = vshrl.u32 %v11864_v25, 16  ;;  %v1145_v39 = vshll.u32 %v11864_v25, 16  ;;  %v13640_v10 = vld [vmem:[%s13333_s29 + $0x54] sm:$0xf] }
  0x73   : > { %2312 = vrot.lane.b32.xlu1 %v12035_v32, %s13213_s18  ;;  %v12034_v42 = vcombine.low %v518_v33, %v528_v34  ;;  %v1155_v43 = vshrl.u32 %v11865_v30, 16  ;;  %v12067_v44 = vcombine.low %v11864_v25, %v11865_v30  ;;  %v1118_v46 = vshrl.u32 %v11862_v31, 16  ;;  %v11945_v24 = vld [vmem:[%s13333_s29 + $0x58] sm:$0xf] }
  0x74   : > { %v894_v3 = vsel %vm13357_vm2, %v892_v37, %v893_v29  ;;  %v1144_v47 = vrot.slane %v1142_v38, 4  ;;  %v1147_v48 = vrot.slane %v1145_v39, 5  ;;  %v1121_v7 = vshll.u32 %v11862_v31, 16  ;;  %v11942_v29 = vld [vmem:[%s13333_s29 + $0x48] sm:$0xf] }
  0x75   : > { %2310 = vrot.lane.b32.xlu0 %v12034_v42, %s13213_s18  ;;  %v12050_v49 = vcombine.low %v891_v36, %v894_v3  ;;  %v1120_v40 = vrot.slane %v1118_v46, 4  ;;  %v1131_v13 = vshrl.u32 %v11863_v41, 16  ;;  %v12066_v50 = vcombine.low %v11862_v31, %v11863_v41  ;;  %v11971_v36 = vld [vmem:[%s13333_s29 + $0x5c] sm:$0x1] }
  0x76   : > { %v1123_v52 = vrot.slane %v1121_v7, 5  ;;  %v1148_v53 = vor.u32 %v1147_v48, %v1144_v47  ;;  %v1151_v54 = vshll.u32 %v11865_v30, 16  ;;  %v1157_v45 = vrot.slane %v1155_v43, 4 }
  0x77   : > { %2392 = vrot.lane.b32.xlu1 %v12051_v35, %s13212_s12  ;;  %v1161_v20 = vshll.u32 %v11891_v1, 16  ;;  %v1127_v55 = vshll.u32 %v11863_v41, 16  ;;  %v1133_v56 = vrot.slane %v1131_v13, 4  ;;  %v1137_v57 = vshll.u32 %v11890_v9, 16  ;;  %v11943_v35 = vld [vmem:[%s13333_s29 + $0x4c] sm:$0xf] }
  0x78   : > { %v1149_v58 = vrot.slane %v1148_v53, 4  ;;  %v1153_v59 = vrot.slane %v1151_v54, 5  ;;  %v1124_v12 = vor.u32 %v1123_v52, %v1120_v40  ;;  %v11923_v60 = vrot.slane %v11907_v51, 9 }
  0x79   : > { %2390 = vrot.lane.b32.xlu0 %v12050_v49, %s13212_s12  ;;  %v1163_v62 = vrot.slane %v1161_v20, 5  ;;  %v1129_v63 = vrot.slane %v1127_v55, 5  ;;  %v1139_v0 = vrot.slane %v1137_v57, 5  ;;  %v1506_v2 = vrot.slane %v11865_v30, 5  ;;  %v372_v57 = vld [vmem:[%s13333_s29 + $0x54] sm:$0xf] }
  0x7a   : > { %v1154_v4 = vsel %vm13401_vm5, %v1149_v58, %v1153_v59  ;;  %v1158_v5 = vor.u32 %v1157_v45, %v1153_v59  ;;  %v1125_v6 = vrot.slane %v1124_v12, 4  ;;  %v1509_v8 = vrot.slane %v11891_v1, 5  ;;  %v11987_v1 = vld [vmem:[%s13333_s29 + $0x54] sm:$0xe] }
  0x7b   : > { %2488 = vrot.lane.b32.xlu1 %v12067_v44, %s13210_s30  ;;  %v1134_v11 = vor.u32 %v1133_v56, %v1129_v63  ;;  %v1507_v14 = vsel %vm13357_vm2, %v11923_v60, %v1506_v2  ;;  %v1508_v15 = vrot.slane %v1506_v2, 4  ;;  %v11922_v16 = vrot.slane %v11906_v61, 9 }
  0x7c   : > { %v1159_v18 = vrot.slane %v1158_v5, 4  ;;  %v1130_v21 = vsel %vm13401_vm5, %v1125_v6, %v1129_v63  ;;  %v1499_v22 = vrot.slane %v11863_v41, 5  ;;  %v1502_v23 = vrot.slane %v11890_v9, 5  ;;  %v13663_v41 = vld [vmem:[%s13333_s29 + $0x50] sm:$0x1] }
  0x7d   : > { %2486 = vrot.lane.b32.xlu0 %v12066_v50, %s13210_s30  ;;  %v1135_v25 = vrot.slane %v1134_v11, 4  ;;  %v1510_v26 = vsel %vm13357_vm2, %v1508_v15, %v1509_v8  ;;  %v1751_v27 = vshrl.u32 %v13640_v10, 16  ;;  %v1754_v28 = vshll.u32 %v13640_v10, 16  ;;  %v11986_v50 = vld [vmem:[%s13333_s29 + $0x48] sm:$0xe] }
  0x7e   : > { %v1164_v30 = vsel %vm13401_vm5, %v1159_v18, %v1163_v62  ;;  %v12099_v31 = vcombine.low %v1507_v14, %v1510_v26  ;;  %v1500_v32 = vsel %vm13357_vm2, %v11922_v16, %v1499_v22  ;;  %v1501_v33 = vrot.slane %v1499_v22, 4  ;;  %v373_v8 = vld [vmem:[%s13333_s29 + $0x58] sm:$0xf]  ;;  %v13686_v22 = vld [vmem:[%s13333_s29 + $0x5c] sm:$0x1] }
  0x7f   : > { %v12083_v34 = vcombine.low %v1154_v4, %v1164_v30  ;;  %v1140_v37 = vsel %vm13401_vm5, %v1135_v25, %v1139_v0  ;;  %v1753_v38 = vrot.slane %v1751_v27, 4  ;;  %v1756_v39 = vrot.slane %v1754_v28, 5  ;;  %v370_v28 = vld [vmem:[%s13333_s29 + $0x48] sm:$0xf] }
  0x80   : > { %v12082_v42 = vcombine.low %v1130_v21, %v1140_v37  ;;  %v1503_v43 = vsel %vm13357_vm2, %v1501_v33, %v1502_v23  ;;  %v1764_v44 = vshrl.u32 %v11945_v24, 16  ;;  %v12115_v46 = vcombine.low %v13640_v10, %v11945_v24  ;;  %v371_v33 = vld [vmem:[%s13333_s29 + $0x4c] sm:$0xf] }
  0x81   : > { %2568 = vrot.lane.b32.xlu1 %v12083_v34, %s13214_s20  ;;  %v12098_v3 = vcombine.low %v1500_v32, %v1503_v43  ;;  %v1727_v47 = vshrl.u32 %v11942_v29, 16  ;;  %v1730_v48 = vshll.u32 %v11942_v29, 16  ;;  %v1740_v7 = vshrl.u32 %v11943_v35, 16 }
  0x82   : > { %2566 = vrot.lane.b32.xlu0 %v12082_v42, %s13214_s20  ;;  %v12114_v9 = vcombine.low %v11942_v29, %v11943_v35  ;;  %v1757_v49 = vor.u32 %v1756_v39, %v1753_v38  ;;  %v1760_v40 = vshll.u32 %v11945_v24, 16  ;;  %v1766_v13 = vrot.slane %v1764_v44, 4  ;;  %v13702_v38 = vld [vmem:[%s13333_s29 + $0x50] sm:$0x1]  ;;  %v800_v39 = vld [vmem:[%s13333_s29 + $0x54] sm:$0xe] }
  0x83   : > { %v1729_v51 = vrot.slane %v1727_v47, 4  ;;  %v1732_v52 = vrot.slane %v1730_v48, 5  ;;  %v1770_v53 = vshll.u32 %v11971_v36, 16  ;;  %v1736_v54 = vshll.u32 %v11943_v35, 16 }
  0x84   : > { %v1758_v45 = vrot.slane %v1757_v49, 4  ;;  %v1762_v20 = vrot.slane %v1760_v40, 5  ;;  %v1742_v55 = vrot.slane %v1740_v7, 4  ;;  %v1746_v56 = vshll.u32 %v13663_v41, 16 }
  0x85   : > { %2648 = vrot.lane.b32.xlu1 %v12099_v31, %s13211_s11  ;;  %v1772_v58 = vrot.slane %v1770_v53, 5  ;;  %v1733_v59 = vor.u32 %v1732_v52, %v1729_v51  ;;  %v1738_v12 = vrot.slane %v1736_v54, 5  ;;  %v12003_v60 = vrot.slane %v11987_v1, 9  ;;  %v799_v52 = vld [vmem:[%s13333_s29 + $0x48] sm:$0xe] }
  0x86   : > { %2646 = vrot.lane.b32.xlu0 %v12098_v3, %s13211_s11  ;;  %v1763_v61 = vsel %vm13401_vm5, %v1758_v45, %v1762_v20  ;;  %v1767_v62 = vor.u32 %v1766_v13, %v1762_v20  ;;  %v1748_v63 = vrot.slane %v1746_v56, 5  ;;  %v2115_v0 = vrot.slane %v11945_v24, 5 }
  0x87   : > { %v1734_v2 = vrot.slane %v1733_v59, 4  ;;  %v1743_v4 = vor.u32 %v1742_v55, %v1738_v12  ;;  %v2118_v5 = vrot.slane %v11971_v36, 5  ;;  %v12002_v6 = vrot.slane %v11986_v50, 9  ;;  %v13714_v59 = vld [vmem:[%s13333_s29 + $0x60] sm:$0xf] }
  0x88   : > { %v1768_v10 = vrot.slane %v1767_v62, 4  ;;  %v2116_v11 = vsel %vm13357_vm2, %v12003_v60, %v2115_v0  ;;  %v2117_v14 = vrot.slane %v2115_v0, 4  ;;  %v2108_v15 = vrot.slane %v11943_v35, 5 }
  0x89   : > { %2744 = vrot.lane.b32.xlu1 %v12115_v46, %s13215_s21  ;;  %v1739_v16 = vsel %vm13401_vm5, %v1734_v2, %v1738_v12  ;;  %v1744_v18 = vrot.slane %v1743_v4, 4  ;;  %v2111_v21 = vrot.slane %v13663_v41, 5  ;;  %v578_v23 = vshrl.u32 %v372_v57, 16 }
  0x8a   : > { %2742 = vrot.lane.b32.xlu0 %v12114_v9, %s13215_s21  ;;  %v1773_v24 = vsel %vm13401_vm5, %v1768_v10, %v1772_v58  ;;  %v2119_v25 = vsel %vm13357_vm2, %v2117_v14, %v2118_v5  ;;  %v2109_v26 = vsel %vm13357_vm2, %v12002_v6, %v2108_v15  ;;  %v2110_v27 = vrot.slane %v2108_v15, 4  ;;  %v13731_v15 = vld [vmem:[%s13333_s29 + $0x54] sm:$0xf] }
  0x8b   : > { %v12131_v29 = vcombine.low %v1763_v61, %v1773_v24  ;;  %v1749_v30 = vsel %vm13401_vm5, %v1744_v18, %v1748_v63  ;;  %v12147_v31 = vcombine.low %v2116_v11, %v2119_v25  ;;  %v580_v32 = vrot.slane %v578_v23, 4  ;;  %v13719_v63 = vld [vmem:[%s13333_s29 + $0x64] sm:$0xf] }
  0x8c   : > { %v12130_v35 = vcombine.low %v1739_v16, %v1749_v30  ;;  %v2112_v36 = vsel %vm13357_vm2, %v2110_v27, %v2111_v21  ;;  %v581_v34 = vshll.u32 %v372_v57, 16  ;;  %v587_v37 = vshll.u32 %v373_v8, 16  ;;  %v13742_v27 = vld [vmem:[%s13333_s29 + $0x58] sm:$0xf] }
  0x8d   : > { %2824 = vrot.lane.b32.xlu1 %v12131_v29, %s13216_s25  ;;  %v12146_v41 = vcombine.low %v2109_v26, %v2112_v36  ;;  %v591_v42 = vshrl.u32 %v373_v8, 16  ;;  %v597_v43 = vshll.u32 %v13686_v22, 16  ;;  %v554_v44 = vshrl.u32 %v370_v28, 16 }
  0x8e   : > { %2822 = vrot.lane.b32.xlu0 %v12130_v35, %s13216_s25  ;;  %v583_v46 = vrot.slane %v581_v34, 5  ;;  %v589_v1 = vrot.slane %v587_v37, 5  ;;  %v557_v3 = vshll.u32 %v370_v28, 16  ;;  %v563_v47 = vshll.u32 %v371_v33, 16 }
  0x8f   : > { %v593_v48 = vrot.slane %v591_v42, 4  ;;  %v599_v7 = vrot.slane %v597_v43, 5  ;;  %v556_v9 = vrot.slane %v554_v44, 4  ;;  %v567_v49 = vshrl.u32 %v371_v33, 16 }
  0x90   : > { %v584_v40 = vor.u32 %v583_v46, %v580_v32  ;;  %v559_v13 = vrot.slane %v557_v3, 5  ;;  %v565_v50 = vrot.slane %v563_v47, 5  ;;  %v573_v51 = vshll.u32 %v13702_v38, 16  ;;  %v11893_v32 = vld [vmem:[%s13333_s29 + $0x68] sm:$0x1] }
  0x91   : > { %2904 = vrot.lane.b32.xlu1 %v12147_v31, %s13217_s28  ;;  %v594_v53 = vor.u32 %v593_v48, %v589_v1  ;;  %v569_v54 = vrot.slane %v567_v49, 4  ;;  %v11845_v45 = vrot.slane %v800_v39, 9  ;;  %v911_v20 = vrot.slane %v373_v8, 5  ;;  %v13723_v6 = vpop.permute.xlu1 %2480 }
  0x92   : > { %2902 = vrot.lane.b32.xlu0 %v12146_v41, %s13217_s28  ;;  %v585_v55 = vrot.slane %v584_v40, 4  ;;  %v560_v56 = vor.u32 %v559_v13, %v556_v9  ;;  %v575_v57 = vrot.slane %v573_v51, 5  ;;  %v914_v58 = vrot.slane %v13686_v22, 5  ;;  %v13757_v39 = vpop.permute.xlu0 %2478 }
  0x93   : > { %v595_v12 = vrot.slane %v594_v53, 4  ;;  %v570_v60 = vor.u32 %v569_v54, %v565_v50  ;;  %v912_v61 = vsel %vm13357_vm2, %v11845_v45, %v911_v20  ;;  %v913_v62 = vrot.slane %v911_v20, 4 }
  0x94   : > { %v590_v0 = vsel %vm13401_vm5, %v585_v55, %v589_v1  ;;  %v561_v2 = vrot.slane %v560_v56, 4  ;;  %v11844_v4 = vrot.slane %v799_v52, 9  ;;  %v904_v5 = vrot.slane %v371_v33, 5  ;;  %v13751_v33 = vld [vmem:[%s13333_s29 + $0x5c] sm:$0x1] }
  0x95   : > { %v600_v8 = vsel %vm13401_vm5, %v595_v12, %v599_v7  ;;  %v571_v10 = vrot.slane %v570_v60, 4  ;;  %v915_v11 = vsel %vm13357_vm2, %v913_v62, %v914_v58  ;;  %v907_v14 = vrot.slane %v13702_v38, 5  ;;  %v11909_v38 = vld [vmem:[%s13333_s29 + $0x60] sm:$0xe]  ;;  %v11908_v7 = vld [vmem:[%s13333_s29 + $0x54] sm:$0xe] }
  0x96   : > { %v12037_v16 = vcombine.low %v590_v0, %v600_v8  ;;  %v566_v18 = vsel %vm13401_vm5, %v561_v2, %v565_v50  ;;  %v12053_v21 = vcombine.low %v912_v61, %v915_v11  ;;  %v905_v22 = vsel %vm13357_vm2, %v11844_v4, %v904_v5  ;;  %v13777_v60 = vld [vmem:[%s13333_s29 + $0x6c] sm:$0xf] }
  0x97   : > { %v576_v23 = vsel %vm13401_vm5, %v571_v10, %v575_v57  ;;  %v906_v24 = vrot.slane %v904_v5, 4  ;;  %v1190_v25 = vshrl.u32 %v13714_v59, 16  ;;  %v1193_v26 = vshll.u32 %v13714_v59, 16 }
  0x98   : > { %2316 = vrot.lane.b32.xlu1 %v12037_v16, %s13213_s18  ;;  %v12036_v28 = vcombine.low %v566_v18, %v576_v23  ;;  %v1203_v29 = vshrl.u32 %v13719_v63, 16  ;;  %v12069_v30 = vcombine.low %v13714_v59, %v13719_v63  ;;  %v1166_v31 = vshrl.u32 %v13731_v15, 16 }
  0x99   : > { %v908_v35 = vsel %vm13357_vm2, %v906_v24, %v907_v14  ;;  %v1192_v36 = vrot.slane %v1190_v25, 4  ;;  %v1195_v34 = vrot.slane %v1193_v26, 5  ;;  %v1169_v37 = vshll.u32 %v13731_v15, 16  ;;  %v13779_v61 = vpop.permute.xlu0 %2638  ;;  %v11946_v25 = vld [vmem:[%s13333_s29 + $0x60] sm:$0xf] }
  0x9a   : > { %2314 = vrot.lane.b32.xlu0 %v12036_v28, %s13213_s18  ;;  %v12052_v41 = vcombine.low %v905_v22, %v908_v35  ;;  %v1168_v42 = vrot.slane %v1166_v31, 4  ;;  %v1179_v43 = vshrl.u32 %v13742_v27, 16  ;;  %v12068_v44 = vcombine.low %v13731_v15, %v13742_v27  ;;  %v13763_v46 = vpop.permute.xlu1 %2382  ;;  %v13792_v15 = vld [vmem:[%s13333_s29 + $0x70] sm:$0xf]  ;;  %v13802_v26 = vld [vmem:[%s13333_s29 + $0x64] sm:$0xf] }
  0x9b   : > { %v1171_v1 = vrot.slane %v1169_v37, 5  ;;  %v1196_v3 = vor.u32 %v1195_v34, %v1192_v36  ;;  %v1199_v47 = vshll.u32 %v13719_v63, 16  ;;  %v1205_v48 = vrot.slane %v1203_v29, 4  ;;  %v13814_v34 = vld [vmem:[%s13333_s29 + $0x74] sm:$0x1] }
  0x9c   : > { %2396 = vrot.lane.b32.xlu1 %v12053_v21, %s13212_s12  ;;  %v1209_v9 = vshll.u32 %v11893_v32, 16  ;;  %v1175_v49 = vshll.u32 %v13742_v27, 16  ;;  %v1181_v40 = vrot.slane %v1179_v43, 4  ;;  %v1185_v13 = vshll.u32 %v13751_v33, 16 }
  0x9d   : > { %v1197_v50 = vrot.slane %v1196_v3, 4  ;;  %v1201_v51 = vrot.slane %v1199_v47, 5  ;;  %v1172_v52 = vor.u32 %v1171_v1, %v1168_v42  ;;  %v11925_v53 = vrot.slane %v11909_v38, 9 }
  0x9e   : > { %2394 = vrot.lane.b32.xlu0 %v12052_v41, %s13212_s12  ;;  %v1211_v54 = vrot.slane %v1209_v9, 5  ;;  %v1177_v45 = vrot.slane %v1175_v49, 5  ;;  %v1187_v20 = vrot.slane %v1185_v13, 5  ;;  %v1520_v55 = vrot.slane %v13719_v63, 5  ;;  %v13772_v56 = vpop.permute.xlu1 %2384 }
  0x9f   : > { %v1202_v57 = vsel %vm13401_vm5, %v1197_v50, %v1201_v51  ;;  %v1206_v58 = vor.u32 %v1205_v48, %v1201_v51  ;;  %v1173_v59 = vrot.slane %v1172_v52, 4  ;;  %v1523_v12 = vrot.slane %v11893_v32, 5 }
  0xa0   : > { %2492 = vrot.lane.b32.xlu1 %v12069_v30, %s13210_s30  ;;  %v1182_v62 = vor.u32 %v1181_v40, %v1177_v45  ;;  %v1521_v0 = vsel %vm13357_vm2, %v11925_v53, %v1520_v55  ;;  %v1522_v63 = vrot.slane %v1520_v55, 4  ;;  %v11924_v2 = vrot.slane %v11908_v7, 9  ;;  %v13010_v55 = vld [vmem:[%s13333_s29 + $0x4] sm:$0xf] }
  0xa1   : > { %v1207_v4 = vrot.slane %v1206_v58, 4  ;;  %v1178_v5 = vsel %vm13401_vm5, %v1173_v59, %v1177_v45  ;;  %v1513_v8 = vrot.slane %v13742_v27, 5  ;;  %v1516_v10 = vrot.slane %v13751_v33, 5  ;;  %v11989_v59 = vld [vmem:[%s13333_s29 + $0x6c] sm:$0xe] }
  0xa2   : > { %2490 = vrot.lane.b32.xlu0 %v12068_v44, %s13210_s30  ;;  %v1183_v11 = vrot.slane %v1182_v62, 4  ;;  %v1524_v14 = vsel %vm13357_vm2, %v1522_v63, %v1523_v12  ;;  %v1799_v16 = vshrl.u32 %v13777_v60, 16  ;;  %v1802_v18 = vshll.u32 %v13777_v60, 16  ;;  %v13806_v31 = vpop.permute.xlu1 %2640  ;;  %v13819_v44 = vld [vmem:[%s13333_s29 + $0x68] sm:$0x1] }
  0xa3   : > { %v1212_v21 = vsel %vm13401_vm5, %v1207_v4, %v1211_v54  ;;  %v12101_v22 = vcombine.low %v1521_v0, %v1524_v14  ;;  %v1514_v23 = vsel %vm13357_vm2, %v11924_v2, %v1513_v8  ;;  %v1515_v24 = vrot.slane %v1513_v8, 4  ;;  %v11988_v63 = vld [vmem:[%s13333_s29 + $0x60] sm:$0xe] }
  0xa4   : > { %v12085_v27 = vcombine.low %v1202_v57, %v1212_v21  ;;  %v1188_v28 = vsel %vm13401_vm5, %v1183_v11, %v1187_v20  ;;  %v1801_v29 = vrot.slane %v1799_v16, 4  ;;  %v1804_v30 = vrot.slane %v1802_v18, 5  ;;  %v13011_v57 = vld [vmem:[%s13333_s29] sm:$0xf] }
  0xa5   : > { %v12084_v32 = vcombine.low %v1178_v5, %v1188_v28  ;;  %v1517_v33 = vsel %vm13357_vm2, %v1515_v24, %v1516_v10  ;;  %v1812_v35 = vshrl.u32 %v13792_v15, 16  ;;  %v12117_v36 = vcombine.low %v13777_v60, %v13792_v15  ;;  %v2303_v37 = vpop.permute.xlu0 %2302 }
  0xa6   : > { %2572 = vrot.lane.b32.xlu1 %v12085_v27, %s13214_s20  ;;  %v12100_v38 = vcombine.low %v1514_v23, %v1517_v33  ;;  %v1775_v41 = vshrl.u32 %v11946_v25, 16  ;;  %v1778_v42 = vshll.u32 %v11946_v25, 16  ;;  %v1788_v43 = vshrl.u32 %v13802_v26, 16  ;;  %v376_v27 = vld [vmem:[%s13333_s29 + $0x6c] sm:$0xf] }
  0xa7   : > { %2570 = vrot.lane.b32.xlu0 %v12084_v32, %s13214_s20  ;;  %v12116_v1 = vcombine.low %v11946_v25, %v13802_v26  ;;  %v1805_v3 = vor.u32 %v1804_v30, %v1801_v29  ;;  %v1808_v47 = vshll.u32 %v13792_v15, 16  ;;  %v1814_v48 = vrot.slane %v1812_v35, 4  ;;  %v13012_v33 = vld [vmem:[%s13333_s29 + $0x10] sm:$0xf]  ;;  %v13013_v35 = vld [vmem:[%s13333_s29 + $0xc] sm:$0xf] }
  0xa8   : > { %v1777_v7 = vrot.slane %v1775_v41, 4  ;;  %v1780_v9 = vrot.slane %v1778_v42, 5  ;;  %v1818_v49 = vshll.u32 %v13814_v34, 16  ;;  %v1784_v40 = vshll.u32 %v13802_v26, 16  ;;  %v13871_v42 = vld [vmem:[%s13333_s29 + $0x74] sm:$0x1] }
  0xa9   : > { %v1806_v13 = vrot.slane %v1805_v3, 4  ;;  %v1810_v50 = vrot.slane %v1808_v47, 5  ;;  %v1790_v51 = vrot.slane %v1788_v43, 4  ;;  %v1794_v52 = vshll.u32 %v13819_v44, 16  ;;  %v2305_v53 = vpop.permute.xlu0 %2304 }
  0xaa   : > { %2652 = vrot.lane.b32.xlu1 %v12101_v22, %s13211_s11  ;;  %v1820_v54 = vrot.slane %v1818_v49, 5  ;;  %v1781_v45 = vor.u32 %v1780_v9, %v1777_v7  ;;  %v1786_v20 = vrot.slane %v1784_v40, 5  ;;  %v12014_v58 = vcombine.low %v13011_v57, %v13010_v55  ;;  %v13831_v12 = vpop.permute.xlu1 %2560 }
  0xab   : > { %2650 = vrot.lane.b32.xlu0 %v12100_v38, %s13211_s11  ;;  %v1811_v60 = vsel %vm13401_vm5, %v1806_v13, %v1810_v50  ;;  %v1815_v62 = vor.u32 %v1814_v48, %v1810_v50  ;;  %v1796_v0 = vrot.slane %v1794_v52, 5  ;;  %v12005_v11 = vrot.slane %v11989_v59, 9  ;;  %v374_v48 = vld [vmem:[%s13333_s29 + $0x60] sm:$0xf]  ;;  %v375_v13 = vld [vmem:[%s13333_s29 + $0x64] sm:$0xf] }
  0xac   : > { %v1782_v2 = vrot.slane %v1781_v45, 4  ;;  %v1791_v4 = vor.u32 %v1790_v51, %v1786_v20  ;;  %v2929_v5 = vsel %vm2926_vm6, %v12014_v58, %v2303_v37  ;;  %v2129_v14 = vrot.slane %v13792_v15, 5 }
  0xad   : > { %v1816_v8 = vrot.slane %v1815_v62, 4  ;;  %v13840_v10 = vsel %vm2975_vm7, %v2929_v5, %v13763_v46  ;;  %v13843_v16 = vpop.permute.xlu0 %2558  ;;  %v2132_v22 = vrot.slane %v13814_v34, 5  ;;  %v12004_v23 = vrot.slane %v11988_v63, 9  ;;  %v13864_v34 = vld [vmem:[%s13333_s29 + $0x70] sm:$0xf] }
  0xae   : > { %2748 = vrot.lane.b32.xlu1 %v12117_v36, %s13215_s21  ;;  %v1787_v18 = vsel %vm13401_vm5, %v1782_v2, %v1786_v20  ;;  %v1792_v21 = vrot.slane %v1791_v4, 4  ;;  %v2130_v15 = vsel %vm13357_vm2, %v12005_v11, %v2129_v14  ;;  %v2131_v24 = vrot.slane %v2129_v14, 4  ;;  %v13856_v28 = vpop.permute.xlu1 %2736 }
  0xaf   : > { %2746 = vrot.lane.b32.xlu0 %v12116_v1, %s13215_s21  ;;  %v1821_v46 = vsel %vm13401_vm5, %v1816_v8, %v1820_v54  ;;  %v2122_v25 = vrot.slane %v13802_v26, 5  ;;  %v2125_v32 = vrot.slane %v13819_v44, 5  ;;  %v12015_v36 = vcombine.low %v13013_v35, %v13012_v33  ;;  %v13888_v54 = vld [vmem:[%s13333_s29 + $0x68] sm:$0x1] }
  0xb0   : > { %v12133_v29 = vcombine.low %v1811_v60, %v1821_v46  ;;  %v1797_v30 = vsel %vm13401_vm5, %v1792_v21, %v1796_v0  ;;  %v2133_v38 = vsel %vm13357_vm2, %v2131_v24, %v2132_v22  ;;  %v626_v3 = vshrl.u32 %v376_v27, 16 }
  0xb1   : > { %v12132_v37 = vcombine.low %v1787_v18, %v1797_v30  ;;  %v2123_v26 = vsel %vm13357_vm2, %v12004_v23, %v2122_v25  ;;  %v2124_v41 = vrot.slane %v2122_v25, 4  ;;  %v13873_v43 = vpop.permute.xlu0 %2734  ;;  %v12149_v44 = vcombine.low %v2130_v15, %v2133_v38  ;;  %v802_v23 = vld [vmem:[%s13333_s29 + $0x6c] sm:$0xe] }
  0xb2   : > { %2828 = vrot.lane.b32.xlu1 %v12133_v29, %s13216_s25  ;;  %v2932_v1 = vsel %vm2926_vm6, %v12015_v36, %v2305_v53  ;;  %v629_v47 = vshll.u32 %v376_v27, 16  ;;  %v635_v49 = vshll.u32 %v13864_v34, 16  ;;  %v639_v40 = vshrl.u32 %v13864_v34, 16  ;;  %v801_v27 = vld [vmem:[%s13333_s29 + $0x60] sm:$0xe] }
  0xb3   : > { %2826 = vrot.lane.b32.xlu0 %v12132_v37, %s13216_s25  ;;  %v2126_v7 = vsel %vm13357_vm2, %v2124_v41, %v2125_v32  ;;  %v2979_v9 = vsel %vm2975_vm7, %v2932_v1, %v13772_v56  ;;  %v628_v51 = vrot.slane %v626_v3, 4  ;;  %v645_v53 = vshll.u32 %v13871_v42, 16 }
  0xb4   : > { %v12148_v50 = vcombine.low %v2123_v26, %v2126_v7  ;;  %v631_v52 = vrot.slane %v629_v47, 5  ;;  %v637_v45 = vrot.slane %v635_v49, 5  ;;  %v641_v20 = vrot.slane %v639_v40, 4  ;;  %v13930_v7 = vld [vmem:[%s13333_s29 + $0x7c] sm:$0xf] }
  0xb5   : > { %v602_v55 = vshrl.u32 %v374_v48, 16  ;;  %v605_v57 = vshll.u32 %v374_v48, 16  ;;  %v13890_v58 = vpop.permute.xlu1 %2816  ;;  %v647_v59 = vrot.slane %v645_v53, 5  ;;  %v611_v60 = vshll.u32 %v375_v13, 16  ;;  %v11872_v48 = vld [vmem:[%s13333_s29 + $0x78] sm:$0xf] }
  0xb6   : > { %2908 = vrot.lane.b32.xlu1 %v12149_v44, %s13217_s28  ;;  %v632_v56 = vor.u32 %v631_v52, %v628_v51  ;;  %v615_v62 = vshrl.u32 %v375_v13, 16  ;;  %v13893_v0 = vpop.permute.xlu0 %2814  ;;  %v642_v63 = vor.u32 %v641_v20, %v637_v45  ;;  %v621_v5 = vshll.u32 %v13888_v54, 16 }
  0xb7   : > { %2906 = vrot.lane.b32.xlu0 %v12148_v50, %s13217_s28  ;;  %v604_v2 = vrot.slane %v602_v55, 4  ;;  %v607_v4 = vrot.slane %v605_v57, 5  ;;  %v613_v11 = vrot.slane %v611_v60, 5  ;;  %v3012_v24 = vsel %vm3008_vm8, %v2979_v9, %v13723_v6  ;;  %v13940_v50 = vld [vmem:[%s13333_s29 + $0x70] sm:$0xf] }
  0xb8   : > { %v633_v8 = vrot.slane %v632_v56, 4  ;;  %v617_v14 = vrot.slane %v615_v62, 4  ;;  %v643_v18 = vrot.slane %v642_v63, 4  ;;  %v623_v22 = vrot.slane %v621_v5, 5 }
  0xb9   : > { %v608_v21 = vor.u32 %v607_v4, %v604_v2  ;;  %v3010_v25 = vsel %vm3008_vm8, %v13840_v10, %v13757_v39  ;;  %v13906_v29 = vpop.permute.xlu1 %2896  ;;  %v3045_v33 = vsel %vm3041_vm9, %v3012_v24, %v13831_v12  ;;  %v11847_v6 = vrot.slane %v802_v23, 9  ;;  %v13962_v4 = vld [vmem:[%s13333_s29 + $0x74] sm:$0x1] }
  0xba   : > { %v638_v46 = vsel %vm13401_vm5, %v633_v8, %v637_v45  ;;  %v618_v15 = vor.u32 %v617_v14, %v613_v11  ;;  %v648_v30 = vsel %vm13401_vm5, %v643_v18, %v647_v59  ;;  %v3043_v35 = vsel %vm3041_vm9, %v3010_v25, %v13843_v16  ;;  %v13915_v39 = vpop.permute.xlu0 %2894 }
  0xbb   : > { %v609_v32 = vrot.slane %v608_v21, 4  ;;  %v12039_v36 = vcombine.low %v638_v46, %v648_v30  ;;  %v925_v38 = vrot.slane %v13864_v34, 5  ;;  %v928_v26 = vrot.slane %v13871_v42, 5  ;;  %v12889_v21 = vld [vmem:[%s19615_s1 + $0x10] ss:$0 sps:$4 sm:$0x33]  }
  0xbc   : > { %v619_v37 = vrot.slane %v618_v15, 4  ;;  %v11846_v41 = vrot.slane %v801_v27, 9  ;;  %v918_v44 = vrot.slane %v375_v13, 5  ;;  %v921_v1 = vrot.slane %v13888_v54, 5  ;;  %v11870_v13 = vld [vmem:[%s13333_s29 + $0x6c] sm:$0xf]  ;;  %12811 = vmatprep.subr.msk.bf16.mxu0 %vm3259_vm13, %v12889_v21  ;;  %12812 = vmatprep.subr.msk.bf16.mxu1 %vm3259_vm13, %v12889_v21 }
  0xbd   : > { %v614_v10 = vsel %vm13401_vm5, %v609_v32, %v613_v11  ;;  %2320 = vrot.lane.b32.xlu1 %v12039_v36, %s13213_s18  ;;  %v926_v16 = vsel %vm13357_vm2, %v11847_v6, %v925_v38  ;;  %v927_v34 = vrot.slane %v925_v38, 4  ;;  %v3078_v49 = vsel %vm3074_vm10, %v3045_v33, %v13806_v31  ;;  %v11911_v30 = vld [vmem:[%s13333_s29 + $0x78] sm:$0xe] }
  0xbe   : > { %v624_v12 = vsel %vm13401_vm5, %v619_v37, %v623_v22  ;;  %v919_v47 = vsel %vm13357_vm2, %v11846_v41, %v918_v44  ;;  %v920_v42 = vrot.slane %v918_v44, 4  ;;  %v3076_v40 = vsel %vm3074_vm10, %v3043_v35, %v13779_v61 }
  0xbf   : > { %v12038_v3 = vcombine.low %v614_v10, %v624_v12  ;;  %v929_v9 = vsel %vm13357_vm2, %v927_v34, %v928_v26  ;;  %v3111_v54 = vsel %vm3107_vm11, %v3078_v49, %v13856_v28  ;;  %v3109_v31 = vsel %vm3107_vm11, %v3076_v40, %v13873_v43  ;;  %v13958_v28 = vld [vmem:[%s13333_s29 + $0x80] sm:$0x1]  ;;  %v11910_v26 = vld [vmem:[%s13333_s29 + $0x6c] sm:$0xe] }
  0xc0   : > { %v13942_v51 = vpop.permute.xlu1 %2308  ;;  %v12055_v52 = vcombine.low %v926_v16, %v929_v9  ;;  %v922_v53 = vsel %vm13357_vm2, %v920_v42, %v921_v1  ;;  %v1238_v45 = vshrl.u32 %v11872_v48, 16  ;;  %v1241_v20 = vshll.u32 %v11872_v48, 16 }
  0xc1   : > { %2318 = vrot.lane.b32.xlu0 %v12038_v3, %s13213_s18  ;;  %v12054_v61 = vcombine.low %v919_v47, %v922_v53  ;;  %v1251_v55 = vshrl.u32 %v13930_v7, 16  ;;  %v12071_v56 = vcombine.low %v11872_v48, %v13930_v7  ;;  %v1214_v59 = vshrl.u32 %v11870_v13, 16 }
  0xc2   : > { %v13952_v57 = vpop.permute.xlu0 %2306  ;;  %2400 = vrot.lane.b32.xlu1 %v12055_v52, %s13212_s12  ;;  %v1217_v60 = vshll.u32 %v11870_v13, 16  ;;  %v1227_v62 = vshrl.u32 %v13940_v50, 16  ;;  %v1240_v63 = vrot.slane %v1238_v45, 4  ;;  %v1243_v43 = vrot.slane %v1241_v20, 5 }
  0xc3   : > { %v12070_v2 = vcombine.low %v11870_v13, %v13940_v50  ;;  %v1216_v8 = vrot.slane %v1214_v59, 4  ;;  %v3144_v14 = vsel %vm19627_vm12, %v3111_v54, %v13890_v58  ;;  %v3142_v18 = vsel %vm19627_vm12, %v3109_v31, %v13893_v0  ;;  %v14007_v31 = vld [vmem:[%s13333_s29 + $0x84] sm:$0xf]  ;;  %v11950_v59 = vld [vmem:[%s13333_s29 + $0x78] sm:$0xf] }
  0xc4   : > { %v13964_v5 = vpop.permute.xlu1 %2388  ;;  %v1219_v11 = vrot.slane %v1217_v60, 5  ;;  %v1244_v22 = vor.u32 %v1243_v43, %v1240_v63  ;;  %v1247_v23 = vshll.u32 %v13930_v7, 16  ;;  %v1253_v46 = vrot.slane %v1251_v55, 4  ;;  %v13014_v63 = vld [vmem:[%s13333_s29 + $0x24] sm:$0xf] }
  0xc5   : > { %2398 = vrot.lane.b32.xlu0 %v12054_v61, %s13212_s12  ;;  %v1257_v15 = vshll.u32 %v13958_v28, 16  ;;  %v1223_v58 = vshll.u32 %v13940_v50, 16  ;;  %v1229_v27 = vrot.slane %v1227_v62, 4  ;;  %v1233_v0 = vshll.u32 %v13962_v4, 16  ;;  %v13015_v43 = vld [vmem:[%s13333_s29 + $0x28] sm:$0xf] }
  0xc6   : > { %v13976_v24 = vpop.permute.xlu0 %2386  ;;  %2496 = vrot.lane.b32.xlu1 %v12071_v56, %s13210_s30  ;;  %v1220_v25 = vor.u32 %v1219_v11, %v1216_v8  ;;  %v1245_v32 = vrot.slane %v1244_v22, 4  ;;  %v1249_v33 = vrot.slane %v1247_v23, 5  ;;  %v3261_v10 = vsel %vm3259_vm13, %v12889_v21, 0  ;;  %v14016_v56 = vld [vmem:[%s13333_s29 + $0x88] sm:$0xf]  ;;  %vm14684_vm13 = vmand %vm19626_vm1, %vm19625_vm3 }
  0xc7   : > { %v1259_v35 = vrot.slane %v1257_v15, 5  ;;  %v1225_v6 = vrot.slane %v1223_v58, 5  ;;  %v1235_v38 = vrot.slane %v1233_v0, 5  ;;  %12772 = vmatpush3.bf16.msra.mxu0 %v3261_v10  ;;  %v11927_v12 = vrot.slane %v11911_v30, 9  ;;  %12810 = vmatpush3.bf16.msra.mxu1 %v3261_v10  ;;  %v13016_v8 = vld [vmem:[%s13333_s29 + $0x18] sm:$0xf]  ;;  %vm14724_vm3 = vmand %vm19626_vm1, %vm3611_vm4 }
  0xc8   : > { %v13982_v36 = vpop.permute.xlu1 %2484  ;;  %v1221_v37 = vrot.slane %v1220_v25, 4  ;;  %v1250_v41 = vsel %vm13401_vm5, %v1245_v32, %v1249_v33  ;;  %v1254_v44 = vor.u32 %v1253_v46, %v1249_v33  ;;  %v3177_v3 = vsel %vm19629_vm14, %v3144_v14, %v13906_v29  ;;  %v13017_v11 = vld [vmem:[%s13333_s29 + $0x1c] sm:$0xf]  ;;  %v11975_v33 = vld [vmem:[%s13333_s29 + $0x8c] sm:$0x1] }
  0xc9   : > { %2494 = vrot.lane.b32.xlu0 %v12070_v2, %s13210_s30  ;;  %v1230_v1 = vor.u32 %v1229_v27, %v1225_v6  ;;  %v1534_v47 = vrot.slane %v13930_v7, 5  ;;  %v1537_v48 = vrot.slane %v13958_v28, 5  ;;  %v11926_v9 = vrot.slane %v11910_v26, 9  ;;  %v14033_v22 = vld [vmem:[%s13333_s29 + $0x7c] sm:$0xf] }
  0xca   : > { %v13988_v16 = vpop.permute.xlu0 %2482  ;;  %v1226_v34 = vsel %vm13401_vm5, %v1221_v37, %v1225_v6  ;;  %v1255_v42 = vrot.slane %v1254_v44, 4  ;;  %v1527_v49 = vrot.slane %v13940_v50, 5  ;;  %v1530_v53 = vrot.slane %v13962_v4, 5  ;;  %v11974_v10 = vld [vmem:[%s13333_s29 + $0x80] sm:$0x1] }
  0xcb   : > { %v1231_v40 = vrot.slane %v1230_v1, 4  ;;  %v1535_v13 = vsel %vm13357_vm2, %v11927_v12, %v1534_v47  ;;  %v1536_v52 = vrot.slane %v1534_v47, 4  ;;  %v3175_v50 = vsel %vm19629_vm14, %v3142_v18, %v13915_v39 }
  0xcc   : > { %v1260_v29 = vsel %vm13401_vm5, %v1255_v42, %v1259_v35  ;;  %v1528_v7 = vsel %vm13357_vm2, %v11926_v9, %v1527_v49  ;;  %v1529_v54 = vrot.slane %v1527_v49, 4  ;;  %12773 = vmatprep.mubr.msk.bf16.mxu0 %vm19628_vm15, %v3175_v50  ;;  %v12017_v2 = vcombine.low %v13014_v63, %v13015_v43  ;;  %v11991_v49 = vld [vmem:[%s13333_s29 + $0x84] sm:$0xe] }
  0xcd   : > { %v12087_v45 = vcombine.low %v1250_v41, %v1260_v29  ;;  %v1236_v20 = vsel %vm13401_vm5, %v1231_v40, %v1235_v38  ;;  %v1538_v55 = vsel %vm13357_vm2, %v1536_v52, %v1537_v48  ;;  %12774 = vmatmul.mubr.msk.bf16.vlgmr.msra.gmra.mrb[0].mxu0 %vm19628_vm15, %v3177_v3  ;;  %v12016_v14 = vcombine.low %v13016_v8, %v13017_v11  ;;  %v11990_v29 = vld [vmem:[%s13333_s29 + $0x78] sm:$0xe]  ;;  %v380_v8 = vld [vmem:[%s13333_s29 + $0x84] sm:$0xf] }
  0xce   : > { %v14009_v61 = vpop.permute.xlu1 %2564  ;;  %v12086_v39 = vcombine.low %v1226_v34, %v1236_v20  ;;  %v12103_v62 = vcombine.low %v1535_v13, %v1538_v55  ;;  %v1531_v28 = vsel %vm13357_vm2, %v1529_v54, %v1530_v53  ;;  %v1847_v18 = vshrl.u32 %v14007_v31, 16 }
  0xcf   : > { %v14019_v60 = vpop.permute.xlu0 %2562  ;;  %2576 = vrot.lane.b32.xlu1 %v12087_v45, %s13214_s20  ;;  %v12102_v4 = vcombine.low %v1528_v7, %v1531_v28  ;;  %v1850_v21 = vshll.u32 %v14007_v31, 16  ;;  %v2938_v23 = vsel %vm2926_vm6, %v12017_v2, %v13942_v51  ;;  %v1860_v46 = vshrl.u32 %v14016_v56, 16 }
  0xd0   : > { %2574 = vrot.lane.b32.xlu0 %v12086_v39, %s13214_s20  ;;  %v12119_v15 = vcombine.low %v14007_v31, %v14016_v56  ;;  %v1823_v25 = vshrl.u32 %v11950_v59, 16  ;;  %v2935_v27 = vsel %vm2926_vm6, %v12016_v14, %v13952_v57  ;;  %v1849_v0 = vrot.slane %v1847_v18, 4 }
  0xd1   : > { %v1852_v30 = vrot.slane %v1850_v21, 5  ;;  %v1826_v32 = vshll.u32 %v11950_v59, 16  ;;  %v1836_v51 = vshrl.u32 %v14033_v22, 16  ;;  %v12118_v6 = vcombine.low %v11950_v59, %v14033_v22 }
  0xd2   : > { %v14041_v58 = vpop.permute.xlu1 %2644  ;;  %v1825_v37 = vrot.slane %v1823_v25, 4  ;;  %v2983_v38 = vsel %vm2975_vm7, %v2938_v23, %v13964_v5  ;;  %v2981_v57 = vsel %vm2975_vm7, %v2935_v27, %v13976_v24  ;;  %v1856_v44 = vshll.u32 %v14016_v56, 16  ;;  %v14100_v27 = vld [vmem:[%s13333_s29 + $0x8c] sm:$0x1] }
  0xd3   : > { %v14046_v35 = vpop.permute.xlu0 %2642  ;;  %2656 = vrot.lane.b32.xlu1 %v12103_v62, %s13211_s11  ;;  %v1828_v26 = vrot.slane %v1826_v32, 5  ;;  %v1853_v41 = vor.u32 %v1852_v30, %v1849_v0  ;;  %v1862_v12 = vrot.slane %v1860_v46, 4  ;;  %v1866_v34 = vshll.u32 %v11975_v33, 16  ;;  %v378_v0 = vld [vmem:[%s13333_s29 + $0x78] sm:$0xf] }
  0xd4   : > { %2654 = vrot.lane.b32.xlu0 %v12102_v4, %s13211_s11  ;;  %v1832_v1 = vshll.u32 %v14033_v22, 16  ;;  %v1838_v3 = vrot.slane %v1836_v51, 4  ;;  %v1858_v42 = vrot.slane %v1856_v44, 5  ;;  %v1842_v9 = vshll.u32 %v11974_v10, 16 }
  0xd5   : > { %v1854_v47 = vrot.slane %v1853_v41, 4  ;;  %v1829_v48 = vor.u32 %v1828_v26, %v1825_v37  ;;  %v1868_v24 = vrot.slane %v1866_v34, 5  ;;  %v3016_v52 = vsel %vm3008_vm8, %v2983_v38, %v13982_v36  ;;  %v379_v37 = vld [vmem:[%s13333_s29 + $0x7c] sm:$0xf]  ;;  %v400_v41 = vld [vmem:[%s13333_s29 + $0x80] sm:$0x1] }
  0xd6   : > { %v14059_v5 = vpop.permute.xlu1 %2740  ;;  %v1834_v13 = vrot.slane %v1832_v1, 5  ;;  %v3014_v53 = vsel %vm3008_vm8, %v2981_v57, %v13988_v16  ;;  %v1863_v54 = vor.u32 %v1862_v12, %v1858_v42  ;;  %v1844_v31 = vrot.slane %v1842_v9, 5 }
  0xd7   : > { %v14062_v40 = vpop.permute.xlu0 %2738  ;;  %2752 = vrot.lane.b32.xlu1 %v12119_v15, %s13215_s21  ;;  %v1859_v7 = vsel %vm13401_vm5, %v1854_v47, %v1858_v42  ;;  %v1830_v50 = vrot.slane %v1829_v48, 4  ;;  %v12007_v20 = vrot.slane %v11991_v49, 9  ;;  %v2143_v55 = vrot.slane %v14016_v56, 5 }
  0xd8   : > { %2750 = vrot.lane.b32.xlu0 %v12118_v6, %s13215_s21  ;;  %v1839_v45 = vor.u32 %v1838_v3, %v1834_v13  ;;  %v2146_v36 = vrot.slane %v11975_v33, 5  ;;  %v1864_v16 = vrot.slane %v1863_v54, 4  ;;  %v12006_v62 = vrot.slane %v11990_v29, 9 }
  0xd9   : > { %v1835_v39 = vsel %vm13401_vm5, %v1830_v50, %v1834_v13  ;;  %v2136_v28 = vrot.slane %v14033_v22, 5  ;;  %v2144_v2 = vsel %vm13357_vm2, %v12007_v20, %v2143_v55  ;;  %v2145_v56 = vrot.slane %v2143_v55, 4  ;;  %v14091_v22 = vld [vmem:[%s13333_s29 + $0x88] sm:$0xf]  ;;  %v804_v13 = vld [vmem:[%s13333_s29 + $0x84] sm:$0xe] }
  0xda   : > { %v14074_v59 = vpop.permute.xlu1 %2820  ;;  %v1840_v43 = vrot.slane %v1839_v45, 4  ;;  %v2139_v4 = vrot.slane %v11974_v10, 5  ;;  %v1869_v11 = vsel %vm13401_vm5, %v1864_v16, %v1868_v24  ;;  %v3049_v21 = vsel %vm3041_vm9, %v3016_v52, %v14009_v61  ;;  %v803_v20 = vld [vmem:[%s13333_s29 + $0x78] sm:$0xe] }
  0xdb   : > { %v14079_v63 = vpop.permute.xlu0 %2818  ;;  %v2137_v14 = vsel %vm13357_vm2, %v12006_v62, %v2136_v28  ;;  %v2138_v18 = vrot.slane %v2136_v28, 4  ;;  %v12135_v23 = vcombine.low %v1859_v7, %v1869_v11  ;;  %v2147_v15 = vsel %vm13357_vm2, %v2145_v56, %v2146_v36 }
  0xdc   : > { %v1845_v46 = vsel %vm13401_vm5, %v1840_v43, %v1844_v31  ;;  %v3047_v25 = vsel %vm3041_vm9, %v3014_v53, %v14019_v60  ;;  %v12151_v32 = vcombine.low %v2144_v2, %v2147_v15  ;;  %v674_v33 = vshrl.u32 %v380_v8, 16 }
  0xdd   : > { %v12134_v30 = vcombine.low %v1835_v39, %v1845_v46  ;;  %v2140_v61 = vsel %vm13357_vm2, %v2138_v18, %v2139_v4  ;;  %2832 = vrot.lane.b32.xlu1 %v12135_v23, %s13216_s25  ;;  %v677_v38 = vshll.u32 %v380_v8, 16  ;;  %v683_v10 = vshll.u32 %v14091_v22, 16 }
  0xde   : > { %v14106_v51 = vpop.permute.xlu1 %2900  ;;  %v12150_v6 = vcombine.low %v2137_v14, %v2140_v61  ;;  %v687_v60 = vshrl.u32 %v14091_v22, 16  ;;  %v676_v26 = vrot.slane %v674_v33, 4  ;;  %v693_v57 = vshll.u32 %v14100_v27, 16  ;;  %v11876_v14 = vld [vmem:[%s13333_s29 + $0x90] sm:$0xf] }
  0xdf   : > { %2830 = vrot.lane.b32.xlu0 %v12134_v30, %s13216_s25  ;;  %v650_v44 = vshrl.u32 %v378_v0, 16  ;;  %v653_v12 = vshll.u32 %v378_v0, 16  ;;  %v14114_v34 = vpop.permute.xlu0 %2898  ;;  %v679_v1 = vrot.slane %v677_v38, 5  ;;  %v685_v3 = vrot.slane %v683_v10, 5  ;;  %v14144_v30 = vld [vmem:[%s13333_s29 + $0x94] sm:$0xf] }
  0xe0   : > { %v689_v47 = vrot.slane %v687_v60, 4  ;;  %v659_v42 = vshll.u32 %v379_v37, 16  ;;  %v695_v48 = vrot.slane %v693_v57, 5  ;;  %v663_v24 = vshrl.u32 %v379_v37, 16 }
  0xe1   : > { %v652_v9 = vrot.slane %v650_v44, 4  ;;  %v655_v49 = vrot.slane %v653_v12, 5  ;;  %2912 = vrot.lane.b32.xlu1 %v12151_v32, %s13217_s28  ;;  %v680_v52 = vor.u32 %v679_v1, %v676_v26  ;;  %v669_v7 = vshll.u32 %v400_v41, 16 }
  0xe2   : > { %v690_v53 = vor.u32 %v689_v47, %v685_v3  ;;  %v661_v29 = vrot.slane %v659_v42, 5  ;;  %v665_v50 = vrot.slane %v663_v24, 4  ;;  %v3082_v31 = vsel %vm3074_vm10, %v3049_v21, %v14041_v58 }
  0xe3   : > { %2910 = vrot.lane.b32.xlu0 %v12150_v6, %s13217_s28  ;;  %v656_v54 = vor.u32 %v655_v49, %v652_v9  ;;  %v3080_v45 = vsel %vm3074_vm10, %v3047_v25, %v14046_v35  ;;  %v681_v36 = vrot.slane %v680_v52, 4  ;;  %v671_v39 = vrot.slane %v669_v7, 5  ;;  %v11874_v6 = vld [vmem:[%s13333_s29 + $0x84] sm:$0xf]  ;;  %v11897_v9 = vld [vmem:[%s13333_s29 + $0x98] sm:$0x1] }
  0xe4   : > { %v691_v16 = vrot.slane %v690_v53, 4  ;;  %v11849_v62 = vrot.slane %v804_v13, 9  ;;  %v666_v43 = vor.u32 %v665_v50, %v661_v29  ;;  %v939_v2 = vrot.slane %v14091_v22, 5  ;;  %v14177_v53 = vld [vmem:[%s13333_s29 + $0x8c] sm:$0x1] }
  0xe5   : > { %v14124_v55 = vpop.permute.xlu1 %2312  ;;  %v657_v28 = vrot.slane %v656_v54, 4  ;;  %v942_v56 = vrot.slane %v14100_v27, 5  ;;  %v686_v58 = vsel %vm13401_vm5, %v681_v36, %v685_v3  ;;  %v11848_v8 = vrot.slane %v803_v20, 9 }
  0xe6   : > { %v696_v35 = vsel %vm13401_vm5, %v691_v16, %v695_v48  ;;  %v932_v11 = vrot.slane %v379_v37, 5  ;;  %v667_v22 = vrot.slane %v666_v43, 4  ;;  %v940_v23 = vsel %vm13357_vm2, %v11849_v62, %v939_v2 }
  0xe7   : > { %v14128_v4 = vpop.permute.xlu0 %2310  ;;  %v12041_v18 = vcombine.low %v686_v58, %v696_v35  ;;  %v662_v21 = vsel %vm13401_vm5, %v657_v28, %v661_v29  ;;  %v941_v15 = vrot.slane %v939_v2, 4  ;;  %v935_v0 = vrot.slane %v400_v41, 5  ;;  %v14161_v41 = vld [vmem:[%s13333_s29 + $0x88] sm:$0xf]  ;;  %v11913_v28 = vld [vmem:[%s13333_s29 + $0x90] sm:$0xe] }
  0xe8   : > { %v933_v25 = vsel %vm13357_vm2, %v11848_v8, %v932_v11  ;;  %v934_v27 = vrot.slane %v932_v11, 4  ;;  %v672_v32 = vsel %vm13401_vm5, %v667_v22, %v671_v39  ;;  %v3115_v61 = vsel %vm3107_vm11, %v3082_v31, %v14059_v5  ;;  %v11912_v35 = vld [vmem:[%s13333_s29 + $0x84] sm:$0xe] }
  0xe9   : > { %v14139_v46 = vpop.permute.xlu1 %2392  ;;  %2324 = vrot.lane.b32.xlu1 %v12041_v18, %s13213_s18  ;;  %v3113_v33 = vsel %vm3107_vm11, %v3080_v45, %v14062_v40  ;;  %v1286_v37 = vshrl.u32 %v11876_v14, 16  ;;  %v12040_v10 = vcombine.low %v662_v21, %v672_v32  ;;  %v943_v60 = vsel %vm13357_vm2, %v941_v15, %v942_v56 }
  0xea   : > { %v936_v26 = vsel %vm13357_vm2, %v934_v27, %v935_v0  ;;  %v1289_v57 = vshll.u32 %v11876_v14, 16  ;;  %v12057_v44 = vcombine.low %v940_v23, %v943_v60  ;;  %v1299_v40 = vshrl.u32 %v14144_v30, 16 }
  0xeb   : > { %v14154_v38 = vpop.permute.xlu0 %2390  ;;  %v12056_v5 = vcombine.low %v933_v25, %v936_v26  ;;  %v1288_v12 = vrot.slane %v1286_v37, 4  ;;  %2322 = vrot.lane.b32.xlu0 %v12040_v10, %s13213_s18  ;;  %v12073_v47 = vcombine.low %v11876_v14, %v14144_v30  ;;  %v1262_v42 = vshrl.u32 %v11874_v6, 16 }
  0xec   : > { %v1291_v3 = vrot.slane %v1289_v57, 5  ;;  %v1265_v48 = vshll.u32 %v11874_v6, 16  ;;  %v1275_v49 = vshrl.u32 %v14161_v41, 16  ;;  %v12072_v24 = vcombine.low %v11874_v6, %v14161_v41  ;;  %v13018_v57 = vld [vmem:[%s13333_s29 + $0x3c] sm:$0xf] }
  0xed   : > { %v14164_v1 = vpop.permute.xlu1 %2488  ;;  %2404 = vrot.lane.b32.xlu1 %v12057_v44, %s13212_s12  ;;  %v3148_v13 = vsel %vm19627_vm12, %v3115_v61, %v14074_v59  ;;  %v3146_v52 = vsel %vm19627_vm12, %v3113_v33, %v14079_v63  ;;  %v1264_v7 = vrot.slane %v1262_v42, 4  ;;  %v1295_v31 = vshll.u32 %v14144_v30, 16  ;;  %v13020_v42 = vld [vmem:[%s13333_s29 + $0x30] sm:$0xf] }
  0xee   : > { %v1267_v54 = vrot.slane %v1265_v48, 5  ;;  %v1292_v50 = vor.u32 %v1291_v3, %v1288_v12  ;;  %v1301_v45 = vrot.slane %v1299_v40, 4  ;;  %v1305_v20 = vshll.u32 %v11897_v9, 16  ;;  %v13021_v48 = vld [vmem:[%s13333_s29 + $0x34] sm:$0xf] }
  0xef   : > { %v14179_v29 = vpop.permute.xlu0 %2486  ;;  %v1271_v36 = vshll.u32 %v14161_v41, 16  ;;  %v1277_v16 = vrot.slane %v1275_v49, 4  ;;  %2402 = vrot.lane.b32.xlu0 %v12056_v5, %s13212_s12  ;;  %v1297_v63 = vrot.slane %v1295_v31, 5  ;;  %v1281_v62 = vshll.u32 %v14177_v53, 16  ;;  %v11956_v5 = vld [vmem:[%s13333_s29 + $0x9c] sm:$0xf] }
  0xf0   : > { %v1293_v59 = vrot.slane %v1292_v50, 4  ;;  %v1268_v39 = vor.u32 %v1267_v54, %v1264_v7  ;;  %v1307_v43 = vrot.slane %v1305_v20, 5  ;;  %v3181_v56 = vsel %vm19629_vm14, %v3148_v13, %v14106_v51  ;;  %v14226_v49 = vld [vmem:[%s13333_s29 + $0xa0] sm:$0xf]  ;;  %v14234_v54 = vld [vmem:[%s13333_s29 + $0x94] sm:$0xf] }
  0xf1   : > { %2500 = vrot.lane.b32.xlu1 %v12073_v47, %s13210_s30  ;;  %v1273_v2 = vrot.slane %v1271_v36, 5  ;;  %v3179_v58 = vsel %vm19629_vm14, %v3146_v52, %v14114_v34  ;;  %v1302_v14 = vor.u32 %v1301_v45, %v1297_v63  ;;  %v1283_v21 = vrot.slane %v1281_v62, 5 }
  0xf2   : > { %v1298_v11 = vsel %vm13401_vm5, %v1293_v59, %v1297_v63  ;;  %v1269_v18 = vrot.slane %v1268_v39, 4  ;;  %12777 = vmatprep.mubr.msk.bf16.mxu0 %vm19628_vm15, %v3179_v58  ;;  %v11929_v15 = vrot.slane %v11913_v28, 9  ;;  %v1548_v51 = vrot.slane %v14144_v30, 5  ;;  %v11977_v39 = vld [vmem:[%s13333_s29 + $0xa4] sm:$0x1] }
  0xf3   : > { %v14192_v8 = vpop.permute.xlu1 %2568  ;;  %v1278_v23 = vor.u32 %v1277_v16, %v1273_v2  ;;  %v1551_v25 = vrot.slane %v11897_v9, 5  ;;  %12778 = vmatmul.mubr.msk.bf16.gmra.mrb[4].mxu0 %vm19628_vm15, %v3181_v56  ;;  %2498 = vrot.lane.b32.xlu0 %v12072_v24, %s13210_s30  ;;  %v1303_v34 = vrot.slane %v1302_v14, 4  ;;  %v11928_v0 = vrot.slane %v11912_v35, 9  ;;  %v11954_v24 = vld [vmem:[%s13333_s29 + $0x90] sm:$0xf] }
  0xf4   : > { %v14197_v22 = vpop.permute.xlu0 %2566  ;;  %v1274_v27 = vsel %vm13401_vm5, %v1269_v18, %v1273_v2  ;;  %v1541_v32 = vrot.slane %v14161_v41, 5  ;;  %v1549_v30 = vsel %vm13357_vm2, %v11929_v15, %v1548_v51  ;;  %v1550_v33 = vrot.slane %v1548_v51, 4  ;;  %v13019_v41 = vld [vmem:[%s13333_s29 + $0x40] sm:$0xf]  ;;  %v11976_v56 = vld [vmem:[%s13333_s29 + $0x98] sm:$0x1] }
  0xf5   : > { %v1279_v61 = vrot.slane %v1278_v23, 4  ;;  %v1544_v37 = vrot.slane %v14177_v53, 5  ;;  %v1308_v10 = vsel %vm13401_vm5, %v1303_v34, %v1307_v43  ;;  %v12019_v44 = vcombine.low %v13018_v57, %v13019_v41 }
  0xf6   : > { %v1542_v60 = vsel %vm13357_vm2, %v11928_v0, %v1541_v32  ;;  %v1543_v26 = vrot.slane %v1541_v32, 4  ;;  %v12089_v40 = vcombine.low %v1298_v11, %v1308_v10  ;;  %v1552_v47 = vsel %vm13357_vm2, %v1550_v33, %v1551_v25  ;;  %v11993_v0 = vld [vmem:[%s13333_s29 + $0x9c] sm:$0xe] }
  0xf7   : > { %v14208_v6 = vpop.permute.xlu1 %2648  ;;  %v1284_v3 = vsel %vm13401_vm5, %v1279_v61, %v1283_v21  ;;  %v12018_v9 = vcombine.low %v13020_v42, %v13021_v48  ;;  %v12105_v52 = vcombine.low %v1549_v30, %v1552_v47  ;;  %v2944_v7 = vsel %vm2926_vm6, %v12019_v44, %v14124_v55 }
  0xf8   : > { %v14217_v12 = vpop.permute.xlu0 %2646  ;;  %v12088_v13 = vcombine.low %v1274_v27, %v1284_v3  ;;  %v1545_v53 = vsel %vm13357_vm2, %v1543_v26, %v1544_v37  ;;  %2580 = vrot.lane.b32.xlu1 %v12089_v40, %s13214_s20  ;;  %v1895_v45 = vshrl.u32 %v11956_v5, 16  ;;  %v1898_v20 = vshll.u32 %v11956_v5, 16  ;;  %v11992_v37 = vld [vmem:[%s13333_s29 + $0x90] sm:$0xe] }
  0xf9   : > { %v12104_v50 = vcombine.low %v1542_v60, %v1545_v53  ;;  %v2941_v31 = vsel %vm2926_vm6, %v12018_v9, %v14128_v4  ;;  %v1908_v16 = vshrl.u32 %v14226_v49, 16  ;;  %v12121_v59 = vcombine.low %v11956_v5, %v14226_v49 }
  0xfa   : > { %2578 = vrot.lane.b32.xlu0 %v12088_v13, %s13214_s20  ;;  %v1871_v55 = vshrl.u32 %v11954_v24, 16  ;;  %v1874_v63 = vshll.u32 %v11954_v24, 16  ;;  %v1897_v28 = vrot.slane %v1895_v45, 4  ;;  %v1900_v43 = vrot.slane %v1898_v20, 5 }
  0xfb   : > { %v14239_v36 = vpop.permute.xlu1 %2744  ;;  %v1884_v2 = vshrl.u32 %v14234_v54, 16  ;;  %v12120_v4 = vcombine.low %v11954_v24, %v14234_v54  ;;  %v2987_v11 = vsel %vm2975_vm7, %v2944_v7, %v14139_v46  ;;  %v2985_v14 = vsel %vm2975_vm7, %v2941_v31, %v14154_v38 }
  0xfc   : > { %v14245_v62 = vpop.permute.xlu0 %2742  ;;  %v1873_v58 = vrot.slane %v1871_v55, 4  ;;  %v1876_v35 = vrot.slane %v1874_v63, 5  ;;  %2660 = vrot.lane.b32.xlu1 %v12105_v52, %s13211_s11  ;;  %v1901_v18 = vor.u32 %v1900_v43, %v1897_v28  ;;  %v1904_v21 = vshll.u32 %v14226_v49, 16  ;;  %v384_v28 = vld [vmem:[%s13333_s29 + $0x9c] sm:$0xf] }
  0xfd   : > { %v1910_v23 = vrot.slane %v1908_v16, 4  ;;  %v1914_v15 = vshll.u32 %v11977_v39, 16  ;;  %v1880_v34 = vshll.u32 %v14234_v54, 16  ;;  %v1886_v27 = vrot.slane %v1884_v2, 4 }
  0xfe   : > { %2658 = vrot.lane.b32.xlu0 %v12104_v50, %s13211_s11  ;;  %v1877_v25 = vor.u32 %v1876_v35, %v1873_v58  ;;  %v1890_v46 = vshll.u32 %v11976_v56, 16  ;;  %v1902_v38 = vrot.slane %v1901_v18, 4  ;;  %v1906_v61 = vrot.slane %v1904_v21, 5  ;;  %v382_v50 = vld [vmem:[%s13333_s29 + $0x90] sm:$0xf] }
  0xff   : > { %v14256_v51 = vpop.permute.xlu1 %2824  ;;  %v1916_v30 = vrot.slane %v1914_v15, 5  ;;  %v3020_v33 = vsel %vm3008_vm8, %v2987_v11, %v14164_v1  ;;  %v1882_v60 = vrot.slane %v1880_v34, 5  ;;  %v3018_v57 = vsel %vm3008_vm8, %v2985_v14, %v14179_v29  ;;  %v14312_v14 = vld [vmem:[%s13333_s29 + $0xa0] sm:$0xf]  ;;  %v14320_v15 = vld [vmem:[%s13333_s29 + $0xa4] sm:$0x1] }
 0x100   : > { %v14261_v32 = vpop.permute.xlu0 %2822  ;;  %v1878_v10 = vrot.slane %v1877_v25, 4  ;;  %v1892_v26 = vrot.slane %v1890_v46, 5  ;;  %2756 = vrot.lane.b32.xlu1 %v12121_v59, %s13215_s21  ;;  %v1907_v41 = vsel %vm13401_vm5, %v1902_v38, %v1906_v61  ;;  %v1911_v44 = vor.u32 %v1910_v23, %v1906_v61  ;;  %v14294_v59 = vld [vmem:[%s13333_s29 + $0x94] sm:$0xf] }
 0x101   : > { %v12009_v5 = vrot.slane %v11993_v0, 9  ;;  %v2157_v40 = vrot.slane %v14226_v49, 5  ;;  %v1887_v3 = vor.u32 %v1886_v27, %v1882_v60  ;;  %v2160_v47 = vrot.slane %v11977_v39, 5  ;;  %v14301_v39 = vld [vmem:[%s13333_s29 + $0x98] sm:$0x1] }
 0x102   : > { %2754 = vrot.lane.b32.xlu0 %v12120_v4, %s13215_s21  ;;  %v1883_v1 = vsel %vm13401_vm5, %v1878_v10, %v1882_v60  ;;  %v12008_v42 = vrot.slane %v11992_v37, 9  ;;  %v1912_v48 = vrot.slane %v1911_v44, 4  ;;  %v2150_v13 = vrot.slane %v14234_v54, 5 }
 0x103   : > { %v14275_v29 = vpop.permute.xlu1 %2904  ;;  %v2158_v9 = vsel %vm13357_vm2, %v12009_v5, %v2157_v40  ;;  %v2159_v24 = vrot.slane %v2157_v40, 4  ;;  %v1888_v49 = vrot.slane %v1887_v3, 4  ;;  %v2153_v52 = vrot.slane %v11976_v56, 5 }
 0x104   : > { %v3053_v53 = vsel %vm3041_vm9, %v3020_v33, %v14192_v8  ;;  %v3051_v7 = vsel %vm3041_vm9, %v3018_v57, %v14197_v22  ;;  %v14285_v31 = vpop.permute.xlu0 %2902  ;;  %v1917_v45 = vsel %vm13401_vm5, %v1912_v48, %v1916_v30  ;;  %v2151_v54 = vsel %vm13357_vm2, %v12008_v42, %v2150_v13 }
 0x105   : > { %v2161_v20 = vsel %vm13357_vm2, %v2159_v24, %v2160_v47  ;;  %v2152_v16 = vrot.slane %v2150_v13, 4  ;;  %v12137_v8 = vcombine.low %v1907_v41, %v1917_v45  ;;  %v1893_v22 = vsel %vm13401_vm5, %v1888_v49, %v1892_v26  ;;  %v805_v41 = vld [vmem:[%s13333_s29 + $0x90] sm:$0xe]  ;;  %v806_v47 = vld [vmem:[%s13333_s29 + $0x9c] sm:$0xe] }
 0x106   : > { %v12153_v55 = vcombine.low %v2158_v9, %v2161_v20  ;;  %v3086_v63 = vsel %vm3074_vm10, %v3053_v53, %v14208_v6  ;;  %v12136_v43 = vcombine.low %v1883_v1, %v1893_v22  ;;  %v3084_v4 = vsel %vm3074_vm10, %v3051_v7, %v14217_v12 }
 0x107   : > { %v2154_v2 = vsel %vm13357_vm2, %v2152_v16, %v2153_v52  ;;  %v698_v56 = vshrl.u32 %v382_v50, 16  ;;  %2836 = vrot.lane.b32.xlu1 %v12137_v8, %s13216_s25  ;;  %v701_v35 = vshll.u32 %v382_v50, 16  ;;  %v707_v11 = vshll.u32 %v14294_v59, 16 }
 0x108   : > { %v12152_v58 = vcombine.low %v2151_v54, %v2154_v2  ;;  %v711_v6 = vshrl.u32 %v14294_v59, 16  ;;  %2834 = vrot.lane.b32.xlu0 %v12136_v43, %s13216_s25  ;;  %v717_v23 = vshll.u32 %v14301_v39, 16  ;;  %v949_v12 = vrot.slane %v14301_v39, 5  ;;  %v11878_v54 = vld [vmem:[%s13333_s29 + $0x9c] sm:$0xf] }
 0x109   : > { %v700_v21 = vrot.slane %v698_v56, 4  ;;  %v722_v25 = vshrl.u32 %v384_v28, 16  ;;  %v703_v34 = vrot.slane %v701_v35, 5  ;;  %v709_v27 = vrot.slane %v707_v11, 5  ;;  %v14358_v43 = vld [vmem:[%s13333_s29 + $0xa0] sm:$0xf] }
 0x10a   : > { %v14314_v18 = vpop.permute.xlu1 %2316  ;;  %v713_v46 = vrot.slane %v711_v6, 4  ;;  %v725_v0 = vshll.u32 %v384_v28, 16  ;;  %v719_v61 = vrot.slane %v717_v23, 5  ;;  %v731_v33 = vshll.u32 %v14312_v14, 16  ;;  %v11880_v11 = vld [vmem:[%s13333_s29 + $0xa8] sm:$0xf] }
 0x10b   : > { %v724_v30 = vrot.slane %v722_v25, 4  ;;  %v735_v37 = vshrl.u32 %v14312_v14, 16  ;;  %2916 = vrot.lane.b32.xlu1 %v12153_v55, %s13217_s28  ;;  %v704_v10 = vor.u32 %v703_v34, %v700_v21  ;;  %v741_v57 = vshll.u32 %v14320_v15, 16 }
 0x10c   : > { %v14322_v38 = vpop.permute.xlu0 %2314  ;;  %v714_v60 = vor.u32 %v713_v46, %v709_v27  ;;  %v727_v26 = vrot.slane %v725_v0, 5  ;;  %2914 = vrot.lane.b32.xlu0 %v12152_v58, %s13217_s28  ;;  %v733_v5 = vrot.slane %v731_v33, 5  ;;  %v956_v1 = vrot.slane %v14320_v15, 5 }
 0x10d   : > { %v737_v40 = vrot.slane %v735_v37, 4  ;;  %v3119_v3 = vsel %vm3107_vm11, %v3086_v63, %v14239_v36  ;;  %v705_v42 = vrot.slane %v704_v10, 4  ;;  %v743_v24 = vrot.slane %v741_v57, 5 }
 0x10e   : > { %v14329_v44 = vpop.permute.xlu1 %2396  ;;  %v715_v48 = vrot.slane %v714_v60, 4  ;;  %v728_v9 = vor.u32 %v727_v26, %v724_v30  ;;  %v3117_v52 = vsel %vm3107_vm11, %v3084_v4, %v14245_v62  ;;  %v11850_v53 = vrot.slane %v805_v41, 9  ;;  %v14391_v26 = vld [vmem:[%s13333_s29 + $0xb0] sm:$0x1] }
 0x10f   : > { %v738_v49 = vor.u32 %v737_v40, %v733_v5  ;;  %v946_v7 = vrot.slane %v14294_v59, 5  ;;  %v710_v50 = vsel %vm13401_vm5, %v705_v42, %v709_v27  ;;  %v11851_v20 = vrot.slane %v806_v47, 9 }
 0x110   : > { %v14336_v13 = vpop.permute.xlu0 %2394  ;;  %v720_v36 = vsel %vm13401_vm5, %v715_v48, %v719_v61  ;;  %v729_v45 = vrot.slane %v728_v9, 4  ;;  %v953_v63 = vrot.slane %v14312_v14, 5  ;;  %v3152_v39 = vsel %vm19627_vm12, %v3119_v3, %v14256_v51  ;;  %v14369_v51 = vld [vmem:[%s13333_s29 + $0xac] sm:$0xf]  ;;  %v14380_v61 = vld [vmem:[%s13333_s29 + $0xa4] sm:$0x1] }
 0x111   : > { %v12042_v8 = vcombine.low %v710_v50, %v720_v36  ;;  %v739_v22 = vrot.slane %v738_v49, 4  ;;  %v947_v62 = vsel %vm13357_vm2, %v11850_v53, %v946_v7  ;;  %v948_v55 = vrot.slane %v946_v7, 4  ;;  %v11914_v49 = vld [vmem:[%s13333_s29 + $0x9c] sm:$0xe]  ;;  %v13022_v50 = vld [vmem:[%s13333_s29 + $0x54] sm:$0xf] }
 0x112   : > { %v14346_v16 = vpop.permute.xlu1 %2492  ;;  %v734_v59 = vsel %vm13401_vm5, %v729_v45, %v733_v5  ;;  %v3150_v28 = vsel %vm19627_vm12, %v3117_v52, %v14261_v32  ;;  %v1310_v58 = vshrl.u32 %v11878_v54, 16  ;;  %v1313_v35 = vshll.u32 %v11878_v54, 16  ;;  %v13023_v36 = vld [vmem:[%s13333_s29 + $0x58] sm:$0xf] }
 0x113   : > { %2326 = vrot.lane.b32.xlu0 %v12042_v8, %s13213_s18  ;;  %v744_v4 = vsel %vm13401_vm5, %v739_v22, %v743_v24  ;;  %v950_v56 = vsel %vm13357_vm2, %v948_v55, %v949_v12  ;;  %v954_v14 = vsel %vm13357_vm2, %v11851_v20, %v953_v63  ;;  %v955_v21 = vrot.slane %v953_v63, 4  ;;  %v13024_v20 = vld [vmem:[%s13333_s29 + $0x48] sm:$0xf] }
 0x114   : > { %v14360_v2 = vpop.permute.xlu0 %2490  ;;  %v12043_v6 = vcombine.low %v734_v59, %v744_v4  ;;  %v12058_v32 = vcombine.low %v947_v62, %v950_v56  ;;  %v1312_v23 = vrot.slane %v1310_v58, 4  ;;  %v1315_v15 = vrot.slane %v1313_v35, 5 }
 0x115   : > { %v1323_v25 = vshrl.u32 %v14358_v43, 16  ;;  %v12074_v34 = vcombine.low %v11878_v54, %v14358_v43  ;;  %v957_v12 = vsel %vm13357_vm2, %v955_v21, %v956_v1  ;;  %v1334_v27 = vshrl.u32 %v11880_v11, 16  ;;  %v13025_v54 = vld [vmem:[%s13333_s29 + $0x4c] sm:$0xf] }
 0x116   : > { %2328 = vrot.lane.b32.xlu1 %v12043_v6, %s13213_s18  ;;  %v1337_v46 = vshll.u32 %v11880_v11, 16  ;;  %v1347_v0 = vshrl.u32 %v14369_v51, 16  ;;  %v12059_v33 = vcombine.low %v954_v14, %v957_v12  ;;  %v12075_v37 = vcombine.low %v11880_v11, %v14369_v51 }
 0x117   : > { %2406 = vrot.lane.b32.xlu0 %v12058_v32, %s13212_s12  ;;  %v3185_v10 = vsel %vm19629_vm14, %v3152_v39, %v14275_v29  ;;  %v3183_v60 = vsel %vm19629_vm14, %v3150_v28, %v14285_v31  ;;  %v1336_v41 = vrot.slane %v1334_v27, 4  ;;  %v1316_v40 = vor.u32 %v1315_v15, %v1312_v23  ;;  %v11915_v39 = vld [vmem:[%s13333_s29 + $0xa8] sm:$0xe] }
 0x118   : > { %v14382_v30 = vpop.permute.xlu1 %2572  ;;  %v1339_v5 = vrot.slane %v1337_v46, 5  ;;  %v1319_v1 = vshll.u32 %v14358_v43, 16  ;;  %12781 = vmatprep.mubr.msk.bf16.mxu0 %vm19628_vm15, %v3183_v60  ;;  %v1325_v3 = vrot.slane %v1323_v25, 4  ;;  %v1329_v29 = vshll.u32 %v14380_v61, 16  ;;  %v11958_v15 = vld [vmem:[%s13333_s29 + $0xa8] sm:$0xf] }
 0x119   : > { %v14393_v57 = vpop.permute.xlu0 %2570  ;;  %v1343_v47 = vshll.u32 %v14369_v51, 16  ;;  %v1349_v31 = vrot.slane %v1347_v0, 4  ;;  %12782 = vmatmul.mubr.msk.bf16.gmra.mrb[8].mxu0 %vm19628_vm15, %v3185_v10  ;;  %v1317_v42 = vrot.slane %v1316_v40, 4  ;;  %v1353_v24 = vshll.u32 %v14391_v26, 16  ;;  %v14438_v46 = vld [vmem:[%s13333_s29 + $0xac] sm:$0xf] }
 0x11a   : > { %2408 = vrot.lane.b32.xlu1 %v12059_v33, %s13212_s12  ;;  %v1321_v48 = vrot.slane %v1319_v1, 5  ;;  %v1340_v9 = vor.u32 %v1339_v5, %v1336_v41  ;;  %v1331_v53 = vrot.slane %v1329_v29, 5  ;;  %v12021_v45 = vcombine.low %v13022_v50, %v13023_v36  ;;  %v14450_v41 = vld [vmem:[%s13333_s29 + $0xb8] sm:$0xf] }
 0x11b   : > { %2502 = vrot.lane.b32.xlu0 %v12074_v34, %s13210_s30  ;;  %v1345_v7 = vrot.slane %v1343_v47, 5  ;;  %v12020_v8 = vcombine.low %v13024_v20, %v13025_v54  ;;  %v1355_v63 = vrot.slane %v1353_v24, 5  ;;  %v11930_v58 = vrot.slane %v11914_v49, 9 }
 0x11c   : > { %v14403_v52 = vpop.permute.xlu1 %2652  ;;  %v1322_v62 = vsel %vm13401_vm5, %v1317_v42, %v1321_v48  ;;  %v1326_v55 = vor.u32 %v1325_v3, %v1321_v48  ;;  %v1341_v59 = vrot.slane %v1340_v9, 4  ;;  %v2950_v4 = vsel %vm2926_vm6, %v12021_v45, %v14314_v18  ;;  %v11978_v48 = vld [vmem:[%s13333_s29 + $0xb0] sm:$0x1] }
 0x11d   : > { %v14410_v22 = vpop.permute.xlu0 %2650  ;;  %v1350_v28 = vor.u32 %v1349_v31, %v1345_v7  ;;  %v2947_v56 = vsel %vm2926_vm6, %v12020_v8, %v14322_v38  ;;  %v1555_v6 = vrot.slane %v14358_v43, 5  ;;  %v1558_v32 = vrot.slane %v14380_v61, 5 }
 0x11e   : > { %2504 = vrot.lane.b32.xlu1 %v12075_v37, %s13210_s30  ;;  %v1327_v35 = vrot.slane %v1326_v55, 4  ;;  %v1346_v11 = vsel %vm13401_vm5, %v1341_v59, %v1345_v7  ;;  %v11931_v18 = vrot.slane %v11915_v39, 9  ;;  %v1562_v23 = vrot.slane %v14369_v51, 5  ;;  %v11960_v37 = vld [vmem:[%s13333_s29 + $0xb4] sm:$0xf] }
 0x11f   : > { %v1351_v21 = vrot.slane %v1350_v28, 4  ;;  %v1565_v38 = vrot.slane %v14391_v26, 5  ;;  %v1556_v43 = vsel %vm13357_vm2, %v11930_v58, %v1555_v6  ;;  %v1557_v12 = vrot.slane %v1555_v6, 4  ;;  %v11979_v7 = vld [vmem:[%s13333_s29 + $0xbc] sm:$0x1] }
 0x120   : > { %v14424_v14 = vpop.permute.xlu1 %2748  ;;  %v1332_v34 = vsel %vm13401_vm5, %v1327_v35, %v1331_v53  ;;  %v2991_v27 = vsel %vm2975_vm7, %v2950_v4, %v14329_v44  ;;  %v1563_v61 = vsel %vm13357_vm2, %v11931_v18, %v1562_v23  ;;  %v1564_v33 = vrot.slane %v1562_v23, 4 }
 0x121   : > { %v14429_v25 = vpop.permute.xlu0 %2746  ;;  %v12090_v0 = vcombine.low %v1322_v62, %v1332_v34  ;;  %v1356_v51 = vsel %vm13401_vm5, %v1351_v21, %v1355_v63  ;;  %v1559_v60 = vsel %vm13357_vm2, %v1557_v12, %v1558_v32  ;;  %v2989_v26 = vsel %vm2975_vm7, %v2947_v56, %v14336_v13 }
 0x122   : > { %v12091_v10 = vcombine.low %v1346_v11, %v1356_v51  ;;  %v1919_v44 = vshrl.u32 %v11958_v15, 16  ;;  %v12106_v5 = vcombine.low %v1556_v43, %v1559_v60  ;;  %v1566_v40 = vsel %vm13357_vm2, %v1564_v33, %v1565_v38  ;;  %v11995_v11 = vld [vmem:[%s13333_s29 + $0xb4] sm:$0xe] }
 0x123   : > { %2582 = vrot.lane.b32.xlu0 %v12090_v0, %s13214_s20  ;;  %v1922_v1 = vshll.u32 %v11958_v15, 16  ;;  %v1932_v3 = vshrl.u32 %v14438_v46, 16  ;;  %v12107_v47 = vcombine.low %v1563_v61, %v1566_v40  ;;  %v12122_v13 = vcombine.low %v11958_v15, %v14438_v46 }
 0x124   : > { %v14456_v29 = vpop.permute.xlu1 %2828  ;;  %2584 = vrot.lane.b32.xlu1 %v12091_v10, %s13214_s20  ;;  %v1921_v31 = vrot.slane %v1919_v44, 4  ;;  %v1943_v42 = vshrl.u32 %v11960_v37, 16  ;;  %v1946_v24 = vshll.u32 %v11960_v37, 16  ;;  %v1956_v49 = vshrl.u32 %v14450_v41, 16 }
 0x125   : > { %v1924_v9 = vrot.slane %v1922_v1, 5  ;;  %v12123_v53 = vcombine.low %v11960_v37, %v14450_v41  ;;  %v14464_v50 = vpop.permute.xlu0 %2826  ;;  %v3024_v45 = vsel %vm3008_vm8, %v2991_v27, %v14346_v16  ;;  %v3022_v20 = vsel %vm3008_vm8, %v2989_v26, %v14360_v2  ;;  %v11994_v16 = vld [vmem:[%s13333_s29 + $0xa8] sm:$0xe] }
 0x126   : > { %v1945_v36 = vrot.slane %v1943_v42, 4  ;;  %v1928_v54 = vshll.u32 %v14438_v46, 16  ;;  %v1948_v8 = vrot.slane %v1946_v24, 5  ;;  %v1934_v55 = vrot.slane %v1932_v3, 4 }
 0x127   : > { %2662 = vrot.lane.b32.xlu0 %v12106_v5, %s13211_s11  ;;  %v1925_v62 = vor.u32 %v1924_v9, %v1921_v31  ;;  %v1938_v59 = vshll.u32 %v11978_v48, 16  ;;  %v1952_v39 = vshll.u32 %v14450_v41, 16  ;;  %v1958_v28 = vrot.slane %v1956_v49, 4  ;;  %v14515_v49 = vld [vmem:[%s13333_s29 + $0xac] sm:$0xf] }
 0x128   : > { %2664 = vrot.lane.b32.xlu1 %v12107_v47, %s13211_s11  ;;  %v1930_v63 = vrot.slane %v1928_v54, 5  ;;  %v1962_v4 = vshll.u32 %v11979_v7, 16  ;;  %v1949_v2 = vor.u32 %v1948_v8, %v1945_v36  ;;  %v3057_v35 = vsel %vm3041_vm9, %v3024_v45, %v14382_v30  ;;  %v2909_v6 = vpop.permute.xlu1 %2908  ;;  %v13026_v45 = vld [vmem:[%s13333_s29 + $0x6c] sm:$0xf]  ;;  %v14526_v8 = vld [vmem:[%s13333_s29 + $0xb4] sm:$0xf] }
 0x129   : > { %v1926_v56 = vrot.slane %v1925_v62, 4  ;;  %v1940_v58 = vrot.slane %v1938_v59, 5  ;;  %v1954_v21 = vrot.slane %v1952_v39, 5  ;;  %v3055_v23 = vsel %vm3041_vm9, %v3022_v20, %v14393_v57  ;;  %v2907_v12 = vpop.permute.xlu0 %2906  ;;  %v13027_v20 = vld [vmem:[%s13333_s29 + $0x70] sm:$0xf] }
 0x12a   : > { %v1935_v32 = vor.u32 %v1934_v55, %v1930_v63  ;;  %v1964_v18 = vrot.slane %v1962_v4, 5  ;;  %v1950_v15 = vrot.slane %v1949_v2, 4  ;;  %v12010_v34 = vrot.slane %v11994_v16, 9  ;;  %v13029_v62 = vld [vmem:[%s13333_s29 + $0x64] sm:$0xf] }
 0x12b   : > { %2758 = vrot.lane.b32.xlu0 %v12122_v13, %s13215_s21  ;;  %v1931_v38 = vsel %vm13401_vm5, %v1926_v56, %v1930_v63  ;;  %v2164_v43 = vrot.slane %v14438_v46, 5  ;;  %v1959_v27 = vor.u32 %v1958_v28, %v1954_v21  ;;  %v2167_v0 = vrot.slane %v11978_v48, 5  ;;  %v14505_v13 = vld [vmem:[%s13333_s29 + $0xa8] sm:$0xf]  ;;  %v14540_v16 = vld [vmem:[%s13333_s29 + $0xb8] sm:$0xf] }
 0x12c   : > { %2760 = vrot.lane.b32.xlu1 %v12123_v53, %s13215_s21  ;;  %v1936_v30 = vrot.slane %v1935_v32, 4  ;;  %v12011_v51 = vrot.slane %v11995_v11, 9  ;;  %v1955_v61 = vsel %vm13401_vm5, %v1950_v15, %v1954_v21  ;;  %v2171_v37 = vrot.slane %v14450_v41, 5 }
 0x12d   : > { %v2165_v57 = vsel %vm13357_vm2, %v12010_v34, %v2164_v43  ;;  %v2166_v33 = vrot.slane %v2164_v43, 4  ;;  %v1960_v10 = vrot.slane %v1959_v27, 4  ;;  %v2174_v60 = vrot.slane %v11979_v7, 5 }
 0x12e   : > { %v1941_v46 = vsel %vm13401_vm5, %v1936_v30, %v1940_v58  ;;  %v3090_v26 = vsel %vm3074_vm10, %v3057_v35, %v14403_v52  ;;  %v2172_v40 = vsel %vm13357_vm2, %v12011_v51, %v2171_v37  ;;  %v2173_v1 = vrot.slane %v2171_v37, 4  ;;  %v405_v35 = vld [vmem:[%s13333_s29 + $0xbc] sm:$0x1]  ;;  %v807_v30 = vld [vmem:[%s13333_s29 + $0xa8] sm:$0xe] }
 0x12f   : > { %v12138_v44 = vcombine.low %v1931_v38, %v1941_v46  ;;  %v2168_v5 = vsel %vm13357_vm2, %v2166_v33, %v2167_v0  ;;  %v2321_v3 = vpop.permute.xlu1 %2320  ;;  %v1965_v41 = vsel %vm13401_vm5, %v1960_v10, %v1964_v18  ;;  %v3088_v52 = vsel %vm3074_vm10, %v3055_v23, %v14410_v22  ;;  %v808_v10 = vld [vmem:[%s13333_s29 + $0xb4] sm:$0xe] }
 0x130   : > { %v12154_v47 = vcombine.low %v2165_v57, %v2168_v5  ;;  %v3123_v31 = vsel %vm3107_vm11, %v3090_v26, %v14424_v14  ;;  %v12139_v42 = vcombine.low %v1955_v61, %v1965_v41  ;;  %v2175_v48 = vsel %vm13357_vm2, %v2173_v1, %v2174_v60  ;;  %v14518_v14 = vld [vmem:[%s13333_s29 + $0xb0] sm:$0x1] }
 0x131   : > { %2838 = vrot.lane.b32.xlu0 %v12138_v44, %s13216_s25  ;;  %v3121_v9 = vsel %vm3107_vm11, %v3088_v52, %v14429_v25  ;;  %v3156_v22 = vsel %vm19627_vm12, %v3123_v31, %v14456_v29  ;;  %v12155_v53 = vcombine.low %v2172_v40, %v2175_v48  ;;  %v12023_v54 = vcombine.low %v13026_v45, %v13027_v20  ;;  %v13028_v29 = vld [vmem:[%s13333_s29 + $0x60] sm:$0xf] }
 0x132   : > { %v3154_v7 = vsel %vm19627_vm12, %v3121_v9, %v14464_v50  ;;  %v3189_v36 = vsel %vm19629_vm14, %v3156_v22, %v2909_v6  ;;  %2840 = vrot.lane.b32.xlu1 %v12139_v42, %s13216_s25  ;;  %v12022_v55 = vcombine.low %v13028_v29, %v13029_v62  ;;  %v746_v59 = vshrl.u32 %v14505_v13, 16 }
 0x133   : > { %v2319_v24 = vpop.permute.xlu0 %2318  ;;  %v3187_v25 = vsel %vm19629_vm14, %v3154_v7, %v2907_v12  ;;  %v749_v50 = vshll.u32 %v14505_v13, 16  ;;  %v2956_v63 = vsel %vm2926_vm6, %v12023_v54, %v2321_v3  ;;  %v755_v39 = vshll.u32 %v14515_v49, 16 }
 0x134   : > { %12785 = vmatprep.mubr.msk.bf16.mxu0 %vm19628_vm15, %v3187_v25  ;;  %v759_v28 = vshrl.u32 %v14515_v49, 16  ;;  %v765_v4 = vshll.u32 %v14518_v14, 16  ;;  %v2953_v56 = vsel %vm2926_vm6, %v12022_v55, %v2319_v24  ;;  %v748_v58 = vrot.slane %v746_v59, 4  ;;  %v2401_v6 = vpop.permute.xlu1 %2400  ;;  %v14570_v25 = vld [vmem:[%s13333_s29 + $0xb8] sm:$0xf] }
 0x135   : > { %2918 = vrot.lane.b32.xlu0 %v12154_v47, %s13217_s28  ;;  %12786 = vmatmul.mubr.msk.bf16.gmra.mrb[12].mxu0 %vm19628_vm15, %v3189_v36  ;;  %v751_v2 = vrot.slane %v749_v50, 5  ;;  %v770_v11 = vshrl.u32 %v14526_v8, 16  ;;  %v757_v32 = vrot.slane %v755_v39, 5  ;;  %v773_v23 = vshll.u32 %v14526_v8, 16  ;;  %v11882_v36 = vld [vmem:[%s13333_s29 + $0xb4] sm:$0xf] }
 0x136   : > { %v761_v21 = vrot.slane %v759_v28, 4  ;;  %v767_v18 = vrot.slane %v765_v4, 5  ;;  %2920 = vrot.lane.b32.xlu1 %v12155_v53, %s13217_s28  ;;  %v779_v43 = vshll.u32 %v14540_v16, 16  ;;  %v783_v12 = vshrl.u32 %v14540_v16, 16  ;;  %v11884_v50 = vld [vmem:[%s13333_s29 + $0xc0] sm:$0xf] }
 0x137   : > { %v2399_v38 = vpop.permute.xlu0 %2398  ;;  %v752_v15 = vor.u32 %v751_v2, %v748_v58  ;;  %v772_v34 = vrot.slane %v770_v11, 4  ;;  %v775_v0 = vrot.slane %v773_v23, 5  ;;  %v789_v51 = vshll.u32 %v405_v35, 16 }
 0x138   : > { %v762_v27 = vor.u32 %v761_v21, %v757_v32  ;;  %v2995_v61 = vsel %vm2975_vm7, %v2956_v63, %v2401_v6  ;;  %v781_v33 = vrot.slane %v779_v43, 5  ;;  %v785_v37 = vrot.slane %v783_v12, 4  ;;  %v2497_v47 = vpop.permute.xlu1 %2496  ;;  %v14581_v63 = vld [vmem:[%s13333_s29 + $0xc4] sm:$0xf] }
 0x139   : > { %v753_v57 = vrot.slane %v752_v15, 4  ;;  %v2993_v46 = vsel %vm2975_vm7, %v2953_v56, %v2399_v38  ;;  %v776_v26 = vor.u32 %v775_v0, %v772_v34  ;;  %v791_v44 = vrot.slane %v789_v51, 5  ;;  %v11900_v15 = vld [vmem:[%s13333_s29 + $0xbc] sm:$0x1] }
 0x13a   : > { %v763_v60 = vrot.slane %v762_v27, 4  ;;  %v11852_v5 = vrot.slane %v807_v30, 9  ;;  %v786_v1 = vor.u32 %v785_v37, %v781_v33  ;;  %v960_v3 = vrot.slane %v14515_v49, 5  ;;  %v11901_v27 = vld [vmem:[%s13333_s29 + $0xc8] sm:$0x1] }
 0x13b   : > { %v758_v40 = vsel %vm13401_vm5, %v753_v57, %v757_v32  ;;  %v963_v41 = vrot.slane %v14518_v14, 5  ;;  %v777_v31 = vrot.slane %v776_v26, 4  ;;  %v11853_v42 = vrot.slane %v808_v10, 9  ;;  %v2495_v9 = vpop.permute.xlu0 %2494  ;;  %v11916_v26 = vld [vmem:[%s13333_s29 + $0xb4] sm:$0xe] }
 0x13c   : > { %v768_v52 = vsel %vm13401_vm5, %v763_v60, %v767_v18  ;;  %v967_v48 = vrot.slane %v14540_v16, 5  ;;  %v787_v24 = vrot.slane %v786_v1, 4  ;;  %v961_v53 = vsel %vm13357_vm2, %v11852_v5, %v960_v3 }
 0x13d   : > { %v12044_v22 = vcombine.low %v758_v40, %v768_v52  ;;  %v962_v7 = vrot.slane %v960_v3, 4  ;;  %v782_v14 = vsel %vm13401_vm5, %v777_v31, %v781_v33  ;;  %v970_v54 = vrot.slane %v405_v35, 5 }
 0x13e   : > { %v968_v45 = vsel %vm13357_vm2, %v11853_v42, %v967_v48  ;;  %v969_v20 = vrot.slane %v967_v48, 4  ;;  %v792_v29 = vsel %vm13401_vm5, %v787_v24, %v791_v44  ;;  %v3028_v55 = vsel %vm3008_vm8, %v2995_v61, %v2497_v47  ;;  %v11917_v42 = vld [vmem:[%s13333_s29 + $0xc0] sm:$0xe] }
 0x13f   : > { %2330 = vrot.lane.b32.xlu0 %v12044_v22, %s13213_s18  ;;  %v964_v62 = vsel %vm13357_vm2, %v962_v7, %v963_v41  ;;  %v3026_v59 = vsel %vm3008_vm8, %v2993_v46, %v2495_v9  ;;  %v12045_v39 = vcombine.low %v782_v14, %v792_v29  ;;  %v1358_v56 = vshrl.u32 %v11882_v36, 16 }
 0x140   : > { %v12060_v28 = vcombine.low %v961_v53, %v964_v62  ;;  %v971_v4 = vsel %vm13357_vm2, %v969_v20, %v970_v54  ;;  %v1361_v2 = vshll.u32 %v11882_v36, 16  ;;  %v1371_v35 = vshrl.u32 %v14570_v25, 16 }
 0x141   : > { %v12061_v58 = vcombine.low %v968_v45, %v971_v4  ;;  %v12076_v11 = vcombine.low %v11882_v36, %v14570_v25  ;;  %v2577_v6 = vpop.permute.xlu1 %2576  ;;  %2332 = vrot.lane.b32.xlu1 %v12045_v39, %s13213_s18  ;;  %v1360_v32 = vrot.slane %v1358_v56, 4  ;;  %v1382_v21 = vshrl.u32 %v11884_v50, 16  ;;  %s13219_s18 = smov 96  }
 0x142   : > { %v1385_v18 = vshll.u32 %v11884_v50, 16  ;;  %v1395_v23 = vshrl.u32 %v14581_v63, 16  ;;  %v2575_v38 = vpop.permute.xlu0 %2574  ;;  %v1363_v34 = vrot.slane %v1361_v2, 5  ;;  %v12077_v43 = vcombine.low %v11884_v50, %v14581_v63 }
 0x143   : > { %2410 = vrot.lane.b32.xlu0 %v12060_v28, %s13212_s12  ;;  %v3061_v12 = vsel %vm3041_vm9, %v3028_v55, %v2577_v6  ;;  %v3059_v30 = vsel %vm3041_vm9, %v3026_v59, %v2575_v38  ;;  %v1384_v0 = vrot.slane %v1382_v21, 4  ;;  %v1367_v61 = vshll.u32 %v14570_v25, 16  ;;  %v11962_v28 = vld [vmem:[%s13333_s29 + $0xc0] sm:$0xf]  ;;  %v11964_v21 = vld [vmem:[%s13333_s29 + $0xcc] sm:$0xf] }
 0x144   : > { %v1387_v51 = vrot.slane %v1385_v18, 5  ;;  %v1373_v57 = vrot.slane %v1371_v35, 4  ;;  %v1364_v33 = vor.u32 %v1363_v34, %v1360_v32  ;;  %v1377_v37 = vshll.u32 %v11900_v15, 16  ;;  %v14628_v18 = vld [vmem:[%s13333_s29 + $0xd0] sm:$0xf] }
 0x145   : > { %v1391_v46 = vshll.u32 %v14581_v63, 16  ;;  %v1397_v10 = vrot.slane %v1395_v23, 4  ;;  %v2657_v60 = vpop.permute.xlu1 %2656  ;;  %2412 = vrot.lane.b32.xlu1 %v12061_v58, %s13212_s12  ;;  %v1369_v44 = vrot.slane %v1367_v61, 5  ;;  %v1401_v40 = vshll.u32 %v11901_v27, 16  ;;  %s351_s12 = scalar_lea.vmem [#allocation4], %s350_s26 }
 0x146   : > { %v1388_v5 = vor.u32 %v1387_v51, %v1384_v0  ;;  %v3094_v1 = vsel %vm3074_vm10, %v3061_v12, %v2657_v60  ;;  %v2655_v3 = vpop.permute.xlu0 %2654  ;;  %v1365_v41 = vrot.slane %v1364_v33, 4  ;;  %v1379_v47 = vrot.slane %v1377_v37, 5  ;;  %v11980_v37 = vld [vmem:[%s13333_s29 + $0xc8] sm:$0x1] }
 0x147   : > { %2506 = vrot.lane.b32.xlu0 %v12076_v11, %s13210_s30  ;;  %v1393_v52 = vrot.slane %v1391_v46, 5  ;;  %v3092_v31 = vsel %vm3074_vm10, %v3059_v30, %v2655_v3  ;;  %v1374_v48 = vor.u32 %v1373_v57, %v1369_v44  ;;  %v1403_v22 = vrot.slane %v1401_v40, 5  ;;  %v11996_v40 = vld [vmem:[%s13333_s29 + $0xc0] sm:$0xe] }
 0x148   : > { %v1389_v9 = vrot.slane %v1388_v5, 4  ;;  %v11932_v24 = vrot.slane %v11916_v26, 9  ;;  %v1370_v53 = vsel %vm13401_vm5, %v1365_v41, %v1369_v44  ;;  %v1569_v36 = vrot.slane %v14570_v25, 5  ;;  %v11981_v5 = vld [vmem:[%s13333_s29 + $0xd4] sm:$0x1] }
 0x149   : > { %v1398_v7 = vor.u32 %v1397_v10, %v1393_v52  ;;  %v1572_v14 = vrot.slane %v11900_v15, 5  ;;  %v2753_v45 = vpop.permute.xlu1 %2752  ;;  %2508 = vrot.lane.b32.xlu1 %v12077_v43, %s13210_s30  ;;  %v1375_v20 = vrot.slane %v1374_v48, 4  ;;  %v11933_v29 = vrot.slane %v11917_v42, 9  ;;  %s13223_s30 = smov 64  }
 0x14a   : > { %v1394_v54 = vsel %vm13401_vm5, %v1389_v9, %v1393_v52  ;;  %v1576_v62 = vrot.slane %v14581_v63, 5  ;;  %v2751_v55 = vpop.permute.xlu0 %2750  ;;  %v1570_v50 = vsel %vm13357_vm2, %v11932_v24, %v1569_v36  ;;  %v1571_v25 = vrot.slane %v1569_v36, 4  ;;  %v14619_v63 = vld [vmem:[%s13333_s29 + $0xc4] sm:$0xf] }
 0x14b   : > { %v1399_v59 = vrot.slane %v1398_v7, 4  ;;  %v1579_v39 = vrot.slane %v11901_v27, 5  ;;  %v1380_v4 = vsel %vm13401_vm5, %v1375_v20, %v1379_v47  ;;  %v3127_v2 = vsel %vm3107_vm11, %v3094_v1, %v2753_v45 }
 0x14c   : > { %v1577_v56 = vsel %vm13357_vm2, %v11933_v29, %v1576_v62  ;;  %v1578_v58 = vrot.slane %v1576_v62, 4  ;;  %v12092_v35 = vcombine.low %v1370_v53, %v1380_v4  ;;  %v1573_v6 = vsel %vm13357_vm2, %v1571_v25, %v1572_v14  ;;  %v11997_v29 = vld [vmem:[%s13333_s29 + $0xcc] sm:$0xe] }
 0x14d   : > { %v1404_v11 = vsel %vm13401_vm5, %v1399_v59, %v1403_v22  ;;  %v3125_v32 = vsel %vm3107_vm11, %v3092_v31, %v2751_v55  ;;  %v12108_v38 = vcombine.low %v1570_v50, %v1573_v6  ;;  %v1967_v34 = vshrl.u32 %v11962_v28, 16 }
 0x14e   : > { %v12093_v23 = vcombine.low %v1394_v54, %v1404_v11  ;;  %v1580_v15 = vsel %vm13357_vm2, %v1578_v58, %v1579_v39  ;;  %2586 = vrot.lane.b32.xlu0 %v12092_v35, %s13214_s20  ;;  %v1970_v12 = vshll.u32 %v11962_v28, 16  ;;  %v1980_v30 = vshrl.u32 %v14619_v63, 16 }
 0x14f   : > { %v12109_v43 = vcombine.low %v1577_v56, %v1580_v15  ;;  %v12124_v27 = vcombine.low %v11962_v28, %v14619_v63  ;;  %v1969_v0 = vrot.slane %v1967_v34, 4  ;;  %v1991_v51 = vshrl.u32 %v11964_v21, 16  ;;  %v2833_v33 = vpop.permute.xlu1 %2832 }
 0x150   : > { %2588 = vrot.lane.b32.xlu1 %v12093_v23, %s13214_s20  ;;  %v1994_v61 = vshll.u32 %v11964_v21, 16  ;;  %v2004_v57 = vshrl.u32 %v14628_v18, 16  ;;  %v1972_v46 = vrot.slane %v1970_v12, 5  ;;  %v12125_v10 = vcombine.low %v11964_v21, %v14628_v18 }
 0x151   : > { %v3160_v60 = vsel %vm19627_vm12, %v3127_v2, %v2833_v33  ;;  %v2831_v26 = vpop.permute.xlu0 %2830  ;;  %v1976_v44 = vshll.u32 %v14619_v63, 16  ;;  %v1993_v1 = vrot.slane %v1991_v51, 4  ;;  %v1982_v47 = vrot.slane %v1980_v30, 4  ;;  %v3563_v51 = vld [vmem:[#allocation2 + $0xc] sm:$0x1] }
 0x152   : > { %v1996_v3 = vrot.slane %v1994_v61, 5  ;;  %v3158_v41 = vsel %vm19627_vm12, %v3125_v32, %v2831_v26  ;;  %2666 = vrot.lane.b32.xlu0 %v12108_v38, %s13211_s11  ;;  %v1973_v52 = vor.u32 %v1972_v46, %v1969_v0  ;;  %v1986_v42 = vshll.u32 %v11980_v37, 16  ;;  %v3566_v0 = vld [vmem:[#allocation2 + $0x18] sm:$0x1]  ;;  %v3613_v33 = vld [vmem:[#allocation2 + $0x14] sm:$0x1] }
 0x153   : > { %v1978_v31 = vrot.slane %v1976_v44, 5  ;;  %v2000_v48 = vshll.u32 %v14628_v18, 16  ;;  %v2006_v22 = vrot.slane %v2004_v57, 4  ;;  %v2010_v24 = vshll.u32 %v11981_v5, 16  ;;  %v2913_v53 = vpop.permute.xlu1 %2912  ;;  %v3616_v57 = vld [vmem:[#allocation2 + $0x20] sm:$0x1] }
 0x154   : > { %2668 = vrot.lane.b32.xlu1 %v12109_v43, %s13211_s11  ;;  %v1997_v9 = vor.u32 %v1996_v3, %v1993_v1  ;;  %v12012_v7 = vrot.slane %v11996_v40, 9  ;;  %v1974_v36 = vrot.slane %v1973_v52, 4  ;;  %v1988_v45 = vrot.slane %v1986_v42, 5  ;;  %v3569_v46 = vld [vmem:[#allocation2 + $0x24] sm:$0x1]  ;;  %s12681_s11 = sshll.u32 %s13301_s17, 4 }
 0x155   : > { %v1983_v14 = vor.u32 %v1982_v47, %v1978_v31  ;;  %v2002_v20 = vrot.slane %v2000_v48, 5  ;;  %v2911_v54 = vpop.permute.xlu0 %2910  ;;  %v2012_v55 = vrot.slane %v2010_v24, 5  ;;  %v3193_v59 = vsel %vm19629_vm14, %v3160_v60, %v2913_v53  ;;  %v3622_v40 = vld [vmem:[#allocation2 + $0x38] sm:$0x1]  ;;  %v3619_v1 = vld [vmem:[#allocation2 + $0x2c] sm:$0x1] }
 0x156   : > { %v1998_v62 = vrot.slane %v1997_v9, 4  ;;  %v3191_v50 = vsel %vm19629_vm14, %v3158_v41, %v2911_v54  ;;  %2762 = vrot.lane.b32.xlu0 %v12124_v27, %s13215_s21  ;;  %v1979_v25 = vsel %vm13401_vm5, %v1974_v36, %v1978_v31  ;;  %v2178_v4 = vrot.slane %v14619_v63, 5  ;;  %s13224_s17 = smov [#allocation4]  }
 0x157   : > { %v1984_v39 = vrot.slane %v1983_v14, 4  ;;  %v2007_v28 = vor.u32 %v2006_v22, %v2002_v20  ;;  %12789 = vmatprep.mubr.msk.bf16.mxu0 %vm19628_vm15, %v3191_v50  ;;  %v2181_v58 = vrot.slane %v11980_v37, 5  ;;  %v12013_v2 = vrot.slane %v11997_v29, 9  ;;  %v3572_v37 = vld [vmem:[#allocation2 + $0x30] sm:$0x1] }
 0x158   : > { %2764 = vrot.lane.b32.xlu1 %v12125_v10, %s13215_s21  ;;  %v2003_v56 = vsel %vm13401_vm5, %v1998_v62, %v2002_v20  ;;  %v2185_v35 = vrot.slane %v14628_v18, 5  ;;  %12790 = vmatmul.mubr.msk.bf16.gmra.mrb[16].mxu0 %vm19628_vm15, %v3193_v59  ;;  %v2179_v63 = vsel %vm13357_vm2, %v12012_v7, %v2178_v4  ;;  %v2180_v32 = vrot.slane %v2178_v4, 4  ;;  %s13220_s21 = smov 48  }
 0x159   : > { %v1989_v11 = vsel %vm13401_vm5, %v1984_v39, %v1988_v45  ;;  %v2008_v6 = vrot.slane %v2007_v28, 4  ;;  %v2188_v15 = vrot.slane %v11981_v5, 5  ;;  %v12028_v60 = vcombine.low %v14505_v13, %v14515_v49 }
 0x15a   : > { %v12140_v21 = vcombine.low %v1979_v25, %v1989_v11  ;;  %v2186_v23 = vsel %vm13357_vm2, %v12013_v2, %v2185_v35  ;;  %v2187_v38 = vrot.slane %v2185_v35, 4  ;;  %v2182_v18 = vsel %vm13357_vm2, %v2180_v32, %v2181_v58 }
 0x15b   : > { %v2013_v34 = vsel %vm13401_vm5, %v2008_v6, %v2012_v55  ;;  %v14670_v43 = vpop.permute.xlu1 %2324  ;;  %v12156_v30 = vcombine.low %v2179_v63, %v2182_v18  ;;  %v19703_v44 = vmov 0  ;;  %v12029_v5 = vcombine.low %v14526_v8, %v14540_v16 }
 0x15c   : > { %2842 = vrot.lane.b32.xlu0 %v12140_v21, %s13216_s25  ;;  %v12141_v12 = vcombine.low %v2003_v56, %v2013_v34  ;;  %v2189_v27 = vsel %vm13357_vm2, %v2187_v38, %v2188_v15  ;;  %v19704_v44 = vsel %vm14684_vm13, 4294967295, %v19703_v44  ;;  %v3567_v3 = vsel %vm14684_vm13, 0, %v3566_v0  ;;  %v3578_v0 = vld [vmem:[#allocation2 + $0x48] sm:$0x1] }
 0x15d   : > { %v12157_v61 = vcombine.low %v2186_v23, %v2189_v27  ;;  %v14676_v10 = vpop.permute.xlu0 %2322  ;;  %19705 = vst [vmem:[#allocation7_spill] sm:$0xff] %v19704_v44  ;;  %v3564_v41 = vsel %vm14684_vm13, 0, %v3563_v51  ;;  %v19630_v47 = vmov 0   ;;  %v3573_v52 = vsel %vm14684_vm13, 0, %v3572_v37  ;;  %3568 = vst [vmem:[#allocation2 + $0x18] sm:$0x1] %v3567_v3 }
 0x15e   : > { %2844 = vrot.lane.b32.xlu1 %v12141_v12, %s13216_s25  ;;  %3551 = vst.msk [vmem:[#allocation2] sm:$0xf] %vm3550_vm0, %v19630_v47  ;;  %3552 = vst.msk [vmem:[#allocation2 + $0x4] sm:$0xf] %vm3550_vm0, %v19630_v47  ;;  %7087 = vmatprep.subr.bf16.mxu1 %v19630_v47  ;;  %v19706_v31 = vmov 0  ;;  %v3570_v42 = vsel %vm14684_vm13, 0, %v3569_v46 }
 0x15f   : > { %v14680_v26 = vpop.permute.xlu1 %2404  ;;  %3554 = vst.msk [vmem:[#allocation2 + $0x8] sm:$0x1] %vm19626_vm1, %v19630_v47  ;;  %3558 = vst.msk [vmem:[#allocation2 + $0xd4] sm:$0x1] %vm19626_vm1, %v19630_v47  ;;  %v19707_v31 = vsel %vm14724_vm3, 4294967295, %v19706_v31  ;;  %10895 = vmatprep.subr.bf16.mxu0 %v19630_v47  ;;  %v3617_v9 = vsel %vm14724_vm3, 0, %v3616_v57 }
 0x160   : > { %2922 = vrot.lane.b32.xlu0 %v12156_v30, %s13217_s28  ;;  %3556 = vst.msk [vmem:[#allocation2 + $0xcc] sm:$0xf] %vm3550_vm0, %v19630_v47  ;;  %3557 = vst.msk [vmem:[#allocation2 + $0xd0] sm:$0xf] %vm3550_vm0, %v19630_v47  ;;  %v3614_v22 = vsel %vm14724_vm3, 0, %v3613_v33  ;;  %v3623_v24 = vsel %vm14724_vm3, 0, %v3622_v40 }
 0x161   : > { %7374 = vst.msk [vmem:[#allocation3] sm:$0xf] %vm3550_vm0, %v19630_v47  ;;  %7375 = vst.msk [vmem:[#allocation3 + $0x4] sm:$0xf] %vm3550_vm0, %v19630_v47  ;;  %v2403_v48 = vpop.permute.xlu0 %2402  ;;  %v3620_v53 = vsel %vm14724_vm3, 0, %v3619_v1  ;;  %v3579_v51 = vsel %vm14684_vm13, 0, %v3578_v0 }
 0x162   : > { %7376 = vst.msk [vmem:[#allocation3 + $0x8] sm:$0x1] %vm19626_vm1, %v19630_v47  ;;  %7380 = vst.msk [vmem:[#allocation3 + $0xd4] sm:$0x1] %vm19626_vm1, %v19630_v47  ;;  %2924 = vrot.lane.b32.xlu1 %v12157_v61, %s13217_s28  ;;  %v13030_v57 = vld [vmem:[%s13333_s29 + $0x84] sm:$0xf] }
 0x163   : > { %7378 = vst.msk [vmem:[#allocation3 + $0xcc] sm:$0xf] %vm3550_vm0, %v19630_v47  ;;  %7379 = vst.msk [vmem:[#allocation3 + $0xd0] sm:$0xf] %vm3550_vm0, %v19630_v47  ;;  %v2501_v7 = vpop.permute.xlu1 %2500  ;;  %v13031_v33 = vld [vmem:[%s13333_s29 + $0x88] sm:$0xf] }
 0x164   : > { %3565 = vst [vmem:[#allocation2 + $0xc] sm:$0x1] %v3564_v41  ;;  %19708 = vst [vmem:[#allocation8_spill] sm:$0xff] %v19707_v31  ;;  %v12025_v37 = vcombine.low %v13030_v57, %v13031_v33  ;;  %v13032_v1 = vld [vmem:[%s13333_s29 + $0x78] sm:$0xf] }
 0x165   : > { %3574 = vst [vmem:[#allocation2 + $0x30] sm:$0x1] %v3573_v52  ;;  %3571 = vst [vmem:[#allocation2 + $0x24] sm:$0x1] %v3570_v42  ;;  %v2499_v36 = vpop.permute.xlu0 %2498  ;;  %v14740_v14 = vld [vmem:[#allocation2 + $0x4] sm:$0xf] }
 0x166   : > { %3618 = vst [vmem:[#allocation2 + $0x20] sm:$0x1] %v3617_v9  ;;  %3615 = vst [vmem:[#allocation2 + $0x14] sm:$0x1] %v3614_v22  ;;  %v4209_v45 = vld [vmem:[#allocation2 + $0x8] sm:$0x1]  ;;  %v2962_v42 = vsel %vm2926_vm6, %v12025_v37, %v14670_v43 }
 0x167   : > { %3624 = vst [vmem:[#allocation2 + $0x38] sm:$0x1] %v3623_v24  ;;  %3621 = vst [vmem:[#allocation2 + $0x2c] sm:$0x1] %v3620_v53  ;;  %v4609_v20 = vld [vmem:[#allocation2] sm:$0xe]  ;;  %v2999_v22 = vsel %vm2975_vm7, %v2962_v42, %v14680_v26 }
 0x168   : > { %v12211_v54 = vrot.slane %v4609_v20, 9  ;;  %v4675_v29 = vrot.slane %v14740_v14, 5  ;;  %v4678_v62 = vrot.slane %v4209_v45, 5  ;;  %v14743_v55 = vld [vmem:[#allocation2] sm:$0xf]  ;;  %v4235_v59 = vshll.u32 %v14740_v14, 16 }
 0x169   : > { %v4239_v50 = vshrl.u32 %v14740_v14, 16  ;;  %v4245_v25 = vshll.u32 %v4209_v45, 16  ;;  %v4226_v4 = vshrl.u32 %v14743_v55, 16  ;;  %v4229_v58 = vshll.u32 %v14743_v55, 16  ;;  %3580 = vst [vmem:[#allocation2 + $0x48] sm:$0x1] %v3579_v51 }
 0x16a   : > { %v4676_v39 = vsel %vm13357_vm2, %v12211_v54, %v4675_v29  ;;  %v4677_v28 = vrot.slane %v4675_v29, 4  ;;  %v2581_v56 = vpop.permute.xlu1 %2580  ;;  %v4237_v2 = vrot.slane %v4235_v59, 5  ;;  %v13033_v3 = vld [vmem:[%s13333_s29 + $0x7c] sm:$0xf]  ;;  %v3032_v53 = vsel %vm3008_vm8, %v2999_v22, %v2501_v7 }
 0x16b   : > { %v4241_v35 = vrot.slane %v4239_v50, 4  ;;  %v4228_v63 = vrot.slane %v4226_v4, 4  ;;  %v4231_v21 = vrot.slane %v4229_v58, 5  ;;  %v4247_v38 = vrot.slane %v4245_v25, 5  ;;  %v3575_v59 = vld [vmem:[#allocation2 + $0x3c] sm:$0x1] }
 0x16c   : > { %v2579_v11 = vpop.permute.xlu0 %2578  ;;  %v4679_v6 = vsel %vm13357_vm2, %v4677_v28, %v4678_v62  ;;  %v12024_v41 = vcombine.low %v13032_v1, %v13033_v3  ;;  %v3065_v54 = vsel %vm3041_vm9, %v3032_v53, %v2581_v56  ;;  %v3576_v26 = vsel %vm14684_vm13, 0, %v3575_v59  ;;  %v3625_v28 = vld [vmem:[#allocation2 + $0x44] sm:$0x1]  ;;  %v3631_v22 = vld [vmem:[#allocation2 + $0x5c] sm:$0x1] }
 0x16d   : > { %v12291_v32 = vcombine.low %v4676_v39, %v4679_v6  ;;  %v4242_v23 = vor.u32 %v4241_v35, %v4237_v2  ;;  %v4232_v34 = vor.u32 %v4231_v21, %v4228_v63  ;;  %3577 = vst [vmem:[#allocation2 + $0x3c] sm:$0x1] %v3576_v26  ;;  %v3584_v21 = vld [vmem:[#allocation2 + $0x60] sm:$0x1]  ;;  %v3632_v53 = vsel %vm14724_vm3, 0, %v3631_v22 }
 0x16e   : > { %v2661_v15 = vpop.permute.xlu1 %2660  ;;  %v2959_v9 = vsel %vm2926_vm6, %v12024_v41, %v14676_v10  ;;  %3633 = vst [vmem:[#allocation2 + $0x5c] sm:$0x1] %v3632_v53  ;;  %v14823_v26 = vld [vmem:[%s19617_s3] ss:$0 sm:$0xff]  ;;  %vm3741_vm1 = vsmask.f32 4368 }
 0x16f   : > { %6194 = vrot.lane.b32.xlu1 %v12291_v32, %s13217_s28  ;;  %v4243_v18 = vrot.slane %v4242_v23, 4  ;;  %v4233_v30 = vrot.slane %v4232_v34, 4  ;;  %v2997_v24 = vsel %vm2975_vm7, %v2959_v9, %v2403_v48  ;;  %v3098_v43 = vsel %vm3074_vm10, %v3065_v54, %v2661_v15  ;;  %v3628_v48 = vld [vmem:[#allocation2 + $0x50] sm:$0x1]  ;;  %v13035_v15 = vld [vmem:[%s13333_s29 + $0x94] sm:$0xf] }
 0x170   : > { %v2659_v12 = vpop.permute.xlu0 %2658  ;;  %v3030_v20 = vsel %vm3008_vm8, %v2997_v24, %v2499_v36  ;;  %v3629_v39 = vsel %vm14724_vm3, 0, %v3628_v48  ;;  %v3585_v23 = vsel %vm14684_vm13, 0, %v3584_v21 }
 0x171   : > { %v4248_v27 = vsel %vm13401_vm5, %v4243_v18, %v4247_v38  ;;  %v4238_v61 = vsel %vm13401_vm5, %v4233_v30, %v4237_v2  ;;  %v3063_v62 = vsel %vm3041_vm9, %v3030_v20, %v2579_v11  ;;  %3630 = vst [vmem:[#allocation2 + $0x50] sm:$0x1] %v3629_v39  ;;  %v3626_v2 = vsel %vm14724_vm3, 0, %v3625_v28  ;;  %v13034_v38 = vld [vmem:[%s13333_s29 + $0x90] sm:$0xf] }
 0x172   : > { %v2757_v46 = vpop.permute.xlu1 %2756  ;;  %v12275_v40 = vcombine.low %v4238_v61, %v4248_v27  ;;  %v3096_v10 = vsel %vm3074_vm10, %v3063_v62, %v2659_v12  ;;  %3627 = vst [vmem:[#allocation2 + $0x44] sm:$0x1] %v3626_v2  ;;  %v12026_v34 = vcombine.low %v13034_v38, %v13035_v15  ;;  %3586 = vst [vmem:[#allocation2 + $0x60] sm:$0x1] %v3585_v23  ;;  %v13036_v30 = vld [vmem:[%s13333_s29 + $0x9c] sm:$0xf] }
 0x173   : > { %v3131_v50 = vsel %vm3107_vm11, %v3098_v43, %v2757_v46  ;;  %v13037_v27 = vld [vmem:[%s13333_s29 + $0xa0] sm:$0xf]  ;;  %s13222_s29 = smov 112  }
 0x174   : > { %v2755_v52 = vpop.permute.xlu0 %2754  ;;  %6114 = vrot.lane.b32.xlu0 %v12275_v40, %s13214_s20  ;;  %v12027_v0 = vcombine.low %v13036_v30, %v13037_v27  ;;  %v3581_v40 = vld [vmem:[#allocation2 + $0x54] sm:$0x1]  ;;  %v14816_v43 = vld [vmem:[%s19616_s2] ss:$0 sm:$0xff] }
 0x175   : > { %v3129_v7 = vsel %vm3107_vm11, %v3096_v10, %v2755_v52  ;;  %v3582_v41 = vsel %vm14684_vm13, 0, %v3581_v40  ;;  %v3634_v52 = vld [vmem:[#allocation2 + $0x68] sm:$0x1] }
 0x176   : > { %3583 = vst [vmem:[#allocation2 + $0x54] sm:$0x1] %v3582_v41  ;;  %v3635_v9 = vsel %vm14724_vm3, 0, %v3634_v52  ;;  %v4072_v41 = vld [vmem:[#allocation2 + $0x18] sm:$0xf] }
 0x177   : > { %3636 = vst [vmem:[#allocation2 + $0x68] sm:$0x1] %v3635_v9 }
 0x179   : > { %v2837_v45 = vpop.permute.xlu1 %2836 }
 0x17a   : > { %v2835_v29 = vpop.permute.xlu0 %2834  ;;  %v3164_v36 = vsel %vm19627_vm12, %v3131_v50, %v2837_v45 }
 0x17b   : > { %v3162_v4 = vsel %vm19627_vm12, %v3129_v7, %v2835_v29 }
 0x17d   : > { %v2917_v25 = vpop.permute.xlu1 %2916 }
 0x17e   : > { %v3197_v56 = vsel %vm19629_vm14, %v3164_v36, %v2917_v25  ;;  %v2915_v58 = vpop.permute.xlu0 %2914 }
 0x17f   : > { %v3195_v35 = vsel %vm19629_vm14, %v3162_v4, %v2915_v58 }
 0x180   : > { %12793 = vmatprep.mubr.msk.bf16.mxu1 %vm19628_vm15, %v3195_v35 }
 0x181   : > { %12794 = vmatmul.mubr.msk.bf16.vlgmr.msra.gmra.mrb[0].mxu1 %vm19628_vm15, %v3197_v56 }
 0x185   : > { %v2327_v11 = vpop.permute.xlu0 %2326 }
 0x186   : > { %v2965_v51 = vsel %vm2926_vm6, %v12026_v34, %v2327_v11 }
 0x188   : > { %v2329_v6 = vpop.permute.xlu1 %2328 }
 0x189   : > { %v2407_v63 = vpop.permute.xlu0 %2406  ;;  %v2968_v61 = vsel %vm2926_vm6, %v12027_v0, %v2329_v6 }
 0x18a   : > { %v3001_v33 = vsel %vm2975_vm7, %v2965_v51, %v2407_v63 }
 0x18c   : > { %v2409_v32 = vpop.permute.xlu1 %2408 }
 0x18d   : > { %v2503_v18 = vpop.permute.xlu0 %2502  ;;  %v3003_v46 = vsel %vm2975_vm7, %v2968_v61, %v2409_v32 }
 0x18e   : > { %v3034_v1 = vsel %vm3008_vm8, %v3001_v33, %v2503_v18 }
 0x190   : > { %v2505_v12 = vpop.permute.xlu1 %2504 }
 0x191   : > { %v3036_v24 = vsel %vm3008_vm8, %v3003_v46, %v2505_v12 }
 0x195   : > { %v2583_v57 = vpop.permute.xlu0 %2582 }
 0x196   : > { %v2585_v37 = vpop.permute.xlu1 %2584  ;;  %v3067_v45 = vsel %vm3041_vm9, %v3034_v1, %v2583_v57 }
 0x197   : > { %v3069_v54 = vsel %vm3041_vm9, %v3036_v24, %v2585_v37  ;;  %v4065_v24 = vld [vmem:[#allocation2 + $0xc] sm:$0xf] }
 0x199   : > { %v2663_v3 = vpop.permute.xlu0 %2662 }
 0x19a   : > { %v2665_v42 = vpop.permute.xlu1 %2664  ;;  %v3100_v29 = vsel %vm3074_vm10, %v3067_v45, %v2663_v3  ;;  %v19709_v3 = vmov 0 }
 0x19b   : > { %v3102_v59 = vsel %vm3074_vm10, %v3069_v54, %v2665_v42 }
 0x19d   : > { %v2759_v20 = vpop.permute.xlu0 %2758 }
 0x19e   : > { %v2761_v62 = vpop.permute.xlu1 %2760  ;;  %v3133_v10 = vsel %vm3107_vm11, %v3100_v29, %v2759_v20  ;;  %v4076_v20 = vld [vmem:[#allocation2 + $0x20] sm:$0x1] }
 0x19f   : > { %v3135_v25 = vsel %vm3107_vm11, %v3102_v59, %v2761_v62  ;;  %v19713_v62 = vmov 0 }
 0x1a0   : > { %v12775_v50 = vpop.f32.mrb[0].mxu0 }
 0x1a1   : > { %v3433_v7 = vmul.f32 %v12775_v50, %v14816_v43  ;;  %v3297_v36 = vpop.f32.mrb[1].mxu0  ;;  %v3590_v50 = vld [vmem:[#allocation2 + $0x78] sm:$0x1] }
 0x1a2   : > { %v3431_v39 = vmul.f32 %v14816_v43, %v3297_v36  ;;  %v12776_v28 = vpop.f32.mrb[2].mxu0 }
 0x1a3   : > { %v2839_v48 = vpop.permute.xlu0 %2838  ;;  %v3472_v58 = vadd.f32 %v14823_v26, %v3433_v7  ;;  %v3434_v2 = vmul.f32 %v12776_v28, %v14816_v43  ;;  %v3300_v35 = vpop.f32.mrb[3].mxu0  ;;  %v3591_v28 = vsel %vm14684_vm13, 0, %v3590_v50 }
 0x1a4   : > { %v3166_v4 = vsel %vm19627_vm12, %v3133_v10, %v2839_v48  ;;  %v2841_v56 = vpop.permute.xlu1 %2840  ;;  %v3470_v11 = vadd.f32 %v14823_v26, %v3431_v39  ;;  %v3432_v6 = vmul.f32 %v14816_v43, %v3300_v35  ;;  %v4069_v39 = vld [vmem:[#allocation2 + $0x14] sm:$0x1]  ;;  %3592 = vst [vmem:[#allocation2 + $0x78] sm:$0x1] %v3591_v28 }
 0x1a5   : > { %v3168_v63 = vsel %vm19627_vm12, %v3135_v25, %v2841_v56  ;;  %v3504_v21 = vmax.f32 %v3472_v58, 0.0  ;;  %v3473_v23 = vadd.f32 %v14823_v26, %v3434_v2  ;;  %vm14842_vm12 = vmand %vm3550_vm0, %vm3611_vm4  ;;  %vm6786_vm4 = vcmask 392192  }
 0x1a6   : > { %v3502_v15 = vmax.f32 %v3470_v11, 0.0  ;;  %v3471_v34 = vadd.f32 %v14823_v26, %v3432_v6  ;;  %v19710_v3 = vsel %vm14842_vm12, 4294967295, %v19709_v3 }
 0x1a7   : > { %v2919_v32 = vpop.permute.xlu0 %2918  ;;  %v12686_v12 = vpack.c.bf16 %v3504_v21, %v3504_v21  ;;  %v3505_v30 = vmax.f32 %v3473_v23, 0.0  ;;  %19711 = vst [vmem:[#allocation9_spill] sm:$0xff] %v19710_v3 }
 0x1a8   : > { %v3199_v38 = vsel %vm19629_vm14, %v3166_v4, %v2919_v32  ;;  %v2921_v18 = vpop.permute.xlu1 %2920  ;;  %v12684_v0 = vpack.c.bf16 %v3502_v15, %v3502_v15  ;;  %v3503_v51 = vmax.f32 %v3471_v34, 0.0 }
 0x1a9   : > { %12797 = vmatprep.mubr.msk.bf16.mxu1 %vm19628_vm15, %v3199_v38  ;;  %v3201_v27 = vsel %vm19629_vm14, %v3168_v63, %v2921_v18  ;;  %v3761_v61 = vshrl.u32 %v12686_v12, 16  ;;  %v12687_v57 = vpack.c.bf16 %v3505_v30, %v3505_v30  ;;  %v3764_v40 = vshll.u32 %v12686_v12, 16 }
 0x1aa   : > { %12798 = vmatmul.mubr.msk.bf16.gmra.mrb[4].mxu1 %vm19628_vm15, %v3201_v27  ;;  %v3744_v33 = vshrl.u32 %v12684_v0, 16  ;;  %v12685_v37 = vpack.c.bf16 %v3503_v51, %v3503_v51  ;;  %v3747_v42 = vshll.u32 %v12684_v0, 16  ;;  %vm19712_vm15 = vsmask.f32 256 }
 0x1ab   : > { %v3763_v46 = vrot.slane %v3761_v61, 7  ;;  %v3769_v1 = vshrl.u32 %v12687_v57, 16  ;;  %v3772_v45 = vshll.u32 %v12687_v57, 16  ;;  %vm14847_vm14 = vmor %vm19712_vm15, %vm3741_vm1  ;;  %v3587_v57 = vld [vmem:[#allocation2 + $0x6c] sm:$0x1] }
 0x1ac   : > { %v3746_v52 = vrot.slane %v3744_v33, 7  ;;  %v3752_v9 = vshrl.u32 %v12685_v37, 16  ;;  %v19714_v62 = vsel %vm14847_vm14, 4294967295, %v19713_v62  ;;  %v3755_v10 = vshll.u32 %v12685_v37, 16 }
 0x1ad   : > { %v3766_v22 = vor.u32 %v3764_v40, %v3763_v46  ;;  %v3771_v53 = vrot.slane %v3769_v1, 7  ;;  %v3767_v54 = vrot.slane %v3763_v46, 4  ;;  %19715 = vst [vmem:[#allocation10_spill] sm:$0xff] %v19714_v62  ;;  %v3640_v46 = vld [vmem:[#allocation2 + $0x80] sm:$0x1]  ;;  %v3588_v49 = vsel %vm14684_vm13, 0, %v3587_v57 }
 0x1ae   : > { %v3749_v29 = vor.u32 %v3747_v42, %v3746_v52  ;;  %v3754_v59 = vrot.slane %v3752_v9, 7  ;;  %v3750_v4 = vrot.slane %v3746_v52, 4  ;;  %v3637_v40 = vld [vmem:[#allocation2 + $0x74] sm:$0x1]  ;;  %3589 = vst [vmem:[#allocation2 + $0x6c] sm:$0x1] %v3588_v49 }
 0x1af   : > { %v4073_v48 = vsel %vm14842_vm12, %v3766_v22, %v4072_v41  ;;  %v3774_v36 = vor.u32 %v3772_v45, %v3771_v53  ;;  %v3776_v25 = vrot.slane %v3771_v53, 4 }
 0x1b0   : > { %4074 = vst [vmem:[#allocation2 + $0x18] sm:$0xf] %v4073_v48  ;;  %v4066_v56 = vsel %vm14842_vm12, %v3749_v29, %v4065_v24  ;;  %v3757_v58 = vor.u32 %v3755_v10, %v3754_v59  ;;  %v3759_v2 = vrot.slane %v3754_v59, 4 }
 0x1b1   : > { %v2331_v7 = vpop.permute.xlu0 %2330  ;;  %4067 = vst [vmem:[#allocation2 + $0xc] sm:$0xf] %v4066_v56  ;;  %v3775_v35 = vsel %vm14847_vm14, %v3767_v54, %v3774_v36  ;;  %v4077_v11 = vsel %vm14684_vm13, %v3776_v25, %v4076_v20 }
 0x1b2   : > { %4075 = vst.msk [vmem:[#allocation2 + $0x1c] sm:$0xf] %vm3550_vm0, %v3775_v35  ;;  %4078 = vst [vmem:[#allocation2 + $0x20] sm:$0x1] %v4077_v11  ;;  %v3758_v63 = vsel %vm14847_vm14, %v3750_v4, %v3757_v58  ;;  %v4070_v32 = vsel %vm14684_vm13, %v3759_v2, %v4069_v39  ;;  %v2971_v51 = vsel %vm2926_vm6, %v12028_v60, %v2331_v7  ;;  %v3641_v60 = vsel %vm14724_vm3, 0, %v3640_v46 }
 0x1b3   : > { %v2333_v6 = vpop.permute.xlu1 %2332  ;;  %4068 = vst.msk [vmem:[#allocation2 + $0x10] sm:$0xf] %vm3550_vm0, %v3758_v63  ;;  %4071 = vst [vmem:[#allocation2 + $0x14] sm:$0x1] %v4070_v32 }
 0x1b4   : > { %v2974_v33 = vsel %vm2926_vm6, %v12029_v5, %v2333_v6  ;;  %3642 = vst [vmem:[#allocation2 + $0x80] sm:$0x1] %v3641_v60  ;;  %v3638_v5 = vsel %vm14724_vm3, 0, %v3637_v40  ;;  %vm19716_vm6 = vcmask 228352  }
 0x1b5   : > { %v2411_v21 = vpop.permute.xlu0 %2410  ;;  %3639 = vst [vmem:[#allocation2 + $0x74] sm:$0x1] %v3638_v5 }
 0x1b6   : > { %v3005_v1 = vsel %vm2975_vm7, %v2971_v51, %v2411_v21 }
 0x1b7   : > { %v2413_v23 = vpop.permute.xlu1 %2412  ;;  %v5394_v15 = vld [vmem:[#allocation2 + $0x18] sm:$0xf] }
 0x1b8   : > { %v4785_v27 = vld [vmem:[#allocation2 + $0xc] sm:$0xf]  ;;  %v4787_v37 = vld [vmem:[#allocation2 + $0x18] sm:$0xf]  ;;  %v5443_v8 = vshrl.u32 %v5394_v15, 16  ;;  %v5446_v16 = vshll.u32 %v5394_v15, 16  ;;  %v3007_v52 = vsel %vm2975_vm7, %v2974_v33, %v2413_v23  ;;  %vm19717_vm7 = vmmov %vm19716_vm6 }
 0x1b9   : > { %v2507_v38 = vpop.permute.xlu0 %2506  ;;  %v14867_v34 = vld [vmem:[#allocation2 + $0x1c] sm:$0xf]  ;;  %v4834_v9 = vshrl.u32 %v4785_v27, 16  ;;  %v4837_v22 = vshll.u32 %v4785_v27, 16  ;;  %v4858_v53 = vshrl.u32 %v4787_v37, 16  ;;  %v4861_v6 = vshll.u32 %v4787_v37, 16 }
 0x1ba   : > { %v12355_v12 = vcombine.low %v5394_v15, %v14867_v34  ;;  %v14870_v30 = vld [vmem:[#allocation2 + $0x10] sm:$0xf]  ;;  %v14872_v0 = vld [vmem:[#allocation2 + $0x1c] sm:$0xf]  ;;  %v5892_v24 = vrot.slane %v14867_v34, 5  ;;  %v3038_v45 = vsel %vm3008_vm8, %v3005_v1, %v2507_v38  ;;  %v5445_v29 = vrot.slane %v5443_v8, 4 }
 0x1bb   : > { %v2509_v18 = vpop.permute.xlu1 %2508  ;;  %v12307_v61 = vcombine.low %v4785_v27, %v14870_v30  ;;  %v12308_v13 = vcombine.low %v4787_v37, %v14872_v0  ;;  %v5448_v59 = vrot.slane %v5446_v16, 5  ;;  %v14898_v10 = vld [vmem:[#allocation2 + $0x20] sm:$0x1]  ;;  %v5826_v50 = vld [vmem:[#allocation2 + $0x18] sm:$0xe]  ;;  %v5456_v7 = vshrl.u32 %v14867_v34, 16 }
 0x1bc   : > { %6546 = vrot.lane.b32.xlu1 %v12355_v12, %s13219_s18  ;;  %v3040_v20 = vsel %vm3008_vm8, %v3007_v52, %v2509_v18  ;;  %v14901_v36 = vrot.slane %v4834_v9, 4  ;;  %v14903_v25 = vrot.slane %v4837_v22, 5  ;;  %v5894_v28 = vrot.slane %v5892_v24, 4 }
 0x1bd   : > { %6290 = vrot.lane.b32.xlu0 %v12307_v61, %s13220_s21  ;;  %v4847_v56 = vshrl.u32 %v14870_v30, 16  ;;  %v14907_v58 = vrot.slane %v4858_v53, 4  ;;  %v5895_v32 = vrot.slane %v14898_v10, 5  ;;  %v12243_v15 = vrot.slane %v5826_v50, 9 }
 0x1be   : > { %v5449_v27 = vor.u32 %v5448_v59, %v5445_v29  ;;  %v14925_v40 = vrot.slane %v4861_v6, 5  ;;  %v5452_v59 = vshll.u32 %v14867_v34, 16  ;;  %vm19718_vm8 = vcmask 261120  }
 0x1bf   : > { %v14919_v33 = vsel %vm13357_vm2, %v5894_v28, %v5895_v32  ;;  %v4086_v32 = vld [vmem:[#allocation2 + $0x30] sm:$0xf]  ;;  %vm19745_vm1 = vmmov %vm19718_vm8 }
 0x1c0   : > { %v2587_v41 = vpop.permute.xlu0 %2586  ;;  %6292 = vrot.lane.b32.xlu1 %v12308_v13, %s13220_s21  ;;  %v4871_v13 = vshrl.u32 %v14872_v0, 16 }
 0x1c1   : > { %v3071_v4 = vsel %vm3041_vm9, %v3038_v45, %v2587_v41  ;;  %v5893_v41 = vsel %vm13357_vm2, %v12243_v15, %v5892_v24  ;;  %v5458_v24 = vrot.slane %v5456_v7, 4 }
 0x1c2   : > { %v2589_v42 = vpop.permute.xlu1 %2588  ;;  %v12387_v52 = vcombine.low %v5893_v41, %v14919_v33  ;;  %v4090_v33 = vld [vmem:[#allocation2 + $0x38] sm:$0x1] }
 0x1c3   : > { %v3073_v11 = vsel %vm3041_vm9, %v3040_v20, %v2589_v42  ;;  %v14933_v20 = vrot.slane %v5449_v27, 4 }
 0x1c4   : > { %v2667_v54 = vpop.permute.xlu0 %2666 }
 0x1c5   : > { %v3104_v51 = vsel %vm3074_vm10, %v3071_v4, %v2667_v54 }
 0x1c6   : > { %v2669_v48 = vpop.permute.xlu1 %2668  ;;  %v12779_v39 = vpop.f32.mrb[4].mxu0 }
 0x1c7   : > { %v3437_v2 = vmul.f32 %v12779_v39, %v14816_v43  ;;  %v3313_v35 = vpop.f32.mrb[5].mxu0  ;;  %v3106_v46 = vsel %vm3074_vm10, %v3073_v11, %v2669_v48  ;;  %vm19719_vm10 = vcmask 293888  }
 0x1c8   : > { %v3435_v63 = vmul.f32 %v14816_v43, %v3313_v35  ;;  %v12780_v21 = vpop.f32.mrb[6].mxu0  ;;  %v2763_v23 = vpop.permute.xlu0 %2762  ;;  %vm19721_vm15 = vmmov %vm19719_vm10 }
 0x1c9   : > { %v3476_v38 = vadd.f32 %v14823_v26, %v3437_v2  ;;  %v3438_v18 = vmul.f32 %v12780_v21, %v14816_v43  ;;  %v3316_v12 = vpop.f32.mrb[7].mxu0  ;;  %v3137_v16 = vsel %vm3107_vm11, %v3104_v51, %v2763_v23 }
 0x1ca   : > { %v2765_v61 = vpop.permute.xlu1 %2764  ;;  %v3474_v57 = vadd.f32 %v14823_v26, %v3435_v63  ;;  %v3436_v37 = vmul.f32 %v14816_v43, %v3316_v12  ;;  %v4079_v12 = vld [vmem:[#allocation2 + $0x24] sm:$0xf] }
 0x1cb   : > { %v3508_v49 = vmax.f32 %v3476_v38, 0.0  ;;  %v3477_v60 = vadd.f32 %v14823_v26, %v3438_v18  ;;  %v3139_v9 = vsel %vm3107_vm11, %v3106_v46, %v2765_v61  ;;  %v5454_v46 = vrot.slane %v5452_v59, 5  ;;  %vm19720_vm11 = vmmov %vm19718_vm8  ;;  %v14960_v59 = vld [vmem:[#allocation2 + $0x14] sm:$0x1] }
 0x1cc   : > { %v3506_v1 = vmax.f32 %v3474_v57, 0.0  ;;  %v3475_v8 = vadd.f32 %v14823_v26, %v3436_v37 }
 0x1cd   : > { %v12690_v5 = vpack.c.bf16 %v3508_v49, %v3508_v49  ;;  %v3509_v42 = vmax.f32 %v3477_v60, 0.0 }
 0x1ce   : > { %v2843_v22 = vpop.permute.xlu0 %2842  ;;  %v12688_v53 = vpack.c.bf16 %v3506_v1, %v3506_v1  ;;  %v3507_v45 = vmax.f32 %v3475_v8, 0.0  ;;  %v4083_v8 = vld [vmem:[#allocation2 + $0x2c] sm:$0x1] }
 0x1cf   : > { %v3795_v54 = vshrl.u32 %v12690_v5, 16  ;;  %v12691_v29 = vpack.c.bf16 %v3509_v42, %v3509_v42  ;;  %v3170_v50 = vsel %vm19716_vm6, %v3137_v16, %v2843_v22  ;;  %v3798_v39 = vshll.u32 %v12690_v5, 16 }
 0x1d0   : > { %v2845_v48 = vpop.permute.xlu1 %2844  ;;  %v3778_v28 = vshrl.u32 %v12688_v53, 16  ;;  %v12689_v4 = vpack.c.bf16 %v3507_v45, %v3507_v45  ;;  %v3781_v11 = vshll.u32 %v12688_v53, 16  ;;  %v5459_v45 = vor.u32 %v5458_v24, %v5454_v46 }
 0x1d1   : > { %v3172_v2 = vsel %vm19717_vm7, %v3139_v9, %v2845_v48  ;;  %v3797_v35 = vrot.slane %v3795_v54, 7  ;;  %v3803_v6 = vshrl.u32 %v12691_v29, 16  ;;  %v3806_v23 = vshll.u32 %v12691_v29, 16 }
 0x1d2   : > { %v2923_v63 = vpop.permute.xlu0 %2922  ;;  %v3780_v21 = vrot.slane %v3778_v28, 7  ;;  %v3786_v38 = vshrl.u32 %v12689_v4, 16  ;;  %v3789_v15 = vshll.u32 %v12689_v4, 16  ;;  %v5455_v9 = vsel %vm13401_vm5, %v14933_v20, %v5454_v46  ;;  %v3596_v28 = vld [vmem:[#allocation2 + $0x90] sm:$0x1] }
 0x1d3   : > { %v3203_v34 = vsel %vm19718_vm8, %v3170_v50, %v2923_v63  ;;  %v3800_v7 = vor.u32 %v3798_v39, %v3797_v35  ;;  %v3801_v18 = vrot.slane %v3797_v35, 4  ;;  %v3805_v27 = vrot.slane %v3803_v6, 7 }
 0x1d4   : > { %v2925_v51 = vpop.permute.xlu1 %2924  ;;  %12801 = vmatprep.mubr.msk.bf16.mxu1 %vm19719_vm10, %v3203_v34  ;;  %v3783_v61 = vor.u32 %v3781_v11, %v3780_v21  ;;  %v3784_v57 = vrot.slane %v3780_v21, 4  ;;  %v3788_v37 = vrot.slane %v3786_v38, 7  ;;  %v5462_v54 = vshll.u32 %v14898_v10, 16  ;;  %v14966_v10 = vld [vmem:[#allocation2 + $0x10] sm:$0xf] }
 0x1d5   : > { %v3205_v49 = vsel %vm19720_vm11, %v3172_v2, %v2925_v51  ;;  %v4087_v60 = vsel %vm14842_vm12, %v3800_v7, %v4086_v32  ;;  %v3808_v1 = vor.u32 %v3806_v23, %v3805_v27  ;;  %v3810_v41 = vrot.slane %v3805_v27, 4  ;;  %19722 = vst [vmem:[#allocation11_spill] sm:$0xff] %v14966_v10  ;;  %v14975_v11 = vld [vmem:[#allocation2 + $0x20] sm:$0x1]  ;;  %v14986_v23 = vld [vmem:[#allocation2 + $0xc] sm:$0xf]  ;;  %vm19968_vm11 = vmmov %vm19745_vm1 }
 0x1d6   : > { %4088 = vst [vmem:[#allocation2 + $0x30] sm:$0xf] %v4087_v60  ;;  %12802 = vmatmul.mubr.msk.bf16.gmra.mrb[8].mxu1 %vm19721_vm15, %v3205_v49  ;;  %v4080_v16 = vsel %vm14842_vm12, %v3783_v61, %v4079_v12  ;;  %v3791_v5 = vor.u32 %v3789_v15, %v3788_v37  ;;  %v3793_v42 = vrot.slane %v3788_v37, 4  ;;  %v4843_v50 = vshll.u32 %v14870_v30, 16  ;;  %19724 = vst [vmem:[#allocation13_spill] sm:$0xff] %v14986_v23 }
 0x1d7   : > { %4081 = vst [vmem:[#allocation2 + $0x24] sm:$0xf] %v4080_v16  ;;  %12412 = vmatprep.mubr.msk.bf16.mxu1 %vm3041_vm9, %v12387_v52  ;;  %v3809_v22 = vsel %vm14847_vm14, %v3801_v18, %v3808_v1  ;;  %v4091_v53 = vsel %vm14684_vm13, %v3810_v41, %v4090_v33  ;;  %v4840_v52 = vor.u32 %v14903_v25, %v14901_v36  ;;  %v5460_v24 = vrot.slane %v5459_v45, 4  ;;  %v3593_v12 = vld [vmem:[#allocation2 + $0x84] sm:$0x1]  ;;  %vm19983_vm15 = vmmov %vm19745_vm1 }
 0x1d8   : > { %4089 = vst.msk [vmem:[#allocation2 + $0x34] sm:$0xf] %vm3550_vm0, %v3809_v22  ;;  %4092 = vst [vmem:[#allocation2 + $0x38] sm:$0x1] %v4091_v53  ;;  %v3792_v29 = vsel %vm14847_vm14, %v3784_v57, %v3791_v5  ;;  %v4084_v20 = vsel %vm14684_vm13, %v3793_v42, %v4083_v8  ;;  %v5464_v48 = vrot.slane %v5462_v54, 5  ;;  %v4849_v39 = vrot.slane %v4847_v56, 4 }
 0x1d9   : > { %4082 = vst.msk [vmem:[#allocation2 + $0x28] sm:$0xf] %vm3550_vm0, %v3792_v29  ;;  %4085 = vst [vmem:[#allocation2 + $0x2c] sm:$0x1] %v4084_v20  ;;  %v4841_v4 = vrot.slane %v4840_v52, 4  ;;  %v4845_v2 = vrot.slane %v4843_v50, 5  ;;  %v4864_v35 = vor.u32 %v14925_v40, %v14907_v58 }
 0x1da   : > { %v4867_v36 = vshll.u32 %v14872_v0, 16  ;;  %v3597_v25 = vsel %vm14684_vm13, 0, %v3596_v28  ;;  %v5465_v6 = vsel %vm13401_vm5, %v5460_v24, %v5464_v48  ;;  %v4853_v63 = vshll.u32 %v14960_v59, 16  ;;  %v3646_v61 = vld [vmem:[#allocation2 + $0x98] sm:$0x1] }
 0x1db   : > { %v4873_v56 = vrot.slane %v4871_v13, 4  ;;  %3598 = vst [vmem:[#allocation2 + $0x90] sm:$0x1] %v3597_v25  ;;  %v14982_v32 = vcombine.low %v5455_v9, %v5465_v6  ;;  %v4846_v58 = vsel %vm13401_vm5, %v4841_v4, %v4845_v2  ;;  %v4850_v40 = vor.u32 %v4849_v39, %v4845_v2  ;;  %v3643_v33 = vld [vmem:[#allocation2 + $0x8c] sm:$0x1] }
 0x1dc   : > { %v4865_v21 = vrot.slane %v4864_v35, 4  ;;  %v4869_v38 = vrot.slane %v4867_v36, 5  ;;  %v4877_v34 = vshll.u32 %v14975_v11, 16  ;;  %v4855_v27 = vrot.slane %v4853_v63, 5  ;;  %v15015_v4 = vld [vmem:[#allocation2 + $0x18] sm:$0xe] }
 0x1dd   : > { %19723 = vst [vmem:[#allocation12_spill] sm:$0xff] %v14982_v32  ;;  %v4851_v7 = vrot.slane %v4850_v40, 4  ;;  %v3594_v51 = vsel %vm14684_vm13, 0, %v3593_v12  ;;  %v3647_v57 = vsel %vm14724_vm3, 0, %v3646_v61  ;;  %v3644_v60 = vsel %vm14724_vm3, 0, %v3643_v33 }
 0x1de   : > { %v4870_v13 = vsel %vm13401_vm5, %v4865_v21, %v4869_v38  ;;  %v4874_v18 = vor.u32 %v4873_v56, %v4869_v38  ;;  %3595 = vst [vmem:[#allocation2 + $0x84] sm:$0x1] %v3594_v51  ;;  %v4879_v49 = vrot.slane %v4877_v34, 5  ;;  %3648 = vst [vmem:[#allocation2 + $0x98] sm:$0x1] %v3647_v57  ;;  %v5290_v2 = vrot.slane %v14872_v0, 5 }
 0x1df   : > { %v4856_v37 = vsel %vm13401_vm5, %v4851_v7, %v4855_v27  ;;  %3645 = vst [vmem:[#allocation2 + $0x8c] sm:$0x1] %v3644_v60  ;;  %v5293_v63 = vrot.slane %v14975_v11, 5  ;;  %v5217_v56 = vld [vmem:[#allocation2 + $0xc] sm:$0xe]  ;;  %v12228_v21 = vrot.slane %v15015_v4, 9 }
 0x1e0   : > { %v4875_v46 = vrot.slane %v4874_v18, 4  ;;  %v15001_v1 = vcombine.low %v4846_v58, %v4856_v37  ;;  %v5283_v38 = vrot.slane %v14870_v30, 5  ;;  %v15021_v34 = vld [vmem:[#allocation2 + $0x1c] sm:$0xf]  ;;  %v5292_v12 = vrot.slane %v5290_v2, 4 }
 0x1e1   : > { %v4100_v0 = vld [vmem:[#allocation2 + $0x48] sm:$0xf]  ;;  %v12227_v57 = vrot.slane %v5217_v56, 9  ;;  %v4093_v11 = vld [vmem:[#allocation2 + $0x3c] sm:$0xf]  ;;  %vm6819_vm6 = vcmask 523264  }
 0x1e2   : > { %19725 = vst [vmem:[#allocation14_spill] sm:$0xff] %v15001_v1  ;;  %v4880_v41 = vsel %vm13401_vm5, %v4875_v46, %v4879_v49  ;;  %v4689_v49 = vrot.slane %v15021_v34, 5  ;;  %v4610_v56 = vld [vmem:[#allocation2 + $0xc] sm:$0xe]  ;;  %vm6852_vm7 = vcmask 654336   ;;  %vm6885_vm8 = vcmask 785408  }
 0x1e3   : > { %v15005_v8 = vcombine.low %v4870_v13, %v4880_v41  ;;  %v4104_v41 = vld [vmem:[#allocation2 + $0x50] sm:$0x1]  ;;  %vm6918_vm10 = vcmask 916480  }
 0x1e5   : > { %19726 = vst [vmem:[#allocation15_spill] sm:$0xff] %v15005_v8 }
 0x1ec   : > { %v12783_v16 = vpop.f32.mrb[8].mxu0 }
 0x1ed   : > { %v3441_v5 = vmul.f32 %v12783_v16, %v14816_v43  ;;  %v3329_v42 = vpop.f32.mrb[9].mxu0 }
 0x1ee   : > { %v3439_v9 = vmul.f32 %v14816_v43, %v3329_v42  ;;  %v12784_v22 = vpop.f32.mrb[10].mxu0 }
 0x1ef   : > { %v3480_v53 = vadd.f32 %v14823_v26, %v3441_v5  ;;  %v3442_v45 = vmul.f32 %v12784_v22, %v14816_v43  ;;  %v3332_v54 = vpop.f32.mrb[11].mxu0  ;;  %v4682_v5 = vrot.slane %v14966_v10, 5 }
 0x1f0   : > { %v3478_v29 = vadd.f32 %v14823_v26, %v3439_v9  ;;  %v3440_v20 = vmul.f32 %v14816_v43, %v3332_v54 }
 0x1f1   : > { %v3512_v52 = vmax.f32 %v3480_v53, 0.0  ;;  %v3481_v50 = vadd.f32 %v14823_v26, %v3442_v45  ;;  %v4097_v45 = vld [vmem:[#allocation2 + $0x44] sm:$0x1] }
 0x1f2   : > { %v3510_v24 = vmax.f32 %v3478_v29, 0.0  ;;  %v3479_v48 = vadd.f32 %v14823_v26, %v3440_v20 }
 0x1f3   : > { %v12694_v39 = vpack.c.bf16 %v3512_v52, %v3512_v52  ;;  %v3513_v28 = vmax.f32 %v3481_v50, 0.0 }
 0x1f4   : > { %v12692_v35 = vpack.c.bf16 %v3510_v24, %v3510_v24  ;;  %v3511_v36 = vmax.f32 %v3479_v48, 0.0  ;;  %v5285_v48 = vrot.slane %v5283_v38, 4 }
 0x1f5   : > { %v3829_v25 = vshrl.u32 %v12694_v39, 16  ;;  %v12695_v6 = vpack.c.bf16 %v3513_v28, %v3513_v28  ;;  %v3832_v13 = vshll.u32 %v12694_v39, 16  ;;  %v5286_v39 = vrot.slane %v14960_v59, 5 }
 0x1f6   : > { %v3812_v58 = vshrl.u32 %v12692_v35, 16  ;;  %v12693_v40 = vpack.c.bf16 %v3511_v36, %v3511_v36  ;;  %v3815_v51 = vshll.u32 %v12692_v35, 16  ;;  %v15039_v35 = vld [vmem:[#allocation2 + $0x20] sm:$0x1]  ;;  %v4611_v36 = vld [vmem:[#allocation2 + $0x18] sm:$0xe]  ;;  %v15046_v59 = vsel %vm13357_vm2, %v5292_v12, %v5293_v63 }
 0x1f7   : > { %v3831_v7 = vrot.slane %v3829_v25, 7  ;;  %v3837_v18 = vshrl.u32 %v12695_v6, 16  ;;  %v3840_v46 = vshll.u32 %v12695_v6, 16  ;;  %v15041_v25 = vld [vmem:[#allocation2 + $0x14] sm:$0x1]  ;;  %19727 = vst [vmem:[#allocation16_spill] sm:$0xff] %v15046_v59  ;;  %v15064_v63 = vsel %vm13357_vm2, %v5285_v48, %v5286_v39 }
 0x1f8   : > { %v3814_v27 = vrot.slane %v3812_v58, 7  ;;  %v3820_v61 = vshrl.u32 %v12693_v40, 16  ;;  %v3823_v16 = vshll.u32 %v12693_v40, 16  ;;  %v4691_v6 = vrot.slane %v4689_v49, 4  ;;  %v15048_v40 = vld [vmem:[#allocation2 + $0x30] sm:$0xf] }
 0x1f9   : > { %v3834_v33 = vor.u32 %v3832_v13, %v3831_v7  ;;  %v3839_v37 = vrot.slane %v3837_v18, 7  ;;  %v3835_v42 = vrot.slane %v3831_v7, 4  ;;  %v4684_v58 = vrot.slane %v4682_v5, 4  ;;  %19728 = vst [vmem:[#allocation17_spill] sm:$0xff] %v15048_v40  ;;  %v15056_v18 = vld [vmem:[#allocation2 + $0x30] sm:$0xf] }
 0x1fa   : > { %v3817_v60 = vor.u32 %v3815_v51, %v3814_v27  ;;  %v3822_v30 = vrot.slane %v3820_v61, 7  ;;  %v3818_v54 = vrot.slane %v3814_v27, 4  ;;  %v15054_v13 = vsel %vm13357_vm2, %v12228_v21, %v5290_v2  ;;  %19730 = vst [vmem:[#allocation19_spill] sm:$0xff] %v15056_v18  ;;  %19732 = vst [vmem:[#allocation21_spill] sm:$0xff] %v15064_v63  ;;  %v4107_v48 = vld [vmem:[#allocation2 + $0x54] sm:$0xf] }
 0x1fb   : > { %v4101_v9 = vsel %vm14842_vm12, %v3834_v33, %v4100_v0  ;;  %v3842_v22 = vor.u32 %v3840_v46, %v3839_v37  ;;  %v3844_v53 = vrot.slane %v3839_v37, 4  ;;  %19729 = vst [vmem:[#allocation18_spill] sm:$0xff] %v15054_v13  ;;  %v15060_v0 = vsel %vm13357_vm2, %v12227_v57, %v5283_v38  ;;  %v3602_v33 = vld [vmem:[#allocation2 + $0xa8] sm:$0x1]  ;;  %v4125_v13 = vld [vmem:[#allocation2 + $0x74] sm:$0x1] }
 0x1fc   : > { %4102 = vst [vmem:[#allocation2 + $0x48] sm:$0xf] %v4101_v9  ;;  %v4094_v29 = vsel %vm14842_vm12, %v3817_v60, %v4093_v11  ;;  %v3825_v20 = vor.u32 %v3823_v16, %v3822_v30  ;;  %v3827_v52 = vrot.slane %v3822_v30, 4  ;;  %19731 = vst [vmem:[#allocation20_spill] sm:$0xff] %v15060_v0  ;;  %v4692_v12 = vrot.slane %v15039_v35, 5 }
 0x1fd   : > { %4095 = vst [vmem:[#allocation2 + $0x3c] sm:$0xf] %v4094_v29  ;;  %v3843_v50 = vsel %vm14847_vm14, %v3835_v42, %v3842_v22  ;;  %v4105_v24 = vsel %vm14684_vm13, %v3844_v53, %v4104_v41  ;;  %v4685_v27 = vrot.slane %v15041_v25, 5  ;;  %v12213_v61 = vrot.slane %v4611_v36, 9  ;;  %v15085_v41 = vld [vmem:[#allocation2 + $0x34] sm:$0xf] }
 0x1fe   : > { %4103 = vst.msk [vmem:[#allocation2 + $0x4c] sm:$0xf] %vm3550_vm0, %v3843_v50  ;;  %4106 = vst [vmem:[#allocation2 + $0x50] sm:$0x1] %v4105_v24  ;;  %v3826_v28 = vsel %vm14847_vm14, %v3818_v54, %v3825_v20  ;;  %v4098_v4 = vsel %vm14684_vm13, %v3827_v52, %v4097_v45  ;;  %v12212_v2 = vrot.slane %v4610_v56, 9  ;;  %v5491_v21 = vshrl.u32 %v15048_v40, 16 }
 0x1ff   : > { %4096 = vst.msk [vmem:[#allocation2 + $0x40] sm:$0xf] %vm3550_vm0, %v3826_v28  ;;  %4099 = vst [vmem:[#allocation2 + $0x44] sm:$0x1] %v4098_v4  ;;  %v15073_v38 = vsel %vm13357_vm2, %v4691_v6, %v4692_v12  ;;  %v15077_v57 = vsel %vm13357_vm2, %v4684_v58, %v4685_v27  ;;  %v5494_v11 = vshll.u32 %v15048_v40, 16  ;;  %v4906_v37 = vshrl.u32 %v15056_v18, 16 }
 0x200   : > { %19733 = vst [vmem:[#allocation22_spill] sm:$0xff] %v15073_v38  ;;  %19734 = vst [vmem:[#allocation23_spill] sm:$0xff] %v15077_v57  ;;  %v3603_v46 = vsel %vm14684_vm13, 0, %v3602_v33  ;;  %v4909_v30 = vshll.u32 %v15056_v18, 16  ;;  %v4250_v16 = vshrl.u32 %v14986_v23, 16  ;;  %v15091_v42 = vsel %vm13357_vm2, %v12213_v61, %v4689_v49 }
 0x201   : > { %19735 = vst [vmem:[#allocation24_spill] sm:$0xff] %v15085_v41  ;;  %3604 = vst [vmem:[#allocation2 + $0xa8] sm:$0x1] %v3603_v46  ;;  %v15095_v9 = vsel %vm13357_vm2, %v12212_v2, %v4682_v5  ;;  %v15097_v22 = vld [vmem:[#allocation2 + $0x34] sm:$0xf]  ;;  %v4253_v53 = vshll.u32 %v14986_v23, 16 }
 0x202   : > { %19736 = vst [vmem:[#allocation25_spill] sm:$0xff] %v15091_v42  ;;  %19737 = vst [vmem:[#allocation26_spill] sm:$0xff] %v15095_v9  ;;  %v4259_v45 = vshll.u32 %v14966_v10, 16  ;;  %v3599_v54 = vld [vmem:[#allocation2 + $0x9c] sm:$0x1]  ;;  %v15105_v52 = vrot.slane %v5491_v21, 4 }
 0x203   : > { %19738 = vst [vmem:[#allocation27_spill] sm:$0xff] %v15097_v22  ;;  %v4263_v49 = vshrl.u32 %v14966_v10, 16  ;;  %v15108_v50 = vld [vmem:[#allocation2 + $0x24] sm:$0xf]  ;;  %v3600_v5 = vsel %vm14684_vm13, 0, %v3599_v54  ;;  %v15112_v24 = vrot.slane %v5494_v11, 5 }
 0x204   : > { %19739 = vst [vmem:[#allocation28_spill] sm:$0xff] %v15108_v50  ;;  %v15115_v39 = vrot.slane %v4906_v37, 4  ;;  %3601 = vst [vmem:[#allocation2 + $0x9c] sm:$0x1] %v3600_v5  ;;  %v15117_v4 = vrot.slane %v4909_v30, 5  ;;  %v15120_v6 = vrot.slane %v4250_v16, 4 }
 0x205   : > { %v4269_v56 = vshll.u32 %v15041_v25, 16  ;;  %v15124_v27 = vrot.slane %v4253_v53, 5  ;;  %v15126_v61 = vrot.slane %v4259_v45, 5  ;;  %v5467_v2 = vshrl.u32 %v15108_v50, 16  ;;  %v4181_v21 = vld [vmem:[#allocation2 + $0x18] sm:$0xf] }
 0x206   : > { %v3652_v37 = vld [vmem:[#allocation2 + $0xb0] sm:$0x1]  ;;  %v3649_v46 = vld [vmem:[#allocation2 + $0xa4] sm:$0x1]  ;;  %v4265_v16 = vrot.slane %v4263_v49, 4  ;;  %v4274_v30 = vshrl.u32 %v4181_v21, 16 }
 0x207   : > { %v3653_v5 = vsel %vm14724_vm3, 0, %v3652_v37  ;;  %v4277_v25 = vshll.u32 %v4181_v21, 16  ;;  %v4287_v20 = vshrl.u32 %v15021_v34, 16  ;;  %v15146_v60 = vrot.slane %v4269_v56, 5  ;;  %v4121_v38 = vld [vmem:[#allocation2 + $0x6c] sm:$0xf] }
 0x208   : > { %v12787_v28 = vpop.f32.mrb[12].mxu0  ;;  %3654 = vst [vmem:[#allocation2 + $0xb0] sm:$0x1] %v3653_v5  ;;  %v4266_v21 = vor.u32 %v4265_v16, %v15126_v61  ;;  %v15160_v51 = vrot.slane %v5467_v2, 4  ;;  %v4132_v0 = vld [vmem:[#allocation2 + $0x80] sm:$0x1] }
 0x209   : > { %v3445_v58 = vmul.f32 %v12787_v28, %v14816_v43  ;;  %v3345_v12 = vpop.f32.mrb[13].mxu0  ;;  %v3650_v28 = vsel %vm14724_vm3, 0, %v3649_v46 }
 0x20a   : > { %v3443_v33 = vmul.f32 %v14816_v43, %v3345_v12  ;;  %v12788_v11 = vpop.f32.mrb[14].mxu0  ;;  %3651 = vst [vmem:[#allocation2 + $0xa4] sm:$0x1] %v3650_v28  ;;  %v15154_v28 = vrot.slane %v4274_v30, 4 }
 0x20b   : > { %v3484_v53 = vadd.f32 %v14823_v26, %v3445_v58  ;;  %v3446_v45 = vmul.f32 %v12788_v11, %v14816_v43  ;;  %v3348_v54 = vpop.f32.mrb[15].mxu0  ;;  %v4283_v11 = vshll.u32 %v15021_v34, 16  ;;  %v15156_v34 = vrot.slane %v4277_v25, 5 }
 0x20c   : > { %v3482_v12 = vadd.f32 %v14823_v26, %v3443_v33  ;;  %v3444_v15 = vmul.f32 %v14816_v43, %v3348_v54  ;;  %v4256_v54 = vor.u32 %v15124_v27, %v15120_v6 }
 0x20d   : > { %v3516_v49 = vmax.f32 %v3484_v53, 0.0  ;;  %v3485_v58 = vadd.f32 %v14823_v26, %v3446_v45  ;;  %v15152_v53 = vld [vmem:[#allocation2 + $0x28] sm:$0xf]  ;;  %v15158_v56 = vrot.slane %v4283_v11, 5 }
 0x20e   : > { %v3514_v29 = vmax.f32 %v3482_v12, 0.0  ;;  %v3483_v37 = vadd.f32 %v14823_v26, %v3444_v15  ;;  %19740 = vst [vmem:[#allocation29_spill] sm:$0xff] %v15152_v53  ;;  %v4289_v12 = vrot.slane %v4287_v20, 4 }
 0x20f   : > { %v12698_v46 = vpack.c.bf16 %v3516_v49, %v3516_v49  ;;  %v3517_v43 = vmax.f32 %v3485_v58, 0.0 }
 0x210   : > { %v12696_v45 = vpack.c.bf16 %v3514_v29, %v3514_v29  ;;  %v3515_v5 = vmax.f32 %v3483_v37, 0.0  ;;  %v4267_v29 = vrot.slane %v4266_v21, 4  ;;  %v4114_v37 = vld [vmem:[#allocation2 + $0x60] sm:$0xf]  ;;  %v4290_v2 = vor.u32 %v4289_v12, %v15158_v56  ;;  %v15167_v21 = vld [vmem:[#allocation2 + $0x34] sm:$0xf] }
 0x211   : > { %v3863_v26 = vshrl.u32 %v12698_v46, 16  ;;  %v12699_v15 = vpack.c.bf16 %v3517_v43, %v3517_v43  ;;  %v3866_v16 = vshll.u32 %v12698_v46, 16  ;;  %v4280_v43 = vor.u32 %v15156_v34, %v15154_v28  ;;  %v4111_v34 = vld [vmem:[#allocation2 + $0x5c] sm:$0x1] }
 0x212   : > { %v3846_v49 = vshrl.u32 %v12696_v45, 16  ;;  %v12697_v58 = vpack.c.bf16 %v3515_v5, %v3515_v5  ;;  %v3849_v36 = vshll.u32 %v12696_v45, 16  ;;  %v4118_v5 = vld [vmem:[#allocation2 + $0x68] sm:$0x1]  ;;  %v5304_v46 = vrot.slane %v15097_v22, 5 }
 0x213   : > { %v3865_v27 = vrot.slane %v3863_v26, 7  ;;  %v3871_v47 = vshrl.u32 %v12699_v15, 16  ;;  %v3874_v33 = vshll.u32 %v12699_v15, 16 }
 0x214   : > { %v3848_v30 = vrot.slane %v3846_v49, 7  ;;  %v3854_v25 = vshrl.u32 %v12697_v58, 16  ;;  %v3857_v26 = vshll.u32 %v12697_v58, 16 }
 0x215   : > { %v3868_v11 = vor.u32 %v3866_v16, %v3865_v27  ;;  %v3873_v20 = vrot.slane %v3871_v47, 7  ;;  %v3869_v49 = vrot.slane %v3865_v27, 4  ;;  %v15173_v16 = vld [vmem:[#allocation2 + $0x24] sm:$0xf] }
 0x216   : > { %v3851_v7 = vor.u32 %v3849_v36, %v3848_v30  ;;  %v3856_v6 = vrot.slane %v3854_v25, 7  ;;  %v3852_v47 = vrot.slane %v3848_v30, 4  ;;  %19741 = vst [vmem:[#allocation30_spill] sm:$0xff] %v15173_v16  ;;  %v4703_v25 = vrot.slane %v15167_v21, 5 }
 0x217   : > { %v4115_v45 = vsel %vm14842_vm12, %v3868_v11, %v4114_v37  ;;  %v3876_v10 = vor.u32 %v3874_v33, %v3873_v20  ;;  %v3878_v28 = vrot.slane %v3873_v20, 4  ;;  %v6115_v37 = vpop.permute.xlu0 %6114  ;;  %v4257_v33 = vrot.slane %v4256_v54, 4  ;;  %v15190_v11 = vld [vmem:[#allocation2 + $0x28] sm:$0xf] }
 0x218   : > { %4116 = vst [vmem:[#allocation2 + $0x60] sm:$0xf] %v4115_v45  ;;  %v4108_v15 = vsel %vm14842_vm12, %v3851_v7, %v4107_v48  ;;  %v3859_v12 = vor.u32 %v3857_v26, %v3856_v6  ;;  %v3861_v36 = vrot.slane %v3856_v6, 4  ;;  %v19742_v6 = vcombine.low %v14743_v55, %v14740_v14  ;;  %19743 = vst [vmem:[#allocation31_spill] sm:$0xff] %v15190_v11  ;;  %v15200_v55 = vld [vmem:[#allocation2 + $0x38] sm:$0x1] }
 0x219   : > { %4109 = vst [vmem:[#allocation2 + $0x54] sm:$0xf] %v4108_v15  ;;  %v3877_v58 = vsel %vm14847_vm14, %v3869_v49, %v3876_v10  ;;  %v4119_v27 = vsel %vm14684_vm13, %v3878_v28, %v4118_v5  ;;  %v4293_v30 = vshll.u32 %v15039_v35, 16  ;;  %v4272_v54 = vsel %vm13401_vm5, %v4267_v29, %v15146_v60  ;;  %v15202_v26 = vld [vmem:[#allocation2 + $0x28] sm:$0xf]  ;;  %v6195_v35 = vpop.permute.xlu1 %6194 }
 0x21a   : > { %4117 = vst.msk [vmem:[#allocation2 + $0x64] sm:$0xf] %vm3550_vm0, %v3877_v58  ;;  %4120 = vst [vmem:[#allocation2 + $0x68] sm:$0x1] %v4119_v27  ;;  %v3860_v7 = vsel %vm14847_vm14, %v3852_v47, %v3859_v12  ;;  %v4112_v48 = vsel %vm14684_vm13, %v3861_v36, %v4111_v34  ;;  %v6708_v10 = vsel %vm3041_vm9, %v19742_v6, %v6115_v37  ;;  %v4882_v5 = vshrl.u32 %v15173_v16, 16 }
 0x21b   : > { %4110 = vst.msk [vmem:[#allocation2 + $0x58] sm:$0xf] %vm3550_vm0, %v3860_v7  ;;  %4113 = vst [vmem:[#allocation2 + $0x5c] sm:$0x1] %v4112_v48  ;;  %v4885_v14 = vshll.u32 %v15173_v16, 16  ;;  %v19744_v49 = vshll.u32 %v15108_v50, 16  ;;  %v15211_v47 = vsel %vm19745_vm1, %v6708_v10, %v6195_v35  ;;  %v4262_v15 = vsel %vm13401_vm5, %v4257_v33, %v15126_v61 }
 0x21c   : > { %v4281_v28 = vrot.slane %v4280_v43, 4  ;;  %v4291_v34 = vrot.slane %v4290_v2, 4  ;;  %v5306_v60 = vrot.slane %v5304_v46, 4  ;;  %v15208_v29 = vld [vmem:[#allocation2 + $0x38] sm:$0x1]  ;;  %v4705_v36 = vrot.slane %v4703_v25, 4 }
 0x21d   : > { %v5472_v45 = vrot.slane %v19744_v49, 5  ;;  %v5220_v12 = vld [vmem:[#allocation2 + $0x30] sm:$0xe]  ;;  %v5297_v58 = vrot.slane %v15190_v11, 5  ;;  %v15217_v27 = vcombine.low %v4262_v15, %v4272_v54  ;;  %v4295_v43 = vrot.slane %v4293_v30, 5 }
 0x21e   : > { %v5307_v2 = vrot.slane %v15200_v55, 5  ;;  %v4613_v37 = vld [vmem:[#allocation2 + $0x30] sm:$0xe]  ;;  %v4696_v7 = vrot.slane %v15202_v26, 5  ;;  %v15221_v48 = vrot.slane %v4882_v5, 4  ;;  %v15223_v6 = vrot.slane %v4885_v14, 5 }
 0x21f   : > { %19746 = vst [vmem:[#allocation32_spill] sm:$0xff] %v15217_v27  ;;  %v4706_v61 = vrot.slane %v15208_v29, 5  ;;  %v4286_v33 = vsel %vm13401_vm5, %v4281_v28, %v15158_v56  ;;  %v4296_v30 = vsel %vm13401_vm5, %v4291_v34, %v4295_v43  ;;  %v12230_v54 = vrot.slane %v5220_v12, 9  ;;  %v15236_v5 = vld [vmem:[#allocation2 + $0x2c] sm:$0x1] }
 0x220   : > { %v15234_v35 = vsel %vm13357_vm2, %v5306_v60, %v5307_v2  ;;  %v5219_v14 = vld [vmem:[#allocation2 + $0x24] sm:$0xe]  ;;  %v12215_v49 = vrot.slane %v4613_v37, 9  ;;  %v5299_v20 = vrot.slane %v5297_v58, 4  ;;  %v15242_v10 = vld [vmem:[#allocation2 + $0x2c] sm:$0x1]  ;;  %v5473_v28 = vor.u32 %v5472_v45, %v15160_v51 }
 0x221   : > { %19747 = vst [vmem:[#allocation33_spill] sm:$0xff] %v15234_v35  ;;  %v15240_v15 = vsel %vm13357_vm2, %v4705_v36, %v4706_v61  ;;  %v5427_v56 = vld [vmem:[#allocation2 + $0x2c] sm:$0x1]  ;;  %v15251_v60 = vsel %vm13357_vm2, %v12230_v54, %v5304_v46  ;;  %v4612_v12 = vld [vmem:[#allocation2 + $0x24] sm:$0xe]  ;;  %v4698_v43 = vrot.slane %v4696_v7, 4  ;;  %v15254_v2 = vcombine.low %v4286_v33, %v4296_v30 }
 0x222   : > { %19748 = vst [vmem:[#allocation34_spill] sm:$0xff] %v15240_v15  ;;  %19749 = vst [vmem:[#allocation35_spill] sm:$0xff] %v15251_v60  ;;  %v5476_v36 = vshll.u32 %v15152_v53, 16  ;;  %v15260_v51 = vsel %vm13357_vm2, %v12215_v49, %v4703_v25  ;;  %v15262_v45 = vld [vmem:[#allocation2 + $0x48] sm:$0xf]  ;;  %v5300_v61 = vrot.slane %v15236_v5, 5 }
 0x223   : > { %19750 = vst [vmem:[#allocation36_spill] sm:$0xff] %v15254_v2  ;;  %19751 = vst [vmem:[#allocation37_spill] sm:$0xff] %v15260_v51  ;;  %v12229_v54 = vrot.slane %v5219_v14, 9  ;;  %v4699_v34 = vrot.slane %v15242_v10, 5  ;;  %v5486_v23 = vshll.u32 %v5427_v56, 16  ;;  %v12214_v37 = vrot.slane %v4612_v12, 9 }
 0x224   : > { %19752 = vst [vmem:[#allocation38_spill] sm:$0xff] %v15262_v45  ;;  %v15270_v33 = vsel %vm13357_vm2, %v5299_v20, %v5300_v61  ;;  %v15272_v30 = vld [vmem:[#allocation2 + $0x48] sm:$0xf]  ;;  %v15274_v25 = vrot.slane %v5473_v28, 4  ;;  %v19755_v49 = vshrl.u32 %v15152_v53, 16  ;;  %v5539_v35 = vshrl.u32 %v15262_v45, 16 }
 0x225   : > { %19753 = vst [vmem:[#allocation39_spill] sm:$0xff] %v15270_v33  ;;  %19754 = vst [vmem:[#allocation40_spill] sm:$0xff] %v15272_v30  ;;  %v15281_v14 = vsel %vm13357_vm2, %v4698_v43, %v4699_v34  ;;  %v15283_v46 = vrot.slane %v5476_v36, 5  ;;  %v5500_v56 = vshll.u32 %v15085_v41, 16  ;;  %v5542_v20 = vshll.u32 %v15262_v45, 16 }
 0x226   : > { %v5482_v31 = vrot.slane %v19755_v49, 4  ;;  %19756 = vst [vmem:[#allocation41_spill] sm:$0xff] %v15281_v14  ;;  %v15289_v12 = vsel %vm13357_vm2, %v12229_v54, %v5297_v58  ;;  %v15293_v28 = vsel %vm13357_vm2, %v12214_v37, %v4696_v7  ;;  %v5428_v61 = vld [vmem:[#allocation2 + $0x38] sm:$0x1]  ;;  %v5497_v49 = vor.u32 %v15112_v24, %v15105_v52  ;;  %v15297_v34 = vld [vmem:[#allocation2 + $0x4c] sm:$0xf] }
 0x227   : > { %19757 = vst [vmem:[#allocation42_spill] sm:$0xff] %v15289_v12  ;;  %19758 = vst [vmem:[#allocation43_spill] sm:$0xff] %v15293_v28  ;;  %v4954_v36 = vshrl.u32 %v15272_v30, 16  ;;  %v4957_v15 = vshll.u32 %v15272_v30, 16  ;;  %v15303_v51 = vrot.slane %v5486_v23, 5  ;;  %v15315_v37 = vrot.slane %v5539_v35, 4 }
 0x228   : > { %19759 = vst [vmem:[#allocation44_spill] sm:$0xff] %v15297_v34  ;;  %v15317_v54 = vld [vmem:[#allocation2 + $0x4c] sm:$0xf]  ;;  %v5483_v23 = vor.u32 %v5482_v31, %v15283_v46  ;;  %v15320_v43 = vrot.slane %v5500_v56, 5  ;;  %v19761_v58 = vshrl.u32 %v15085_v41, 16  ;;  %v15324_v33 = vrot.slane %v5542_v20, 5 }
 0x229   : > { %19760 = vst [vmem:[#allocation45_spill] sm:$0xff] %v15317_v54  ;;  %v5510_v24 = vshll.u32 %v5428_v61, 16  ;;  %v15332_v35 = vld [vmem:[%s19616_s2] ss:$0 sm:$0xff]  ;;  %v15335_v12 = vrot.slane %v4954_v36, 4  ;;  %v4891_v20 = vshll.u32 %v15190_v11, 16 }
 0x22a   : > { %v5506_v14 = vrot.slane %v19761_v58, 4  ;;  %v15337_v58 = vrot.slane %v4957_v15, 5  ;;  %v4915_v45 = vshll.u32 %v15097_v22, 16  ;;  %v15352_v2 = vrot.slane %v5483_v23, 4  ;;  %v4183_v50 = vld [vmem:[#allocation2 + $0x24] sm:$0xf] }
 0x22b   : > { %v12791_v28 = vpop.f32.mrb[16].mxu0  ;;  %v15357_v30 = vrot.slane %v5497_v49, 4  ;;  %v15359_v53 = vrot.slane %v5510_v24, 5 }
 0x22c   : > { %v3449_v31 = vmul.f32 %v15332_v35, %v12791_v28  ;;  %v3361_v56 = vpop.f32.mrb[17].mxu0  ;;  %v15348_v28 = vld [vmem:[%s19617_s3] ss:$0 sm:$0xff] }
 0x22d   : > { %v3447_v7 = vmul.f32 %v15332_v35, %v3361_v56  ;;  %v12792_v60 = vpop.f32.mrb[18].mxu0  ;;  %v5507_v56 = vor.u32 %v5506_v14, %v15320_v43 }
 0x22e   : > { %v3488_v15 = vadd.f32 %v15348_v28, %v3449_v31  ;;  %v3450_v36 = vmul.f32 %v15332_v35, %v12792_v60  ;;  %v3364_v16 = vpop.f32.mrb[19].mxu0  ;;  %v15362_v31 = vrot.slane %v4891_v20, 5  ;;  %v19762_v60 = vshrl.u32 %v15190_v11, 16 }
 0x22f   : > { %v3486_v52 = vadd.f32 %v15348_v28, %v3447_v7  ;;  %v3448_v61 = vmul.f32 %v15332_v35, %v3364_v16  ;;  %v15369_v7 = vrot.slane %v4915_v45, 5  ;;  %v19763_v16 = vshrl.u32 %v15097_v22, 16 }
 0x230   : > { %v3520_v27 = vmax.f32 %v3488_v15, 0.0  ;;  %v3489_v8 = vadd.f32 %v15348_v28, %v3450_v36  ;;  %v15366_v23 = vrot.slane %v19762_v60, 4  ;;  %v15375_v15 = vrot.slane %v5507_v56, 4 }
 0x231   : > { %v3518_v1 = vmax.f32 %v3486_v52, 0.0  ;;  %v3487_v14 = vadd.f32 %v15348_v28, %v3448_v61  ;;  %v15373_v49 = vrot.slane %v19763_v16, 4  ;;  %v4298_v36 = vshrl.u32 %v4183_v50, 16 }
 0x232   : > { %v12702_v24 = vpack.c.bf16 %v3520_v27, %v3520_v27  ;;  %v3521_v32 = vmax.f32 %v3489_v8, 0.0  ;;  %v4301_v60 = vshll.u32 %v4183_v50, 16  ;;  %v4898_v45 = vor.u32 %v15366_v23, %v15362_v31  ;;  %v4128_v50 = vld [vmem:[#allocation2 + $0x78] sm:$0xf] }
 0x233   : > { %v12700_v20 = vpack.c.bf16 %v3518_v1, %v3518_v1  ;;  %v3519_v18 = vmax.f32 %v3487_v14, 0.0  ;;  %v4307_v61 = vshll.u32 %v15202_v26, 16  ;;  %v4922_v8 = vor.u32 %v15373_v49, %v15369_v7 }
 0x234   : > { %v3897_v41 = vshrl.u32 %v12702_v24, 16  ;;  %v12703_v52 = vpack.c.bf16 %v3521_v32, %v3521_v32  ;;  %v4311_v27 = vshrl.u32 %v15202_v26, 16  ;;  %v3900_v1 = vshll.u32 %v12702_v24, 16 }
 0x235   : > { %v3880_v22 = vshrl.u32 %v12700_v20, 16  ;;  %v12701_v16 = vpack.c.bf16 %v3519_v18, %v3519_v18  ;;  %v15384_v40 = vrot.slane %v4298_v36, 4  ;;  %v3883_v32 = vshll.u32 %v12700_v20, 16 }
 0x236   : > { %v3899_v56 = vrot.slane %v3897_v41, 7  ;;  %v3905_v14 = vshrl.u32 %v12703_v52, 16  ;;  %v15386_v9 = vrot.slane %v4301_v60, 5  ;;  %v3908_v18 = vshll.u32 %v12703_v52, 16  ;;  %v4185_v60 = vld [vmem:[#allocation2 + $0x30] sm:$0xf] }
 0x237   : > { %v3882_v11 = vrot.slane %v3880_v22, 7  ;;  %v3888_v57 = vshrl.u32 %v12701_v16, 16  ;;  %v15388_v63 = vrot.slane %v4307_v61, 5  ;;  %v3891_v41 = vshll.u32 %v12701_v16, 16 }
 0x238   : > { %v3902_v23 = vor.u32 %v3900_v1, %v3899_v56  ;;  %v3907_v42 = vrot.slane %v3905_v14, 7  ;;  %v4313_v24 = vrot.slane %v4311_v27, 4  ;;  %v3903_v59 = vrot.slane %v3899_v56, 4  ;;  %v15398_v27 = vld [vmem:[#allocation2 + $0x40] sm:$0xf] }
 0x239   : > { %v3885_v49 = vor.u32 %v3883_v32, %v3882_v11  ;;  %v3890_v26 = vrot.slane %v3888_v57, 7  ;;  %v3886_v1 = vrot.slane %v3882_v11, 4  ;;  %19764 = vst [vmem:[#allocation46_spill] sm:$0xff] %v15398_v27  ;;  %v4335_v56 = vshrl.u32 %v15167_v21, 16 }
 0x23a   : > { %v4129_v36 = vsel %vm14842_vm12, %v3902_v23, %v4128_v50  ;;  %v3910_v22 = vor.u32 %v3908_v18, %v3907_v42  ;;  %v3912_v20 = vrot.slane %v3907_v42, 4  ;;  %v4331_v42 = vshll.u32 %v15167_v21, 16 }
 0x23b   : > { %4130 = vst [vmem:[#allocation2 + $0x78] sm:$0xf] %v4129_v36  ;;  %v4122_v52 = vsel %vm14842_vm12, %v3885_v49, %v4121_v38  ;;  %v3893_v61 = vor.u32 %v3891_v41, %v3890_v26  ;;  %v3895_v14 = vrot.slane %v3890_v26, 4  ;;  %v4322_v50 = vshrl.u32 %v4185_v60, 16  ;;  %v15416_v49 = vld [vmem:[#allocation2 + $0x3c] sm:$0xf] }
 0x23c   : > { %4123 = vst [vmem:[#allocation2 + $0x6c] sm:$0xf] %v4122_v52  ;;  %v3911_v57 = vsel %vm14847_vm14, %v3903_v59, %v3910_v22  ;;  %v4133_v16 = vsel %vm14684_vm13, %v3912_v20, %v4132_v0  ;;  %v4325_v59 = vshll.u32 %v4185_v60, 16  ;;  %v5489_v0 = vsel %vm13401_vm5, %v15352_v2, %v15303_v51  ;;  %19766 = vst [vmem:[#allocation47_spill] sm:$0xff] %v15416_v49 }
 0x23d   : > { %4131 = vst.msk [vmem:[#allocation2 + $0x7c] sm:$0xf] %vm3550_vm0, %v3911_v57  ;;  %4134 = vst [vmem:[#allocation2 + $0x80] sm:$0x1] %v4133_v16  ;;  %v3894_v38 = vsel %vm14847_vm14, %v3886_v1, %v3893_v61  ;;  %v4126_v11 = vsel %vm14684_vm13, %v3895_v14, %v4125_v13  ;;  %v19765_v21 = vor.u32 %v15223_v6, %v15221_v48  ;;  %v4899_v23 = vrot.slane %v4898_v45, 4 }
 0x23e   : > { %4124 = vst.msk [vmem:[#allocation2 + $0x70] sm:$0xf] %vm3550_vm0, %v3894_v38  ;;  %4127 = vst [vmem:[#allocation2 + $0x74] sm:$0x1] %v4126_v11  ;;  %v4925_v18 = vshll.u32 %v15200_v55, 16  ;;  %v5513_v13 = vsel %vm13401_vm5, %v15375_v15, %v15359_v53  ;;  %v19767_v26 = vor.u32 %v15117_v4, %v15115_v39  ;;  %v4314_v2 = vor.u32 %v4313_v24, %v15388_v63 }
 0x23f   : > { %v4889_v32 = vrot.slane %v19765_v21, 4  ;;  %v19768_v6 = vshll.u32 %v15236_v5, 16  ;;  %v4923_v55 = vrot.slane %v4922_v8, 4  ;;  %v15430_v45 = vrot.slane %v4331_v42, 5  ;;  %v5222_v14 = vld [vmem:[#allocation2 + $0x48] sm:$0xe] }
 0x240   : > { %v4913_v41 = vrot.slane %v19767_v26, 4  ;;  %v4337_v36 = vrot.slane %v4335_v56, 4  ;;  %v4304_v22 = vor.u32 %v15386_v9, %v15384_v40  ;;  %v4317_v53 = vshll.u32 %v15242_v10, 16  ;;  %v15463_v42 = vld [vmem:[#allocation2 + $0x40] sm:$0xf] }
 0x241   : > { %v4903_v51 = vrot.slane %v19768_v6, 5  ;;  %v4324_v15 = vrot.slane %v4322_v50, 4  ;;  %v4327_v39 = vrot.slane %v4325_v59, 5  ;;  %v4927_v24 = vrot.slane %v4925_v18, 5  ;;  %19773 = vst [vmem:[#allocation51_spill] sm:$0xff] %v15463_v42 }
 0x242   : > { %v5515_v20 = vshrl.u32 %v15416_v49, 16  ;;  %v5318_v5 = vrot.slane %v15317_v54, 5  ;;  %v19769_v8 = vsel %vm13401_vm5, %v15274_v25, %v15283_v46  ;;  %v5503_v40 = vsel %vm13401_vm5, %v15357_v30, %v15320_v43  ;;  %v15459_v25 = vld [vmem:[#allocation2 + $0x50] sm:$0x1]  ;;  %v15465_v56 = vld [vmem:[#allocation2 + $0x4c] sm:$0xf] }
 0x243   : > { %v4904_v4 = vsel %vm13401_vm5, %v4899_v23, %v4903_v51  ;;  %v15444_v60 = vcombine.low %v19769_v8, %v5489_v0  ;;  %v4315_v9 = vrot.slane %v4314_v2, 4  ;;  %v5518_v10 = vshll.u32 %v15416_v49, 16  ;;  %v15473_v59 = vld [vmem:[#allocation2 + $0x3c] sm:$0xf]  ;;  %v15482_v18 = vld [vmem:[#allocation2 + $0x40] sm:$0xf] }
 0x244   : > { %v15451_v1 = vcombine.low %v5503_v40, %v5513_v13  ;;  %v4894_v52 = vsel %vm13401_vm5, %v4889_v32, %v15362_v31  ;;  %v4928_v61 = vsel %vm13401_vm5, %v4923_v55, %v4927_v24  ;;  %v4338_v46 = vor.u32 %v4337_v36, %v15430_v45  ;;  %19774 = vst [vmem:[#allocation52_spill] sm:$0xff] %v15473_v59  ;;  %v4615_v55 = vld [vmem:[#allocation2 + $0x48] sm:$0xe]  ;;  %v15508_v8 = vld [vmem:[#allocation2 + $0x50] sm:$0x1] }
 0x245   : > { %19770 = vst [vmem:[#allocation48_spill] sm:$0xff] %v15444_v60  ;;  %v15461_v57 = vcombine.low %v4894_v52, %v4904_v4  ;;  %v4305_v30 = vrot.slane %v4304_v22, 4  ;;  %v4319_v43 = vrot.slane %v4317_v53, 5  ;;  %v4328_v16 = vor.u32 %v4327_v39, %v4324_v15  ;;  %v15497_v15 = vld [vmem:[#allocation2 + $0x60] sm:$0xf] }
 0x246   : > { %19771 = vst [vmem:[#allocation49_spill] sm:$0xff] %v15451_v1  ;;  %v4918_v31 = vsel %vm13401_vm5, %v4913_v41, %v15369_v7  ;;  %v15470_v38 = vrot.slane %v5515_v20, 4  ;;  %v4341_v11 = vshll.u32 %v15208_v29, 16  ;;  %v5320_v50 = vrot.slane %v5318_v5, 4  ;;  %19778 = vst [vmem:[#allocation56_spill] sm:$0xff] %v15497_v15  ;;  %v19810_v1 = vld [vmem:[#allocation21_spill] sm:$0xff] }
 0x247   : > { %19772 = vst [vmem:[#allocation50_spill] sm:$0xff] %v15461_v57  ;;  %v15475_v0 = vcombine.low %v4918_v31, %v4928_v61  ;;  %v4320_v21 = vsel %vm13401_vm5, %v4315_v9, %v4319_v43  ;;  %v15479_v32 = vrot.slane %v5518_v10, 5  ;;  %v4339_v13 = vrot.slane %v4338_v46, 4  ;;  %v15510_v40 = vld [vmem:[#allocation2 + $0x44] sm:$0x1] }
 0x248   : > { %v5321_v7 = vrot.slane %v15459_v25, 5  ;;  %v4717_v26 = vrot.slane %v15465_v56, 5  ;;  %v5311_v29 = vrot.slane %v15463_v42, 5  ;;  %v4310_v41 = vsel %vm13401_vm5, %v4305_v30, %v15388_v63  ;;  %v5221_v61 = vld [vmem:[#allocation2 + $0x3c] sm:$0xe] }
 0x249   : > { %19775 = vst [vmem:[#allocation53_spill] sm:$0xff] %v15475_v0  ;;  %v4329_v2 = vrot.slane %v4328_v16, 4  ;;  %v12232_v6 = vrot.slane %v5222_v14, 9  ;;  %v4930_v51 = vshrl.u32 %v15473_v59, 16  ;;  %v15491_v36 = vcombine.low %v4310_v41, %v4320_v21  ;;  %v15522_v16 = vld [vmem:[#allocation2 + $0x44] sm:$0x1] }
 0x24a   : > { %v4343_v22 = vrot.slane %v4341_v11, 5  ;;  %v15495_v53 = vsel %vm13357_vm2, %v5320_v50, %v5321_v7  ;;  %v4710_v39 = vrot.slane %v15482_v18, 5  ;;  %v4933_v63 = vshll.u32 %v15473_v59, 16  ;;  %v15564_v20 = vld [vmem:[#allocation2 + $0x64] sm:$0xf] }
 0x24b   : > { %19776 = vst [vmem:[#allocation54_spill] sm:$0xff] %v15491_v36  ;;  %19777 = vst [vmem:[#allocation55_spill] sm:$0xff] %v15495_v53  ;;  %v15502_v4 = vsel %vm13357_vm2, %v12232_v6, %v5318_v5  ;;  %v12217_v10 = vrot.slane %v4615_v55, 9  ;;  %v4719_v52 = vrot.slane %v4717_v26, 4  ;;  %v5313_v46 = vrot.slane %v5311_v29, 4 }
 0x24c   : > { %19779 = vst [vmem:[#allocation57_spill] sm:$0xff] %v15502_v4  ;;  %v4344_v9 = vsel %vm13401_vm5, %v4339_v13, %v4343_v22  ;;  %v4334_v5 = vsel %vm13401_vm5, %v4329_v2, %v15430_v45  ;;  %v15519_v30 = vrot.slane %v4930_v51, 4  ;;  %v5587_v43 = vshrl.u32 %v15497_v15, 16  ;;  %v15527_v13 = vld [vmem:[#allocation2 + $0x60] sm:$0xf] }
 0x24d   : > { %v4720_v31 = vrot.slane %v15508_v8, 5  ;;  %v5314_v11 = vrot.slane %v15510_v40, 5  ;;  %v5590_v50 = vshll.u32 %v15497_v15, 16  ;;  %v4712_v21 = vrot.slane %v4710_v39, 4  ;;  %19780 = vst [vmem:[#allocation58_spill] sm:$0xff] %v15527_v13 }
 0x24e   : > { %v15529_v7 = vcombine.low %v4334_v5, %v4344_v9  ;;  %v15531_v45 = vrot.slane %v4933_v63, 5  ;;  %v15535_v41 = vsel %vm13357_vm2, %v12217_v10, %v4717_v26  ;;  %v12231_v2 = vrot.slane %v5221_v61, 9  ;;  %v4614_v6 = vld [vmem:[#allocation2 + $0x3c] sm:$0xe]  ;;  %v15545_v22 = vld [vmem:[#allocation2 + $0x64] sm:$0xf]  ;;  %v6291_v5 = vpop.permute.xlu0 %6290 }
 0x24f   : > { %19782 = vst [vmem:[#allocation60_spill] sm:$0xff] %v15535_v41  ;;  %v15539_v51 = vsel %vm13357_vm2, %v4719_v52, %v4720_v31  ;;  %v15543_v55 = vsel %vm13357_vm2, %v5313_v46, %v5314_v11  ;;  %v4713_v9 = vrot.slane %v15522_v16, 5  ;;  %v5548_v63 = vshll.u32 %v15297_v34, 16  ;;  %v4135_v41 = vld [vmem:[#allocation2 + $0x84] sm:$0xf] }
 0x250   : > { %19781 = vst [vmem:[#allocation59_spill] sm:$0xff] %v15529_v7  ;;  %19783 = vst [vmem:[#allocation61_spill] sm:$0xff] %v15539_v51  ;;  %v15551_v26 = vsel %vm13357_vm2, %v12231_v2, %v5311_v29  ;;  %v15553_v10 = vrot.slane %v5587_v43, 4  ;;  %v5002_v52 = vshrl.u32 %v15527_v13, 16  ;;  %v5545_v61 = vor.u32 %v15324_v33, %v15315_v37  ;;  %v5430_v37 = vld [vmem:[#allocation2 + $0x50] sm:$0x1] }
 0x251   : > { %19784 = vst [vmem:[#allocation62_spill] sm:$0xff] %v15543_v55  ;;  %19785 = vst [vmem:[#allocation63_spill] sm:$0xff] %v15551_v26  ;;  %v15558_v46 = vrot.slane %v5590_v50, 5  ;;  %v12216_v31 = vrot.slane %v4614_v6, 9  ;;  %v15562_v11 = vsel %vm13357_vm2, %v4712_v21, %v4713_v9  ;;  %v5005_v14 = vshll.u32 %v15527_v13, 16 }
 0x252   : > { %19786 = vst [vmem:[#allocation64_spill] sm:$0xff] %v15553_v10  ;;  %19788 = vst [vmem:[#allocation66_spill] sm:$0xff] %v15562_v11  ;;  %v15576_v50 = vsel %vm6786_vm4, %v15211_v47, %v6291_v5  ;;  %v15582_v6 = vrot.slane %v5548_v63, 5  ;;  %v19791_v9 = vshrl.u32 %v15297_v34, 16  ;;  %v15588_v2 = vrot.slane %v5002_v52, 4 }
 0x253   : > { %19787 = vst [vmem:[#allocation65_spill] sm:$0xff] %v15558_v46  ;;  %19789 = vst [vmem:[#allocation67_spill] sm:$0xff] %v15576_v50  ;;  %v15580_v21 = vsel %vm13357_vm2, %v12216_v31, %v4710_v39  ;;  %v15591_v24 = vrot.slane %v5545_v61, 4  ;;  %v5429_v47 = vld [vmem:[#allocation2 + $0x44] sm:$0x1]  ;;  %v15594_v31 = vrot.slane %v5005_v14, 5  ;;  %v5521_v48 = vor.u32 %v15479_v32, %v15470_v38 }
 0x254   : > { %19790 = vst [vmem:[#allocation68_spill] sm:$0xff] %v15580_v21  ;;  %v5554_v29 = vrot.slane %v19791_v9, 4  ;;  %v12795_v43 = vpop.f32.mrb[0].mxu1  ;;  %19792 = vst [vmem:[#allocation69_spill] sm:$0xff] %v15588_v2  ;;  %v5558_v63 = vshll.u32 %v5430_v37, 16  ;;  %v5524_v23 = vshll.u32 %v15398_v27, 16  ;;  %v4960_v32 = vor.u32 %v15337_v58, %v15335_v12 }
 0x255   : > { %v3453_v5 = vmul.f32 %v15332_v35, %v12795_v43  ;;  %v3377_v39 = vpop.f32.mrb[1].mxu1  ;;  %19793 = vst [vmem:[#allocation70_spill] sm:$0xff] %v15594_v31  ;;  %v19794_v61 = vshrl.u32 %v15398_v27, 16  ;;  %v5534_v21 = vshll.u32 %v5429_v47, 16  ;;  %v19797_v53 = vmov 0   ;;  %v19812_v2 = vld [vmem:[#allocation25_spill] sm:$0xff] }
 0x256   : > { %v3451_v9 = vmul.f32 %v15332_v35, %v3377_v39  ;;  %v12796_v50 = vpop.f32.mrb[2].mxu1  ;;  %v5555_v37 = vor.u32 %v5554_v29, %v15582_v6  ;;  %v15618_v52 = vrot.slane %v5524_v23, 5  ;;  %v19795_v23 = vshrl.u32 %v15317_v54, 16  ;;  %v4146_v7 = vld [vmem:[#allocation2 + $0x98] sm:$0x1] }
 0x257   : > { %v5530_v33 = vrot.slane %v19794_v61, 4  ;;  %v3492_v43 = vadd.f32 %v15348_v28, %v3453_v5  ;;  %v3454_v14 = vmul.f32 %v15332_v35, %v12796_v50  ;;  %v3380_v11 = vpop.f32.mrb[3].mxu1  ;;  %v15616_v50 = vrot.slane %v5558_v63, 5  ;;  %v4160_v10 = vld [vmem:[#allocation2 + $0xb0] sm:$0x1] }
 0x258   : > { %v3490_v39 = vadd.f32 %v15348_v28, %v3451_v9  ;;  %v3452_v15 = vmul.f32 %v15332_v35, %v3380_v11  ;;  %v15621_v9 = vrot.slane %v5521_v48, 4  ;;  %v4963_v11 = vshll.u32 %v15317_v54, 16  ;;  %v19813_v54 = vld [vmem:[#allocation22_spill] sm:$0xff] }
 0x259   : > { %v3524_v61 = vmax.f32 %v3492_v43, 0.0  ;;  %v3493_v5 = vadd.f32 %v15348_v28, %v3454_v14  ;;  %v15624_v38 = vrot.slane %v5555_v37, 4  ;;  %v15626_v26 = vrot.slane %v5534_v21, 5  ;;  %v12938_v37 = vld [vmem:[%s19618_s4] sm:$0xff]  }
 0x25a   : > { %v3522_v29 = vmax.f32 %v3490_v39, 0.0  ;;  %v3491_v47 = vadd.f32 %v15348_v28, %v3452_v15  ;;  %v15628_v43 = vrot.slane %v4960_v32, 4  ;;  %v15632_v63 = vrot.slane %v19795_v23, 4  ;;  %v4142_v23 = vld [vmem:[#allocation2 + $0x90] sm:$0xf]  ;;  %7088 = vmatpush1.bf16.msra.mxu1 %v12938_v37 }
 0x25b   : > { %v12706_v13 = vpack.c.bf16 %v3524_v61, %v3524_v61  ;;  %v3525_v55 = vmax.f32 %v3493_v5, 0.0  ;;  %v5531_v48 = vor.u32 %v5530_v33, %v15618_v52  ;;  %v4973_v39 = vshll.u32 %v15459_v25, 16  ;;  %7089 = vmatprep.subr.bf16.mxu1 %v19797_v53 }
 0x25c   : > { %v12704_v12 = vpack.c.bf16 %v3522_v29, %v3522_v29  ;;  %v3523_v58 = vmax.f32 %v3491_v47, 0.0  ;;  %v15639_v5 = vrot.slane %v4963_v11, 5  ;;  %v4939_v32 = vshll.u32 %v15463_v42, 16 }
 0x25d   : > { %v3931_v14 = vshrl.u32 %v12706_v13, 16  ;;  %v12707_v15 = vpack.c.bf16 %v3525_v55, %v3525_v55  ;;  %v3934_v47 = vshll.u32 %v12706_v13, 16  ;;  %v5561_v55 = vsel %vm13401_vm5, %v15624_v38, %v15616_v50  ;;  %v4139_v38 = vld [vmem:[#allocation2 + $0x8c] sm:$0x1] }
 0x25e   : > { %v3914_v21 = vshrl.u32 %v12704_v12, 16  ;;  %v12705_v61 = vpack.c.bf16 %v3523_v58, %v3523_v58  ;;  %v3917_v33 = vshll.u32 %v12704_v12, 16  ;;  %v19796_v58 = vshrl.u32 %v15463_v42, 16  ;;  %v4187_v42 = vld [vmem:[#allocation2 + $0x3c] sm:$0xf] }
 0x25f   : > { %v3933_v29 = vrot.slane %v3931_v14, 7  ;;  %v3939_v51 = vshrl.u32 %v12707_v15, 16  ;;  %v3942_v4 = vshll.u32 %v12707_v15, 16  ;;  %v5532_v27 = vrot.slane %v5531_v48, 4 }
 0x260   : > { %v3916_v25 = vrot.slane %v3914_v21, 7  ;;  %v3922_v59 = vshrl.u32 %v12705_v61, 16  ;;  %v15648_v11 = vrot.slane %v19796_v58, 4  ;;  %v3925_v0 = vshll.u32 %v12705_v61, 16 }
 0x261   : > { %v3936_v14 = vor.u32 %v3934_v47, %v3933_v29  ;;  %v3941_v13 = vrot.slane %v3939_v51, 7  ;;  %v15651_v50 = vrot.slane %v4939_v32, 5  ;;  %v3937_v12 = vrot.slane %v3933_v29, 4  ;;  %v12939_v51 = vld [vmem:[%s19618_s4 + $0x8] sm:$0xff]  }
 0x262   : > { %v3919_v49 = vor.u32 %v3917_v33, %v3916_v25  ;;  %v3924_v36 = vrot.slane %v3922_v59, 7  ;;  %v3920_v15 = vrot.slane %v3916_v25, 4  ;;  %v4970_v29 = vor.u32 %v15632_v63, %v15639_v5  ;;  %7090 = vmatpush1.bf16.msra.mxu1 %v12939_v51  ;;  %v4189_v25 = vld [vmem:[#allocation2 + $0x48] sm:$0xf]  ;;  %v12941_v33 = vld [vmem:[%s19618_s4 + $0x10] sm:$0xff]  }
 0x263   : > { %v4143_v37 = vsel %vm14842_vm12, %v3936_v14, %v4142_v23  ;;  %v3944_v21 = vor.u32 %v3942_v4, %v3941_v13  ;;  %v3946_v58 = vrot.slane %v3941_v13, 4  ;;  %v4936_v47 = vor.u32 %v15531_v45, %v15519_v30  ;;  %v15668_v23 = vld [vmem:[#allocation2 + $0x54] sm:$0xf]  ;;  %7091 = vmatprep.subr.bf16.mxu1 %v19797_v53 }
 0x264   : > { %4144 = vst [vmem:[#allocation2 + $0x90] sm:$0xf] %v4143_v37  ;;  %v4136_v59 = vsel %vm14842_vm12, %v3919_v49, %v4135_v41  ;;  %v3927_v48 = vor.u32 %v3925_v0, %v3924_v36  ;;  %v3929_v61 = vrot.slane %v3924_v36, 4  ;;  %19798 = vst [vmem:[#allocation71_spill] sm:$0xff] %v15668_v23  ;;  %v4346_v36 = vshrl.u32 %v4187_v42, 16 }
 0x265   : > { %4137 = vst [vmem:[#allocation2 + $0x84] sm:$0xf] %v4136_v59  ;;  %v3945_v32 = vsel %vm14847_vm14, %v3937_v12, %v3944_v21  ;;  %v4147_v4 = vsel %vm14684_vm13, %v3946_v58, %v4146_v7  ;;  %v4349_v7 = vshll.u32 %v4187_v42, 16  ;;  %v19799_v30 = vsel %vm13401_vm5, %v15591_v24, %v15582_v6  ;;  %v15697_v6 = vld [vmem:[#allocation2 + $0x58] sm:$0xf] }
 0x266   : > { %4145 = vst.msk [vmem:[#allocation2 + $0x94] sm:$0xf] %vm3550_vm0, %v3945_v32  ;;  %4148 = vst [vmem:[#allocation2 + $0x98] sm:$0x1] %v4147_v4  ;;  %v3928_v49 = vsel %vm14847_vm14, %v3920_v15, %v3927_v48  ;;  %v4140_v0 = vsel %vm14684_vm13, %v3929_v61, %v4139_v38  ;;  %v15682_v45 = vcombine.low %v19799_v30, %v5561_v55  ;;  %v4975_v63 = vrot.slane %v4973_v39, 5  ;;  %v12943_v30 = vld [vmem:[%s19618_s4 + $0x18] sm:$0xff]  }
 0x267   : > { %4138 = vst.msk [vmem:[#allocation2 + $0x88] sm:$0xf] %vm3550_vm0, %v3928_v49  ;;  %4141 = vst [vmem:[#allocation2 + $0x8c] sm:$0x1] %v4140_v0  ;;  %v5527_v41 = vsel %vm13401_vm5, %v15621_v9, %v15618_v52  ;;  %v4949_v42 = vshll.u32 %v15510_v40, 16  ;;  %v5537_v14 = vsel %vm13401_vm5, %v5532_v27, %v15626_v26  ;;  %v4946_v24 = vor.u32 %v15648_v11, %v15651_v50 }
 0x268   : > { %19800 = vst [vmem:[#allocation72_spill] sm:$0xff] %v15682_v45  ;;  %v5563_v55 = vshrl.u32 %v15668_v23, 16  ;;  %v5566_v52 = vshll.u32 %v15668_v23, 16  ;;  %v4971_v9 = vrot.slane %v4970_v29, 4  ;;  %v15701_v40 = vrot.slane %v4936_v47, 4  ;;  %7092 = vmatpush1.bf16.msra.mxu1 %v12941_v33 }
 0x269   : > { %v4355_v39 = vshll.u32 %v15482_v18, 16  ;;  %v4359_v13 = vshrl.u32 %v15482_v18, 16  ;;  %v4348_v38 = vrot.slane %v4346_v36, 4  ;;  %v4351_v12 = vrot.slane %v4349_v7, 5  ;;  %7093 = vmatprep.subr.bf16.mxu1 %v19797_v53 }
 0x26a   : > { %v4365_v27 = vshll.u32 %v15522_v16, 16  ;;  %v4370_v26 = vshrl.u32 %v4189_v25, 16  ;;  %v15707_v11 = vcombine.low %v5527_v41, %v5537_v14  ;;  %v4966_v37 = vsel %vm13401_vm5, %v15628_v43, %v15639_v5  ;;  %v15718_v16 = vld [vmem:[#allocation2 + $0x60] sm:$0xe] }
 0x26b   : > { %v4373_v58 = vshll.u32 %v4189_v25, 16  ;;  %v4947_v18 = vrot.slane %v4946_v24, 4  ;;  %v4951_v15 = vrot.slane %v4949_v42, 5  ;;  %v15714_v59 = vrot.slane %v5563_v55, 4  ;;  %v15720_v61 = vld [vmem:[#allocation2 + $0x90] sm:$0xf] }
 0x26c   : > { %19801 = vst [vmem:[#allocation73_spill] sm:$0xff] %v15707_v11  ;;  %v5412_v51 = vld [vmem:[#allocation2 + $0x84] sm:$0xf]  ;;  %v15716_v48 = vrot.slane %v5566_v52, 5  ;;  %v4976_v4 = vsel %vm13401_vm5, %v4971_v9, %v4975_v63  ;;  %v4942_v43 = vsel %vm13401_vm5, %v15701_v40, %v15651_v50  ;;  %v15730_v5 = vrot.slane %v4355_v39, 5  ;;  %7094 = vmatpush1.bf16.msra.mxu1 %v12943_v30  ;;  %v19807_v11 = vld [vmem:[#allocation16_spill] sm:$0xff] }
 0x26d   : > { %19802 = vst [vmem:[#allocation74_spill] sm:$0xff] %v15714_v59  ;;  %v15722_v32 = vld [vmem:[#allocation2 + $0x94] sm:$0xf]  ;;  %v4361_v29 = vrot.slane %v4359_v13, 4  ;;  %v4352_v0 = vor.u32 %v4351_v12, %v4348_v38  ;;  %v15736_v36 = vrot.slane %v4365_v27, 5  ;;  %v15738_v7 = vrot.slane %v4370_v26, 4  ;;  %7095 = vmatprep.subr.bf16.mxu1 %v19797_v53 }
 0x26e   : > { %19803 = vst [vmem:[#allocation75_spill] sm:$0xff] %v15716_v48  ;;  %v12365_v47 = vcombine.low %v15720_v61, %v15722_v32  ;;  %v15734_v49 = vld [vmem:[#allocation2 + $0x88] sm:$0xf]  ;;  %v5659_v41 = vshrl.u32 %v5412_v51, 16  ;;  %v15744_v63 = vld [vmem:[#allocation2 + $0x94] sm:$0xf]  ;;  %v15752_v55 = vcombine.low %v4966_v37, %v4976_v4  ;;  %v4952_v52 = vsel %vm13401_vm5, %v4947_v18, %v4951_v15 }
 0x26f   : > { %v12364_v50 = vcombine.low %v5412_v51, %v15734_v49  ;;  %v15746_v42 = vrot.slane %v4373_v58, 5  ;;  %v4379_v25 = vshll.u32 %v15465_v56, 16  ;;  %v5662_v33 = vshll.u32 %v5412_v51, 16  ;;  %v4805_v14 = vld [vmem:[#allocation2 + $0x84] sm:$0xf] }
 0x270   : > { %6566 = vrot.lane.b32.xlu1 %v12365_v47, %s13219_s18  ;;  %v15750_v24 = vld [vmem:[#allocation2 + $0x88] sm:$0xf]  ;;  %19804 = vst [vmem:[#allocation76_spill] sm:$0xff] %v15752_v55  ;;  %v12944_v40 = vld [vmem:[%s19618_s4 + $0x20] sm:$0xff]   ;;  %v15762_v39 = vld [vmem:[#allocation2 + $0x90] sm:$0xf]  ;;  %v4362_v13 = vor.u32 %v4361_v29, %v15730_v5  ;;  %v15781_v9 = vcombine.low %v4942_v43, %v4952_v52  ;;  %v19814_v34 = vcombine.low %v19812_v2, %v19813_v54 }
 0x271   : > { %6564 = vrot.lane.b32.xlu0 %v12364_v50, %s13219_s18  ;;  %v4383_v38 = vshrl.u32 %v15465_v56, 16  ;;  %v5683_v26 = vshrl.u32 %v15720_v61, 16  ;;  %v12318_v37 = vcombine.low %v15762_v39, %v15744_v63  ;;  %v5360_v58 = vrot.slane %v15744_v63, 5  ;;  %v15779_v50 = vld [vmem:[#allocation2 + $0x88] sm:$0xf]  ;;  %7096 = vmatpush1.bf16.msra.mxu1 %v12944_v40 }
 0x272   : > { %v15773_v51 = vrot.slane %v4352_v0, 4  ;;  %v5074_v18 = vshrl.u32 %v4805_v14, 16  ;;  %v5077_v15 = vshll.u32 %v4805_v14, 16  ;;  %v12317_v4 = vcombine.low %v4805_v14, %v15750_v24  ;;  %19805 = vst [vmem:[#allocation77_spill] sm:$0xff] %v15781_v9  ;;  %v12946_v0 = vld [vmem:[%s19618_s4 + $0x28] sm:$0xff]   ;;  %7097 = vmatprep.subr.bf16.mxu1 %v19797_v53 }
 0x273   : > { %v5353_v56 = vrot.slane %v15750_v24, 5  ;;  %v5686_v29 = vshll.u32 %v15720_v61, 16  ;;  %v5661_v47 = vrot.slane %v5659_v41, 4  ;;  %v5664_v30 = vrot.slane %v5662_v33, 5  ;;  %v15788_v14 = vld [vmem:[#allocation2 + $0x98] sm:$0x1] }
 0x274   : > { %6312 = vrot.lane.b32.xlu1 %v12318_v37, %s13220_s21  ;;  %v5098_v21 = vshrl.u32 %v15762_v39, 16  ;;  %v15792_v41 = vrot.slane %v4379_v25, 5  ;;  %v5362_v43 = vrot.slane %v5360_v58, 4  ;;  %v15796_v52 = vld [vmem:[#allocation2 + $0x8c] sm:$0x1]  ;;  %v4752_v40 = vrot.slane %v15779_v50, 5 }
 0x275   : > { %6310 = vrot.lane.b32.xlu0 %v12317_v4, %s13220_s21  ;;  %v15799_v37 = vrot.slane %v4362_v13, 4  ;;  %v15801_v27 = vrot.slane %v4383_v38, 4  ;;  %v5076_v12 = vrot.slane %v5074_v18, 4  ;;  %v5079_v23 = vrot.slane %v5077_v15, 5  ;;  %v5228_v61 = vld [vmem:[#allocation2 + $0x90] sm:$0xe]  ;;  %7098 = vmatpush1.bf16.msra.mxu1 %v12946_v0 }
 0x276   : > { %v5355_v25 = vrot.slane %v5353_v56, 4  ;;  %v15804_v9 = vrot.slane %v5683_v26, 4  ;;  %v15806_v33 = vrot.slane %v5686_v29, 5  ;;  %v19806_v55 = vld [vmem:[#allocation18_spill] sm:$0xff]  ;;  %v5363_v13 = vrot.slane %v15788_v14, 5  ;;  %v19809_v4 = vld [vmem:[#allocation20_spill] sm:$0xff]  ;;  %7099 = vmatprep.subr.bf16.mxu1 %v19797_v53 }
 0x277   : > { %v19808_v45 = vcombine.low %v19806_v55, %v19807_v11  ;;  %v5227_v38 = vld [vmem:[#allocation2 + $0x84] sm:$0xe]  ;;  %v5665_v57 = vor.u32 %v5664_v30, %v5661_v47  ;;  %v12947_v18 = vld [vmem:[%s19618_s4 + $0x30] sm:$0xff]   ;;  %v5672_v15 = vshrl.u32 %v15734_v49, 16  ;;  %v15818_v29 = vrot.slane %v5098_v21, 4 }
 0x278   : > { %v19811_v11 = vcombine.low %v19809_v4, %v19810_v1  ;;  %v15825_v55 = vld [vmem:[#allocation2 + $0x8c] sm:$0x1]  ;;  %v12238_v30 = vrot.slane %v5228_v61, 9  ;;  %v5364_v0 = vsel %vm13357_vm2, %v5362_v43, %v5363_v13  ;;  %v4620_v26 = vld [vmem:[#allocation2 + $0x84] sm:$0xe]  ;;  %v4754_v21 = vrot.slane %v4752_v40, 4 }
 0x279   : > { %6452 = vrot.lane.b32.xlu1 %v19808_v45, %s13221_s27  ;;  %v5356_v45 = vrot.slane %v15796_v52, 5  ;;  %v5087_v60 = vshrl.u32 %v15750_v24, 16  ;;  %v12237_v31 = vrot.slane %v5227_v38, 9  ;;  %v5435_v4 = vld [vmem:[#allocation2 + $0x8c] sm:$0x1]  ;;  %v4755_v43 = vrot.slane %v15825_v55, 5  ;;  %7100 = vmatpush1.bf16.msra.mxu1 %v12947_v18 }
 0x27a   : > { %6450 = vrot.lane.b32.xlu0 %v19811_v11, %s13221_s27  ;;  %v5080_v11 = vor.u32 %v5079_v23, %v5076_v12  ;;  %v5361_v61 = vsel %vm13357_vm2, %v12238_v30, %v5360_v58  ;;  %v15841_v13 = vrot.slane %v5665_v57, 4  ;;  %v5668_v47 = vshll.u32 %v15734_v49, 16  ;;  %7101 = vmatprep.subr.bf16.mxu1 %v19797_v53  ;;  %v19911_v3 = vld [vmem:[#allocation77_spill] sm:$0xff] }
 0x27b   : > { %v5357_v1 = vsel %vm13357_vm2, %v5355_v25, %v5356_v45  ;;  %v19815_v25 = vld [vmem:[#allocation26_spill] sm:$0xff]  ;;  %v19816_v45 = vld [vmem:[#allocation23_spill] sm:$0xff]  ;;  %v12350_v12 = vcombine.low %v5361_v61, %v5364_v0  ;;  %v12222_v54 = vrot.slane %v4620_v26, 9  ;;  %v5083_v2 = vshll.u32 %v15750_v24, 16 }
 0x27c   : > { %v19817_v23 = vcombine.low %v19815_v25, %v19816_v45  ;;  %v4756_v18 = vsel %vm13357_vm2, %v4754_v21, %v4755_v43  ;;  %v5678_v30 = vshll.u32 %v5435_v4, 16  ;;  %v12949_v0 = vld [vmem:[%s19618_s4 + $0x38] sm:$0xff]   ;;  %v15861_v26 = vrot.slane %v5080_v11, 4 }
 0x27d   : > { %6198 = vrot.lane.b32.xlu1 %v19814_v34, %s13217_s28  ;;  %v12799_v38 = vpop.f32.mrb[4].mxu1  ;;  %v5354_v34 = vsel %vm13357_vm2, %v12237_v31, %v5353_v56  ;;  %v4753_v24 = vsel %vm13357_vm2, %v12222_v54, %v4752_v40  ;;  %v5674_v56 = vrot.slane %v5672_v15, 4  ;;  %v15868_v43 = vrot.slane %v5668_v47, 5  ;;  %7102 = vmatpush1.bf16.msra.mxu1 %v12949_v0 }
 0x27e   : > { %6196 = vrot.lane.b32.xlu0 %v19817_v23, %s13217_s28  ;;  %v3457_v57 = vmul.f32 %v15332_v35, %v12799_v38  ;;  %v3393_v58 = vpop.f32.mrb[5].mxu1  ;;  %v12349_v49 = vcombine.low %v5354_v34, %v5357_v1  ;;  %v15863_v38 = vld [vmem:[#allocation2 + $0x84] sm:$0xf]  ;;  %v15870_v25 = vrot.slane %v5087_v60, 4  ;;  %v12302_v15 = vcombine.low %v4753_v24, %v4756_v18  ;;  %7103 = vmatprep.subr.bf16.mxu1 %v19797_v53  ;;  %v4149_v53 = vld [vmem:[#allocation2 + $0x9c] sm:$0xf] }
 0x27f   : > { %v3455_v61 = vmul.f32 %v15332_v35, %v3393_v58  ;;  %v12800_v31 = vpop.f32.mrb[6].mxu1  ;;  %v15875_v11 = vrot.slane %v5083_v2, 5  ;;  %v15878_v54 = vrot.slane %v5678_v30, 5  ;;  %v12950_v60 = vld [vmem:[%s19618_s4 + $0x40] sm:$0xff]   ;;  %v4493_v2 = vshll.u32 %v15863_v38, 16 }
 0x280   : > { %v3496_v1 = vadd.f32 %v15348_v28, %v3457_v57  ;;  %v3458_v21 = vmul.f32 %v15332_v35, %v12800_v31  ;;  %v3396_v4 = vpop.f32.mrb[7].mxu1  ;;  %v19818_v18 = vld [vmem:[#allocation17_spill] sm:$0xff]  ;;  %v19819_v30 = vld [vmem:[#allocation24_spill] sm:$0xff]  ;;  %v5675_v0 = vor.u32 %v5674_v56, %v15868_v43  ;;  %v4499_v31 = vshll.u32 %v15779_v50, 16 }
 0x281   : > { %6472 = vrot.lane.b32.xlu1 %v12350_v12, %s13221_s27  ;;  %v3494_v45 = vadd.f32 %v15348_v28, %v3455_v61  ;;  %v3456_v40 = vmul.f32 %v15332_v35, %v3396_v4  ;;  %v4490_v12 = vshrl.u32 %v15863_v38, 16  ;;  %v19820_v61 = vcombine.low %v19818_v18, %v19819_v30  ;;  %7104 = vmatpush1.bf16.msra.mxu1 %v12950_v60  ;;  %v19824_v60 = vld [vmem:[#allocation12_spill] sm:$0xff] }
 0x282   : > { %6470 = vrot.lane.b32.xlu0 %v12349_v49, %s13221_s27  ;;  %v3528_v23 = vmax.f32 %v3496_v1, 0.0  ;;  %v3497_v34 = vadd.f32 %v15348_v28, %v3458_v21  ;;  %v4503_v38 = vshrl.u32 %v15779_v50, 16  ;;  %v5692_v18 = vshll.u32 %v15722_v32, 16 }
 0x283   : > { %v3526_v47 = vmax.f32 %v3494_v45, 0.0  ;;  %v3495_v35 = vadd.f32 %v15348_v28, %v3456_v40  ;;  %v5090_v28 = vor.u32 %v15870_v25, %v15875_v11  ;;  %v15898_v40 = vrot.slane %v4490_v12, 4  ;;  %v19822_v25 = vld [vmem:[#allocation27_spill] sm:$0xff] }
 0x284   : > { %v12710_v58 = vpack.c.bf16 %v3528_v23, %v3528_v23  ;;  %v3529_v49 = vmax.f32 %v3497_v34, 0.0  ;;  %v5676_v50 = vrot.slane %v5675_v0, 4 }
 0x285   : > { %6550 = vrot.lane.b32.xlu1 %v19820_v61, %s13219_s18  ;;  %v12708_v24 = vpack.c.bf16 %v3526_v47, %v3526_v47  ;;  %v3527_v1 = vmax.f32 %v3495_v35, 0.0  ;;  %v4156_v35 = vld [vmem:[#allocation2 + $0xa8] sm:$0xf]  ;;  %v19821_v61 = vld [vmem:[#allocation19_spill] sm:$0xff] }
 0x286   : > { %6216 = vrot.lane.b32.xlu0 %v12302_v15, %s13217_s28  ;;  %v3965_v21 = vshrl.u32 %v12710_v58, 16  ;;  %v3968_v4 = vshll.u32 %v12710_v58, 16  ;;  %v12711_v45 = vpack.c.bf16 %v3529_v49, %v3529_v49  ;;  %v19823_v57 = vcombine.low %v19821_v61, %v19822_v25  ;;  %v4153_v25 = vld [vmem:[#allocation2 + $0xa4] sm:$0x1] }
 0x287   : > { %v3948_v23 = vshrl.u32 %v12708_v24, 16  ;;  %v3951_v34 = vshll.u32 %v12708_v24, 16  ;;  %v12709_v56 = vpack.c.bf16 %v3527_v1, %v3527_v1  ;;  %v15907_v24 = vrot.slane %v4499_v31, 5  ;;  %v19825_v31 = vld [vmem:[#allocation14_spill] sm:$0xff] }
 0x288   : > { %v3967_v47 = vrot.slane %v3965_v21, 7  ;;  %v3973_v30 = vshrl.u32 %v12711_v45, 16  ;;  %v3976_v15 = vshll.u32 %v12711_v45, 16  ;;  %v4505_v45 = vrot.slane %v4503_v38, 4 }
 0x289   : > { %6296 = vrot.lane.b32.xlu1 %v19823_v57, %s13220_s21  ;;  %v3950_v58 = vrot.slane %v3948_v23, 7  ;;  %v3956_v49 = vshrl.u32 %v12709_v56, 16  ;;  %v3959_v12 = vshll.u32 %v12709_v56, 16  ;;  %v15909_v57 = vrot.slane %v5692_v18, 5 }
 0x28a   : > { %6626 = vrot.lane.b32.xlu0 %v19824_v60, %s13222_s29  ;;  %v3970_v1 = vor.u32 %v3968_v4, %v3967_v47  ;;  %v3971_v21 = vrot.slane %v3967_v47, 4  ;;  %v3975_v48 = vrot.slane %v3973_v30, 7  ;;  %v19826_v4 = vshrl.u32 %v15722_v32, 16  ;;  %v19827_v30 = vld [vmem:[#allocation15_spill] sm:$0xff] }
 0x28b   : > { %v3953_v59 = vor.u32 %v3951_v34, %v3950_v58  ;;  %v3954_v46 = vrot.slane %v3950_v58, 4  ;;  %v3958_v61 = vrot.slane %v3956_v49, 7  ;;  %v5091_v58 = vrot.slane %v5090_v28, 4 }
 0x28c   : > { %v4157_v0 = vsel %vm14842_vm12, %v3970_v1, %v4156_v35  ;;  %v3978_v23 = vor.u32 %v3976_v15, %v3975_v48  ;;  %v3980_v56 = vrot.slane %v3975_v48, 4  ;;  %v5698_v47 = vrot.slane %v19826_v4, 4 }
 0x28d   : > { %6370 = vrot.lane.b32.xlu1 %v19825_v31, %s13223_s30  ;;  %4158 = vst [vmem:[#allocation2 + $0xa8] sm:$0xf] %v4157_v0  ;;  %v4150_v38 = vsel %vm14842_vm12, %v3953_v59, %v4149_v53  ;;  %v3961_v34 = vor.u32 %v3959_v12, %v3958_v61  ;;  %v3963_v18 = vrot.slane %v3958_v61, 4  ;;  %v4495_v35 = vrot.slane %v4493_v2, 5  ;;  %v5436_v12 = vld [vmem:[#allocation2 + $0x98] sm:$0x1] }
 0x28e   : > { %6372 = vrot.lane.b32.xlu0 %v19827_v30, %s13223_s30  ;;  %4151 = vst [vmem:[#allocation2 + $0x9c] sm:$0xf] %v4150_v38  ;;  %v3979_v48 = vsel %vm14847_vm14, %v3971_v21, %v3978_v23  ;;  %v4161_v15 = vsel %vm14684_vm13, %v3980_v56, %v4160_v10  ;;  %v5107_v32 = vshll.u32 %v15744_v63, 16  ;;  %v5681_v2 = vsel %vm13401_vm5, %v5676_v50, %v15878_v54  ;;  %v19828_v10 = vld [vmem:[#allocation32_spill] sm:$0xff]  ;;  %v15945_v54 = vld [vmem:[#allocation2 + $0x68] sm:$0x1] }
 0x28f   : > { %4159 = vst.msk [vmem:[#allocation2 + $0xac] sm:$0xf] %vm3550_vm0, %v3979_v48  ;;  %4162 = vst [vmem:[#allocation2 + $0xb0] sm:$0x1] %v4161_v15  ;;  %v3962_v53 = vsel %vm14847_vm14, %v3954_v46, %v3961_v34  ;;  %v4154_v59 = vsel %vm14684_vm13, %v3963_v18, %v4153_v25  ;;  %v4506_v49 = vor.u32 %v4505_v45, %v15907_v24  ;;  %v19829_v28 = vshll.u32 %v15796_v52, 16  ;;  %v19832_v0 = vld [vmem:[#allocation28_spill] sm:$0xff] }
 0x290   : > { %4152 = vst.msk [vmem:[#allocation2 + $0xa0] sm:$0xf] %vm3550_vm0, %v3962_v53  ;;  %4155 = vst [vmem:[#allocation2 + $0xa4] sm:$0x1] %v4154_v59  ;;  %v5699_v46 = vor.u32 %v5698_v47, %v15909_v57  ;;  %v15941_v1 = vrot.slane %v5107_v32, 5  ;;  %v19830_v21 = vshrl.u32 %v15744_v63, 16  ;;  %v5671_v52 = vsel %vm13401_vm5, %v15841_v13, %v15868_v43 }
 0x291   : > { %6116 = vrot.lane.b32.xlu1 %v19828_v10, %s13214_s20  ;;  %v5095_v60 = vrot.slane %v19829_v28, 5  ;;  %v19831_v50 = vshll.u32 %v15762_v39, 16  ;;  %v19833_v23 = vld [vmem:[#allocation29_spill] sm:$0xff]  ;;  %v4496_v25 = vor.u32 %v4495_v35, %v15898_v40  ;;  %v4509_v63 = vshll.u32 %v15825_v55, 16  ;;  %v15989_v53 = vld [vmem:[#allocation2 + $0x54] sm:$0xf] }
 0x292   : > { %v5113_v61 = vrot.slane %v19830_v21, 4  ;;  %v19834_v56 = vcombine.low %v19832_v0, %v19833_v23  ;;  %v12380_v31 = vcombine.low %v5671_v52, %v5681_v2  ;;  %v5689_v39 = vor.u32 %v15806_v33, %v15804_v9  ;;  %v15963_v38 = vld [vmem:[#allocation2 + $0x64] sm:$0xf]  ;;  %v19842_v21 = vld [vmem:[#allocation31_spill] sm:$0xff]  ;;  %v4617_v23 = vld [vmem:[#allocation2 + $0x60] sm:$0xe] }
 0x293   : > { %v5103_v45 = vrot.slane %v19831_v50, 5  ;;  %v5096_v4 = vsel %vm13401_vm5, %v5091_v58, %v5095_v60  ;;  %v5702_v47 = vshll.u32 %v5436_v12, 16  ;;  %v4507_v34 = vrot.slane %v4506_v49, 4  ;;  %v16014_v60 = vld [vmem:[#allocation2 + $0x68] sm:$0x1] }
 0x294   : > { %6548 = vrot.lane.b32.xlu0 %v19834_v56, %s13219_s18  ;;  %v4358_v13 = vsel %vm13401_vm5, %v15773_v51, %v15730_v5  ;;  %v19835_v43 = vshll.u32 %v15508_v8, 16  ;;  %v5335_v55 = vrot.slane %v15945_v54, 5  ;;  %v5086_v9 = vsel %vm13401_vm5, %v15861_v26, %v15875_v11  ;;  %v15982_v5 = vld [vmem:[#allocation2 + $0x58] sm:$0xf] }
 0x295   : > { %6644 = vrot.lane.b32.xlu1 %v12380_v31, %s13222_s29  ;;  %v5700_v33 = vrot.slane %v5699_v46, 4  ;;  %v5114_v18 = vor.u32 %v5113_v61, %v15941_v1  ;;  %v4386_v30 = vor.u32 %v15801_v27, %v15792_v41  ;;  %v19836_v8 = vld [vmem:[#allocation36_spill] sm:$0xff]  ;;  %v12333_v51 = vcombine.low %v5086_v9, %v5096_v4  ;;  %v19841_v46 = vld [vmem:[#allocation30_spill] sm:$0xff] }
 0x296   : > { %v15971_v40 = vrot.slane %v19835_v43, 5  ;;  %v4497_v35 = vrot.slane %v4496_v25, 4  ;;  %v4511_v48 = vrot.slane %v4509_v63, 5  ;;  %v4731_v15 = vrot.slane %v15963_v38, 5  ;;  %v16027_v63 = vld [vmem:[#allocation2 + $0x5c] sm:$0x1] }
 0x297   : > { %v5690_v58 = vrot.slane %v5689_v39, 4  ;;  %v5704_v32 = vrot.slane %v5702_v47, 5  ;;  %v5104_v26 = vor.u32 %v5103_v45, %v15818_v29  ;;  %v5117_v11 = vshll.u32 %v15788_v14, 16  ;;  %v16029_v31 = vld [vmem:[#allocation2 + $0x58] sm:$0xf] }
 0x298   : > { %6118 = vrot.lane.b32.xlu0 %v19836_v8, %s13214_s20  ;;  %v4512_v27 = vsel %vm13401_vm5, %v4507_v34, %v4511_v48  ;;  %v19837_v59 = vor.u32 %v15746_v42, %v15738_v7  ;;  %v19838_v49 = vrot.slane %v15564_v20, 5  ;;  %v19839_v12 = vrot.slane %v15718_v16, 9  ;;  %v5223_v47 = vld [vmem:[#allocation2 + $0x54] sm:$0xe] }
 0x299   : > { %v5325_v29 = vrot.slane %v15982_v5, 5  ;;  %6390 = vrot.lane.b32.xlu1 %v12333_v51, %s13223_s30  ;;  %v5705_v14 = vsel %vm13401_vm5, %v5700_v33, %v5704_v32  ;;  %v5115_v28 = vrot.slane %v5114_v18, 4  ;;  %v4368_v7 = vsel %vm13401_vm5, %v15799_v37, %v15736_v36  ;;  %v16045_v33 = vld [vmem:[#allocation2 + $0x78] sm:$0xf] }
 0x29a   : > { %v4377_v2 = vrot.slane %v19837_v59, 4  ;;  %v16002_v10 = vsel %vm13357_vm2, %v19839_v12, %v19838_v49  ;;  %v19840_v42 = vmov %v19838_v49  ;;  %v19843_v61 = vcombine.low %v19841_v46, %v19842_v21  ;;  %19844 = vst [vmem:[#allocation18_spill] sm:$0xff] %v16045_v33  ;;  %v16077_v12 = vld [vmem:[#allocation2 + $0x5c] sm:$0x1] }
 0x29b   : > { %v5334_v16 = vrot.slane %v19840_v42, 4  ;;  %v4502_v50 = vsel %vm13401_vm5, %v4497_v35, %v15907_v24  ;;  %v4387_v45 = vrot.slane %v4386_v30, 4  ;;  %v4978_v0 = vshrl.u32 %v15989_v53, 16  ;;  %v4616_v42 = vld [vmem:[#allocation2 + $0x54] sm:$0xe] }
 0x29c   : > { %6294 = vrot.lane.b32.xlu0 %v19843_v61, %s13220_s21  ;;  %v4733_v56 = vrot.slane %v4731_v15, 4  ;;  %v12286_v36 = vcombine.low %v4502_v50, %v4512_v27  ;;  %v5695_v37 = vsel %vm13401_vm5, %v5690_v58, %v15909_v57  ;;  %v5105_v52 = vrot.slane %v5104_v26, 4  ;;  %v19847_v27 = vld [vmem:[#allocation33_spill] sm:$0xff]  ;;  %v5416_v21 = vld [vmem:[#allocation2 + $0x9c] sm:$0xf] }
 0x29d   : > { %v5119_v25 = vrot.slane %v5117_v11, 5  ;;  %v12381_v4 = vcombine.low %v5695_v37, %v5705_v14  ;;  %v16031_v39 = vcombine.low %v4358_v13, %v4368_v7  ;;  %v4981_v24 = vshll.u32 %v15989_v53, 16  ;;  %v5417_v61 = vld [vmem:[#allocation2 + $0xa0] sm:$0xf] }
 0x29e   : > { %v5327_v34 = vrot.slane %v5325_v29, 4  ;;  %6136 = vrot.lane.b32.xlu1 %v12286_v36, %s13214_s20  ;;  %v4382_v57 = vsel %vm13401_vm5, %v4377_v2, %v15792_v41  ;;  %v16042_v9 = vsel %vm13357_vm2, %v5334_v16, %v5335_v55  ;;  %v4734_v13 = vrot.slane %v16014_v60, 5 }
 0x29f   : > { %v5120_v43 = vsel %vm13401_vm5, %v5115_v28, %v5119_v25  ;;  %v12219_v30 = vrot.slane %v4617_v23, 9  ;;  %v5328_v8 = vrot.slane %v16027_v63, 5  ;;  %v4724_v51 = vrot.slane %v16029_v31, 5  ;;  %v16098_v23 = vld [vmem:[#allocation2 + $0x78] sm:$0xf]  ;;  %v19851_v25 = vld [vmem:[#allocation34_spill] sm:$0xff] }
 0x2a0   : > { %6646 = vrot.lane.b32.xlu0 %v12381_v4, %s13222_s29  ;;  %v5110_v41 = vsel %vm13401_vm5, %v5105_v52, %v15941_v1  ;;  %v4392_v55 = vsel %vm13401_vm5, %v4387_v45, %v15971_v40  ;;  %v16059_v35 = vsel %vm13357_vm2, %v4733_v56, %v4734_v13  ;;  %v12233_v48 = vrot.slane %v5223_v47, 9  ;;  %v19846_v1 = vld [vmem:[#allocation35_spill] sm:$0xff]  ;;  %19849 = vst [vmem:[#allocation20_spill] sm:$0xff] %v16098_v23  ;;  %v19850_v52 = vld [vmem:[#allocation37_spill] sm:$0xff]  ;;  %v19864_v45 = vld [vmem:[#allocation42_spill] sm:$0xff] }
 0x2a1   : > { %v12334_v58 = vcombine.low %v5110_v41, %v5120_v43  ;;  %v16063_v32 = vsel %vm13357_vm2, %v5327_v34, %v5328_v8  ;;  %v5635_v26 = vshrl.u32 %v16045_v33, 16  ;;  %v5638_v11 = vshll.u32 %v16045_v33, 16  ;;  %v19853_v34 = vld [vmem:[#allocation64_spill] sm:$0xff]  ;;  %v19854_v43 = vld [vmem:[#allocation65_spill] sm:$0xff] }
 0x2a2   : > { %19845 = vst [vmem:[#allocation16_spill] sm:$0xff] %v16063_v32  ;;  %v19848_v59 = vcombine.low %v19846_v1, %v19847_v27  ;;  %v16073_v2 = vrot.slane %v4978_v0, 4  ;;  %v16075_v49 = vrot.slane %v4981_v24, 5  ;;  %v5596_v14 = vshll.u32 %v15545_v22, 16  ;;  %v16109_v24 = vld [vmem:[#allocation2 + $0x7c] sm:$0xf] }
 0x2a3   : > { %v16083_v28 = vsel %vm13357_vm2, %v12219_v30, %v4731_v15  ;;  %v16087_v7 = vsel %vm13357_vm2, %v12233_v48, %v5325_v29  ;;  %v4726_v16 = vrot.slane %v4724_v51, 4  ;;  %v5572_v46 = vshll.u32 %v15697_v6, 16  ;;  %v5432_v48 = vld [vmem:[#allocation2 + $0x68] sm:$0x1]  ;;  %v16146_v15 = vld [vmem:[#allocation2 + $0x70] sm:$0xf] }
 0x2a4   : > { %6456 = vrot.lane.b32.xlu1 %v19848_v59, %s13221_s27  ;;  %6392 = vrot.lane.b32.xlu0 %v12334_v58, %s13223_s30  ;;  %v16090_v50 = vcombine.low %v4382_v57, %v4392_v55  ;;  %v12366_v29 = vcombine.low %v5416_v21, %v5417_v61  ;;  %v16100_v56 = vrot.slane %v5635_v26, 4  ;;  %v16102_v36 = vrot.slane %v5638_v11, 5  ;;  %v5437_v40 = vld [vmem:[#allocation2 + $0xa4] sm:$0x1] }
 0x2a5   : > { %v4727_v37 = vrot.slane %v16077_v12, 5  ;;  %v19852_v4 = vcombine.low %v19850_v52, %v19851_v25  ;;  %v12218_v47 = vrot.slane %v4616_v42, 9  ;;  %v5593_v57 = vor.u32 %v19854_v43, %v19853_v34  ;;  %v16127_v42 = vld [vmem:[#allocation2 + $0x7c] sm:$0xf]  ;;  %v19858_v25 = vld [vmem:[#allocation74_spill] sm:$0xff] }
 0x2a6   : > { %v16113_v13 = vrot.slane %v5596_v14, 5  ;;  %v19855_v30 = vshrl.u32 %v15545_v22, 16  ;;  %v5050_v55 = vshrl.u32 %v16098_v23, 16  ;;  %v16123_v58 = vrot.slane %v5572_v46, 5  ;;  %v5431_v52 = vld [vmem:[#allocation2 + $0x5c] sm:$0x1] }
 0x2a7   : > { %v16120_v41 = vsel %vm13357_vm2, %v4726_v16, %v4727_v37  ;;  %v19857_v26 = vshrl.u32 %v15697_v6, 16  ;;  %v5707_v1 = vshrl.u32 %v5416_v21, 16  ;;  %v5710_v27 = vshll.u32 %v5416_v21, 16  ;;  %v19859_v46 = vld [vmem:[#allocation75_spill] sm:$0xff]  ;;  %v19860_v34 = vld [vmem:[#allocation38_spill] sm:$0xff]  ;;  %v19861_v43 = vld [vmem:[#allocation44_spill] sm:$0xff] }
 0x2a8   : > { %6202 = vrot.lane.b32.xlu1 %v19852_v4, %s13217_s28  ;;  %v5602_v8 = vrot.slane %v19855_v30, 4  ;;  %6568 = vrot.lane.b32.xlu0 %v12366_v29, %s13219_s18  ;;  %19856 = vst [vmem:[#allocation21_spill] sm:$0xff] %v16120_v41  ;;  %v5720_v59 = vshrl.u32 %v5417_v61, 16  ;;  %v5716_v14 = vshll.u32 %v5417_v61, 16  ;;  %v5053_v37 = vshll.u32 %v16098_v23, 16  ;;  %v19872_v23 = vld [vmem:[#allocation43_spill] sm:$0xff] }
 0x2a9   : > { %v5578_v11 = vrot.slane %v19857_v26, 4  ;;  %v5569_v4 = vor.u32 %v19859_v46, %v19858_v25  ;;  %v19862_v30 = vcombine.low %v19860_v34, %v19861_v43  ;;  %v16141_v21 = vsel %vm13357_vm2, %v12218_v47, %v4724_v51  ;;  %v12803_v0 = vpop.f32.mrb[8].mxu1  ;;  %v19865_v25 = vld [vmem:[#allocation39_spill] sm:$0xff]  ;;  %v19867_v51 = vld [vmem:[#allocation40_spill] sm:$0xff] }
 0x2aa   : > { %19863 = vst [vmem:[#allocation25_spill] sm:$0xff] %v16141_v21  ;;  %v16143_v61 = vrot.slane %v5593_v57, 4  ;;  %v5603_v26 = vor.u32 %v5602_v8, %v16113_v13  ;;  %v5606_v16 = vshll.u32 %v5432_v48, 16  ;;  %v19866_v46 = vcombine.low %v19864_v45, %v19865_v25  ;;  %v3409_v57 = vpop.f32.mrb[9].mxu1  ;;  %v19873_v21 = vld [vmem:[#allocation41_spill] sm:$0xff] }
 0x2ab   : > { %v16154_v43 = vrot.slane %v5050_v55, 4  ;;  %v5579_v47 = vor.u32 %v5578_v11, %v16123_v58  ;;  %v5709_v8 = vrot.slane %v5707_v1, 4  ;;  %v5712_v48 = vrot.slane %v5710_v27, 5  ;;  %v12804_v18 = vpop.f32.mrb[10].mxu1  ;;  %v3608_v55 = vld [vmem:[#allocation2 + $0xc0] sm:$0x1] }
 0x2ac   : > { %6554 = vrot.lane.b32.xlu1 %v19862_v30, %s13219_s18  ;;  %6454 = vrot.lane.b32.xlu0 %v19866_v46, %s13221_s27  ;;  %v16158_v30 = vrot.slane %v5716_v14, 5  ;;  %v5722_v29 = vrot.slane %v5720_v59, 4  ;;  %v16160_v33 = vrot.slane %v5053_v37, 5  ;;  %v5570_v25 = vrot.slane %v5569_v4, 4  ;;  %v16164_v34 = vpop.f32.mrb[11].mxu1  ;;  %v19868_v11 = vld [vmem:[#allocation45_spill] sm:$0xff] }
 0x2ad   : > { %v5582_v46 = vshll.u32 %v5431_v52, 16  ;;  %v19869_v41 = vcombine.low %v19867_v51, %v19868_v11  ;;  %v5599_v1 = vsel %vm13401_vm5, %v16143_v61, %v16113_v13  ;;  %v5604_v27 = vrot.slane %v5603_v26, 4  ;;  %v19870_v14 = vld [vmem:[#allocation69_spill] sm:$0xff]  ;;  %v19871_v37 = vld [vmem:[#allocation70_spill] sm:$0xff]  ;;  %v3605_v52 = vld [vmem:[#allocation2 + $0xb4] sm:$0x1] }
 0x2ae   : > { %v5608_v59 = vrot.slane %v5606_v16, 5  ;;  %v5008_v45 = vor.u32 %v19871_v37, %v19870_v14  ;;  %v16176_v4 = vld [vmem:[#allocation2 + $0x6c] sm:$0xf]  ;;  %v19874_v32 = vcombine.low %v19872_v23, %v19873_v21  ;;  %v5726_v51 = vshll.u32 %v5437_v40, 16  ;;  %v13040_v26 = vld [vmem:[%s19616_s2] ss:$0 sm:$0xff] }
 0x2af   : > { %v4984_v11 = vor.u32 %v16075_v49, %v16073_v2  ;;  %v5713_v16 = vor.u32 %v5712_v48, %v5709_v8  ;;  %v5723_v61 = vor.u32 %v5722_v29, %v16158_v30  ;;  %v3461_v14 = vmul.f32 %v13040_v26, %v12803_v0  ;;  %v19875_v29 = vld [vmem:[#allocation48_spill] sm:$0xff]  ;;  %v13041_v0 = vld [vmem:[#allocation2 + $0x64] sm:$0xf] }
 0x2b0   : > { %6300 = vrot.lane.b32.xlu1 %v19869_v41, %s13220_s21  ;;  %6200 = vrot.lane.b32.xlu0 %v19874_v32, %s13217_s28  ;;  %v5580_v41 = vrot.slane %v5579_v47, 4  ;;  %v3609_v23 = vsel %vm14684_vm13, 0, %v3608_v55  ;;  %v5575_v32 = vsel %vm13401_vm5, %v5570_v25, %v16123_v58  ;;  %v5584_v40 = vrot.slane %v5582_v46, 5  ;;  %v13042_v58 = vld [vmem:[%s19617_s3] ss:$0 sm:$0xff]  ;;  %v19876_v25 = vld [vmem:[#allocation49_spill] sm:$0xff] }
 0x2b1   : > { %3610 = vst [vmem:[#allocation2 + $0xc0] sm:$0x1] %v3609_v23  ;;  %v3459_v2 = vmul.f32 %v13040_v26, %v3409_v57  ;;  %v3606_v49 = vsel %vm14684_vm13, 0, %v3605_v52  ;;  %v5609_v21 = vsel %vm13401_vm5, %v5604_v27, %v5608_v59  ;;  %v5011_v47 = vshll.u32 %v13041_v0, 16  ;;  %v3658_v57 = vld [vmem:[#allocation2 + $0xc8] sm:$0x1] }
 0x2b2   : > { %v5021_v8 = vshll.u32 %v15945_v54, 16  ;;  %v3500_v48 = vadd.f32 %v13042_v58, %v3461_v14  ;;  %3607 = vst [vmem:[#allocation2 + $0xb4] sm:$0x1] %v3606_v49  ;;  %v5728_v46 = vrot.slane %v5726_v51, 5  ;;  %v5585_v55 = vsel %vm13401_vm5, %v5580_v41, %v5584_v40  ;;  %v19879_v51 = vld [vmem:[#allocation50_spill] sm:$0xff] }
 0x2b3   : > { %v16209_v37 = vrot.slane %v5008_v45, 4  ;;  %v3498_v27 = vadd.f32 %v13042_v58, %v3459_v2  ;;  %v5714_v59 = vrot.slane %v5713_v16, 4  ;;  %v5724_v52 = vrot.slane %v5723_v61, 4 }
 0x2b4   : > { %6628 = vrot.lane.b32.xlu1 %v19875_v29, %s13222_s29  ;;  %6630 = vrot.lane.b32.xlu0 %v19876_v25, %s13222_s29  ;;  %v3532_v54 = vmax.f32 %v3500_v48, 0.0  ;;  %v3462_v23 = vmul.f32 %v13040_v26, %v12804_v18  ;;  %v16211_v29 = vcombine.low %v5599_v1, %v5609_v21  ;;  %v19877_v14 = vshrl.u32 %v15564_v20, 16  ;;  %v19881_v18 = vld [vmem:[#allocation53_spill] sm:$0xff]  ;;  %v3655_v48 = vld [vmem:[#allocation2 + $0xbc] sm:$0x1] }
 0x2b5   : > { %v3530_v0 = vmax.f32 %v3498_v27, 0.0  ;;  %v3659_v25 = vsel %vm14724_vm3, 0, %v3658_v57  ;;  %v16219_v41 = vcombine.low %v5575_v32, %v5585_v55  ;;  %v16221_v45 = vrot.slane %v5011_v47, 5 }
 0x2b6   : > { %v5017_v49 = vrot.slane %v19877_v14, 4  ;;  %v16223_v16 = vrot.slane %v5021_v8, 5  ;;  %v12714_v61 = vpack.c.bf16 %v3532_v54, %v3532_v54  ;;  %3660 = vst [vmem:[#allocation2 + $0xc8] sm:$0x1] %v3659_v25  ;;  %v16227_v1 = vrot.slane %v4984_v11, 4  ;;  %v19882_v14 = vld [vmem:[#allocation54_spill] sm:$0xff] }
 0x2b7   : > { %19880 = vst [vmem:[#allocation22_spill] sm:$0xff] %v16219_v41  ;;  %v4987_v40 = vshll.u32 %v15982_v5, 16  ;;  %v12712_v2 = vpack.c.bf16 %v3530_v0, %v3530_v0  ;;  %v3501_v21 = vadd.f32 %v13042_v58, %v3462_v23  ;;  %v5719_v32 = vsel %vm13401_vm5, %v5714_v59, %v16158_v30  ;;  %v4191_v0 = vld [vmem:[#allocation2 + $0x54] sm:$0xf] }
 0x2b8   : > { %6374 = vrot.lane.b32.xlu1 %v19879_v51, %s13223_s30  ;;  %6376 = vrot.lane.b32.xlu0 %v19881_v18, %s13223_s30  ;;  %v5729_v47 = vsel %vm13401_vm5, %v5724_v52, %v5728_v46  ;;  %v3999_v8 = vshrl.u32 %v12714_v61, 16  ;;  %v4002_v57 = vshll.u32 %v12714_v61, 16  ;;  %v3460_v11 = vmul.f32 %v13040_v26, %v16164_v34  ;;  %v19884_v25 = vld [vmem:[#allocation47_spill] sm:$0xff]  ;;  %v19885_v51 = vld [vmem:[#allocation46_spill] sm:$0xff]  ;;  %v4170_v18 = vld [vmem:[#allocation2 + $0xc0] sm:$0xf] }
 0x2b9   : > { %v3982_v55 = vshrl.u32 %v12712_v2, 16  ;;  %v3985_v27 = vshll.u32 %v12712_v2, 16  ;;  %v3533_v54 = vmax.f32 %v3501_v21, 0.0  ;;  %v19883_v30 = vshrl.u32 %v15982_v5, 16  ;;  %v4163_v23 = vld [vmem:[#allocation2 + $0xb4] sm:$0xf] }
 0x2ba   : > { %v4001_v46 = vrot.slane %v3999_v8, 7  ;;  %v3656_v52 = vsel %vm14724_vm3, 0, %v3655_v48  ;;  %v19886_v34 = vcombine.low %v19884_v25, %v19885_v51  ;;  %v5018_v26 = vor.u32 %v5017_v49, %v16221_v45 }
 0x2bb   : > { %v4993_v59 = vrot.slane %v19883_v30, 4  ;;  %v16251_v61 = vrot.slane %v4987_v40, 5  ;;  %v16253_v2 = vrot.slane %v3982_v55, 7  ;;  %v12715_v21 = vpack.c.bf16 %v3533_v54, %v3533_v54  ;;  %3657 = vst [vmem:[#allocation2 + $0xbc] sm:$0x1] %v3656_v52 }
 0x2bc   : > { %6120 = vrot.lane.b32.xlu1 %v19882_v14, %s13214_s20  ;;  %6552 = vrot.lane.b32.xlu0 %v19886_v34, %s13219_s18  ;;  %v12382_v14 = vcombine.low %v5719_v32, %v5729_v47  ;;  %v4997_v8 = vshll.u32 %v16027_v63, 16  ;;  %v4004_v30 = vor.u32 %v4002_v57, %v4001_v46  ;;  %v3499_v48 = vadd.f32 %v13042_v58, %v3460_v11  ;;  %v4193_v55 = vld [vmem:[#allocation2 + $0x60] sm:$0xf]  ;;  %v19887_v63 = vld [vmem:[#allocation59_spill] sm:$0xff] }
 0x2bd   : > { %v4394_v13 = vshrl.u32 %v4191_v0, 16  ;;  %v3987_v41 = vor.u32 %v3985_v27, %v16253_v2  ;;  %v4007_v25 = vshrl.u32 %v12715_v21, 16  ;;  %v4010_v51 = vshll.u32 %v12715_v21, 16 }
 0x2be   : > { %v4403_v49 = vshll.u32 %v16029_v31, 16  ;;  %v4407_v40 = vshrl.u32 %v16029_v31, 16  ;;  %v4171_v32 = vsel %vm14842_vm12, %v4004_v30, %v4170_v18  ;;  %v3531_v47 = vmax.f32 %v3499_v48, 0.0  ;;  %v4174_v31 = vld [vmem:[#allocation2 + $0xc8] sm:$0x1] }
 0x2bf   : > { %v4397_v58 = vshll.u32 %v4191_v0, 16  ;;  %v4005_v57 = vrot.slane %v4001_v46, 4  ;;  %4172 = vst [vmem:[#allocation2 + $0xc0] sm:$0xf] %v4171_v32  ;;  %v4164_v27 = vsel %vm14842_vm12, %v3987_v41, %v4163_v23  ;;  %v4009_v54 = vrot.slane %v4007_v25, 7  ;;  %v19888_v0 = vld [vmem:[#allocation57_spill] sm:$0xff] }
 0x2c0   : > { %6648 = vrot.lane.b32.xlu1 %v12382_v14, %s13222_s29  ;;  %6122 = vrot.lane.b32.xlu0 %v19887_v63, %s13214_s20  ;;  %v5019_v11 = vrot.slane %v5018_v26, 4  ;;  %v4994_v52 = vor.u32 %v4993_v59, %v16251_v61  ;;  %v16267_v34 = vrot.slane %v4997_v8, 5  ;;  %4165 = vst [vmem:[#allocation2 + $0xb4] sm:$0xf] %v4164_v27  ;;  %v12713_v21 = vpack.c.bf16 %v3531_v47, %v3531_v47  ;;  %v19889_v46 = vld [vmem:[#allocation55_spill] sm:$0xff]  ;;  %v19891_v59 = vld [vmem:[#allocation52_spill] sm:$0xff] }
 0x2c1   : > { %v4418_v18 = vshrl.u32 %v4193_v55, 16  ;;  %v4421_v14 = vshll.u32 %v4193_v55, 16  ;;  %v4012_v30 = vor.u32 %v4010_v51, %v4009_v54  ;;  %v4014_v48 = vrot.slane %v4009_v54, 4  ;;  %v19892_v8 = vld [vmem:[#allocation51_spill] sm:$0xff] }
 0x2c2   : > { %v19890_v32 = vcombine.low %v19888_v0, %v19889_v46  ;;  %v16273_v63 = vrot.slane %v4403_v49, 5  ;;  %v4409_v41 = vrot.slane %v4407_v40, 4  ;;  %v3990_v23 = vshrl.u32 %v12713_v21, 16 }
 0x2c3   : > { %v3993_v26 = vshll.u32 %v12713_v21, 16  ;;  %v19893_v25 = vcombine.low %v19891_v59, %v19892_v8  ;;  %v4396_v47 = vrot.slane %v4394_v13, 4  ;;  %v4399_v27 = vrot.slane %v4397_v58, 5  ;;  %v19898_v8 = vld [vmem:[#allocation62_spill] sm:$0xff] }
 0x2c4   : > { %6460 = vrot.lane.b32.xlu1 %v19890_v32, %s13221_s27  ;;  %v4013_v51 = vsel %vm14847_vm14, %v4005_v57, %v4012_v30  ;;  %v4175_v55 = vsel %vm14684_vm13, %v4014_v48, %v4174_v31  ;;  %v4427_v54 = vshll.u32 %v15963_v38, 16  ;;  %v4431_v49 = vshrl.u32 %v15963_v38, 16  ;;  %v4167_v30 = vld [vmem:[#allocation2 + $0xbc] sm:$0x1]  ;;  %v19895_v48 = vld [vmem:[#allocation61_spill] sm:$0xff] }
 0x2c5   : > { %6298 = vrot.lane.b32.xlu0 %v19893_v25, %s13220_s21  ;;  %v3988_v40 = vrot.slane %v16253_v2, 4  ;;  %4173 = vst.msk [vmem:[#allocation2 + $0xc4] sm:$0xf] %vm3550_vm0, %v4013_v51  ;;  %4176 = vst [vmem:[#allocation2 + $0xc8] sm:$0x1] %v4175_v55  ;;  %v3992_v21 = vrot.slane %v3990_v23, 7  ;;  %v5024_v13 = vsel %vm13401_vm5, %v5019_v11, %v16223_v16  ;;  %v4410_v2 = vor.u32 %v4409_v41, %v16273_v63 }
 0x2c6   : > { %v4995_v58 = vrot.slane %v4994_v52, 4  ;;  %v4420_v0 = vrot.slane %v4418_v18, 4  ;;  %v4423_v57 = vrot.slane %v4421_v14, 5  ;;  %v19894_v31 = vld [vmem:[#allocation60_spill] sm:$0xff]  ;;  %v5611_v38 = vshrl.u32 %v16176_v4, 16  ;;  %v19897_v23 = vld [vmem:[#allocation63_spill] sm:$0xff] }
 0x2c7   : > { %v19896_v46 = vcombine.low %v19894_v31, %v19895_v48  ;;  %v3995_v32 = vor.u32 %v3993_v26, %v3992_v21  ;;  %v3997_v59 = vrot.slane %v3992_v21, 4  ;;  %v19899_v25 = vcombine.low %v19897_v23, %v19898_v8 }
 0x2c8   : > { %v5614_v16 = vshll.u32 %v16176_v4, 16  ;;  %v4400_v11 = vor.u32 %v4399_v27, %v4396_v47  ;;  %v4413_v52 = vshll.u32 %v16077_v12, 16  ;;  %v5346_v18 = vrot.slane %v16127_v42, 5 }
 0x2c9   : > { %6206 = vrot.lane.b32.xlu1 %v19896_v46, %s13217_s28  ;;  %6458 = vrot.lane.b32.xlu0 %v19899_v25, %s13221_s27  ;;  %v16303_v14 = vrot.slane %v4427_v54, 5  ;;  %v4433_v51 = vrot.slane %v4431_v49, 4  ;;  %v3996_v41 = vsel %vm14847_vm14, %v3988_v40, %v3995_v32  ;;  %v4168_v26 = vsel %vm14684_vm13, %v3997_v59, %v4167_v30  ;;  %v16323_v54 = vld [vmem:[#allocation2 + $0x80] sm:$0x1]  ;;  %v5226_v49 = vld [vmem:[#allocation2 + $0x78] sm:$0xe] }
 0x2ca   : > { %v19900_v55 = vsel %vm13401_vm5, %v16209_v37, %v16221_v45  ;;  %v4990_v12 = vsel %vm13401_vm5, %v16227_v1, %v16251_v61  ;;  %v5000_v47 = vsel %vm13401_vm5, %v4995_v58, %v16267_v34  ;;  %v4424_v27 = vor.u32 %v4423_v57, %v4420_v0  ;;  %v16325_v40 = vld [vmem:[#allocation2 + $0x6c] sm:$0xf]  ;;  %4166 = vst.msk [vmem:[#allocation2 + $0xb8] sm:$0xf] %vm3550_vm0, %v3996_v41  ;;  %v19901_v37 = vld [vmem:[#allocation56_spill] sm:$0xff] }
 0x2cb   : > { %v16314_v21 = vcombine.low %v19900_v55, %v5024_v13  ;;  %4169 = vst [vmem:[#allocation2 + $0xbc] sm:$0x1] %v4168_v26  ;;  %v19902_v45 = vcombine.low %v19901_v37, %v15545_v22  ;;  %v16332_v13 = vrot.slane %v5611_v38, 4  ;;  %v5624_v1 = vshrl.u32 %v16146_v15, 16  ;;  %v16335_v34 = vld [vmem:[#allocation2 + $0x7c] sm:$0xf] }
 0x2cc   : > { %v4411_v61 = vrot.slane %v4410_v2, 4  ;;  %v5620_v58 = vshll.u32 %v16146_v15, 16  ;;  %v19903_v0 = vld [vmem:[#allocation68_spill] sm:$0xff]  ;;  %v19904_v57 = vld [vmem:[#allocation66_spill] sm:$0xff]  ;;  %v5616_v31 = vrot.slane %v5614_v16, 5  ;;  %v4401_v48 = vrot.slane %v4400_v11, 4 }
 0x2cd   : > { %6558 = vrot.lane.b32.xlu1 %v19902_v45, %s13219_s18  ;;  %v19905_v30 = vcombine.low %v19903_v0, %v19904_v57  ;;  %v4437_v46 = vshll.u32 %v16014_v60, 16  ;;  %v5348_v22 = vrot.slane %v5346_v18, 4  ;;  %v16343_v32 = vcombine.low %v4990_v12, %v5000_v47  ;;  %v16346_v2 = vld [vmem:[#allocation2 + $0x70] sm:$0xf]  ;;  %v19908_v12 = vld [vmem:[#allocation72_spill] sm:$0xff] }
 0x2ce   : > { %v4415_v38 = vrot.slane %v4413_v52, 5  ;;  %v4434_v59 = vor.u32 %v4433_v51, %v16303_v14  ;;  %v5026_v23 = vshrl.u32 %v16325_v40, 16  ;;  %v4425_v8 = vrot.slane %v4424_v27, 4  ;;  %v19906_v16 = vld [vmem:[#allocation58_spill] sm:$0xff] }
 0x2cf   : > { %6204 = vrot.lane.b32.xlu0 %v19905_v30, %s13217_s28  ;;  %v12236_v25 = vrot.slane %v5226_v49, 9  ;;  %v5349_v41 = vrot.slane %v16323_v54, 5  ;;  %v4745_v26 = vrot.slane %v16335_v34, 5  ;;  %v19907_v60 = vcombine.low %v19906_v16, %v15564_v20  ;;  %v16369_v49 = vld [vmem:[#allocation2 + $0x80] sm:$0x1] }
 0x2d0   : > { %v4416_v11 = vsel %vm13401_vm5, %v4411_v61, %v4415_v38  ;;  %v5029_v52 = vshll.u32 %v16325_v40, 16  ;;  %v16358_v51 = vrot.slane %v5620_v58, 5  ;;  %v5626_v55 = vrot.slane %v5624_v1, 4  ;;  %v16379_v0 = vld [vmem:[#allocation2 + $0x70] sm:$0xf] }
 0x2d1   : > { %6304 = vrot.lane.b32.xlu1 %v19907_v60, %s13220_s21  ;;  %v4406_v47 = vsel %vm13401_vm5, %v4401_v48, %v16273_v63  ;;  %v4439_v27 = vrot.slane %v4437_v46, 5  ;;  %v16367_v20 = vsel %vm13357_vm2, %v5348_v22, %v5349_v41  ;;  %v5339_v37 = vrot.slane %v16346_v2, 5  ;;  %v4619_v30 = vld [vmem:[#allocation2 + $0x78] sm:$0xe]  ;;  %v5433_v46 = vld [vmem:[#allocation2 + $0x74] sm:$0x1] }
 0x2d2   : > { %v4435_v45 = vrot.slane %v4434_v59, 4  ;;  %v16374_v1 = vsel %vm13357_vm2, %v12236_v25, %v5346_v18  ;;  %v16376_v61 = vrot.slane %v5026_v23, 4  ;;  %v5039_v58 = vshrl.u32 %v16346_v2, 16  ;;  %v19909_v18 = vld [vmem:[#allocation73_spill] sm:$0xff]  ;;  %v16391_v23 = vld [vmem:[#allocation2 + $0x74] sm:$0x1] }
 0x2d3   : > { %6634 = vrot.lane.b32.xlu0 %v19908_v12, %s13222_s29  ;;  %v16381_v63 = vcombine.low %v4406_v47, %v4416_v11  ;;  %v4430_v57 = vsel %vm13401_vm5, %v4425_v8, %v16303_v14  ;;  %v4747_v48 = vrot.slane %v4745_v26, 4  ;;  %v5035_v22 = vshll.u32 %v16346_v2, 16  ;;  %v19910_v14 = vld [vmem:[#allocation76_spill] sm:$0xff]  ;;  %v5225_v16 = vld [vmem:[#allocation2 + $0x6c] sm:$0xe] }
 0x2d4   : > { %v5031_v59 = vrot.slane %v5029_v52, 5  ;;  %v5617_v25 = vor.u32 %v5616_v31, %v16332_v13  ;;  %v5627_v41 = vor.u32 %v5626_v55, %v16358_v51  ;;  %v4748_v8 = vrot.slane %v16369_v49, 5  ;;  %v4618_v47 = vld [vmem:[#allocation2 + $0x6c] sm:$0xe] }
 0x2d5   : > { %6632 = vrot.lane.b32.xlu1 %v19909_v18, %s13222_s29  ;;  %v5341_v60 = vrot.slane %v5339_v37, 4  ;;  %v4738_v11 = vrot.slane %v16379_v0, 5  ;;  %v5644_v12 = vshll.u32 %v16109_v24, 16  ;;  %v4440_v52 = vsel %vm13401_vm5, %v4435_v45, %v4439_v27 }
 0x2d6   : > { %v12221_v13 = vrot.slane %v4619_v30, 9  ;;  %v5630_v31 = vshll.u32 %v5433_v46, 16  ;;  %v16406_v55 = vsel %vm13357_vm2, %v4747_v48, %v4748_v8  ;;  %v5342_v18 = vrot.slane %v16391_v23, 5  ;;  %v19912_v48 = vld [vmem:[#allocation71_spill] sm:$0xff] }
 0x2d7   : > { %6380 = vrot.lane.b32.xlu0 %v19910_v14, %s13223_s30  ;;  %v16409_v14 = vld [vmem:[#allocation2 + $0x74] sm:$0x1]  ;;  %v16411_v38 = vrot.slane %v5035_v22, 5  ;;  %v5041_v62 = vrot.slane %v5039_v58, 4  ;;  %v12235_v45 = vrot.slane %v5225_v16, 9  ;;  %v5618_v30 = vrot.slane %v5617_v25, 4 }
 0x2d8   : > { %v16417_v27 = vsel %vm13357_vm2, %v12221_v13, %v4745_v26  ;;  %v5628_v46 = vrot.slane %v5627_v41, 4  ;;  %v19913_v8 = vcombine.low %v19912_v48, %v15697_v6  ;;  %v16425_v22 = vsel %vm13357_vm2, %v5341_v60, %v5342_v18  ;;  %v4195_v48 = vld [vmem:[#allocation2 + $0x6c] sm:$0xf] }
 0x2d9   : > { %6378 = vrot.lane.b32.xlu1 %v19911_v3, %s13223_s30  ;;  %v4740_v58 = vrot.slane %v4738_v11, 4  ;;  %v16427_v44 = vrot.slane %v5644_v12, 5  ;;  %v19914_v3 = vshrl.u32 %v16109_v24, 16  ;;  %v16431_v13 = vcombine.low %v4430_v57, %v4440_v52 }
 0x2da   : > { %v16437_v41 = vsel %vm13357_vm2, %v12235_v45, %v5339_v37  ;;  %v5632_v6 = vrot.slane %v5630_v31, 5  ;;  %v12220_v16 = vrot.slane %v4618_v47, 9  ;;  %v4741_v60 = vrot.slane %v16409_v14, 5  ;;  %v13043_v47 = vld [vmem:[#allocation2 + $0x28] sm:$0xf] }
 0x2db   : > { %6556 = vrot.lane.b32.xlu0 %v19913_v8, %s13219_s18  ;;  %v5650_v26 = vrot.slane %v19914_v3, 4  ;;  %v5032_v18 = vor.u32 %v5031_v59, %v16376_v61  ;;  %v5042_v12 = vor.u32 %v5041_v62, %v16411_v38  ;;  %v16442_v8 = vpop.permute.xlu1 %6546  ;;  %v5623_v37 = vsel %vm13401_vm5, %v5618_v30, %v16358_v51  ;;  %v5434_v59 = vld [vmem:[#allocation2 + $0x80] sm:$0x1]  ;;  %v5827_v51 = vld [vmem:[#allocation2 + $0x24] sm:$0xe] }
 0x2dc   : > { %v5633_v52 = vsel %vm13401_vm5, %v5628_v46, %v5632_v6  ;;  %v5899_v61 = vrot.slane %v13043_v47, 5  ;;  %v16457_v62 = vsel %vm13357_vm2, %v12220_v16, %v4738_v11  ;;  %v5045_v31 = vshll.u32 %v16391_v23, 16 }
 0x2dd   : > { %6124 = vrot.lane.b32.xlu1 %v16031_v39, %s13214_s20  ;;  %v16461_v39 = vsel %vm13357_vm2, %v4740_v58, %v4741_v60  ;;  %v5651_v45 = vor.u32 %v5650_v26, %v16427_v44  ;;  %v4442_v30 = vshrl.u32 %v4195_v48, 16  ;;  %v4445_v46 = vshll.u32 %v4195_v48, 16 }
 0x2de   : > { %v4451_v3 = vshll.u32 %v16379_v0, 16  ;;  %v4455_v6 = vshrl.u32 %v16379_v0, 16  ;;  %v5033_v47 = vrot.slane %v5032_v18, 4  ;;  %v5043_v11 = vrot.slane %v5042_v12, 4  ;;  %v13044_v12 = vld [vmem:[#allocation2 + $0x2c] sm:$0x1] }
 0x2df   : > { %6126 = vrot.lane.b32.xlu0 %v16090_v50, %s13214_s20  ;;  %v16467_v50 = vcombine.low %v5623_v37, %v5633_v52  ;;  %v5654_v16 = vshll.u32 %v5434_v59, 16  ;;  %v19915_v58 = vcombine.low %v16002_v10, %v16042_v9  ;;  %v12244_v26 = vrot.slane %v5827_v51, 9  ;;  %v16482_v9 = vpop.permute.xlu1 %6292 }
 0x2e0   : > { %v5901_v60 = vrot.slane %v5899_v61, 4  ;;  %v5641_v48 = vor.u32 %v16102_v36, %v16100_v56  ;;  %v19916_v0 = vcombine.low %v15989_v53, %v15982_v5  ;;  %v5047_v18 = vrot.slane %v5045_v31, 5  ;;  %19917 = vst [vmem:[#allocation26_spill] sm:$0xff] %v16482_v9  ;;  %v4197_v31 = vld [vmem:[#allocation2 + $0x78] sm:$0xf] }
 0x2e1   : > { %6464 = vrot.lane.b32.xlu1 %v19915_v58, %s13221_s27  ;;  %v5902_v37 = vrot.slane %v13044_v12, 5  ;;  %v5652_v52 = vrot.slane %v5651_v45, 4  ;;  %v5059_v10 = vshll.u32 %v16127_v42, 16  ;;  %v4444_v59 = vrot.slane %v4442_v30, 4 }
 0x2e2   : > { %v4447_v58 = vrot.slane %v4445_v46, 5  ;;  %v16484_v51 = vrot.slane %v4451_v3, 5  ;;  %v4457_v23 = vrot.slane %v4455_v6, 4  ;;  %v5038_v56 = vsel %vm13401_vm5, %v5033_v47, %v16411_v38 }
 0x2e3   : > { %6302 = vrot.lane.b32.xlu0 %v19916_v0, %s13220_s21  ;;  %v5048_v5 = vsel %vm13401_vm5, %v5043_v11, %v5047_v18  ;;  %v16493_v53 = vsel %vm13357_vm2, %v12244_v26, %v5899_v61  ;;  %v5656_v36 = vrot.slane %v5654_v16, 5  ;;  %v19918_v45 = vcombine.low %v16083_v28, %v16059_v35  ;;  %v19919_v61 = vld [vmem:[#allocation16_spill] sm:$0xff]  ;;  %v16529_v12 = vpop.permute.xlu0 %6564  ;;  %v16562_v11 = vld [vmem:[#allocation2 + $0x98] sm:$0x1] }
 0x2e4   : > { %v16501_v30 = vsel %vm13357_vm2, %v5901_v60, %v5902_v37  ;;  %v5642_v46 = vrot.slane %v5641_v48, 4  ;;  %v4461_v38 = vshll.u32 %v16409_v14, 16  ;;  %v5056_v3 = vor.u32 %v16160_v33, %v16154_v43  ;;  %v16512_v35 = vld [vmem:[#allocation2 + $0x1c] sm:$0xf]  ;;  %v16514_v28 = vld [vmem:[#allocation2 + $0x18] sm:$0xf]  ;;  %v16522_v43 = vpop.permute.xlu1 %6566 }
 0x2e5   : > { %6210 = vrot.lane.b32.xlu1 %v19918_v45, %s13217_s28  ;;  %v19920_v6 = vcombine.low %v16087_v7, %v19919_v61  ;;  %v5657_v47 = vsel %vm13401_vm5, %v5652_v52, %v5656_v36  ;;  %19921 = vst [vmem:[#allocation23_spill] sm:$0xff] %v16512_v35  ;;  %19922 = vst [vmem:[#allocation17_spill] sm:$0xff] %v16514_v28  ;;  %v16518_v16 = vrot.slane %v5059_v10, 5  ;;  %v19923_v14 = vshrl.u32 %v16127_v42, 16  ;;  %v16525_v60 = vld [vmem:[#allocation2 + $0x94] sm:$0xf] }
 0x2e6   : > { %19924 = vst [vmem:[#allocation24_spill] sm:$0xff] %v16522_v43  ;;  %v4448_v26 = vor.u32 %v4447_v58, %v4444_v59  ;;  %v4458_v7 = vor.u32 %v4457_v23, %v16484_v51  ;;  %v16527_v48 = vld [vmem:[#allocation2 + $0x90] sm:$0xe]  ;;  %v4466_v0 = vshrl.u32 %v4197_v31, 16  ;;  %v4469_v18 = vshll.u32 %v4197_v31, 16  ;;  %19925 = vst [vmem:[#allocation19_spill] sm:$0xff] %v16529_v12 }
 0x2e7   : > { %6462 = vrot.lane.b32.xlu0 %v19920_v6, %s13221_s27  ;;  %v5065_v33 = vrot.slane %v19923_v14, 4  ;;  %v16531_v37 = vcombine.low %v5038_v56, %v5048_v5  ;;  %v4475_v10 = vshll.u32 %v16335_v34, 16  ;;  %v4479_v36 = vshrl.u32 %v16335_v34, 16  ;;  %v19926_v59 = vld [vmem:[#allocation18_spill] sm:$0xff]  ;;  %v16547_v5 = vld [vmem:[#allocation2 + $0x9c] sm:$0xf] }
 0x2e8   : > { %v19927_v23 = vcombine.low %v19926_v59, %v16109_v24  ;;  %v5647_v58 = vsel %vm13401_vm5, %v5642_v46, %v16427_v44  ;;  %v4463_v31 = vrot.slane %v4461_v38, 5  ;;  %v16544_v45 = vrot.slane %v5056_v3, 4  ;;  %v19928_v61 = vld [vmem:[#allocation25_spill] sm:$0xff]  ;;  %v4201_v38 = vld [vmem:[#allocation2 + $0x90] sm:$0xf]  ;;  %v16560_v3 = vpop.permute.xlu1 %6312 }
 0x2e9   : > { %v5069_v56 = vshll.u32 %v16323_v54, 16  ;;  %v19929_v6 = vld [vmem:[#allocation21_spill] sm:$0xff]  ;;  %v16553_v14 = vcombine.low %v5647_v58, %v5657_v47  ;;  %v5066_v24 = vor.u32 %v5065_v33, %v16518_v16  ;;  %v12223_v59 = vrot.slane %v16527_v48, 9  ;;  %19931 = vst [vmem:[#allocation27_spill] sm:$0xff] %v16560_v3  ;;  %v19936_v28 = vld [vmem:[#allocation22_spill] sm:$0xff] }
 0x2ea   : > { %6562 = vrot.lane.b32.xlu1 %v19927_v23, %s13219_s18  ;;  %v19930_v34 = vcombine.low %v19928_v61, %v19929_v6  ;;  %v4759_v44 = vrot.slane %v16525_v60, 5  ;;  %v16558_v46 = vld [vmem:[#allocation2 + $0xa0] sm:$0xf]  ;;  %v4449_v54 = vrot.slane %v4448_v26, 4  ;;  %v4459_v23 = vrot.slane %v4458_v7, 4  ;;  %v16564_v6 = vpop.permute.xlu0 %6310 }
 0x2eb   : > { %v4468_v52 = vrot.slane %v4466_v0, 4  ;;  %v4471_v61 = vrot.slane %v4469_v18, 5  ;;  %19932 = vst [vmem:[#allocation12_spill] sm:$0xff] %v16564_v6  ;;  %v16566_v47 = vrot.slane %v4475_v10, 5  ;;  %v4481_v33 = vrot.slane %v4479_v36, 4 }
 0x2ec   : > { %6208 = vrot.lane.b32.xlu0 %v19930_v34, %s13217_s28  ;;  %v5122_v48 = vshrl.u32 %v16547_v5, 16  ;;  %v5125_v58 = vshll.u32 %v16547_v5, 16  ;;  %v19933_v34 = vld [vmem:[#allocation20_spill] sm:$0xff]  ;;  %v5131_v26 = vshll.u32 %v16558_v46, 16  ;;  %v5135_v7 = vshrl.u32 %v16558_v46, 16 }
 0x2ed   : > { %v19934_v57 = vcombine.low %v19933_v34, %v16127_v42  ;;  %v4514_v0 = vshrl.u32 %v4201_v38, 16  ;;  %v4517_v18 = vshll.u32 %v4201_v38, 16  ;;  %v16582_v36 = vrot.slane %v5066_v24, 4  ;;  %v16595_v10 = vld [vmem:[#allocation2 + $0xa4] sm:$0x1] }
 0x2ee   : > { %v4761_v25 = vrot.slane %v4759_v44, 4  ;;  %v4762_v42 = vrot.slane %v16562_v11, 5  ;;  %v4464_v34 = vsel %vm13401_vm5, %v4459_v23, %v4463_v31  ;;  %v4485_v38 = vshll.u32 %v16369_v49, 16  ;;  %v16592_v43 = vpop.permute.xlu0 %6450 }
 0x2ef   : > { %6308 = vrot.lane.b32.xlu1 %v19934_v57, %s13220_s21  ;;  %v16585_v57 = vpop.permute.xlu1 %6452  ;;  %v4523_v3 = vshll.u32 %v16525_v60, 16  ;;  %v4472_v6 = vor.u32 %v4471_v61, %v4468_v52  ;;  %v4482_v24 = vor.u32 %v4481_v33, %v16566_v47  ;;  %v5124_v12 = vrot.slane %v5122_v48, 4  ;;  %v4203_v33 = vld [vmem:[#allocation2 + $0x9c] sm:$0xf] }
 0x2f0   : > { %6638 = vrot.lane.b32.xlu0 %v16211_v29, %s13222_s29  ;;  %19935 = vst [vmem:[#allocation14_spill] sm:$0xff] %v16585_v57  ;;  %v4527_v29 = vshrl.u32 %v16525_v60, 16  ;;  %v5127_v35 = vrot.slane %v5125_v58, 5  ;;  %v16599_v57 = vrot.slane %v5131_v26, 5  ;;  %v5137_v31 = vrot.slane %v5135_v7, 4 }
 0x2f1   : > { %v4516_v49 = vrot.slane %v4514_v0, 4  ;;  %v4519_v23 = vrot.slane %v4517_v18, 5  ;;  %v4454_v60 = vsel %vm13401_vm5, %v4449_v54, %v16484_v51  ;;  %v5071_v52 = vrot.slane %v5069_v56, 5  ;;  %v16621_v51 = vld [vmem:[#allocation2 + $0xa0] sm:$0xf] }
 0x2f2   : > { %v16608_v61 = vsel %vm13357_vm2, %v12223_v59, %v4759_v44  ;;  %v16616_v58 = vcombine.low %v4454_v60, %v4464_v34  ;;  %v16619_v26 = vrot.slane %v4523_v3, 5  ;;  %v4529_v7 = vrot.slane %v4527_v29, 4  ;;  %v16623_v56 = vpop.permute.xlu0 %6196  ;;  %v16628_v0 = vld [vmem:[#allocation2 + $0xa8] sm:$0xf] }
 0x2f3   : > { %6636 = vrot.lane.b32.xlu1 %v19936_v28, %s13222_s29  ;;  %v16612_v28 = vsel %vm13357_vm2, %v4761_v25, %v4762_v42  ;;  %v16614_v48 = vpop.permute.xlu1 %6198  ;;  %19938 = vst [vmem:[#allocation32_spill] sm:$0xff] %v16623_v56  ;;  %v5072_v59 = vsel %vm13401_vm5, %v16582_v36, %v5071_v52  ;;  %v4473_v25 = vrot.slane %v4472_v6, 4  ;;  %v4483_v44 = vrot.slane %v4482_v24, 4  ;;  %v16639_v6 = vld [vmem:[#allocation2 + $0xac] sm:$0xf]  ;;  %v19951_v56 = vld [vmem:[#allocation67_spill] sm:$0xff] }
 0x2f4   : > { %6384 = vrot.lane.b32.xlu0 %v16314_v21, %s13223_s30  ;;  %19937 = vst [vmem:[#allocation15_spill] sm:$0xff] %v16614_v48  ;;  %v5141_v21 = vshll.u32 %v16595_v10, 16  ;;  %v5128_v54 = vor.u32 %v5127_v35, %v5124_v12  ;;  %v4487_v18 = vrot.slane %v4485_v38, 5  ;;  %v5138_v42 = vor.u32 %v5137_v31, %v16599_v57 }
 0x2f5   : > { %v4520_v34 = vor.u32 %v4519_v23, %v4516_v49  ;;  %v19939_v29 = vcombine.low %v16176_v4, %v16146_v15  ;;  %v4538_v35 = vshrl.u32 %v4203_v33, 16  ;;  %v4541_v12 = vshll.u32 %v4203_v33, 16 }
 0x2f6   : > { %v4547_v36 = vshll.u32 %v16621_v51, 16  ;;  %v16645_v60 = vrot.slane %v5141_v21, 5  ;;  %v4530_v38 = vor.u32 %v4529_v7, %v16619_v26  ;;  %v5731_v31 = vshrl.u32 %v16628_v0, 16  ;;  %v16650_v15 = vpop.permute.xlu0 %6470  ;;  %v16660_v21 = vld [vmem:[#allocation2 + $0xa4] sm:$0x1] }
 0x2f7   : > { %6382 = vrot.lane.b32.xlu1 %v16343_v32, %s13223_s30  ;;  %v4551_v32 = vshrl.u32 %v16621_v51, 16  ;;  %v16643_v24 = vpop.permute.xlu1 %6472  ;;  %v5734_v49 = vshll.u32 %v16628_v0, 16  ;;  %19941 = vst [vmem:[#allocation29_spill] sm:$0xff] %v16650_v15  ;;  %v4478_v4 = vsel %vm13401_vm5, %v4473_v25, %v16566_v47  ;;  %v4488_v23 = vsel %vm13401_vm5, %v4483_v44, %v4487_v18  ;;  %v5229_v47 = vld [vmem:[#allocation2 + $0x9c] sm:$0xe] }
 0x2f8   : > { %6560 = vrot.lane.b32.xlu0 %v19939_v29, %s13219_s18  ;;  %19940 = vst [vmem:[#allocation28_spill] sm:$0xff] %v16643_v24  ;;  %v16657_v52 = vrot.slane %v5128_v54, 4  ;;  %v4533_v33 = vshll.u32 %v16562_v11, 16  ;;  %v16664_v7 = vrot.slane %v5138_v42, 4  ;;  %v16666_v29 = vrot.slane %v4520_v34, 4 }
 0x2f9   : > { %v5744_v3 = vshrl.u32 %v16639_v6, 16  ;;  %v5740_v25 = vshll.u32 %v16639_v6, 16  ;;  %v4540_v11 = vrot.slane %v4538_v35, 4  ;;  %v4543_v44 = vrot.slane %v4541_v12, 5 }
 0x2fa   : > { %v16672_v54 = vrot.slane %v4547_v36, 5  ;;  %v4553_v18 = vrot.slane %v4551_v32, 4  ;;  %v16678_v34 = vrot.slane %v4530_v38, 4  ;;  %v5733_v24 = vrot.slane %v5731_v31, 4  ;;  %v16681_v9 = vpop.permute.xlu0 %6216 }
 0x2fb   : > { %6128 = vrot.lane.b32.xlu1 %v16381_v63, %s13214_s20  ;;  %v16674_v63 = vld [vmem:[#allocation2 + $0xa8] sm:$0xf]  ;;  %v16676_v42 = vpop.permute.xlu1 %6550  ;;  %v5736_v15 = vrot.slane %v5734_v49, 5  ;;  %v4557_v48 = vshll.u32 %v16660_v21, 16  ;;  %19943 = vst [vmem:[#allocation30_spill] sm:$0xff] %v16681_v9  ;;  %v16690_v12 = vcombine.low %v4478_v4, %v4488_v23  ;;  %v16692_v36 = vrot.slane %v4533_v33, 5 }
 0x2fc   : > { %6130 = vrot.lane.b32.xlu0 %v16431_v13, %s13214_s20  ;;  %19942 = vst [vmem:[#allocation36_spill] sm:$0xff] %v16676_v42  ;;  %v19944_v13 = vsel %vm13401_vm5, %v16544_v45, %v16518_v16  ;;  %v12239_v32 = vrot.slane %v5229_v47, 9  ;;  %v19946_v38 = vcombine.low %v16374_v1, %v16367_v20  ;;  %v5367_v31 = vrot.slane %v16558_v46, 5  ;;  %v5438_v9 = vld [vmem:[#allocation2 + $0xb0] sm:$0x1] }
 0x2fd   : > { %v16688_v35 = vcombine.low %v19944_v13, %v5072_v59  ;;  %19945 = vst [vmem:[#allocation31_spill] sm:$0xff] %v16690_v12  ;;  %v5146_v49 = vshrl.u32 %v16674_v63, 16  ;;  %v16700_v42 = vrot.slane %v5740_v25, 5  ;;  %v5746_v16 = vrot.slane %v5744_v3, 4  ;;  %v16715_v23 = vld [vmem:[#allocation2 + $0xac] sm:$0xf] }
 0x2fe   : > { %v19947_v45 = vcombine.low %v16325_v40, %v16346_v2  ;;  %v4544_v1 = vor.u32 %v4543_v44, %v4540_v11  ;;  %v4554_v4 = vor.u32 %v4553_v18, %v16672_v54  ;;  %v16727_v33 = vrot.slane %v4557_v48, 5  ;;  %v16729_v25 = vld [vmem:[#allocation2 + $0xb0] sm:$0x1]  ;;  %v5230_v11 = vld [vmem:[#allocation2 + $0xa8] sm:$0xe]  ;;  %v6627_v44 = vpop.permute.xlu0 %6626 }
 0x2ff   : > { %6468 = vrot.lane.b32.xlu1 %v19946_v38, %s13221_s27  ;;  %v16717_v3 = vpop.permute.xlu1 %6296  ;;  %v5737_v47 = vor.u32 %v5736_v15, %v5733_v24  ;;  %v16733_v18 = vsel %vm13357_vm2, %v12239_v32, %v5367_v31  ;;  %v5370_v13 = vrot.slane %v16595_v10, 5  ;;  %v5750_v38 = vshll.u32 %v5438_v9, 16  ;;  %v4622_v40 = vld [vmem:[#allocation2 + $0x9c] sm:$0xe] }
 0x300   : > { %6306 = vrot.lane.b32.xlu0 %v19947_v45, %s13220_s21  ;;  %19948 = vst [vmem:[#allocation35_spill] sm:$0xff] %v16717_v3  ;;  %v5374_v45 = vrot.slane %v16715_v23, 5  ;;  %v19949_v48 = vcombine.low %v16417_v27, %v16406_v55  ;;  %v5369_v24 = vrot.slane %v5367_v31, 4  ;;  %v16741_v15 = vrot.slane %v5146_v49, 4  ;;  %v16751_v55 = vld [vmem:[#allocation2 + $0xb4] sm:$0xf] }
 0x301   : > { %v5747_v2 = vor.u32 %v5746_v16, %v16700_v42  ;;  %v4766_v59 = vrot.slane %v16621_v51, 5  ;;  %v19950_v10 = vcombine.low %v16437_v41, %v16425_v22  ;;  %v4545_v9 = vrot.slane %v4544_v1, 4  ;;  %v16754_v51 = vld [vmem:[#allocation2 + $0xb8] sm:$0xf] }
 0x302   : > { %v4555_v32 = vrot.slane %v4554_v4, 4  ;;  %v5149_v20 = vshll.u32 %v16674_v63, 16  ;;  %v5738_v31 = vrot.slane %v5737_v47, 4  ;;  %v12240_v49 = vrot.slane %v5230_v11, 9  ;;  %v16758_v41 = vpop.permute.xlu0 %6372 }
 0x303   : > { %6214 = vrot.lane.b32.xlu1 %v19949_v48, %s13217_s28  ;;  %v6371_v27 = vpop.permute.xlu1 %6370  ;;  %v5377_v16 = vrot.slane %v16729_v25, 5  ;;  %v12224_v48 = vrot.slane %v4622_v40, 9  ;;  %v5752_v1 = vrot.slane %v5750_v38, 5  ;;  %v5376_v4 = vrot.slane %v5374_v45, 4  ;;  %v5439_v38 = vld [vmem:[#allocation2 + $0xbc] sm:$0x1] }
 0x304   : > { %6466 = vrot.lane.b32.xlu0 %v19950_v10, %s13221_s27  ;;  %v6821_v22 = vsel %vm6819_vm6, %v19951_v56, %v6371_v27  ;;  %v4769_v10 = vrot.slane %v16660_v21, 5  ;;  %v5748_v47 = vrot.slane %v5747_v2, 4  ;;  %v4768_v11 = vrot.slane %v4766_v59, 4 }
 0x305   : > { %v6854_v3 = vsel %vm6852_vm7, %v6821_v22, %v16592_v43  ;;  %v5755_v40 = vshrl.u32 %v16751_v55, 16  ;;  %v19952_v56 = vcombine.low %v16457_v62, %v16461_v39  ;;  %v5758_v21 = vshll.u32 %v16751_v55, 16 }
 0x306   : > { %v6887_v12 = vsel %vm6885_vm8, %v6854_v3, %v16442_v8  ;;  %v5764_v43 = vshll.u32 %v16754_v51, 16  ;;  %v5768_v27 = vshrl.u32 %v16754_v51, 16  ;;  %v4550_v8 = vsel %vm13401_vm5, %v4545_v9, %v16672_v54  ;;  %v16785_v39 = vpop.permute.xlu0 %6548 }
 0x307   : > { %6640 = vrot.lane.b32.xlu1 %v16467_v50, %s13222_s29  ;;  %v16775_v50 = vpop.permute.xlu1 %6116  ;;  %v6920_v2 = vsel %vm6918_vm10, %v6887_v12, %v6627_v44  ;;  %v16783_v3 = vsel %vm13357_vm2, %v5369_v24, %v5370_v13  ;;  %v5151_v62 = vrot.slane %v5149_v20, 5  ;;  %v4560_v22 = vsel %vm13401_vm5, %v4555_v32, %v16727_v33 }
 0x308   : > { %6212 = vrot.lane.b32.xlu0 %v19952_v56, %s13217_s28  ;;  %7120 = vmatmul.mubr.bf16.vlgmr.msra.gmra.mrb[12].mxu1 %v6920_v2  ;;  %v5743_v12 = vsel %vm13401_vm5, %v5738_v31, %v16700_v42  ;;  %v16795_v44 = vsel %vm13357_vm2, %v12240_v49, %v5374_v45  ;;  %v16799_v54 = vsel %vm13357_vm2, %v12224_v48, %v4766_v59  ;;  %v5774_v59 = vshll.u32 %v5439_v38, 16 }
 0x309   : > { %v19953_v20 = vcombine.low %v16493_v53, %v16501_v30  ;;  %v5753_v33 = vsel %vm13401_vm5, %v5748_v47, %v5752_v1  ;;  %v16811_v42 = vsel %vm13357_vm2, %v5376_v4, %v5377_v16  ;;  %v16815_v13 = vsel %vm13357_vm2, %v4768_v11, %v4769_v10  ;;  %v16868_v11 = vld [vmem:[#allocation2 + $0xb8] sm:$0xf] }
 0x30a   : > { %v5760_v45 = vrot.slane %v5758_v21, 5  ;;  %v16819_v53 = vrot.slane %v5764_v43, 5  ;;  %v5770_v30 = vrot.slane %v5768_v27, 4  ;;  %v19954_v9 = vsel %vm13401_vm5, %v16664_v7, %v16645_v60  ;;  %v16847_v48 = vpop.permute.xlu0 %6118  ;;  %v16880_v27 = vld [vmem:[#allocation2 + $0xac] sm:$0xf] }
 0x30b   : > { %6386 = vrot.lane.b32.xlu1 %v16531_v37, %s13223_s30  ;;  %12413 = vmatprep.mubr.msk.bf16.mxu1 %vm3041_vm9, %v19953_v20  ;;  %v5757_v37 = vrot.slane %v5755_v40, 4  ;;  %v16821_v24 = vpop.permute.xlu1 %6644  ;;  %v19955_v32 = vsel %vm13401_vm5, %v16657_v52, %v16599_v57  ;;  %v19957_v49 = vsel %vm13401_vm5, %v16666_v29, %v16619_v26  ;;  %v16849_v57 = vcombine.low %v4550_v8, %v4560_v22  ;;  %v5828_v29 = vld [vmem:[#allocation2 + $0x30] sm:$0xe]  ;;  %v16870_v40 = vld [vmem:[#allocation2 + $0xa8] sm:$0xf] }
 0x30c   : > { %6642 = vrot.lane.b32.xlu0 %v16553_v14, %s13222_s29  ;;  %v12335_v31 = vcombine.low %v19955_v32, %v19954_v9  ;;  %v19956_v14 = vsel %vm13401_vm5, %v16678_v34, %v16692_v36  ;;  %v16857_v36 = vld [vmem:[#allocation2 + $0xb4] sm:$0xf]  ;;  %v16861_v1 = vcombine.low %v5743_v12, %v5753_v33  ;;  %v16865_v10 = vrot.slane %v5774_v59, 5  ;;  %v16888_v20 = vld [vmem:[#allocation2 + $0xa8] sm:$0xe] }
 0x30d   : > { %v12287_v16 = vcombine.low %v19957_v49, %v19956_v14  ;;  %v5152_v47 = vor.u32 %v5151_v62, %v16741_v15  ;;  %v5761_v56 = vor.u32 %v5760_v45, %v5757_v37  ;;  %v5771_v38 = vor.u32 %v5770_v30, %v16819_v53  ;;  %v13047_v62 = vld [vmem:[#allocation2 + $0x34] sm:$0xf]  ;;  %v13048_v4 = vld [vmem:[#allocation2 + $0x38] sm:$0x1]  ;;  %v4223_v7 = vld [vmem:[#allocation2 + $0xb0] sm:$0x1] }
 0x30e   : > { %v19958_v21 = vshrl.u32 %v16715_v23, 16  ;;  %v5165_v15 = vshll.u32 %v16729_v25, 16  ;;  %v12245_v8 = vrot.slane %v5828_v29, 9  ;;  %v5906_v22 = vrot.slane %v13047_v62, 5  ;;  %v16886_v12 = vpop.permute.xlu0 %6294  ;;  %v19961_v49 = vld [vmem:[#allocation31_spill] sm:$0xff] }
 0x30f   : > { %6132 = vrot.lane.b32.xlu1 %v16616_v58, %s13214_s20  ;;  %v5155_v58 = vshll.u32 %v16715_v23, 16  ;;  %v16882_v2 = vpop.permute.xlu1 %6390  ;;  %v5173_v33 = vshll.u32 %v16857_v36, 16  ;;  %v5179_v59 = vshll.u32 %v16868_v11, 16  ;;  %v5183_v37 = vshrl.u32 %v16868_v11, 16 }
 0x310   : > { %6388 = vrot.lane.b32.xlu0 %v16688_v35, %s13223_s30  ;;  %v16878_v43 = vrot.slane %v19958_v21, 4  ;;  %19959 = vst [vmem:[#allocation33_spill] sm:$0xff] %v16882_v2  ;;  %v5170_v35 = vshrl.u32 %v16857_v36, 16  ;;  %v4562_v45 = vshrl.u32 %v16870_v40, 16  ;;  %v19960_v25 = vcombine.low %v16608_v61, %v16612_v28 }
 0x311   : > { %v16898_v30 = vrot.slane %v5152_v47, 4  ;;  %v4565_v9 = vshll.u32 %v16870_v40, 16  ;;  %v4571_v32 = vshll.u32 %v16880_v27, 16  ;;  %v4575_v14 = vshrl.u32 %v16880_v27, 16 }
 0x312   : > { %v5762_v29 = vrot.slane %v5761_v56, 4  ;;  %v5772_v21 = vrot.slane %v5771_v38, 4  ;;  %v16905_v62 = vrot.slane %v5155_v58, 5  ;;  %v5909_v26 = vrot.slane %v13048_v4, 5  ;;  %v16912_v52 = vpop.permute.xlu0 %6646  ;;  %v19964_v58 = vld [vmem:[#allocation13_spill] sm:$0xff] }
 0x313   : > { %6218 = vrot.lane.b32.xlu1 %v19960_v25, %s13217_s28  ;;  %v16907_v34 = vpop.permute.xlu1 %6136  ;;  %v16909_v61 = vrot.slane %v5165_v15, 5  ;;  %v5908_v28 = vrot.slane %v5906_v22, 4  ;;  %v12225_v47 = vrot.slane %v16888_v20, 9  ;;  %v5172_v25 = vrot.slane %v5170_v35, 4  ;;  %19963 = vst [vmem:[#allocation34_spill] sm:$0xff] %v16912_v52 }
 0x314   : > { %6134 = vrot.lane.b32.xlu0 %v19961_v49, %s13214_s20  ;;  %19962 = vst [vmem:[#allocation37_spill] sm:$0xff] %v16907_v34  ;;  %v5175_v60 = vrot.slane %v5173_v33, 5  ;;  %v16914_v2 = vrot.slane %v5179_v59, 5  ;;  %v5185_v56 = vrot.slane %v5183_v37, 4  ;;  %v4564_v38 = vrot.slane %v4562_v45, 4  ;;  %v19965_v49 = vld [vmem:[#allocation11_spill] sm:$0xff] }
 0x315   : > { %v19966_v4 = vcombine.low %v19964_v58, %v19965_v49  ;;  %v16922_v15 = vld [vmem:[#allocation2 + $0xbc] sm:$0x1]  ;;  %v4567_v20 = vrot.slane %v4565_v9, 5  ;;  %v16924_v35 = vrot.slane %v4571_v32, 5  ;;  %v4577_v52 = vrot.slane %v4575_v14, 4 }
 0x316   : > { %v5162_v59 = vor.u32 %v16878_v43, %v16905_v62  ;;  %v5777_v45 = vsel %vm13401_vm5, %v5772_v21, %v16865_v10  ;;  %v16948_v9 = vsel %vm13357_vm2, %v5908_v28, %v5909_v26  ;;  %v4776_v43 = vrot.slane %v4223_v7, 5  ;;  %v19967_v32 = vld [vmem:[#allocation32_spill] sm:$0xff] }
 0x317   : > { %v6711_v34 = vsel %vm3041_vm9, %v19966_v4, %v16775_v50  ;;  %6394 = vrot.lane.b32.xlu1 %v12335_v31, %s13223_s30  ;;  %v16935_v50 = vsel %vm13357_vm2, %v12245_v8, %v5906_v22  ;;  %v4773_v31 = vrot.slane %v16880_v27, 5  ;;  %v16938_v37 = vpop.permute.xlu1 %6456  ;;  %v16952_v22 = vpop.permute.xlu0 %6392  ;;  %v5176_v14 = vor.u32 %v5175_v60, %v5172_v25  ;;  %v13049_v28 = vld [vmem:[#allocation2 + $0x40] sm:$0xf] }
 0x318   : > { %6138 = vrot.lane.b32.xlu0 %v12287_v16, %s13214_s20  ;;  %v5767_v16 = vsel %vm13401_vm5, %v5762_v29, %v16819_v53  ;;  %v6757_v8 = vsel %vm19968_vm11, %v6711_v34, %v19967_v32  ;;  %v5186_v58 = vor.u32 %v5185_v56, %v16914_v2  ;;  %v5189_v49 = vshll.u32 %v16922_v15, 16  ;;  %v16956_v53 = vld [vmem:[#allocation2 + $0xb4] sm:$0xf]  ;;  %vm19991_vm11 = vmmov %vm19745_vm1 }
 0x319   : > { %v19969_v10 = vcombine.low %v16628_v0, %v16639_v6  ;;  %v4568_v26 = vor.u32 %v4567_v20, %v4564_v38  ;;  %v4578_v29 = vor.u32 %v4577_v52, %v16924_v35  ;;  %v4581_v21 = vshll.u32 %v4223_v7, 16  ;;  %v19971_v0 = vld [vmem:[#allocation26_spill] sm:$0xff]  ;;  %v5829_v52 = vld [vmem:[#allocation2 + $0x3c] sm:$0xe]  ;;  %v16989_v7 = vld [vmem:[#allocation2 + $0xc0] sm:$0xf] }
 0x31a   : > { %v5913_v34 = vrot.slane %v13049_v28, 5  ;;  %v19970_v60 = vcombine.low %v16547_v5, %v16558_v46  ;;  %v16967_v25 = vcombine.low %v5767_v16, %v5777_v45  ;;  %v5163_v56 = vrot.slane %v5162_v59, 4 }
 0x31b   : > { %6570 = vrot.lane.b32.xlu1 %v19969_v10, %s13219_s18  ;;  %v4775_v4 = vrot.slane %v4773_v31, 4  ;;  %v6790_v6 = vsel %vm6786_vm4, %v6757_v8, %v19971_v0  ;;  %v16973_v38 = vpop.permute.xlu1 %6202  ;;  %v4586_v20 = vshrl.u32 %v16956_v53, 16  ;;  %v4589_v5 = vshll.u32 %v16956_v53, 16  ;;  %v16979_v46 = vpop.permute.xlu0 %6568  ;;  %v16985_v8 = vld [vmem:[#allocation2 + $0xb8] sm:$0xf] }
 0x31c   : > { %6314 = vrot.lane.b32.xlu0 %v19970_v60, %s13220_s21  ;;  %19972 = vst [vmem:[#allocation64_spill] sm:$0xff] %v16979_v46  ;;  %v16983_v59 = vsel %vm13357_vm2, %v12225_v47, %v4773_v31  ;;  %v5177_v16 = vrot.slane %v5176_v14, 4  ;;  %v5187_v45 = vrot.slane %v5186_v58, 4  ;;  %v5191_v10 = vrot.slane %v5189_v49, 5  ;;  %v13050_v14 = vld [vmem:[#allocation2 + $0x44] sm:$0x1] }
 0x31d   : > { %v4569_v28 = vrot.slane %v4568_v26, 4  ;;  %v4579_v60 = vrot.slane %v4578_v29, 4  ;;  %v4583_v0 = vrot.slane %v4581_v21, 5  ;;  %v5915_v32 = vrot.slane %v5913_v34, 4 }
 0x31e   : > { %v6823_v33 = vsel %vm6819_vm6, %v6790_v6, %v16758_v41  ;;  %v19973_v47 = vcombine.low %v16733_v18, %v16783_v3  ;;  %v5168_v31 = vsel %vm13401_vm5, %v5163_v56, %v16909_v61  ;;  %v5916_v58 = vrot.slane %v13050_v14, 5 }
 0x31f   : > { %6140 = vrot.lane.b32.xlu1 %v16849_v57, %s13214_s20  ;;  %v17002_v57 = vsel %vm13357_vm2, %v4775_v4, %v4776_v43  ;;  %v17004_v49 = vpop.permute.xlu1 %6554  ;;  %v4588_v26 = vrot.slane %v4586_v20, 4  ;;  %v4591_v29 = vrot.slane %v4589_v5, 5  ;;  %v4595_v41 = vshll.u32 %v16985_v8, 16  ;;  %v17008_v18 = vpop.permute.xlu0 %6454  ;;  %v19975_v5 = vld [vmem:[#allocation14_spill] sm:$0xff] }
 0x320   : > { %6474 = vrot.lane.b32.xlu0 %v19973_v47, %s13221_s27  ;;  %v4599_v21 = vshrl.u32 %v16985_v8, 16  ;;  %v5182_v3 = vsel %vm13401_vm5, %v5177_v16, %v16914_v2  ;;  %v5192_v61 = vsel %vm13401_vm5, %v5187_v45, %v5191_v10  ;;  %v12246_v43 = vrot.slane %v5829_v52, 9  ;;  %v17045_v45 = vld [vmem:[#allocation2 + $0xbc] sm:$0x1]  ;;  %v5231_v10 = vld [vmem:[#allocation2 + $0xb4] sm:$0xe] }
 0x321   : > { %v5779_v56 = vshrl.u32 %v16989_v7, 16  ;;  %v19974_v4 = vcombine.low %v16674_v63, %v16715_v23  ;;  %v4574_v6 = vsel %vm13401_vm5, %v4569_v28, %v16924_v35  ;;  %v4584_v20 = vsel %vm13401_vm5, %v4579_v60, %v4583_v0 }
 0x322   : > { %v17027_v2 = vsel %vm13357_vm2, %v5915_v32, %v5916_v58  ;;  %v5782_v52 = vshll.u32 %v16989_v7, 16  ;;  %v6856_v16 = vsel %vm6852_vm7, %v6823_v33, %v19975_v5  ;;  %v19976_v63 = vsel %vm13401_vm5, %v16898_v30, %v16905_v62  ;;  %v17047_v33 = vld [vmem:[#allocation2 + $0xc0] sm:$0xf] }
 0x323   : > { %6316 = vrot.lane.b32.xlu1 %v19974_v4, %s13220_s21  ;;  %v12336_v23 = vcombine.low %v19976_v63, %v5168_v31  ;;  %v12305_v35 = vcombine.low %v16983_v59, %v17002_v57  ;;  %v17043_v32 = vsel %vm13357_vm2, %v12246_v43, %v5913_v34  ;;  %v17049_v28 = vpop.permute.xlu1 %6300  ;;  %v4592_v60 = vor.u32 %v4591_v29, %v4588_v26  ;;  %v17056_v47 = vpop.permute.xlu0 %6200  ;;  %v19977_v43 = vld [vmem:[#allocation17_spill] sm:$0xff]  ;;  %v19978_v4 = vld [vmem:[#allocation23_spill] sm:$0xff] }
 0x324   : > { %6650 = vrot.lane.b32.xlu0 %v16861_v1, %s13222_s29  ;;  %v17051_v1 = vld [vmem:[#allocation2 + $0xc4] sm:$0xf]  ;;  %v17053_v0 = vrot.slane %v4595_v41, 5  ;;  %v4601_v30 = vrot.slane %v4599_v21, 4  ;;  %v5381_v62 = vrot.slane %v16868_v11, 5  ;;  %v17058_v31 = vcombine.low %v5182_v3, %v5192_v61 }
 0x325   : > { %v17060_v34 = vcombine.low %v4574_v6, %v4584_v20  ;;  %v17064_v58 = vrot.slane %v5779_v56, 4  ;;  %v19979_v26 = vcombine.low %v19977_v43, %v19978_v4  ;;  %v19980_v41 = vcombine.low %v16795_v44, %v16811_v42 }
 0x326   : > { %v5784_v21 = vrot.slane %v5782_v52, 5  ;;  %v4605_v3 = vshll.u32 %v17045_v45, 16  ;;  %v12241_v61 = vrot.slane %v5231_v10, 9  ;;  %v6889_v6 = vsel %vm6885_vm8, %v6856_v16, %v16785_v39  ;;  %v17089_v39 = vld [vmem:[#allocation2 + $0xc4] sm:$0xf]  ;;  %v19982_v16 = vld [vmem:[#allocation15_spill] sm:$0xff] }
 0x327   : > { %v6714_v29 = vsel %vm3041_vm9, %v19979_v26, %v16847_v48  ;;  %6476 = vrot.lane.b32.xlu1 %v19980_v41, %s13221_s27  ;;  %v19981_v56 = vcombine.low %v16799_v54, %v16815_v13  ;;  %v5792_v20 = vshrl.u32 %v17051_v1, 16  ;;  %v5194_v48 = vshrl.u32 %v17047_v33, 16  ;;  %v6629_v44 = vpop.permute.xlu1 %6628  ;;  %v6631_v13 = vpop.permute.xlu0 %6630  ;;  %v17107_v41 = vld [vmem:[#allocation2 + $0xc8] sm:$0x1] }
 0x328   : > { %v5788_v5 = vshll.u32 %v17051_v1, 16  ;;  %v17085_v42 = vrot.slane %v4592_v60, 4  ;;  %v4602_v52 = vor.u32 %v4601_v30, %v17053_v0  ;;  %v5383_v63 = vrot.slane %v5381_v62, 4 }
 0x329   : > { %6220 = vrot.lane.b32.xlu0 %v19981_v56, %s13217_s28  ;;  %v5384_v10 = vrot.slane %v16922_v15, 5  ;;  %v6759_v54 = vsel %vm19983_vm15, %v6714_v29, %v19982_v16  ;;  %v6923_v43 = vsel %vm6918_vm10, %v6889_v6, %v6629_v44  ;;  %v5197_v26 = vshll.u32 %v17047_v33, 16  ;;  %v17119_v44 = vld [vmem:[#allocation2 + $0xcc] sm:$0xf]  ;;  %v17130_v16 = vld [vmem:[#allocation2 + $0xd0] sm:$0xf]  ;;  %vm19992_vm15 = vmmov %vm19745_vm1 }
 0x32a   : > { %v6792_v60 = vsel %vm6786_vm4, %v6759_v54, %v16886_v12  ;;  %7128 = vmatmul.mubr.bf16.gmra.mrb[16].mxu1 %v6923_v43  ;;  %v4607_v30 = vrot.slane %v4605_v3, 5  ;;  %v17105_v29 = vsel %vm13357_vm2, %v12241_v61, %v5381_v62  ;;  %v19984_v6 = vcombine.low %v16935_v50, %v16948_v9 }
 0x32b   : > { %6652 = vrot.lane.b32.xlu1 %v16967_v25, %s13222_s29  ;;  %v17114_v12 = vrot.slane %v5194_v48, 4  ;;  %v5207_v25 = vshrl.u32 %v17089_v39, 16  ;;  %v17117_v56 = vrot.slane %v5788_v5, 5  ;;  %v5794_v3 = vrot.slane %v5792_v20, 4  ;;  %v6375_v62 = vpop.permute.xlu1 %6374  ;;  %v5232_v48 = vld [vmem:[#allocation2 + $0xc0] sm:$0xe]  ;;  %v17133_v5 = vpop.permute.xlu0 %6376 }
 0x32c   : > { %12414 = vmatprep.mubr.msk.bf16.mxu1 %vm3041_vm9, %v19984_v6  ;;  %v4603_v61 = vrot.slane %v4602_v52, 4  ;;  %v17127_v50 = vsel %vm13357_vm2, %v5383_v63, %v5384_v10  ;;  %v5785_v9 = vor.u32 %v5784_v21, %v17064_v58  ;;  %v6825_v20 = vsel %vm6819_vm6, %v6792_v60, %v6375_v62  ;;  %v17145_v58 = vld [vmem:[#allocation2 + $0xc8] sm:$0x1]  ;;  %v19986_v60 = vld [vmem:[#allocation36_spill] sm:$0xff] }
 0x32d   : > { %6396 = vrot.lane.b32.xlu0 %v12336_v23, %s13223_s30  ;;  %v4598_v23 = vsel %vm13401_vm5, %v17085_v42, %v17053_v0  ;;  %v17135_v54 = vrot.slane %v5197_v26, 5  ;;  %v5798_v43 = vshll.u32 %v17107_v41, 16  ;;  %v5388_v0 = vrot.slane %v17089_v39, 5  ;;  %v4624_v42 = vld [vmem:[#allocation2 + $0xb4] sm:$0xe] }
 0x32e   : > { %v6858_v52 = vsel %vm6852_vm7, %v6825_v20, %v17008_v18  ;;  %v4780_v21 = vrot.slane %v16985_v8, 5  ;;  %v5803_v63 = vshrl.u32 %v17119_v44, 16  ;;  %v5806_v10 = vshll.u32 %v17119_v44, 16 }
 0x32f   : > { %6222 = vrot.lane.b32.xlu1 %v12305_v35, %s13217_s28  ;;  %v19985_v26 = vcombine.low %v16751_v55, %v16754_v51  ;;  %v6891_v18 = vsel %vm6885_vm8, %v6858_v52, %v19986_v60  ;;  %v5795_v6 = vor.u32 %v5794_v3, %v17117_v56  ;;  %v5816_v59 = vshrl.u32 %v17130_v16, 16  ;;  %v6121_v35 = vpop.permute.xlu1 %6120  ;;  %v17162_v14 = vpop.permute.xlu0 %6552 }
 0x330   : > { %v5812_v57 = vshll.u32 %v17130_v16, 16  ;;  %v6926_v62 = vsel %vm6918_vm10, %v6891_v18, %v6631_v13  ;;  %v4608_v20 = vsel %vm13401_vm5, %v4603_v61, %v4607_v30  ;;  %v5786_v15 = vrot.slane %v5785_v9, 4 }
 0x331   : > { %6572 = vrot.lane.b32.xlu0 %v19985_v26, %s13219_s18  ;;  %v12242_v4 = vrot.slane %v5232_v48, 9  ;;  %v5800_v55 = vrot.slane %v5798_v43, 5  ;;  %v5391_v51 = vrot.slane %v17145_v58, 5  ;;  %v12226_v52 = vrot.slane %v4624_v42, 9  ;;  %v13052_v42 = vld [vmem:[#allocation2 + $0x24] sm:$0xf] }
 0x332   : > { %v5203_v3 = vshll.u32 %v17089_v39, 16  ;;  %7136 = vmatmul.mubr.bf16.gmra.mrb[20].mxu1 %v6926_v62  ;;  %v5390_v26 = vrot.slane %v5388_v0, 4  ;;  %v4783_v13 = vrot.slane %v17045_v45, 5  ;;  %v5805_v60 = vrot.slane %v5803_v63, 4 }
 0x333   : > { %6398 = vrot.lane.b32.xlu1 %v17058_v31, %s13223_s30  ;;  %v5808_v18 = vrot.slane %v5806_v10, 5  ;;  %v19987_v30 = vcombine.low %v17043_v32, %v17027_v2  ;;  %v5796_v61 = vrot.slane %v5795_v6, 4  ;;  %v4782_v9 = vrot.slane %v4780_v21, 4  ;;  %v13051_v31 = vld [vmem:[#allocation2 + $0x28] sm:$0xf]  ;;  %v17177_v46 = vpop.permute.xlu1 %6648  ;;  %v17183_v10 = vpop.permute.xlu0 %6122 }
 0x334   : > { %v17175_v48 = vrot.slane %v5812_v57, 5  ;;  %v5818_v43 = vrot.slane %v5816_v59, 4  ;;  %v12262_v62 = vcombine.low %v13052_v42, %v13051_v31  ;;  %v12290_v45 = vcombine.low %v4598_v23, %v4608_v20  ;;  %v13053_v42 = vld [vmem:[#allocation2 + $0x4c] sm:$0xf] }
 0x335   : > { %6142 = vrot.lane.b32.xlu0 %v17060_v34, %s13214_s20  ;;  %12415 = vmatprep.mubr.msk.bf16.mxu1 %vm3041_vm9, %v19987_v30  ;;  %v12353_v63 = vcombine.low %v17105_v29, %v17127_v50  ;;  %v17181_v34 = vld [vmem:[#allocation2 + $0xd4] sm:$0x1]  ;;  %v5791_v2 = vsel %vm13401_vm5, %v5786_v15, %v17117_v56  ;;  %v5389_v32 = vsel %vm13357_vm2, %v12242_v4, %v5388_v0  ;;  %v17190_v6 = vrot.slane %v5203_v3, 5 }
 0x336   : > { %v5209_v59 = vrot.slane %v5207_v25, 4  ;;  %v19988_v23 = vcombine.low %v16989_v7, %v17051_v1  ;;  %v5392_v29 = vsel %vm13357_vm2, %v5390_v26, %v5391_v51  ;;  %v4781_v50 = vsel %vm13357_vm2, %v12226_v52, %v4780_v21 }
 0x337   : > { %v5200_v15 = vor.u32 %v17135_v54, %v17114_v12  ;;  %v5809_v56 = vor.u32 %v5808_v18, %v5805_v60  ;;  %v19989_v4 = vcombine.low %v16857_v36, %v16868_v11  ;;  %v5801_v25 = vsel %vm13401_vm5, %v5796_v61, %v5800_v55  ;;  %v17212_v21 = vpop.permute.xlu1 %6460  ;;  %v17215_v54 = vpop.permute.xlu0 %6298  ;;  %v5840_v55 = vld [vmem:[#allocation2 + $0xc0] sm:$0xe] }
 0x338   : > { %6574 = vrot.lane.b32.xlu1 %v19988_v23, %s13219_s18  ;;  %v4784_v7 = vsel %vm13357_vm2, %v4782_v9, %v4783_v13  ;;  %v5819_v0 = vor.u32 %v5818_v43, %v17175_v48  ;;  %v5822_v57 = vshll.u32 %v17181_v34, 16  ;;  %v6717_v12 = vsel %vm3041_vm9, %v12262_v62, %v6121_v35 }
 0x339   : > { %6318 = vrot.lane.b32.xlu0 %v19989_v4, %s13220_s21  ;;  %v12322_v36 = vcombine.low %v17047_v33, %v17089_v39  ;;  %v5210_v11 = vor.u32 %v5209_v59, %v17190_v6  ;;  %v5213_v20 = vshll.u32 %v17145_v58, 16  ;;  %v12385_v51 = vcombine.low %v5791_v2, %v5801_v25 }
 0x33a   : > { %v12354_v52 = vcombine.low %v5389_v32, %v5392_v29  ;;  %v12306_v3 = vcombine.low %v4781_v50, %v4784_v7  ;;  %v5810_v26 = vrot.slane %v5809_v56, 4  ;;  %v5201_v13 = vrot.slane %v5200_v15, 4  ;;  %v19990_v32 = vld [vmem:[#allocation35_spill] sm:$0xff] }
 0x33b   : > { %v5820_v35 = vrot.slane %v5819_v0, 4  ;;  %v5824_v60 = vrot.slane %v5822_v57, 5  ;;  %v12273_v18 = vcombine.low %v16870_v40, %v16880_v27  ;;  %v6761_v33 = vsel %vm19745_vm1, %v6717_v12, %v17056_v47  ;;  %v17227_v39 = vpop.permute.xlu1 %6206  ;;  %v17231_v9 = vpop.permute.xlu0 %6458  ;;  %v7439_v27 = vld [vmem:[#allocation3 + $0x38] sm:$0x1] }
 0x33c   : > { %6144 = vrot.lane.b32.xlu1 %v12290_v45, %s13214_s20  ;;  %v12257_v58 = vrot.slane %v5840_v55, 9  ;;  %v5990_v30 = vrot.slane %v17051_v1, 5  ;;  %v5993_v61 = vrot.slane %v17107_v41, 5  ;;  %v5211_v43 = vrot.slane %v5210_v11, 4  ;;  %v5830_v11 = vld [vmem:[#allocation2 + $0x48] sm:$0xe] }
 0x33d   : > { %6478 = vrot.lane.b32.xlu0 %v12353_v63, %s13221_s27  ;;  %v5215_v31 = vrot.slane %v5213_v20, 5  ;;  %v5920_v62 = vrot.slane %v13053_v42, 5  ;;  %v12274_v45 = vcombine.low %v16956_v53, %v16985_v8  ;;  %v5815_v47 = vsel %vm13401_vm5, %v5810_v26, %v17175_v48  ;;  %v5841_v63 = vld [vmem:[#allocation2 + $0xcc] sm:$0xe] }
 0x33e   : > { %v17241_v1 = vsel %vm13357_vm2, %v12257_v58, %v5990_v30  ;;  %v5992_v41 = vrot.slane %v5990_v30, 4  ;;  %v5997_v2 = vrot.slane %v17130_v16, 5  ;;  %v6794_v59 = vsel %vm6786_vm4, %v6761_v33, %v19990_v32  ;;  %v13057_v30 = vld [vmem:[#allocation2 + $0x58] sm:$0xf] }
 0x33f   : > { %v5825_v23 = vsel %vm13401_vm5, %v5820_v35, %v5824_v60  ;;  %v12258_v29 = vrot.slane %v5841_v63, 9  ;;  %v6000_v50 = vrot.slane %v17181_v34, 5  ;;  %v17250_v48 = vpop.permute.xlu1 %6558  ;;  %v5206_v25 = vsel %vm13401_vm5, %v5201_v13, %v17190_v6  ;;  %v13055_v35 = vld [vmem:[#allocation2 + $0x34] sm:$0xf]  ;;  %v13056_v60 = vld [vmem:[#allocation2 + $0x30] sm:$0xf] }
 0x340   : > { %6320 = vrot.lane.b32.xlu1 %v12322_v36, %s13220_s21  ;;  %v17254_v15 = vsel %vm13357_vm2, %v5992_v41, %v5993_v61  ;;  %v5999_v56 = vrot.slane %v5997_v2, 4  ;;  %v5922_v7 = vrot.slane %v5920_v62, 4  ;;  %v6827_v57 = vsel %vm6819_vm6, %v6794_v59, %v17133_v5 }
 0x341   : > { %6654 = vrot.lane.b32.xlu0 %v12385_v51, %s13222_s29  ;;  %v17256_v4 = vpop.permute.xlu0 %6204  ;;  %v12401_v0 = vcombine.low %v17241_v1, %v17254_v15  ;;  %v17265_v34 = vsel %vm13357_vm2, %v12258_v29, %v5997_v2  ;;  %v5216_v12 = vsel %vm13401_vm5, %v5211_v43, %v5215_v31  ;;  %v12386_v36 = vcombine.low %v5815_v47, %v5825_v23  ;;  %v13054_v51 = vld [vmem:[#allocation2 + $0x50] sm:$0x1] }
 0x342   : > { %v17274_v6 = vsel %vm13357_vm2, %v5999_v56, %v6000_v50  ;;  %v5923_v5 = vrot.slane %v13054_v51, 5  ;;  %v12338_v13 = vcombine.low %v5206_v25, %v5216_v12  ;;  %v12263_v33 = vcombine.low %v13056_v60, %v13055_v35  ;;  %v13060_v51 = vld [vmem:[#allocation2 + $0x3c] sm:$0xf]  ;;  %v13061_v60 = vld [vmem:[#allocation2 + $0x64] sm:$0xf] }
 0x343   : > { %v12402_v20 = vcombine.low %v17265_v34, %v17274_v6  ;;  %v17279_v55 = vpop.permute.xlu1 %6304  ;;  %v12247_v58 = vrot.slane %v5830_v11, 9  ;;  %v5927_v61 = vrot.slane %v13057_v30, 5  ;;  %v12370_v43 = vcombine.low %v17119_v44, %v17130_v16  ;;  %v13059_v11 = vld [vmem:[#allocation2 + $0x40] sm:$0xf] }
 0x344   : > { %6480 = vrot.lane.b32.xlu1 %v12354_v52, %s13221_s27  ;;  %v6860_v52 = vsel %vm6852_vm7, %v6827_v57, %v16938_v37  ;;  %v6720_v31 = vsel %vm3041_vm9, %v12263_v33, %v17183_v10  ;;  %v13058_v10 = vld [vmem:[#allocation2 + $0x5c] sm:$0x1]  ;;  %v5934_v33 = vrot.slane %v13061_v60, 5 }
 0x345   : > { %6224 = vrot.lane.b32.xlu0 %v12306_v3, %s13217_s28  ;;  %v6635_v26 = vpop.permute.xlu0 %6634  ;;  %v5924_v3 = vsel %vm13357_vm2, %v5922_v7, %v5923_v5  ;;  %v6893_v37 = vsel %vm6885_vm8, %v6860_v52, %v17162_v14  ;;  %v5921_v47 = vsel %vm13357_vm2, %v12247_v58, %v5920_v62  ;;  %v5929_v32 = vrot.slane %v5927_v61, 4  ;;  %v5831_v14 = vld [vmem:[#allocation2 + $0x54] sm:$0xe] }
 0x346   : > { %v12391_v2 = vcombine.low %v5921_v47, %v5924_v3  ;;  %v6763_v59 = vsel %vm19991_vm11, %v6720_v31, %v16973_v38  ;;  %v5930_v62 = vrot.slane %v13058_v10, 5  ;;  %v12248_v56 = vrot.slane %v5831_v14, 9  ;;  %v7382_v14 = vld [vmem:[#allocation3 + $0xc] sm:$0x1]  ;;  %vm19995_vm11 = vmmov %vm19745_vm1 }
 0x347   : > { %v6633_v42 = vpop.permute.xlu1 %6632  ;;  %v6796_v44 = vsel %vm6786_vm4, %v6763_v59, %v17215_v54  ;;  %v12264_v5 = vcombine.low %v13060_v51, %v13059_v11  ;;  %v13066_v51 = vld [vmem:[#allocation2 + $0x74] sm:$0x1] }
 0x348   : > { %6656 = vrot.lane.b32.xlu1 %v12386_v36, %s13222_s29  ;;  %v6929_v63 = vsel %vm6918_vm10, %v6893_v37, %v6633_v42  ;;  %v5931_v38 = vsel %vm13357_vm2, %v5929_v32, %v5930_v62  ;;  %v5928_v54 = vsel %vm13357_vm2, %v12248_v56, %v5927_v61  ;;  %v5832_v37 = vld [vmem:[#allocation2 + $0x60] sm:$0xe]  ;;  %v13062_v42 = vld [vmem:[#allocation2 + $0x68] sm:$0x1]  ;;  %v7383_v62 = vsel %vm14684_vm13, 0, %v7382_v14 }
 0x349   : > { %6400 = vrot.lane.b32.xlu0 %v12338_v13, %s13223_s30  ;;  %v6381_v41 = vpop.permute.xlu0 %6380  ;;  %7144 = vmatmul.mubr.bf16.gmra.mrb[24].mxu1 %v6929_v63  ;;  %v12392_v36 = vcombine.low %v5928_v54, %v5931_v38  ;;  %v5937_v47 = vrot.slane %v13062_v42, 5  ;;  %v13064_v63 = vld [vmem:[#allocation2 + $0x48] sm:$0xf]  ;;  %7384 = vst [vmem:[#allocation3 + $0xc] sm:$0x1] %v7383_v62 }
 0x34a   : > { %12416 = vmatprep.mubr.msk.bf16.mxu1 %vm3041_vm9, %v12391_v2 }
 0x34b   : > { %v6379_v16 = vpop.permute.xlu1 %6378 }
 0x34c   : > { %v6829_v23 = vsel %vm6819_vm6, %v6796_v44, %v6379_v16  ;;  %v13065_v16 = vld [vmem:[#allocation2 + $0x70] sm:$0xf] }
 0x34d   : > { %6576 = vrot.lane.b32.xlu0 %v12370_v43, %s13219_s18  ;;  %v6557_v29 = vpop.permute.xlu0 %6556  ;;  %v6862_v50 = vsel %vm6852_vm7, %v6829_v23, %v17231_v9  ;;  %v5936_v43 = vrot.slane %v5934_v33, 4 }
 0x34e   : > { %v6895_v25 = vsel %vm6885_vm8, %v6862_v50, %v17004_v49 }
 0x34f   : > { %v6125_v7 = vpop.permute.xlu1 %6124  ;;  %v6932_v57 = vsel %vm6918_vm10, %v6895_v25, %v6635_v26  ;;  %v5938_v44 = vsel %vm13357_vm2, %v5936_v43, %v5937_v47  ;;  %v7430_v47 = vld [vmem:[#allocation3 + $0x14] sm:$0x1] }
 0x350   : > { %v6723_v52 = vsel %vm3041_vm9, %v12264_v5, %v6125_v7 }
 0x351   : > { %v6127_v12 = vpop.permute.xlu0 %6126  ;;  %7152 = vmatmul.mubr.bf16.gmra.mrb[28].mxu1 %v6932_v57  ;;  %v6765_v49 = vsel %vm19992_vm15, %v6723_v52, %v17256_v4  ;;  %v13063_v4 = vld [vmem:[#allocation2 + $0x4c] sm:$0xf]  ;;  %vm19996_vm15 = vmmov %vm19745_vm1 }
 0x352   : > { %12417 = vmatprep.mubr.msk.bf16.mxu1 %vm3041_vm9, %v12392_v36  ;;  %v6798_v58 = vsel %vm6786_vm4, %v6765_v49, %v17049_v28  ;;  %v12265_v2 = vcombine.low %v13064_v63, %v13063_v4  ;;  %v12249_v28 = vrot.slane %v5832_v37, 9  ;;  %v5833_v36 = vld [vmem:[#allocation2 + $0x6c] sm:$0xe] }
 0x353   : > { %v17313_v9 = vpop.permute.xlu1 %6464  ;;  %v6831_v61 = vsel %vm6819_vm6, %v6798_v58, %v6381_v41  ;;  %v5941_v41 = vrot.slane %v13065_v16, 5  ;;  %v12250_v60 = vrot.slane %v5833_v36, 9  ;;  %v13067_v58 = vld [vmem:[#allocation2 + $0x58] sm:$0xf]  ;;  %v8022_v16 = vld [vmem:[#allocation3 + $0x8] sm:$0x1] }
 0x354   : > { %v6864_v59 = vsel %vm6852_vm7, %v6831_v61, %v17212_v21  ;;  %v6726_v23 = vsel %vm3041_vm9, %v12265_v2, %v6127_v12  ;;  %v5935_v38 = vsel %vm13357_vm2, %v12249_v28, %v5934_v33  ;;  %v13069_v2 = vld [vmem:[#allocation2 + $0x7c] sm:$0xf]  ;;  %v7431_v28 = vsel %vm14724_vm3, 0, %v7430_v47 }
 0x355   : > { %v6303_v13 = vpop.permute.xlu0 %6302  ;;  %v6897_v56 = vsel %vm6885_vm8, %v6864_v59, %v6557_v29  ;;  %v12393_v7 = vcombine.low %v5935_v38, %v5938_v44  ;;  %v5943_v57 = vrot.slane %v5941_v41, 4  ;;  %v6767_v54 = vsel %vm19745_vm1, %v6726_v23, %v17227_v39  ;;  %v13068_v39 = vld [vmem:[#allocation2 + $0x54] sm:$0xf]  ;;  %7432 = vst [vmem:[#allocation3 + $0x14] sm:$0x1] %v7431_v28 }
 0x356   : > { %v6800_v12 = vsel %vm6786_vm4, %v6767_v54, %v6303_v13  ;;  %v5944_v29 = vrot.slane %v13066_v51, 5  ;;  %v12266_v61 = vcombine.low %v13068_v39, %v13067_v58  ;;  %v5942_v42 = vsel %vm13357_vm2, %v12250_v60, %v5941_v41  ;;  %v13070_v39 = vld [vmem:[#allocation2 + $0x80] sm:$0x1] }
 0x357   : > { %v17318_v26 = vpop.permute.xlu1 %6210  ;;  %v5948_v59 = vrot.slane %v13069_v2, 5  ;;  %v8491_v60 = vrot.slane %v8022_v16, 5  ;;  %v13072_v2 = vld [vmem:[#allocation2 + $0x60] sm:$0xf] }
 0x358   : > { %v5945_v33 = vsel %vm13357_vm2, %v5943_v57, %v5944_v29  ;;  %v5834_v57 = vld [vmem:[#allocation2 + $0x78] sm:$0xe] }
 0x359   : > { %v6463_v35 = vpop.permute.xlu0 %6462  ;;  %v12394_v63 = vcombine.low %v5942_v42, %v5945_v33  ;;  %v12251_v58 = vrot.slane %v5834_v57, 9 }
 0x35c   : > { %v17322_v3 = vpop.permute.xlu1 %6562 }
 0x35e   : > { %v6209_v30 = vpop.permute.xlu0 %6208 }
 0x361   : > { %v17325_v31 = vpop.permute.xlu1 %6308 }
 0x362   : > { %v6639_v32 = vpop.permute.xlu0 %6638 }
 0x365   : > { %v6637_v50 = vpop.permute.xlu1 %6636 }
 0x366   : > { %v6385_v21 = vpop.permute.xlu0 %6384  ;;  %v6935_v25 = vsel %vm6918_vm10, %v6897_v56, %v6637_v50  ;;  %v8422_v50 = vld [vmem:[#allocation3] sm:$0xe] }
 0x367   : > { %7160 = vmatmul.mubr.bf16.gmra.mrb[32].mxu1 %v6935_v25  ;;  %v8058_v25 = vshll.u32 %v8022_v16, 16  ;;  %v13073_v16 = vld [vmem:[#allocation2 + $0x88] sm:$0xf] }
 0x368   : > { %12418 = vmatprep.mubr.msk.bf16.mxu1 %vm3041_vm9, %v12393_v7 }
 0x369   : > { %v6383_v11 = vpop.permute.xlu1 %6382 }
 0x36a   : > { %v6833_v5 = vsel %vm6819_vm6, %v6800_v12, %v6383_v11  ;;  %v17343_v52 = vpop.permute.xlu0 %6560  ;;  %v12462_v12 = vrot.slane %v8422_v50, 9  ;;  %v5950_v11 = vrot.slane %v5948_v59, 4 }
 0x36b   : > { %v6866_v49 = vsel %vm6852_vm7, %v6833_v5, %v6463_v35 }
 0x36c   : > { %v6899_v43 = vsel %vm6885_vm8, %v6866_v49, %v17250_v48  ;;  %v17357_v48 = vld [vmem:[#allocation3] sm:$0xf] }
 0x36d   : > { %v6129_v13 = vpop.permute.xlu1 %6128  ;;  %v6938_v37 = vsel %vm6918_vm10, %v6899_v43, %v6639_v32  ;;  %v17359_v32 = vld [vmem:[#allocation3 + $0x4] sm:$0xf]  ;;  %v8039_v62 = vshrl.u32 %v17357_v48, 16  ;;  %v8042_v23 = vshll.u32 %v17357_v48, 16 }
 0x36e   : > { %v6729_v4 = vsel %vm3041_vm9, %v12266_v61, %v6129_v13  ;;  %v6131_v35 = vpop.permute.xlu0 %6130  ;;  %v8052_v38 = vshrl.u32 %v17359_v32, 16  ;;  %v8488_v49 = vrot.slane %v17359_v32, 5  ;;  %v5951_v61 = vrot.slane %v13070_v39, 5 }
 0x36f   : > { %v6769_v44 = vsel %vm19995_vm11, %v6729_v4, %v6209_v30  ;;  %7168 = vmatmul.mubr.bf16.gmra.mrb[36].mxu1 %v6938_v37  ;;  %v8048_v30 = vshll.u32 %v17359_v32, 16  ;;  %v8041_v54 = vrot.slane %v8039_v62, 4  ;;  %v8044_v36 = vrot.slane %v8042_v23, 5  ;;  %vm19998_vm11 = vmmov %vm19745_vm1 }
 0x370   : > { %v6802_v41 = vsel %vm6786_vm4, %v6769_v44, %v17279_v55  ;;  %12419 = vmatprep.mubr.msk.bf16.mxu1 %vm3041_vm9, %v12394_v63  ;;  %v8054_v29 = vrot.slane %v8052_v38, 4  ;;  %v8060_v13 = vrot.slane %v8058_v25, 5  ;;  %v8490_v4 = vrot.slane %v8488_v49, 4  ;;  %v13071_v63 = vld [vmem:[#allocation2 + $0x64] sm:$0xf] }
 0x371   : > { %v17366_v56 = vpop.permute.xlu1 %6468  ;;  %v6835_v55 = vsel %vm6819_vm6, %v6802_v41, %v6385_v21  ;;  %v8050_v51 = vrot.slane %v8048_v30, 5  ;;  %v8045_v5 = vor.u32 %v8044_v36, %v8041_v54  ;;  %v8489_v21 = vsel %vm13357_vm2, %v12462_v12, %v8488_v49 }
 0x372   : > { %v6307_v7 = vpop.permute.xlu0 %6306  ;;  %v6868_v42 = vsel %vm6852_vm7, %v6835_v55, %v17313_v9  ;;  %v12267_v28 = vcombine.low %v13072_v2, %v13071_v63  ;;  %v5952_v44 = vsel %vm13357_vm2, %v5950_v11, %v5951_v61  ;;  %v5955_v41 = vrot.slane %v13073_v16, 5 }
 0x373   : > { %v8055_v43 = vor.u32 %v8054_v29, %v8050_v51  ;;  %v8046_v47 = vrot.slane %v8045_v5, 4  ;;  %v5949_v23 = vsel %vm13357_vm2, %v12251_v58, %v5948_v59  ;;  %v8492_v50 = vsel %vm13357_vm2, %v8490_v4, %v8491_v60  ;;  %v13074_v5 = vld [vmem:[#allocation2 + $0x8c] sm:$0x1] }
 0x374   : > { %v6732_v30 = vsel %vm3041_vm9, %v12267_v28, %v6131_v35  ;;  %v6901_v25 = vsel %vm6885_vm8, %v6868_v42, %v17343_v52  ;;  %v12542_v54 = vcombine.low %v8489_v21, %v8492_v50  ;;  %v12395_v59 = vcombine.low %v5949_v23, %v5952_v44  ;;  %v13076_v42 = vld [vmem:[#allocation2 + $0x70] sm:$0xf] }
 0x375   : > { %v17372_v33 = vpop.permute.xlu1 %6214  ;;  %v8056_v62 = vrot.slane %v8055_v43, 4  ;;  %v8051_v9 = vsel %vm13401_vm5, %v8046_v47, %v8050_v51  ;;  %v5957_v11 = vrot.slane %v5955_v41, 4  ;;  %v6771_v35 = vsel %vm19996_vm15, %v6732_v30, %v17318_v26  ;;  %v5835_v51 = vld [vmem:[#allocation2 + $0x84] sm:$0xe]  ;;  %v13075_v26 = vld [vmem:[#allocation2 + $0x94] sm:$0xf]  ;;  %vm20005_vm15 = vmmov %vm19745_vm1 }
 0x376   : > { %v6467_v37 = vpop.permute.xlu0 %6466  ;;  %10007 = vrot.lane.b32.xlu1 %v12542_v54, %s13217_s28  ;;  %v6804_v52 = vsel %vm6786_vm4, %v6771_v35, %v6307_v7  ;;  %v5958_v49 = vrot.slane %v13074_v5, 5  ;;  %v12252_v61 = vrot.slane %v5835_v51, 9  ;;  %v13077_v47 = vld [vmem:[#allocation2 + $0x6c] sm:$0xf]  ;;  %v13080_v54 = vld [vmem:[#allocation2 + $0x98] sm:$0x1] }
 0x377   : > { %v8061_v57 = vsel %vm13401_vm5, %v8056_v62, %v8060_v13  ;;  %v5962_v13 = vrot.slane %v13075_v26, 5  ;;  %v12268_v21 = vcombine.low %v13077_v47, %v13076_v42  ;;  %v5836_v62 = vld [vmem:[#allocation2 + $0x90] sm:$0xe]  ;;  %v20000_v42 = vld [vmem:[#allocation33_spill] sm:$0xff] }
 0x378   : > { %v12526_v55 = vcombine.low %v8051_v9, %v8061_v57  ;;  %v5959_v43 = vsel %vm13357_vm2, %v5957_v11, %v5958_v49  ;;  %v5956_v2 = vsel %vm13357_vm2, %v12252_v61, %v5955_v41  ;;  %v7385_v9 = vld [vmem:[#allocation3 + $0x18] sm:$0x1]  ;;  %v19997_v11 = vld [vmem:[#allocation19_spill] sm:$0xff] }
 0x379   : > { %v6641_v38 = vpop.permute.xlu1 %6640  ;;  %v12396_v44 = vcombine.low %v5956_v2, %v5959_v43  ;;  %v5964_v23 = vrot.slane %v5962_v13, 4  ;;  %v13084_v2 = vld [vmem:[#allocation2 + $0x84] sm:$0xf] }
 0x37a   : > { %v6213_v36 = vpop.permute.xlu0 %6212  ;;  %v6941_v12 = vsel %vm6918_vm10, %v6901_v25, %v6641_v38  ;;  %9927 = vrot.lane.b32.xlu0 %v12526_v55, %s13214_s20  ;;  %v13078_v38 = vld [vmem:[#allocation2 + $0x7c] sm:$0xf]  ;;  %v13079_v25 = vld [vmem:[#allocation2 + $0x78] sm:$0xf] }
 0x37b   : > { %7176 = vmatmul.mubr.bf16.gmra.mrb[40].mxu1 %v6941_v12  ;;  %v12269_v57 = vcombine.low %v13079_v25, %v13078_v38  ;;  %v13085_v38 = vld [vmem:[#allocation2 + $0xac] sm:$0xf] }
 0x37c   : > { %12420 = vmatprep.mubr.msk.bf16.mxu1 %vm3041_vm9, %v12395_v59  ;;  %v5976_v25 = vrot.slane %v13085_v38, 5 }
 0x37d   : > { %v6387_v29 = vpop.permute.xlu1 %6386 }
 0x37e   : > { %v6837_v60 = vsel %vm6819_vm6, %v6804_v52, %v6387_v29  ;;  %v6643_v58 = vpop.permute.xlu0 %6642  ;;  %v5837_v52 = vld [vmem:[#allocation2 + $0x9c] sm:$0xe]  ;;  %v13081_v29 = vld [vmem:[#allocation2 + $0xa0] sm:$0xf] }
 0x37f   : > { %v6870_v39 = vsel %vm6852_vm7, %v6837_v60, %v6467_v37  ;;  %v5969_v5 = vrot.slane %v13081_v29, 5  ;;  %v19999_v60 = vld [vmem:[#allocation12_spill] sm:$0xff] }
 0x380   : > { %v6903_v7 = vsel %vm6885_vm8, %v6870_v39, %v17322_v3  ;;  %v7386_v3 = vsel %vm14684_vm13, 0, %v7385_v9  ;;  %v7433_v9 = vld [vmem:[#allocation3 + $0x20] sm:$0x1] }
 0x381   : > { %v6133_v4 = vpop.permute.xlu1 %6132  ;;  %v6944_v63 = vsel %vm6918_vm10, %v6903_v7, %v6643_v58  ;;  %7387 = vst [vmem:[#allocation3 + $0x18] sm:$0x1] %v7386_v3  ;;  %v5971_v7 = vrot.slane %v5969_v5, 4 }
 0x382   : > { %v6735_v37 = vsel %vm3041_vm9, %v12268_v21, %v6133_v4  ;;  %v6389_v28 = vpop.permute.xlu0 %6388  ;;  %v12254_v21 = vrot.slane %v5837_v52, 9 }
 0x383   : > { %v6773_v16 = vsel %vm19745_vm1, %v6735_v37, %v6213_v36  ;;  %7184 = vmatmul.mubr.bf16.gmra.mrb[44].mxu1 %v6944_v63  ;;  %v5965_v36 = vrot.slane %v13080_v54, 5  ;;  %v13083_v63 = vld [vmem:[#allocation2 + $0x88] sm:$0xf] }
 0x384   : > { %v6806_v50 = vsel %vm6786_vm4, %v6773_v16, %v17325_v31  ;;  %12421 = vmatprep.mubr.msk.bf16.mxu1 %vm3041_vm9, %v12396_v44  ;;  %v12253_v31 = vrot.slane %v5836_v62, 9  ;;  %v12270_v37 = vcombine.low %v13084_v2, %v13083_v63  ;;  %v5838_v54 = vld [vmem:[#allocation2 + $0xa8] sm:$0xe] }
 0x385   : > { %v6839_v41 = vsel %vm6819_vm6, %v6806_v50, %v6389_v28  ;;  %v17415_v30 = vpop.permute.xlu1 %6218  ;;  %v5966_v51 = vsel %vm13357_vm2, %v5964_v23, %v5965_v36  ;;  %v20001_v28 = vld [vmem:[#allocation29_spill] sm:$0xff]  ;;  %v5970_v23 = vsel %vm13357_vm2, %v12254_v21, %v5969_v5  ;;  %v20003_v50 = vld [vmem:[#allocation24_spill] sm:$0xff]  ;;  %v12255_v29 = vrot.slane %v5838_v54, 9 }
 0x386   : > { %v6872_v12 = vsel %vm6852_vm7, %v6839_v41, %v17366_v56  ;;  %v6135_v59 = vpop.permute.xlu0 %6134  ;;  %v5963_v39 = vsel %vm13357_vm2, %v12253_v31, %v5962_v13  ;;  %v7388_v36 = vld [vmem:[#allocation3 + $0x24] sm:$0x1]  ;;  %v5978_v5 = vrot.slane %v5976_v25, 4 }
 0x387   : > { %v6738_v55 = vsel %vm3041_vm9, %v12269_v57, %v6135_v59  ;;  %v6905_v35 = vsel %vm6885_vm8, %v6872_v12, %v19997_v11  ;;  %v12397_v26 = vcombine.low %v5963_v39, %v5966_v51  ;;  %v7434_v57 = vsel %vm14724_vm3, 0, %v7433_v9  ;;  %v20004_v12 = vld [vmem:[#allocation30_spill] sm:$0xff] }
 0x388   : > { %v6775_v49 = vsel %vm19998_vm11, %v6738_v55, %v17372_v33  ;;  %v6947_v43 = vsel %vm6918_vm10, %v6905_v35, %v16821_v24  ;;  %v13082_v33 = vld [vmem:[#allocation2 + $0xa4] sm:$0x1]  ;;  %7435 = vst [vmem:[#allocation3 + $0x20] sm:$0x1] %v7434_v57  ;;  %v7389_v55 = vsel %vm14684_vm13, 0, %v7388_v36  ;;  %v20006_v35 = vld [vmem:[#allocation34_spill] sm:$0xff]  ;;  %v5977_v63 = vsel %vm13357_vm2, %v12255_v29, %v5976_v25  ;;  %vm20010_vm11 = vmmov %vm19745_vm1 }
 0x389   : > { %v6808_v58 = vsel %vm6786_vm4, %v6775_v49, %v19999_v60  ;;  %v17428_v56 = vpop.permute.xlu1 %6394  ;;  %v5972_v4 = vrot.slane %v13082_v33, 5  ;;  %v20002_v24 = vld [vmem:[#allocation37_spill] sm:$0xff]  ;;  %7390 = vst [vmem:[#allocation3 + $0x24] sm:$0x1] %v7389_v55  ;;  %v13086_v49 = vld [vmem:[#allocation2 + $0xb0] sm:$0x1] }
 0x38a   : > { %v6139_v61 = vpop.permute.xlu0 %6138  ;;  %v6841_v47 = vsel %vm6819_vm6, %v6808_v58, %v20000_v42  ;;  %v6741_v16 = vsel %vm3041_vm9, %v12270_v37, %v20002_v24  ;;  %v5979_v60 = vrot.slane %v13086_v49, 5  ;;  %v20007_v58 = vld [vmem:[#allocation27_spill] sm:$0xff]  ;;  %v20008_v24 = vld [vmem:[#allocation28_spill] sm:$0xff] }
 0x38b   : > { %7192 = vmatmul.mubr.bf16.gmra.mrb[48].mxu1 %v6947_v43  ;;  %v6874_v13 = vsel %vm6852_vm7, %v6841_v47, %v20001_v28  ;;  %v5973_v41 = vsel %vm13357_vm2, %v5971_v7, %v5972_v4  ;;  %v6777_v59 = vsel %vm20005_vm15, %v6741_v16, %v20004_v12  ;;  %v13087_v43 = vld [vmem:[#allocation2 + $0x94] sm:$0xf]  ;;  %v7436_v4 = vld [vmem:[#allocation3 + $0x2c] sm:$0x1]  ;;  %v13089_v37 = vld [vmem:[#allocation2 + $0xb8] sm:$0xf] }
 0x38c   : > { %12422 = vmatprep.mubr.msk.bf16.mxu1 %vm3041_vm9, %v12397_v26  ;;  %v6907_v3 = vsel %vm6885_vm8, %v6874_v13, %v20003_v50  ;;  %v12398_v52 = vcombine.low %v5970_v23, %v5973_v41  ;;  %v6810_v39 = vsel %vm6786_vm4, %v6777_v59, %v20007_v58  ;;  %v13088_v26 = vld [vmem:[#allocation2 + $0x90] sm:$0xf]  ;;  %v5980_v2 = vsel %vm13357_vm2, %v5978_v5, %v5979_v60  ;;  %v20009_v23 = vld [vmem:[#allocation64_spill] sm:$0xff]  ;;  %vm20011_vm15 = vmmov %vm19745_vm1 }
 0x38d   : > { %v17439_v44 = vpop.permute.xlu1 %6570  ;;  %v6950_v51 = vsel %vm6918_vm10, %v6907_v3, %v20006_v35  ;;  %v12271_v42 = vcombine.low %v13088_v26, %v13087_v43  ;;  %v6843_v47 = vsel %vm6819_vm6, %v6810_v39, %v16952_v22  ;;  %v5983_v28 = vrot.slane %v13089_v37, 5  ;;  %v5839_v22 = vld [vmem:[#allocation2 + $0xb4] sm:$0xe]  ;;  %v13090_v36 = vld [vmem:[#allocation2 + $0xbc] sm:$0x1] }
 0x38e   : > { %v6315_v62 = vpop.permute.xlu0 %6314  ;;  %v7437_v13 = vsel %vm14724_vm3, 0, %v7436_v4  ;;  %v6876_v16 = vsel %vm6852_vm7, %v6843_v47, %v20008_v24  ;;  %v12399_v25 = vcombine.low %v5977_v63, %v5980_v2  ;;  %v12256_v57 = vrot.slane %v5839_v22, 9  ;;  %v13091_v59 = vld [vmem:[#allocation2 + $0x9c] sm:$0xf]  ;;  %v13092_v55 = vld [vmem:[#allocation2 + $0xa0] sm:$0xf] }
 0x38f   : > { %v6744_v7 = vsel %vm3041_vm9, %v12271_v42, %v6139_v61  ;;  %7438 = vst [vmem:[#allocation3 + $0x2c] sm:$0x1] %v7437_v13  ;;  %v6909_v61 = vsel %vm6885_vm8, %v6876_v16, %v20009_v23  ;;  %v5985_v54 = vrot.slane %v5983_v28, 4  ;;  %v5986_v12 = vrot.slane %v13090_v36, 5  ;;  %v7391_v26 = vld [vmem:[#allocation3 + $0x30] sm:$0x1] }
 0x390   : > { %v6779_v9 = vsel %vm19745_vm1, %v6744_v7, %v17415_v30  ;;  %v6953_v38 = vsel %vm6918_vm10, %v6909_v61, %v17177_v46  ;;  %v12272_v35 = vcombine.low %v13091_v59, %v13092_v55  ;;  %v5984_v5 = vsel %vm13357_vm2, %v12256_v57, %v5983_v28  ;;  %v7394_v22 = vld [vmem:[#allocation3 + $0x3c] sm:$0x1]  ;;  %v7397_v36 = vld [vmem:[#allocation3 + $0x48] sm:$0x1]  ;;  %v7445_v59 = vld [vmem:[#allocation3 + $0x50] sm:$0x1] }
 0x391   : > { %v6141_v31 = vpop.permute.xlu1 %6140  ;;  %v6812_v3 = vsel %vm6786_vm4, %v6779_v9, %v6315_v62  ;;  %v5987_v49 = vsel %vm13357_vm2, %v5985_v54, %v5986_v12  ;;  %v7392_v42 = vsel %vm14684_vm13, 0, %v7391_v26  ;;  %v7440_v16 = vsel %vm14724_vm3, 0, %v7439_v27 }
 0x392   : > { %v6475_v11 = vpop.permute.xlu0 %6474  ;;  %v6845_v30 = vsel %vm6819_vm6, %v6812_v3, %v17428_v56  ;;  %v6747_v62 = vsel %vm3041_vm9, %v12272_v35, %v6141_v31  ;;  %v12400_v43 = vcombine.low %v5984_v5, %v5987_v49  ;;  %7393 = vst [vmem:[#allocation3 + $0x30] sm:$0x1] %v7392_v42  ;;  %7441 = vst [vmem:[#allocation3 + $0x38] sm:$0x1] %v7440_v16  ;;  %v7395_v23 = vsel %vm14684_vm13, 0, %v7394_v22 }
 0x393   : > { %7200 = vmatmul.mubr.bf16.gmra.mrb[52].mxu1 %v6950_v51  ;;  %7396 = vst [vmem:[#allocation3 + $0x3c] sm:$0x1] %v7395_v23  ;;  %v7442_v3 = vld [vmem:[#allocation3 + $0x44] sm:$0x1]  ;;  %v7398_v12 = vsel %vm14684_vm13, 0, %v7397_v36  ;;  %v7446_v55 = vsel %vm14724_vm3, 0, %v7445_v59 }
 0x394   : > { %12423 = vmatprep.mubr.msk.bf16.mxu1 %vm3041_vm9, %v12398_v52  ;;  %v6878_v52 = vsel %vm6852_vm7, %v6845_v30, %v6475_v11  ;;  %7399 = vst [vmem:[#allocation3 + $0x48] sm:$0x1] %v7398_v12  ;;  %7447 = vst [vmem:[#allocation3 + $0x50] sm:$0x1] %v7446_v55  ;;  %v7400_v35 = vld [vmem:[#allocation3 + $0x54] sm:$0x1] }
 0x395   : > { %v6317_v21 = vpop.permute.xlu1 %6316  ;;  %v6911_v58 = vsel %vm6885_vm8, %v6878_v52, %v17439_v44  ;;  %v7401_v30 = vsel %vm14684_vm13, 0, %v7400_v35  ;;  %v17544_v52 = vld [vmem:[%s19619_s5] ss:$0 sm:$0xff]  ;;  %v7403_v42 = vld [vmem:[#allocation3 + $0x60] sm:$0x1] }
 0x396   : > { %v6651_v33 = vpop.permute.xlu0 %6650  ;;  %7402 = vst [vmem:[#allocation3 + $0x54] sm:$0x1] %v7401_v30  ;;  %v7454_v35 = vld [vmem:[#allocation3 + $0x74] sm:$0x1] }
 0x397   : > { %v6956_v31 = vsel %vm6918_vm10, %v6911_v58, %v6651_v33 }
 0x399   : > { %v6477_v50 = vpop.permute.xlu1 %6476 }
 0x39b   : > { %v6221_v41 = vpop.permute.xlu0 %6220  ;;  %7208 = vmatmul.mubr.bf16.gmra.mrb[56].mxu1 %v6953_v38  ;;  %v7443_v38 = vsel %vm14724_vm3, 0, %v7442_v3 }
 0x39c   : > { %12424 = vmatprep.mubr.msk.bf16.mxu1 %vm3041_vm9, %v12399_v25  ;;  %v6781_v29 = vsel %vm20010_vm11, %v6747_v62, %v6221_v41  ;;  %7444 = vst [vmem:[#allocation3 + $0x44] sm:$0x1] %v7443_v38  ;;  %vm20015_vm11 = vmmov %vm19745_vm1 }
 0x39d   : > { %v6653_v51 = vpop.permute.xlu1 %6652  ;;  %v6814_v56 = vsel %vm6786_vm4, %v6781_v29, %v6317_v21  ;;  %v17549_v29 = vld [vmem:[%s19620_s6] ss:$0 sm:$0xff] }
 0x39f   : > { %v6397_v46 = vpop.permute.xlu0 %6396 }
 0x3a0   : > { %v6847_v11 = vsel %vm6819_vm6, %v6814_v56, %v6397_v46 }
 0x3a1   : > { %v6223_v60 = vpop.permute.xlu1 %6222  ;;  %v6880_v7 = vsel %vm6852_vm7, %v6847_v11, %v6477_v50 }
 0x3a3   : > { %v6573_v39 = vpop.permute.xlu0 %6572  ;;  %7216 = vmatmul.mubr.bf16.gmra.mrb[60].mxu1 %v6956_v31 }
 0x3a4   : > { %12425 = vmatprep.mubr.msk.bf16.mxu1 %vm3041_vm9, %v12400_v43  ;;  %v6913_v21 = vsel %vm6885_vm8, %v6880_v7, %v6573_v39 }
 0x3a5   : > { %v6399_v47 = vpop.permute.xlu1 %6398  ;;  %v6959_v37 = vsel %vm6918_vm10, %v6913_v21, %v6653_v51  ;;  %v7448_v51 = vld [vmem:[#allocation3 + $0x5c] sm:$0x1] }
 0x3a6   : > { %v7449_v62 = vsel %vm14724_vm3, 0, %v7448_v51  ;;  %v7409_v51 = vld [vmem:[#allocation3 + $0x78] sm:$0x1] }
 0x3a7   : > { %v6143_v44 = vpop.permute.xlu0 %6142  ;;  %7450 = vst [vmem:[#allocation3 + $0x5c] sm:$0x1] %v7449_v62 }
 0x3a8   : > { %v6750_v33 = vsel %vm3041_vm9, %v12273_v18, %v6143_v44 }
 0x3a9   : > { %v6783_v63 = vsel %vm20011_vm15, %v6750_v33, %v6223_v60 }
 0x3aa   : > { %v6575_v4 = vpop.permute.xlu1 %6574 }
 0x3ab   : > { %v6319_v2 = vpop.permute.xlu0 %6318  ;;  %7224 = vmatmul.mubr.bf16.gmra.mrb[64].mxu1 %v6959_v37 }
 0x3ac   : > { %v6816_v28 = vsel %vm6786_vm4, %v6783_v63, %v6319_v2  ;;  %12426 = vmatprep.mubr.msk.bf16.mxu1 %vm3041_vm9, %v12401_v0  ;;  %v7878_v63 = vld [vmem:[#allocation3 + $0xc] sm:$0xf] }
 0x3ad   : > { %v6849_v24 = vsel %vm6819_vm6, %v6816_v28, %v6399_v47  ;;  %v7404_v47 = vsel %vm14684_vm13, 0, %v7403_v42 }
 0x3ae   : > { %v6145_v13 = vpop.permute.xlu1 %6144  ;;  %7405 = vst [vmem:[#allocation3 + $0x60] sm:$0x1] %v7404_v47 }
 0x3af   : > { %v6479_v40 = vpop.permute.xlu0 %6478  ;;  %v6753_v9 = vsel %vm3041_vm9, %v12274_v45, %v6145_v13  ;;  %v7451_v13 = vld [vmem:[#allocation3 + $0x68] sm:$0x1] }
 0x3b0   : > { %v6882_v18 = vsel %vm6852_vm7, %v6849_v24, %v6479_v40  ;;  %v7882_v24 = vld [vmem:[#allocation3 + $0x14] sm:$0x1]  ;;  %v7452_v40 = vsel %vm14724_vm3, 0, %v7451_v13 }
 0x3b1   : > { %v6915_v1 = vsel %vm6885_vm8, %v6882_v18, %v6575_v4  ;;  %7453 = vst [vmem:[#allocation3 + $0x68] sm:$0x1] %v7452_v40 }
 0x3b2   : > { %v6321_v15 = vpop.permute.xlu1 %6320 }
 0x3b3   : > { %v6655_v61 = vpop.permute.xlu0 %6654 }
 0x3b4   : > { %v6962_v0 = vsel %vm6918_vm10, %v6915_v1, %v6655_v61 }
 0x3b5   : > { %7232 = vmatmul.mubr.bf16.gmra.mrb[68].mxu1 %v6962_v0  ;;  %v7406_v0 = vld [vmem:[#allocation3 + $0x6c] sm:$0x1] }
 0x3b6   : > { %12427 = vmatprep.mubr.msk.bf16.mxu1 %vm3041_vm9, %v12402_v20  ;;  %v6481_v25 = vpop.permute.xlu1 %6480 }
 0x3b7   : > { %v6225_v50 = vpop.permute.xlu0 %6224 }
 0x3b8   : > { %v6785_v41 = vsel %vm19745_vm1, %v6753_v9, %v6225_v50  ;;  %v7407_v9 = vsel %vm14684_vm13, 0, %v7406_v0 }
 0x3b9   : > { %v6818_v57 = vsel %vm6786_vm4, %v6785_v41, %v6321_v15  ;;  %7408 = vst [vmem:[#allocation3 + $0x6c] sm:$0x1] %v7407_v9 }
 0x3ba   : > { %v6657_v6 = vpop.permute.xlu1 %6656 }
 0x3bb   : > { %v6401_v54 = vpop.permute.xlu0 %6400 }
 0x3bc   : > { %v6851_v34 = vsel %vm6819_vm6, %v6818_v57, %v6401_v54 }
 0x3bd   : > { %v6884_v20 = vsel %vm6852_vm7, %v6851_v34, %v6481_v25 }
 0x3bf   : > { %v6577_v53 = vpop.permute.xlu0 %6576 }
 0x3c0   : > { %v6917_v8 = vsel %vm6885_vm8, %v6884_v20, %v6577_v53 }
 0x3c1   : > { %v6965_v45 = vsel %vm6918_vm10, %v6917_v8, %v6657_v6 }
 0x3c2   : > { %7240 = vmatmul.mubr.bf16.gmra.mrb[72].mxu1 %v6965_v45 }
 0x3db   : > { %v7121_v46 = vpop.f32.mrb[12].mxu1 }
 0x3dc   : > { %v7255_v5 = vmul.f32 %v17544_v52, %v7121_v46  ;;  %v7123_v49 = vpop.f32.mrb[13].mxu1 }
 0x3dd   : > { %v7124_v60 = vpop.f32.mrb[14].mxu1 }
 0x3de   : > { %v7294_v58 = vadd.f32 %v17549_v29, %v7255_v5  ;;  %v7256_v56 = vmul.f32 %v17544_v52, %v7124_v60  ;;  %v7126_v39 = vpop.f32.mrb[15].mxu1 }
 0x3e0   : > { %v7326_v31 = vmax.f32 %v7294_v58, 0.0  ;;  %v7295_v43 = vadd.f32 %v17549_v29, %v7256_v56  ;;  %v7455_v58 = vsel %vm14724_vm3, 0, %v7454_v35 }
 0x3e1   : > { %7456 = vst [vmem:[#allocation3 + $0x74] sm:$0x1] %v7455_v58  ;;  %v7889_v58 = vld [vmem:[#allocation3 + $0x20] sm:$0x1] }
 0x3e2   : > { %v12716_v11 = vpack.c.bf16 %v7326_v31, %v7326_v31  ;;  %v7327_v26 = vmax.f32 %v7295_v43, 0.0  ;;  %v7410_v43 = vsel %vm14684_vm13, 0, %v7409_v51 }
 0x3e3   : > { %7411 = vst [vmem:[#allocation3 + $0x78] sm:$0x1] %v7410_v43 }
 0x3e4   : > { %v7559_v7 = vshrl.u32 %v12716_v11, 16  ;;  %v12717_v44 = vpack.c.bf16 %v7327_v26, %v7327_v26  ;;  %v7562_v33 = vshll.u32 %v12716_v11, 16 }
 0x3e6   : > { %v7561_v21 = vrot.slane %v7559_v7, 7  ;;  %v7567_v4 = vshrl.u32 %v12717_v44, 16  ;;  %v7570_v28 = vshll.u32 %v12717_v44, 16 }
 0x3e8   : > { %v7564_v2 = vor.u32 %v7562_v33, %v7561_v21  ;;  %v7569_v37 = vrot.slane %v7567_v4, 7  ;;  %v7565_v27 = vrot.slane %v7561_v21, 4 }
 0x3ea   : > { %v7879_v16 = vsel %vm14842_vm12, %v7564_v2, %v7878_v63  ;;  %v7572_v22 = vor.u32 %v7570_v28, %v7569_v37  ;;  %v7574_v23 = vrot.slane %v7569_v37, 4 }
 0x3eb   : > { %7880 = vst [vmem:[#allocation3 + $0xc] sm:$0xf] %v7879_v16 }
 0x3ec   : > { %v7573_v1 = vsel %vm14847_vm14, %v7565_v27, %v7572_v22  ;;  %v7883_v15 = vsel %vm14684_vm13, %v7574_v23, %v7882_v24 }
 0x3ed   : > { %7881 = vst.msk [vmem:[#allocation3 + $0x10] sm:$0xf] %vm3550_vm0, %v7573_v1  ;;  %7884 = vst [vmem:[#allocation3 + $0x14] sm:$0x1] %v7883_v15  ;;  %v7457_v15 = vld [vmem:[#allocation3 + $0x80] sm:$0x1] }
 0x3f2   : > { %v8598_v50 = vld [vmem:[#allocation3 + $0xc] sm:$0xf] }
 0x3f3   : > { %v9030_v57 = vld [vmem:[#allocation3 + $0xc] sm:$0xe]  ;;  %v8647_v11 = vshrl.u32 %v8598_v50, 16  ;;  %v8650_v44 = vshll.u32 %v8598_v50, 16 }
 0x3f4   : > { %v8599_v3 = vld [vmem:[#allocation3 + $0x10] sm:$0xf]  ;;  %v17570_v25 = vld [vmem:[#allocation3 + $0x14] sm:$0x1]  ;;  %v12478_v20 = vrot.slane %v9030_v57, 9 }
 0x3f5   : > { %v17568_v41 = vld [vmem:[#allocation3 + $0x10] sm:$0xf]  ;;  %v12558_v38 = vcombine.low %v8598_v50, %v8599_v3  ;;  %v9096_v54 = vrot.slane %v8599_v3, 5  ;;  %v17574_v6 = vld [vmem:[#allocation3 + $0x14] sm:$0x1]  ;;  %v9099_v8 = vrot.slane %v17570_v25, 5 }
 0x3f6   : > { %v8495_v34 = vrot.slane %v17568_v41, 5  ;;  %v8423_v36 = vld [vmem:[#allocation3 + $0xc] sm:$0xe]  ;;  %v8498_v55 = vrot.slane %v17574_v6, 5  ;;  %v8660_v21 = vshrl.u32 %v8599_v3, 16  ;;  %v8656_v33 = vshll.u32 %v8599_v3, 16 }
 0x3f7   : > { %10103 = vrot.lane.b32.xlu0 %v12558_v38, %s13220_s21  ;;  %v9098_v53 = vrot.slane %v9096_v54, 4  ;;  %v9097_v12 = vsel %vm13357_vm2, %v12478_v20, %v9096_v54  ;;  %v12463_v46 = vrot.slane %v8423_v36, 9  ;;  %v7992_v31 = vld [vmem:[#allocation3 + $0xc] sm:$0xf]  ;;  %v8072_v28 = vshll.u32 %v17568_v41, 16 }
 0x3f8   : > { %v8497_v45 = vrot.slane %v8495_v34, 4  ;;  %v8063_v2 = vshrl.u32 %v7992_v31, 16  ;;  %v8066_v37 = vshll.u32 %v7992_v31, 16  ;;  %v8076_v13 = vshrl.u32 %v17568_v41, 16 }
 0x3f9   : > { %v9100_v59 = vsel %vm13357_vm2, %v9098_v53, %v9099_v8  ;;  %v8496_v39 = vsel %vm13357_vm2, %v12463_v46, %v8495_v34  ;;  %v8649_v24 = vrot.slane %v8647_v11, 4  ;;  %v8652_v16 = vrot.slane %v8650_v44, 5 }
 0x3fa   : > { %v12590_v30 = vcombine.low %v9097_v12, %v9100_v59  ;;  %v8499_v5 = vsel %vm13357_vm2, %v8497_v45, %v8498_v55  ;;  %v17598_v23 = vrot.slane %v8656_v33, 5  ;;  %v8662_v1 = vrot.slane %v8660_v21, 4  ;;  %v7885_v59 = vld [vmem:[#allocation3 + $0x18] sm:$0xf] }
 0x3fb   : > { %v12543_v7 = vcombine.low %v8496_v39, %v8499_v5  ;;  %v8065_v38 = vrot.slane %v8063_v2, 4  ;;  %v8068_v54 = vrot.slane %v8066_v37, 5  ;;  %v17601_v34 = vrot.slane %v8072_v28, 5 }
 0x3fc   : > { %10263 = vrot.lane.b32.xlu0 %v12590_v30, %s13221_s27  ;;  %v8078_v41 = vrot.slane %v8076_v13, 4  ;;  %v7458_v20 = vsel %vm14724_vm3, 0, %v7457_v15  ;;  %v8653_v35 = vor.u32 %v8652_v16, %v8649_v24  ;;  %v8663_v30 = vor.u32 %v8662_v1, %v17598_v23 }
 0x3fd   : > { %v7129_v62 = vpop.f32.mrb[16].mxu1  ;;  %7459 = vst [vmem:[#allocation3 + $0x80] sm:$0x1] %v7458_v20  ;;  %v8666_v51 = vshll.u32 %v17570_v25, 16  ;;  %v8069_v39 = vor.u32 %v8068_v54, %v8065_v38  ;;  %v7896_v38 = vld [vmem:[#allocation3 + $0x2c] sm:$0x1] }
 0x3fe   : > { %v7257_v49 = vmul.f32 %v17544_v52, %v7129_v62  ;;  %v7131_v60 = vpop.f32.mrb[17].mxu1  ;;  %v8079_v31 = vor.u32 %v8078_v41, %v17601_v34  ;;  %v8664_v25 = vrot.slane %v8663_v30, 4 }
 0x3ff   : > { %v7132_v56 = vpop.f32.mrb[18].mxu1  ;;  %v8668_v2 = vrot.slane %v8666_v51, 5  ;;  %v8070_v24 = vrot.slane %v8069_v39, 4 }
 0x400   : > { %v7296_v26 = vadd.f32 %v17549_v29, %v7257_v49  ;;  %v7258_v42 = vmul.f32 %v17544_v52, %v7132_v56  ;;  %v7134_v47 = vpop.f32.mrb[19].mxu1  ;;  %10009 = vrot.lane.b32.xlu0 %v12543_v7, %s13217_s28  ;;  %v8082_v7 = vshll.u32 %v17574_v6, 16  ;;  %v8080_v37 = vrot.slane %v8079_v31, 4 }
 0x401   : > { %v8669_v16 = vsel %vm13401_vm5, %v8664_v25, %v8668_v2 }
 0x402   : > { %v7328_v4 = vmax.f32 %v7296_v26, 0.0  ;;  %v7297_v63 = vadd.f32 %v17549_v29, %v7258_v42 }
 0x404   : > { %v12718_v40 = vpack.c.bf16 %v7328_v4, %v7328_v4  ;;  %v7329_v27 = vmax.f32 %v7297_v63, 0.0  ;;  %v8654_v4 = vrot.slane %v8653_v35, 4 }
 0x405   : > { %v7137_v22 = vpop.f32.mrb[20].mxu1 }
 0x406   : > { %v7576_v0 = vshrl.u32 %v12718_v40, 16  ;;  %v12719_v9 = vpack.c.bf16 %v7329_v27, %v7329_v27  ;;  %v7259_v50 = vmul.f32 %v17544_v52, %v7137_v22  ;;  %v7139_v3 = vpop.f32.mrb[21].mxu1  ;;  %v7579_v8 = vshll.u32 %v12718_v40, 16  ;;  %v7412_v40 = vld [vmem:[#allocation3 + $0x84] sm:$0x1] }
 0x407   : > { %v7140_v57 = vpop.f32.mrb[22].mxu1  ;;  %v7892_v27 = vld [vmem:[#allocation3 + $0x24] sm:$0xf]  ;;  %v8084_v22 = vrot.slane %v8082_v7, 5  ;;  %v7413_v1 = vsel %vm14684_vm13, 0, %v7412_v40 }
 0x408   : > { %v7578_v53 = vrot.slane %v7576_v0, 7  ;;  %v7584_v45 = vshrl.u32 %v12719_v9, 16  ;;  %v7298_v36 = vadd.f32 %v17549_v29, %v7259_v50  ;;  %v7142_v12 = vpop.f32.mrb[23].mxu1  ;;  %v7260_v55 = vmul.f32 %v17544_v52, %v7140_v57  ;;  %7414 = vst [vmem:[#allocation3 + $0x84] sm:$0x1] %v7413_v1 }
 0x409   : > { %v7587_v5 = vshll.u32 %v12719_v9, 16  ;;  %v8659_v0 = vsel %vm13401_vm5, %v8654_v4, %v17598_v23  ;;  %v8085_v57 = vsel %vm13401_vm5, %v8080_v37, %v8084_v22  ;;  %v8075_v23 = vsel %vm13401_vm5, %v8070_v24, %v17601_v34 }
 0x40a   : > { %v7581_v62 = vor.u32 %v7579_v8, %v7578_v53  ;;  %v7586_v46 = vrot.slane %v7584_v45, 7  ;;  %v7330_v49 = vmax.f32 %v7298_v36, 0.0  ;;  %v7582_v60 = vrot.slane %v7578_v53, 4 }
 0x40b   : > { %v7299_v56 = vadd.f32 %v17549_v29, %v7260_v55  ;;  %v17630_v8 = vcombine.low %v8659_v0, %v8669_v16 }
 0x40c   : > { %v7886_v43 = vsel %vm14842_vm12, %v7581_v62, %v7885_v59  ;;  %v7589_v11 = vor.u32 %v7587_v5, %v7586_v46  ;;  %v7591_v26 = vrot.slane %v7586_v46, 4  ;;  %v12720_v42 = vpack.c.bf16 %v7330_v49, %v7330_v49 }
 0x40d   : > { %7887 = vst [vmem:[#allocation3 + $0x18] sm:$0xf] %v7886_v43  ;;  %v7331_v47 = vmax.f32 %v7299_v56, 0.0  ;;  %v17639_v46 = vcombine.low %v8075_v23, %v8085_v57  ;;  %v12510_v5 = vcombine.low %v17357_v48, %v17359_v32 }
 0x40e   : > { %v7590_v44 = vsel %vm14847_vm14, %v7582_v60, %v7589_v11  ;;  %v7890_v21 = vsel %vm14684_vm13, %v7591_v26, %v7889_v58  ;;  %v7593_v33 = vshrl.u32 %v12720_v42, 16  ;;  %v7596_v13 = vshll.u32 %v12720_v42, 16 }
 0x40f   : > { %7888 = vst.msk [vmem:[#allocation3 + $0x1c] sm:$0xf] %vm3550_vm0, %v7590_v44  ;;  %7891 = vst [vmem:[#allocation3 + $0x20] sm:$0x1] %v7890_v21  ;;  %v12721_v63 = vpack.c.bf16 %v7331_v47, %v7331_v47 }
 0x410   : > { %v7595_v28 = vrot.slane %v7593_v33, 7 }
 0x411   : > { %v7601_v6 = vshrl.u32 %v12721_v63, 16  ;;  %v7604_v3 = vshll.u32 %v12721_v63, 16 }
 0x412   : > { %v7598_v15 = vor.u32 %v7596_v13, %v7595_v28  ;;  %v7599_v9 = vrot.slane %v7595_v28, 4 }
 0x413   : > { %v7603_v50 = vrot.slane %v7601_v6, 7 }
 0x414   : > { %v7893_v54 = vsel %vm14842_vm12, %v7598_v15, %v7892_v27  ;;  %v9207_v41 = vld [vmem:[#allocation3 + $0x18] sm:$0xf] }
 0x415   : > { %v8600_v20 = vld [vmem:[#allocation3 + $0x18] sm:$0xf]  ;;  %7894 = vst [vmem:[#allocation3 + $0x24] sm:$0xf] %v7893_v54  ;;  %v7606_v45 = vor.u32 %v7604_v3, %v7603_v50  ;;  %v7608_v36 = vrot.slane %v7603_v50, 4  ;;  %v9256_v12 = vshrl.u32 %v9207_v41, 16 }
 0x416   : > { %v9639_v53 = vld [vmem:[#allocation3 + $0x18] sm:$0xe]  ;;  %v9259_v59 = vshll.u32 %v9207_v41, 16  ;;  %v17635_v35 = vld [vmem:[#allocation3 + $0x1c] sm:$0xf]  ;;  %v8671_v51 = vshrl.u32 %v8600_v20, 16 }
 0x417   : > { %v9031_v55 = vld [vmem:[#allocation3 + $0x18] sm:$0xe]  ;;  %v17637_v30 = vld [vmem:[#allocation3 + $0x1c] sm:$0xf]  ;;  %v8674_v62 = vshll.u32 %v8600_v20, 16  ;;  %v7607_v34 = vsel %vm14847_vm14, %v7599_v9, %v7606_v45  ;;  %v7897_v49 = vsel %vm14684_vm13, %v7608_v36, %v7896_v38  ;;  %v9258_v60 = vrot.slane %v9256_v12, 4 }
 0x418   : > { %v9261_v58 = vrot.slane %v9259_v59, 5  ;;  %v17647_v56 = vld [vmem:[#allocation3 + $0x20] sm:$0x1]  ;;  %7895 = vst.msk [vmem:[#allocation3 + $0x28] sm:$0xf] %vm3550_vm0, %v7607_v34  ;;  %v12606_v31 = vcombine.low %v9207_v41, %v17635_v35  ;;  %v9269_v43 = vshrl.u32 %v17635_v35, 16  ;;  %v12559_v42 = vcombine.low %v8600_v20, %v17637_v30 }
 0x419   : > { %v17649_v39 = vld [vmem:[#allocation3 + $0x20] sm:$0x1]  ;;  %7898 = vst [vmem:[#allocation3 + $0x2c] sm:$0x1] %v7897_v49  ;;  %v8673_v11 = vrot.slane %v8671_v51, 4  ;;  %v8676_v26 = vrot.slane %v8674_v62, 5 }
 0x41a   : > { %v8684_v47 = vshrl.u32 %v17637_v30, 16  ;;  %v12494_v25 = vrot.slane %v9639_v53, 9  ;;  %v9705_v7 = vrot.slane %v17635_v35, 5  ;;  %10359 = vrot.lane.b32.xlu1 %v12606_v31, %s13219_s18  ;;  %v9708_v44 = vrot.slane %v17647_v56, 5  ;;  %v17676_v41 = vld [vmem:[#allocation3 + $0x1c] sm:$0xf] }
 0x41b   : > { %v12479_v21 = vrot.slane %v9031_v55, 9  ;;  %v9103_v33 = vrot.slane %v17637_v30, 5  ;;  %v9106_v4 = vrot.slane %v17649_v39, 5  ;;  %v9262_v37 = vor.u32 %v9261_v58, %v9258_v60  ;;  %v17678_v20 = vld [vmem:[#allocation3 + $0x20] sm:$0x1] }
 0x41c   : > { %v9706_v63 = vsel %vm13357_vm2, %v12494_v25, %v9705_v7  ;;  %v9707_v2 = vrot.slane %v9705_v7, 4  ;;  %v9265_v28 = vshll.u32 %v17635_v35, 16  ;;  %v9209_v13 = vld [vmem:[#allocation3 + $0x24] sm:$0xf]  ;;  %v9271_v6 = vrot.slane %v9269_v43, 4  ;;  %v7145_v22 = vpop.f32.mrb[24].mxu1 }
 0x41d   : > { %v8602_v24 = vld [vmem:[#allocation3 + $0x24] sm:$0xf]  ;;  %v17666_v40 = vsel %vm13357_vm2, %v12479_v21, %v9103_v33  ;;  %v9105_v27 = vrot.slane %v9103_v33, 4  ;;  %v8677_v16 = vor.u32 %v8676_v26, %v8673_v11  ;;  %v9280_v15 = vshrl.u32 %v9209_v13, 16  ;;  %v7147_v3 = vpop.f32.mrb[25].mxu1 }
 0x41e   : > { %v9709_v1 = vsel %vm13357_vm2, %v9707_v2, %v9708_v44  ;;  %v9283_v0 = vshll.u32 %v9209_v13, 16  ;;  %v8695_v9 = vshrl.u32 %v8602_v24, 16  ;;  %10105 = vrot.lane.b32.xlu1 %v12559_v42, %s13220_s21  ;;  %v7261_v50 = vmul.f32 %v17544_v52, %v7145_v22  ;;  %v7148_v53 = vpop.f32.mrb[26].mxu1  ;;  %v8424_v60 = vld [vmem:[#allocation3 + $0x18] sm:$0xe] }
 0x41f   : > { %v12638_v38 = vcombine.low %v9706_v63, %v9709_v1  ;;  %v8698_v57 = vshll.u32 %v8602_v24, 16  ;;  %v17674_v54 = vsel %vm13357_vm2, %v9105_v27, %v9106_v4  ;;  %v17680_v23 = vld [vmem:[#allocation3 + $0x28] sm:$0xf]  ;;  %v17682_v45 = vrot.slane %v9280_v15, 4  ;;  %v7150_v51 = vpop.f32.mrb[27].mxu1 }
 0x420   : > { %v17684_v36 = vrot.slane %v9283_v0, 5  ;;  %v17686_v12 = vrot.slane %v8695_v9, 4  ;;  %v12591_v59 = vcombine.low %v17666_v40, %v17674_v54  ;;  %v7300_v55 = vadd.f32 %v17549_v29, %v7261_v50  ;;  %v17695_v49 = vld [vmem:[#allocation3 + $0x28] sm:$0xf] }
 0x421   : > { %12663 = vmatprep.mubr.msk.bf16.mxu0 %vm3041_vm9, %v12638_v38  ;;  %v7262_v35 = vmul.f32 %v17544_v52, %v7148_v53  ;;  %v12607_v62 = vcombine.low %v9209_v13, %v17680_v23  ;;  %v9293_v34 = vshrl.u32 %v17680_v23, 16  ;;  %v17697_v58 = vrot.slane %v8698_v57, 5 }
 0x422   : > { %v12560_v31 = vcombine.low %v8602_v24, %v17695_v49  ;;  %v8708_v43 = vshrl.u32 %v17695_v49, 16  ;;  %v9263_v11 = vrot.slane %v9262_v37, 4  ;;  %v7332_v26 = vmax.f32 %v7300_v55, 0.0  ;;  %10183 = vrot.lane.b32.xlu1 %v17630_v8, %s13223_s30  ;;  %v7899_v55 = vld [vmem:[#allocation3 + $0x30] sm:$0xf] }
 0x423   : > { %v7301_v42 = vadd.f32 %v17549_v29, %v7262_v35  ;;  %10361 = vrot.lane.b32.xlu0 %v12607_v62, %s13219_s18  ;;  %v9267_v25 = vrot.slane %v9265_v28, 5  ;;  %v9275_v7 = vshll.u32 %v17647_v56, 16  ;;  %v12464_v44 = vrot.slane %v8424_v60, 9 }
 0x424   : > { %v8502_v21 = vrot.slane %v17676_v41, 5  ;;  %v8505_v33 = vrot.slane %v17678_v20, 5  ;;  %v17708_v4 = vrot.slane %v8677_v16, 4  ;;  %v12722_v63 = vpack.c.bf16 %v7332_v26, %v7332_v26  ;;  %v7153_v24 = vpop.f32.mrb[28].mxu1  ;;  %v7994_v26 = vld [vmem:[#allocation3 + $0x18] sm:$0xf] }
 0x425   : > { %v7333_v2 = vmax.f32 %v7301_v42, 0.0  ;;  %v9268_v37 = vsel %vm13401_vm5, %v9263_v11, %v9267_v25  ;;  %v9272_v13 = vor.u32 %v9271_v6, %v9267_v25  ;;  %v9277_v8 = vrot.slane %v9275_v7, 5  ;;  %v7155_v15 = vpop.f32.mrb[29].mxu1  ;;  %v7903_v42 = vld [vmem:[#allocation3 + $0x38] sm:$0x1] }
 0x426   : > { %v8503_v28 = vsel %vm13357_vm2, %v12464_v44, %v8502_v21  ;;  %v8504_v40 = vrot.slane %v8502_v21, 4  ;;  %v8680_v56 = vshll.u32 %v17637_v30, 16  ;;  %v7610_v27 = vshrl.u32 %v12722_v63, 16  ;;  %9929 = vrot.lane.b32.xlu1 %v17639_v46, %s13214_s20  ;;  %v7156_v6 = vpop.f32.mrb[30].mxu1 }
 0x427   : > { %v7613_v22 = vshll.u32 %v12722_v63, 16  ;;  %v12723_v1 = vpack.c.bf16 %v7333_v2, %v7333_v2  ;;  %10107 = vrot.lane.b32.xlu0 %v12560_v31, %s13220_s21  ;;  %v7263_v16 = vmul.f32 %v17544_v52, %v7153_v24  ;;  %v9273_v0 = vrot.slane %v9272_v13, 4  ;;  %v7158_v46 = vpop.f32.mrb[31].mxu1 }
 0x428   : > { %v8506_v9 = vsel %vm13357_vm2, %v8504_v40, %v8505_v33  ;;  %v8682_v50 = vrot.slane %v8680_v56, 5  ;;  %v8686_v3 = vrot.slane %v8684_v47, 4  ;;  %v7612_v38 = vrot.slane %v7610_v27, 7  ;;  %v7906_v56 = vld [vmem:[#allocation3 + $0x3c] sm:$0xf] }
 0x429   : > { %v7618_v57 = vshrl.u32 %v12723_v1, 16  ;;  %v7621_v54 = vshll.u32 %v12723_v1, 16  ;;  %v7302_v53 = vadd.f32 %v17549_v29, %v7263_v16  ;;  %v7264_v35 = vmul.f32 %v17544_v52, %v7156_v6 }
 0x42a   : > { %v9278_v51 = vsel %vm13401_vm5, %v9273_v0, %v9277_v8  ;;  %v12544_v62 = vcombine.low %v8503_v28, %v8506_v9  ;;  %v8683_v60 = vsel %vm13401_vm5, %v17708_v4, %v8682_v50  ;;  %v7615_v31 = vor.u32 %v7613_v22, %v7612_v38  ;;  %10265 = vrot.lane.b32.xlu1 %v12591_v59, %s13221_s27 }
 0x42b   : > { %v7616_v30 = vrot.slane %v7612_v38, 4  ;;  %v7620_v47 = vrot.slane %v7618_v57, 7  ;;  %v7334_v11 = vmax.f32 %v7302_v53, 0.0  ;;  %v7303_v25 = vadd.f32 %v17549_v29, %v7264_v35  ;;  %v17747_v53 = vld [vmem:[#allocation3 + $0x2c] sm:$0x1] }
 0x42c   : > { %v12622_v7 = vcombine.low %v9268_v37, %v9278_v51  ;;  %v8687_v44 = vor.u32 %v8686_v3, %v8682_v50  ;;  %v8690_v21 = vshll.u32 %v17649_v39, 16  ;;  %v7900_v33 = vsel %vm14842_vm12, %v7615_v31, %v7899_v55  ;;  %v9032_v50 = vld [vmem:[#allocation3 + $0x24] sm:$0xe] }
 0x42d   : > { %v7623_v63 = vor.u32 %v7621_v54, %v7620_v47  ;;  %v7625_v2 = vrot.slane %v7620_v47, 4  ;;  %v12724_v4 = vpack.c.bf16 %v7334_v11, %v7334_v11  ;;  %7901 = vst [vmem:[#allocation3 + $0x30] sm:$0xf] %v7900_v33  ;;  %v7335_v13 = vmax.f32 %v7303_v25, 0.0 }
 0x42e   : > { %10439 = vrot.lane.b32.xlu0 %v12622_v7, %s13222_s29  ;;  %v8688_v24 = vrot.slane %v8687_v44, 4  ;;  %v8692_v59 = vrot.slane %v8690_v21, 5  ;;  %v8087_v8 = vshrl.u32 %v7994_v26, 16  ;;  %10011 = vrot.lane.b32.xlu1 %v12544_v62, %s13217_s28  ;;  %v8090_v16 = vshll.u32 %v7994_v26, 16  ;;  %v8425_v62 = vld [vmem:[#allocation3 + $0x24] sm:$0xe] }
 0x42f   : > { %v7624_v28 = vsel %vm14847_vm14, %v7616_v30, %v7623_v63  ;;  %v7904_v37 = vsel %vm14684_vm13, %v7625_v2, %v7903_v42  ;;  %v7627_v39 = vshrl.u32 %v12724_v4, 16  ;;  %v7630_v40 = vshll.u32 %v12724_v4, 16  ;;  %v7910_v26 = vld [vmem:[#allocation3 + $0x44] sm:$0x1]  ;;  %v17756_v7 = vld [vmem:[#allocation3 + $0x2c] sm:$0x1] }
 0x430   : > { %7902 = vst.msk [vmem:[#allocation3 + $0x34] sm:$0xf] %vm3550_vm0, %v7624_v28  ;;  %7905 = vst [vmem:[#allocation3 + $0x38] sm:$0x1] %v7904_v37  ;;  %v12725_v27 = vpack.c.bf16 %v7335_v13, %v7335_v13  ;;  %v8693_v22 = vsel %vm13401_vm5, %v8688_v24, %v8692_v59  ;;  %v8089_v1 = vrot.slane %v8087_v8, 4  ;;  %v8096_v0 = vshll.u32 %v17676_v41, 16 }
 0x431   : > { %v7629_v15 = vrot.slane %v7627_v39, 7  ;;  %v12575_v6 = vcombine.low %v8683_v60, %v8693_v22  ;;  %v8100_v9 = vshrl.u32 %v17676_v41, 16  ;;  %v8092_v57 = vrot.slane %v8090_v16, 5  ;;  %v17750_v41 = vld [vmem:[#allocation3 + $0x28] sm:$0xf] }
 0x432   : > { %v7635_v3 = vshrl.u32 %v12725_v27, 16  ;;  %v7638_v38 = vshll.u32 %v12725_v27, 16  ;;  %v8106_v54 = vshll.u32 %v17678_v20, 16  ;;  %v8098_v35 = vrot.slane %v8096_v0, 5  ;;  %v12979_v8 = vld [vmem:[%s19621_s7] sm:$0xff]  }
 0x433   : > { %v7632_v46 = vor.u32 %v7630_v40, %v7629_v15  ;;  %v7633_v55 = vrot.slane %v7629_v15, 4  ;;  %10185 = vrot.lane.b32.xlu0 %v12575_v6, %s13223_s30  ;;  %v8102_v51 = vrot.slane %v8100_v9, 4  ;;  %v8093_v31 = vor.u32 %v8092_v57, %v8089_v1  ;;  %10896 = vmatpush1.bf16.msra.mxu0 %v12979_v8 }
 0x434   : > { %v7637_v60 = vrot.slane %v7635_v3, 7  ;;  %v8108_v30 = vrot.slane %v8106_v54, 5  ;;  %v12480_v47 = vrot.slane %v9032_v50, 9  ;;  %v9110_v42 = vrot.slane %v17695_v49, 5  ;;  %v9211_v59 = vld [vmem:[#allocation3 + $0x30] sm:$0xf] }
 0x435   : > { %v7907_v11 = vsel %vm14842_vm12, %v7632_v46, %v7906_v56  ;;  %v8103_v20 = vor.u32 %v8102_v51, %v8098_v35  ;;  %v9113_v25 = vrot.slane %v17747_v53, 5  ;;  %v8094_v33 = vrot.slane %v8093_v31, 4  ;;  %v8604_v15 = vld [vmem:[#allocation3 + $0x30] sm:$0xf] }
 0x436   : > { %7908 = vst [vmem:[#allocation3 + $0x3c] sm:$0xf] %v7907_v11  ;;  %v7640_v44 = vor.u32 %v7638_v38, %v7637_v60  ;;  %v7642_v21 = vrot.slane %v7637_v60, 4  ;;  %v12465_v63 = vrot.slane %v8425_v62, 9  ;;  %v9111_v4 = vsel %vm13357_vm2, %v12480_v47, %v9110_v42 }
 0x437   : > { %v8104_v2 = vrot.slane %v8103_v20, 4  ;;  %v9112_v13 = vrot.slane %v9110_v42, 4  ;;  %v8509_v24 = vrot.slane %v17750_v41, 5  ;;  %v8099_v39 = vsel %vm13401_vm5, %v8094_v33, %v8098_v35  ;;  %v17771_v56 = vld [vmem:[#allocation3 + $0x34] sm:$0xf] }
 0x438   : > { %v7641_v28 = vsel %vm14847_vm14, %v7633_v55, %v7640_v44  ;;  %v7911_v37 = vsel %vm14684_vm13, %v7642_v21, %v7910_v26  ;;  %v8512_v40 = vrot.slane %v17756_v7, 5  ;;  %v9304_v9 = vshrl.u32 %v9211_v59, 16  ;;  %v17780_v38 = vld [vmem:[#allocation3 + $0x34] sm:$0xf]  ;;  %v9240_v44 = vld [vmem:[#allocation3 + $0x2c] sm:$0x1] }
 0x439   : > { %7909 = vst.msk [vmem:[#allocation3 + $0x40] sm:$0xf] %vm3550_vm0, %v7641_v28  ;;  %7912 = vst [vmem:[#allocation3 + $0x44] sm:$0x1] %v7911_v37  ;;  %v8109_v27 = vsel %vm13401_vm5, %v8104_v2, %v8108_v30  ;;  %v9114_v22 = vsel %vm13357_vm2, %v9112_v13, %v9113_v25  ;;  %v8510_v1 = vsel %vm13357_vm2, %v12465_v63, %v8509_v24  ;;  %v8511_v16 = vrot.slane %v8509_v24, 4 }
 0x43a   : > { %v12528_v6 = vcombine.low %v8099_v39, %v8109_v27  ;;  %v12592_v0 = vcombine.low %v9111_v4, %v9114_v22  ;;  %v9307_v50 = vshll.u32 %v9211_v59, 16  ;;  %v7161_v3 = vpop.f32.mrb[32].mxu1  ;;  %v20014_v57 = vmov 0  }
 0x43b   : > { %10897 = vmatprep.subr.bf16.mxu0 %v20014_v57  ;;  %v8513_v54 = vsel %vm13357_vm2, %v8511_v16, %v8512_v40  ;;  %v12608_v46 = vcombine.low %v9211_v59, %v17771_v56  ;;  %v9317_v55 = vshrl.u32 %v17771_v56, 16  ;;  %v7265_v35 = vmul.f32 %v17544_v52, %v7161_v3  ;;  %v7163_v51 = vpop.f32.mrb[33].mxu1 }
 0x43c   : > { %9931 = vrot.lane.b32.xlu0 %v12528_v6, %s13214_s20  ;;  %v12545_v62 = vcombine.low %v8510_v1, %v8513_v54  ;;  %v17789_v60 = vrot.slane %v9304_v9, 4  ;;  %v17791_v31 = vrot.slane %v9307_v50, 5  ;;  %v7164_v30 = vpop.f32.mrb[34].mxu1  ;;  %v8719_v47 = vshrl.u32 %v8604_v15, 16 }
 0x43d   : > { %10363 = vrot.lane.b32.xlu1 %v12608_v46, %s13219_s18  ;;  %v7304_v11 = vadd.f32 %v17549_v29, %v7265_v35  ;;  %v7266_v26 = vmul.f32 %v17544_v52, %v7164_v30  ;;  %v7166_v20 = vpop.f32.mrb[35].mxu1  ;;  %v8722_v42 = vshll.u32 %v8604_v15, 16  ;;  %v12561_v25 = vcombine.low %v8604_v15, %v17780_v38  ;;  %v9213_v21 = vld [vmem:[#allocation3 + $0x3c] sm:$0xf] }
 0x43e   : > { %v17797_v33 = vrot.slane %v8719_v47, 4  ;;  %v8732_v63 = vshrl.u32 %v17780_v38, 16  ;;  %v9286_v2 = vor.u32 %v17684_v36, %v17682_v45  ;;  %v9289_v4 = vshll.u32 %v17680_v23, 16 }
 0x43f   : > { %v7336_v13 = vmax.f32 %v7304_v11, 0.0  ;;  %v7305_v24 = vadd.f32 %v17549_v29, %v7266_v26  ;;  %v17804_v59 = vrot.slane %v8722_v42, 5  ;;  %v9295_v8 = vrot.slane %v9293_v34, 4  ;;  %v12981_v11 = vld [vmem:[%s19621_s7 + $0x8] sm:$0xff]  }
 0x440   : > { %10267 = vrot.lane.b32.xlu0 %v12592_v0, %s13221_s27  ;;  %v9287_v28 = vrot.slane %v9286_v2, 4  ;;  %v9291_v37 = vrot.slane %v9289_v4, 5  ;;  %v9299_v39 = vshll.u32 %v9240_v44, 16  ;;  %v17809_v40 = vld [vmem:[#allocation3 + $0x40] sm:$0xf]  ;;  %v9328_v27 = vshrl.u32 %v9213_v21, 16  ;;  %10898 = vmatpush1.bf16.msra.mxu0 %v12981_v11 }
 0x441   : > { %v12726_v22 = vpack.c.bf16 %v7336_v13, %v7336_v13  ;;  %v7337_v45 = vmax.f32 %v7305_v24, 0.0  ;;  %10109 = vrot.lane.b32.xlu1 %v12561_v25, %s13220_s21  ;;  %v9331_v36 = vshll.u32 %v9213_v21, 16  ;;  %v12609_v1 = vcombine.low %v9213_v21, %v17809_v40  ;;  %10899 = vmatprep.subr.bf16.mxu0 %v20014_v57 }
 0x442   : > { %v9292_v16 = vsel %vm13401_vm5, %v9287_v28, %v9291_v37  ;;  %v9296_v23 = vor.u32 %v9295_v8, %v9291_v37  ;;  %v9301_v34 = vrot.slane %v9299_v39, 5  ;;  %v17815_v15 = vrot.slane %v9328_v27, 4  ;;  %v7169_v6 = vpop.f32.mrb[36].mxu1  ;;  %v7917_v8 = vld [vmem:[#allocation3 + $0x50] sm:$0x1] }
 0x443   : > { %v7644_v0 = vshrl.u32 %v12726_v22, 16  ;;  %v7647_v9 = vshll.u32 %v12726_v22, 16  ;;  %v12727_v50 = vpack.c.bf16 %v7337_v45, %v7337_v45  ;;  %v17817_v3 = vrot.slane %v9331_v36, 5  ;;  %v7171_v54 = vpop.f32.mrb[37].mxu1  ;;  %v8606_v22 = vld [vmem:[#allocation3 + $0x3c] sm:$0xf] }
 0x444   : > { %10013 = vrot.lane.b32.xlu0 %v12545_v62, %s13217_s28  ;;  %v9297_v46 = vrot.slane %v9296_v23, 4  ;;  %v9341_v35 = vshrl.u32 %v17809_v40, 16  ;;  %v7267_v51 = vmul.f32 %v17544_v52, %v7169_v6  ;;  %v7172_v30 = vpop.f32.mrb[38].mxu1  ;;  %v8701_v47 = vor.u32 %v17697_v58, %v17686_v12  ;;  %v7913_v62 = vld [vmem:[#allocation3 + $0x48] sm:$0xf] }
 0x445   : > { %v7646_v26 = vrot.slane %v7644_v0, 7  ;;  %v7652_v20 = vshrl.u32 %v12727_v50, 16  ;;  %v7655_v42 = vshll.u32 %v12727_v50, 16  ;;  %v7268_v25 = vmul.f32 %v17544_v52, %v7172_v30  ;;  %v7174_v44 = vpop.f32.mrb[39].mxu1  ;;  %v17846_v6 = vld [vmem:[#allocation3 + $0x40] sm:$0xf] }
 0x446   : > { %v9302_v21 = vsel %vm13401_vm5, %v9297_v46, %v9301_v34  ;;  %v7306_v2 = vadd.f32 %v17549_v29, %v7267_v51  ;;  %v8702_v4 = vrot.slane %v8701_v47, 4  ;;  %v8704_v13 = vshll.u32 %v17695_v49, 16  ;;  %v7996_v47 = vld [vmem:[#allocation3 + $0x24] sm:$0xf] }
 0x447   : > { %v7649_v12 = vor.u32 %v7647_v9, %v7646_v26  ;;  %v7650_v58 = vrot.slane %v7646_v26, 4  ;;  %v7654_v24 = vrot.slane %v7652_v20, 7  ;;  %v12623_v28 = vcombine.low %v9292_v16, %v9302_v21 }
 0x448   : > { %10365 = vrot.lane.b32.xlu0 %v12609_v1, %s13219_s18  ;;  %v7338_v52 = vmax.f32 %v7306_v2, 0.0  ;;  %v7307_v37 = vadd.f32 %v17549_v29, %v7268_v25  ;;  %v8706_v39 = vrot.slane %v8704_v13, 5  ;;  %v8710_v27 = vrot.slane %v8708_v43, 4  ;;  %v12982_v1 = vld [vmem:[%s19621_s7 + $0x10] sm:$0xff]  }
 0x449   : > { %v7914_v45 = vsel %vm14842_vm12, %v7649_v12, %v7913_v62  ;;  %v7657_v36 = vor.u32 %v7655_v42, %v7654_v24  ;;  %v7659_v23 = vrot.slane %v7654_v24, 4  ;;  %10441 = vrot.lane.b32.xlu1 %v12623_v28, %s13222_s29  ;;  %v8714_v16 = vshll.u32 %v17747_v53, 16  ;;  %10900 = vmatpush1.bf16.msra.mxu0 %v12982_v1 }
 0x44a   : > { %7915 = vst [vmem:[#allocation3 + $0x48] sm:$0xf] %v7914_v45  ;;  %v12728_v29 = vpack.c.bf16 %v7338_v52, %v7338_v52  ;;  %v7339_v34 = vmax.f32 %v7307_v37, 0.0  ;;  %v8707_v49 = vsel %vm13401_vm5, %v8702_v4, %v8706_v39  ;;  %v8711_v43 = vor.u32 %v8710_v27, %v8706_v39  ;;  %10901 = vmatprep.subr.bf16.mxu0 %v20014_v57  ;;  %v7920_v4 = vld [vmem:[#allocation3 + $0x54] sm:$0xf] }
 0x44b   : > { %v7658_v0 = vsel %vm14847_vm14, %v7650_v58, %v7657_v36  ;;  %v7918_v9 = vsel %vm14684_vm13, %v7659_v23, %v7917_v8  ;;  %v8716_v53 = vrot.slane %v8714_v16, 5  ;;  %v8743_v50 = vshrl.u32 %v8606_v22, 16  ;;  %v7924_v39 = vld [vmem:[#allocation3 + $0x5c] sm:$0x1] }
 0x44c   : > { %7916 = vst.msk [vmem:[#allocation3 + $0x4c] sm:$0xf] %vm3550_vm0, %v7658_v0  ;;  %7919 = vst [vmem:[#allocation3 + $0x50] sm:$0x1] %v7918_v9  ;;  %v7661_v54 = vshrl.u32 %v12728_v29, 16  ;;  %v7664_v46 = vshll.u32 %v12728_v29, 16  ;;  %v12729_v51 = vpack.c.bf16 %v7339_v34, %v7339_v34  ;;  %v12562_v20 = vcombine.low %v8606_v22, %v17846_v6 }
 0x44d   : > { %v8712_v30 = vrot.slane %v8711_v43, 4  ;;  %v17854_v11 = vrot.slane %v8743_v50, 4  ;;  %v8746_v26 = vshll.u32 %v8606_v22, 16  ;;  %v8756_v42 = vshrl.u32 %v17846_v6, 16  ;;  %v9241_v0 = vld [vmem:[#allocation3 + $0x38] sm:$0x1] }
 0x44e   : > { %v7663_v25 = vrot.slane %v7661_v54, 7  ;;  %v7669_v44 = vshrl.u32 %v12729_v51, 16  ;;  %v7672_v62 = vshll.u32 %v12729_v51, 16  ;;  %v17860_v2 = vpop.f32.mrb[40].mxu1  ;;  %10111 = vrot.lane.b32.xlu0 %v12562_v20, %s13220_s21  ;;  %v8111_v58 = vshrl.u32 %v7996_v47, 16 }
 0x44f   : > { %v8717_v21 = vsel %vm13401_vm5, %v8712_v30, %v8716_v53  ;;  %v17862_v12 = vrot.slane %v8746_v26, 5  ;;  %v8114_v24 = vshll.u32 %v7996_v47, 16  ;;  %v7179_v8 = vpop.f32.mrb[41].mxu1  ;;  %v8120_v27 = vshll.u32 %v17750_v41, 16  ;;  %v9033_v51 = vld [vmem:[#allocation3 + $0x30] sm:$0xe] }
 0x450   : > { %v12576_v13 = vcombine.low %v8707_v49, %v8717_v21  ;;  %v7666_v28 = vor.u32 %v7664_v46, %v7663_v25  ;;  %v7667_v52 = vrot.slane %v7663_v25, 4  ;;  %v7671_v37 = vrot.slane %v7669_v44, 7  ;;  %v7180_v22 = vpop.f32.mrb[42].mxu1  ;;  %v8633_v46 = vld [vmem:[#allocation3 + $0x38] sm:$0x1] }
 0x451   : > { %v8113_v45 = vrot.slane %v8111_v58, 4  ;;  %v8116_v36 = vrot.slane %v8114_v24, 5  ;;  %v8124_v23 = vshrl.u32 %v17750_v41, 16  ;;  %v8130_v16 = vshll.u32 %v17756_v7, 16  ;;  %v7182_v1 = vpop.f32.mrb[43].mxu1 }
 0x452   : > { %10187 = vrot.lane.b32.xlu1 %v12576_v13, %s13223_s30  ;;  %v7921_v29 = vsel %vm14842_vm12, %v7666_v28, %v7920_v4  ;;  %v7674_v34 = vor.u32 %v7672_v62, %v7671_v37  ;;  %v7676_v49 = vrot.slane %v7671_v37, 4  ;;  %v8122_v43 = vrot.slane %v8120_v27, 5  ;;  %v17895_v27 = vld [vmem:[#allocation3 + $0x34] sm:$0xf] }
 0x453   : > { %7922 = vst [vmem:[#allocation3 + $0x54] sm:$0xf] %v7921_v29  ;;  %v8117_v9 = vor.u32 %v8116_v36, %v8113_v45  ;;  %v8126_v53 = vrot.slane %v8124_v23, 4  ;;  %v8132_v50 = vrot.slane %v8130_v16, 5  ;;  %v9310_v54 = vor.u32 %v17791_v31, %v17789_v60  ;;  %v12983_v31 = vld [vmem:[%s19621_s7 + $0x18] sm:$0xff]  }
 0x454   : > { %v7675_v41 = vsel %vm14847_vm14, %v7667_v52, %v7674_v34  ;;  %v7925_v7 = vsel %vm14684_vm13, %v7676_v49, %v7924_v39  ;;  %v9313_v30 = vshll.u32 %v17771_v56, 16  ;;  %v9319_v47 = vrot.slane %v9317_v55, 4  ;;  %10902 = vmatpush1.bf16.msra.mxu0 %v12983_v31  ;;  %v8426_v16 = vld [vmem:[#allocation3 + $0x30] sm:$0xe] }
 0x455   : > { %7923 = vst.msk [vmem:[#allocation3 + $0x58] sm:$0xf] %vm3550_vm0, %v7675_v41  ;;  %7926 = vst [vmem:[#allocation3 + $0x5c] sm:$0x1] %v7925_v7  ;;  %v8118_v26 = vrot.slane %v8117_v9, 4  ;;  %v8127_v20 = vor.u32 %v8126_v53, %v8122_v43  ;;  %v9311_v25 = vrot.slane %v9310_v54, 4  ;;  %v8725_v24 = vor.u32 %v17804_v59, %v17797_v33  ;;  %10903 = vmatprep.subr.bf16.mxu0 %v20014_v57 }
 0x456   : > { %v9323_v60 = vshll.u32 %v9241_v0, 16  ;;  %v9315_v44 = vrot.slane %v9313_v30, 5  ;;  %v12481_v62 = vrot.slane %v9033_v51, 9  ;;  %v9117_v21 = vrot.slane %v17780_v38, 5  ;;  %v17885_v13 = vpop.f32.mrb[44].mxu1  ;;  %v12984_v54 = vld [vmem:[%s19621_s7 + $0x20] sm:$0xff]  }
 0x457   : > { %v9120_v4 = vrot.slane %v8633_v46, 5  ;;  %v8123_v56 = vsel %vm13401_vm5, %v8118_v26, %v8122_v43  ;;  %v8128_v55 = vrot.slane %v8127_v20, 4  ;;  %v7187_v8 = vpop.f32.mrb[45].mxu1  ;;  %v8726_v33 = vrot.slane %v8725_v24, 4  ;;  %v17910_v53 = vld [vmem:[%s19619_s5] ss:$0 sm:$0xff] }
 0x458   : > { %v9325_v58 = vrot.slane %v9323_v60, 5  ;;  %v9316_v28 = vsel %vm13401_vm5, %v9311_v25, %v9315_v44  ;;  %v9320_v52 = vor.u32 %v9319_v47, %v9315_v44  ;;  %v9118_v37 = vsel %vm13357_vm2, %v12481_v62, %v9117_v21  ;;  %v17897_v45 = vpop.f32.mrb[46].mxu1  ;;  %v7998_v30 = vld [vmem:[#allocation3 + $0x30] sm:$0xf]  ;;  %v17927_v26 = vld [vmem:[%s19620_s6] ss:$0 sm:$0xff]  ;;  %10904 = vmatpush1.bf16.msra.mxu0 %v12984_v54 }
 0x459   : > { %v9119_v39 = vrot.slane %v9117_v21, 4  ;;  %v8133_v36 = vsel %vm13401_vm5, %v8128_v55, %v8132_v50  ;;  %v8728_v59 = vshll.u32 %v17780_v38, 16  ;;  %v8734_v23 = vrot.slane %v8732_v63, 4  ;;  %v7190_v1 = vpop.f32.mrb[47].mxu1  ;;  %v8026_v63 = vld [vmem:[#allocation3 + $0x38] sm:$0x1]  ;;  %10905 = vmatprep.subr.bf16.mxu0 %v20014_v57 }
 0x45a   : > { %v12529_v29 = vcombine.low %v8123_v56, %v8133_v36  ;;  %v9321_v34 = vrot.slane %v9320_v52, 4  ;;  %v8738_v43 = vshll.u32 %v8633_v46, 16  ;;  %v7269_v50 = vmul.f32 %v17910_v53, %v17860_v2  ;;  %v12986_v21 = vld [vmem:[%s19621_s7 + $0x28] sm:$0xff]  }
 0x45b   : > { %v9121_v49 = vsel %vm13357_vm2, %v9119_v39, %v9120_v4  ;;  %v8730_v9 = vrot.slane %v8728_v59, 5  ;;  %v7270_v38 = vmul.f32 %v17910_v53, %v7180_v22  ;;  %v12466_v41 = vrot.slane %v8426_v16, 9  ;;  %v9034_v16 = vld [vmem:[#allocation3 + $0x3c] sm:$0xe] }
 0x45c   : > { %v12593_v0 = vcombine.low %v9118_v37, %v9121_v49  ;;  %9933 = vrot.lane.b32.xlu1 %v12529_v29, %s13214_s20  ;;  %v9326_v46 = vsel %vm13401_vm5, %v9321_v34, %v9325_v58  ;;  %v8740_v51 = vrot.slane %v8738_v43, 5  ;;  %v8516_v7 = vrot.slane %v17895_v27, 5  ;;  %10906 = vmatpush1.bf16.msra.mxu0 %v12986_v21 }
 0x45d   : > { %v12624_v47 = vcombine.low %v9316_v28, %v9326_v46  ;;  %v8731_v2 = vsel %vm13401_vm5, %v8726_v33, %v8730_v9  ;;  %v8735_v22 = vor.u32 %v8734_v23, %v8730_v9  ;;  %v7308_v20 = vadd.f32 %v17927_v26, %v7269_v50  ;;  %10907 = vmatprep.subr.bf16.mxu0 %v20014_v57  ;;  %v9215_v46 = vld [vmem:[#allocation3 + $0x48] sm:$0xf] }
 0x45e   : > { %v7309_v25 = vadd.f32 %v17927_v26, %v7270_v38  ;;  %v8517_v60 = vsel %vm13357_vm2, %v12466_v41, %v8516_v7  ;;  %v8518_v31 = vrot.slane %v8516_v7, 4  ;;  %v8519_v44 = vrot.slane %v8026_v63, 5  ;;  %v17933_v62 = vpop.f32.mrb[48].mxu1 }
 0x45f   : > { %10443 = vrot.lane.b32.xlu0 %v12624_v47, %s13222_s29  ;;  %v8736_v4 = vrot.slane %v8735_v22, 4  ;;  %v7340_v56 = vmax.f32 %v7308_v20, 0.0  ;;  %v8135_v55 = vshrl.u32 %v7998_v30, 16  ;;  %v8138_v58 = vshll.u32 %v7998_v30, 16  ;;  %v7195_v24 = vpop.f32.mrb[49].mxu1 }
 0x460   : > { %10269 = vrot.lane.b32.xlu1 %v12593_v0, %s13221_s27  ;;  %v7341_v8 = vmax.f32 %v7309_v25, 0.0  ;;  %v8520_v28 = vsel %vm13357_vm2, %v8518_v31, %v8519_v44  ;;  %v8144_v52 = vshll.u32 %v17895_v27, 16  ;;  %v8148_v37 = vshrl.u32 %v17895_v27, 16  ;;  %v17945_v39 = vpop.f32.mrb[50].mxu1  ;;  %v17949_v0 = vld [vmem:[#allocation3 + $0x44] sm:$0x1] }
 0x461   : > { %v8741_v36 = vsel %vm13401_vm5, %v8736_v4, %v8740_v51  ;;  %v12730_v33 = vpack.c.bf16 %v7340_v56, %v7340_v56  ;;  %v12546_v59 = vcombine.low %v8517_v60, %v8520_v28  ;;  %v8137_v23 = vrot.slane %v8135_v55, 4  ;;  %v7198_v1 = vpop.f32.mrb[51].mxu1  ;;  %v12988_v27 = vld [vmem:[%s19621_s7 + $0x30] sm:$0xff]   ;;  %v7927_v51 = vld [vmem:[#allocation3 + $0x60] sm:$0xf] }
 0x462   : > { %v12577_v29 = vcombine.low %v8731_v2, %v8741_v36  ;;  %v12731_v34 = vpack.c.bf16 %v7341_v8, %v7341_v8  ;;  %v8140_v49 = vrot.slane %v8138_v58, 5  ;;  %v8146_v43 = vrot.slane %v8144_v52, 5  ;;  %v7931_v22 = vld [vmem:[#allocation3 + $0x68] sm:$0x1]  ;;  %10908 = vmatpush1.bf16.msra.mxu0 %v12988_v27  ;;  %v8427_v8 = vld [vmem:[#allocation3 + $0x3c] sm:$0xe] }
 0x463   : > { %v7678_v9 = vshrl.u32 %v12730_v33, 16  ;;  %v7681_v50 = vshll.u32 %v12730_v33, 16  ;;  %v8150_v38 = vrot.slane %v8148_v37, 4  ;;  %v8154_v54 = vshll.u32 %v8026_v63, 16  ;;  %10909 = vmatprep.subr.bf16.mxu0 %v20014_v57 }
 0x464   : > { %10189 = vrot.lane.b32.xlu0 %v12577_v29, %s13223_s30  ;;  %v7686_v41 = vshrl.u32 %v12731_v34, 16  ;;  %v7689_v7 = vshll.u32 %v12731_v34, 16  ;;  %10015 = vrot.lane.b32.xlu1 %v12546_v59, %s13217_s28  ;;  %v8141_v30 = vor.u32 %v8140_v49, %v8137_v23  ;;  %v12482_v47 = vrot.slane %v9034_v16, 9  ;;  %v17966_v59 = vld [vmem:[#allocation3 + $0x4c] sm:$0xf] }
 0x465   : > { %v7680_v2 = vrot.slane %v7678_v9, 7  ;;  %v8151_v20 = vor.u32 %v8150_v38, %v8146_v43  ;;  %v8156_v25 = vrot.slane %v8154_v54, 5  ;;  %v9124_v60 = vrot.slane %v17846_v6, 5  ;;  %v17976_v49 = vld [vmem:[#allocation3 + $0x40] sm:$0xf] }
 0x466   : > { %v7688_v31 = vrot.slane %v7686_v41, 7  ;;  %v8142_v44 = vrot.slane %v8141_v30, 4  ;;  %v9127_v63 = vrot.slane %v17949_v0, 5  ;;  %v9352_v21 = vshrl.u32 %v9215_v46, 16  ;;  %v17959_v4 = vpop.f32.mrb[52].mxu1 }
 0x467   : > { %v7683_v56 = vor.u32 %v7681_v50, %v7680_v2  ;;  %v7684_v55 = vrot.slane %v7680_v2, 4  ;;  %v8152_v58 = vrot.slane %v8151_v20, 4  ;;  %v9125_v24 = vsel %vm13357_vm2, %v12482_v47, %v9124_v60  ;;  %v7203_v28 = vpop.f32.mrb[53].mxu1  ;;  %v17984_v54 = vld [vmem:[#allocation3 + $0x44] sm:$0x1] }
 0x468   : > { %v7691_v52 = vor.u32 %v7689_v7, %v7688_v31  ;;  %v7693_v37 = vrot.slane %v7688_v31, 4  ;;  %v8147_v36 = vsel %vm13401_vm5, %v8142_v44, %v8146_v43  ;;  %v9126_v33 = vrot.slane %v9124_v60, 4  ;;  %v17968_v23 = vpop.f32.mrb[54].mxu1  ;;  %v17986_v41 = vld [vmem:[#allocation3 + $0x4c] sm:$0xf] }
 0x469   : > { %v7928_v16 = vsel %vm14842_vm12, %v7683_v56, %v7927_v51  ;;  %v8157_v1 = vsel %vm13401_vm5, %v8152_v58, %v8156_v25  ;;  %v17974_v29 = vrot.slane %v9352_v21, 4  ;;  %v9355_v34 = vshll.u32 %v9215_v46, 16  ;;  %v7206_v27 = vpop.f32.mrb[55].mxu1  ;;  %v8608_v51 = vld [vmem:[#allocation3 + $0x48] sm:$0xf]  ;;  %v12990_v21 = vld [vmem:[%s19621_s7 + $0x38] sm:$0xff]  }
 0x46a   : > { %7929 = vst [vmem:[#allocation3 + $0x60] sm:$0xf] %v7928_v16  ;;  %v7692_v43 = vsel %vm14847_vm14, %v7684_v55, %v7691_v52  ;;  %v7932_v9 = vsel %vm14684_vm13, %v7693_v37, %v7931_v22  ;;  %v12530_v50 = vcombine.low %v8147_v36, %v8157_v1  ;;  %v9128_v38 = vsel %vm13357_vm2, %v9126_v33, %v9127_v63  ;;  %v9242_v58 = vld [vmem:[#allocation3 + $0x44] sm:$0x1]  ;;  %v12992_v16 = vld [vmem:[%s19621_s7 + $0x40] sm:$0xff]  }
 0x46b   : > { %7930 = vst.msk [vmem:[#allocation3 + $0x64] sm:$0xf] %vm3550_vm0, %v7692_v43  ;;  %7933 = vst [vmem:[#allocation3 + $0x68] sm:$0x1] %v7932_v9  ;;  %v12594_v7 = vcombine.low %v9125_v24, %v9128_v38  ;;  %v17989_v30 = vrot.slane %v9355_v34, 5  ;;  %v12610_v47 = vcombine.low %v9215_v46, %v17966_v59  ;;  %v9365_v2 = vshrl.u32 %v17966_v59, 16  ;;  %10910 = vmatpush1.bf16.msra.mxu0 %v12990_v21 }
 0x46c   : > { %9935 = vrot.lane.b32.xlu0 %v12530_v50, %s13214_s20  ;;  %v7271_v22 = vmul.f32 %v17910_v53, %v17885_v13  ;;  %v7272_v20 = vmul.f32 %v17910_v53, %v17897_v45  ;;  %v12467_v25 = vrot.slane %v8427_v8, 9  ;;  %v8523_v60 = vrot.slane %v17976_v49, 5  ;;  %v9217_v24 = vld [vmem:[#allocation3 + $0x54] sm:$0xf]  ;;  %v18025_v9 = vld [vmem:[#allocation3 + $0x58] sm:$0xf]  ;;  %10911 = vmatprep.subr.bf16.mxu0 %v20014_v57 }
 0x46d   : > { %10367 = vrot.lane.b32.xlu1 %v12610_v47, %s13219_s18  ;;  %v8526_v31 = vrot.slane %v17984_v54, 5  ;;  %v8767_v44 = vshrl.u32 %v8608_v51, 16  ;;  %v8770_v63 = vshll.u32 %v8608_v51, 16  ;;  %v12563_v46 = vcombine.low %v8608_v51, %v17986_v41 }
 0x46e   : > { %v7310_v13 = vadd.f32 %v17927_v26, %v7271_v22  ;;  %v7311_v56 = vadd.f32 %v17927_v26, %v7272_v20  ;;  %v8524_v45 = vsel %vm13357_vm2, %v12467_v25, %v8523_v60  ;;  %v8525_v55 = vrot.slane %v8523_v60, 4  ;;  %v18009_v8 = vpop.f32.mrb[56].mxu1 }
 0x46f   : > { %v18011_v28 = vrot.slane %v8767_v44, 4  ;;  %v18013_v52 = vrot.slane %v8770_v63, 5  ;;  %v8780_v37 = vshrl.u32 %v17986_v41, 16  ;;  %v9334_v36 = vor.u32 %v17817_v3, %v17815_v15  ;;  %v7211_v33 = vpop.f32.mrb[57].mxu1  ;;  %10912 = vmatpush1.bf16.msra.mxu0 %v12992_v16 }
 0x470   : > { %10271 = vrot.lane.b32.xlu0 %v12594_v7, %s13221_s27  ;;  %v7342_v1 = vmax.f32 %v7310_v13, 0.0  ;;  %v7343_v34 = vmax.f32 %v7311_v56, 0.0  ;;  %v8527_v27 = vsel %vm13357_vm2, %v8525_v55, %v8526_v31  ;;  %v9337_v43 = vshll.u32 %v17809_v40, 16  ;;  %v18027_v50 = vpop.f32.mrb[58].mxu1 }
 0x471   : > { %v12547_v15 = vcombine.low %v8524_v45, %v8527_v27  ;;  %10113 = vrot.lane.b32.xlu1 %v12563_v46, %s13220_s21  ;;  %v9335_v3 = vrot.slane %v9334_v36, 4  ;;  %v9343_v38 = vrot.slane %v9341_v35, 4  ;;  %v9347_v51 = vshll.u32 %v9242_v58, 16  ;;  %v7214_v7 = vpop.f32.mrb[59].mxu1  ;;  %v7934_v58 = vld [vmem:[#allocation3 + $0x6c] sm:$0xf] }
 0x472   : > { %v12732_v47 = vpack.c.bf16 %v7342_v1, %v7342_v1  ;;  %v12733_v22 = vpack.c.bf16 %v7343_v34, %v7343_v34  ;;  %v9339_v20 = vrot.slane %v9337_v43, 5  ;;  %v9376_v25 = vshrl.u32 %v9217_v24, 16  ;;  %v7938_v1 = vld [vmem:[#allocation3 + $0x74] sm:$0x1] }
 0x473   : > { %v9349_v60 = vrot.slane %v9347_v51, 5  ;;  %v9379_v31 = vshll.u32 %v9217_v24, 16  ;;  %v12611_v44 = vcombine.low %v9217_v24, %v18025_v9  ;;  %v9389_v63 = vshrl.u32 %v18025_v9, 16 }
 0x474   : > { %v7695_v57 = vshrl.u32 %v12732_v47, 16  ;;  %v7698_v21 = vshll.u32 %v12732_v47, 16  ;;  %v7703_v46 = vshrl.u32 %v12733_v22, 16  ;;  %v7706_v13 = vshll.u32 %v12733_v22, 16  ;;  %10017 = vrot.lane.b32.xlu0 %v12547_v15, %s13217_s28 }
 0x475   : > { %v9340_v40 = vsel %vm13401_vm5, %v9335_v3, %v9339_v20  ;;  %v9344_v35 = vor.u32 %v9343_v38, %v9339_v20  ;;  %v18038_v56 = vrot.slane %v9376_v25, 4  ;;  %v18040_v45 = vrot.slane %v9379_v31, 5  ;;  %v8610_v20 = vld [vmem:[#allocation3 + $0x54] sm:$0xf] }
 0x476   : > { %v7697_v55 = vrot.slane %v7695_v57, 7  ;;  %v7705_v24 = vrot.slane %v7703_v46, 7  ;;  %v7273_v36 = vmul.f32 %v17910_v53, %v17933_v62  ;;  %v7274_v33 = vmul.f32 %v17910_v53, %v17945_v39  ;;  %v18046_v16 = vpop.f32.mrb[60].mxu1 }
 0x477   : > { %v9345_v34 = vrot.slane %v9344_v35, 4  ;;  %v8749_v27 = vor.u32 %v17862_v12, %v17854_v11  ;;  %v8752_v43 = vshll.u32 %v17846_v6, 16  ;;  %v8758_v15 = vrot.slane %v8756_v42, 4  ;;  %v7219_v3 = vpop.f32.mrb[61].mxu1  ;;  %v18060_v6 = vld [vmem:[#allocation3 + $0x58] sm:$0xf] }
 0x478   : > { %v7700_v38 = vor.u32 %v7698_v21, %v7697_v55  ;;  %v7701_v51 = vrot.slane %v7697_v55, 4  ;;  %v7708_v7 = vor.u32 %v7706_v13, %v7705_v24  ;;  %v7710_v62 = vrot.slane %v7705_v24, 4  ;;  %10369 = vrot.lane.b32.xlu0 %v12611_v44, %s13219_s18  ;;  %v18054_v39 = vpop.f32.mrb[62].mxu1  ;;  %v8000_v35 = vld [vmem:[#allocation3 + $0x3c] sm:$0xf] }
 0x479   : > { %v9350_v47 = vsel %vm13401_vm5, %v9345_v34, %v9349_v60  ;;  %v7312_v22 = vadd.f32 %v17927_v26, %v7273_v36  ;;  %v7313_v11 = vadd.f32 %v17927_v26, %v7274_v33  ;;  %v8750_v12 = vrot.slane %v8749_v27, 4  ;;  %v7222_v42 = vpop.f32.mrb[63].mxu1 }
 0x47a   : > { %v7935_v25 = vsel %vm14842_vm12, %v7700_v38, %v7934_v58  ;;  %v7709_v31 = vsel %vm14847_vm14, %v7701_v51, %v7708_v7  ;;  %v7939_v44 = vsel %vm14684_vm13, %v7710_v62, %v7938_v1  ;;  %v12625_v57 = vcombine.low %v9340_v40, %v9350_v47 }
 0x47b   : > { %7936 = vst [vmem:[#allocation3 + $0x6c] sm:$0xf] %v7935_v25  ;;  %7937 = vst.msk [vmem:[#allocation3 + $0x70] sm:$0xf] %vm3550_vm0, %v7709_v31  ;;  %v7344_v60 = vmax.f32 %v7312_v22, 0.0  ;;  %v7345_v21 = vmax.f32 %v7313_v11, 0.0  ;;  %v12564_v24 = vcombine.low %v8610_v20, %v18060_v6 }
 0x47c   : > { %7940 = vst [vmem:[#allocation3 + $0x74] sm:$0x1] %v7939_v44  ;;  %v8754_v46 = vrot.slane %v8752_v43, 5  ;;  %v8762_v13 = vshll.u32 %v17949_v0, 16  ;;  %10445 = vrot.lane.b32.xlu1 %v12625_v57, %s13222_s29  ;;  %v8791_v55 = vshrl.u32 %v8610_v20, 16  ;;  %v8794_v58 = vshll.u32 %v8610_v20, 16 }
 0x47d   : > { %v8804_v36 = vshrl.u32 %v18060_v6, 16  ;;  %v12734_v33 = vpack.c.bf16 %v7344_v60, %v7344_v60  ;;  %v12735_v40 = vpack.c.bf16 %v7345_v21, %v7345_v21  ;;  %10115 = vrot.lane.b32.xlu0 %v12564_v24, %s13220_s21  ;;  %v8159_v0 = vshrl.u32 %v8000_v35, 16  ;;  %v7941_v21 = vld [vmem:[#allocation3 + $0x78] sm:$0xf] }
 0x47e   : > { %v8755_v1 = vsel %vm13401_vm5, %v8750_v12, %v8754_v46  ;;  %v8759_v34 = vor.u32 %v8758_v15, %v8754_v46  ;;  %v8764_v27 = vrot.slane %v8762_v13, 5  ;;  %v18075_v3 = vrot.slane %v8791_v55, 4  ;;  %v18080_v38 = vpop.f32.mrb[64].mxu1  ;;  %v7945_v46 = vld [vmem:[#allocation3 + $0x80] sm:$0x1] }
 0x47f   : > { %v18077_v43 = vrot.slane %v8794_v58, 5  ;;  %v7712_v51 = vshrl.u32 %v12734_v33, 16  ;;  %v7715_v7 = vshll.u32 %v12734_v33, 16  ;;  %v7720_v62 = vshrl.u32 %v12735_v40, 16  ;;  %v7227_v22 = vpop.f32.mrb[65].mxu1 }
 0x480   : > { %v7723_v47 = vshll.u32 %v12735_v40, 16  ;;  %v8760_v11 = vrot.slane %v8759_v34, 4  ;;  %v8161_v20 = vrot.slane %v8159_v0, 4  ;;  %v8162_v42 = vshll.u32 %v8000_v35, 16  ;;  %v18083_v12 = vpop.f32.mrb[66].mxu1 }
 0x481   : > { %v8168_v15 = vshll.u32 %v17976_v49, 16  ;;  %v7714_v25 = vrot.slane %v7712_v51, 7  ;;  %v7722_v31 = vrot.slane %v7720_v62, 7  ;;  %v8172_v44 = vshrl.u32 %v17976_v49, 16  ;;  %v7230_v60 = vpop.f32.mrb[67].mxu1 }
 0x482   : > { %v8178_v57 = vshll.u32 %v17984_v54, 16  ;;  %v8765_v13 = vsel %vm13401_vm5, %v8760_v11, %v8764_v27  ;;  %v8164_v55 = vrot.slane %v8162_v42, 5  ;;  %v9358_v35 = vor.u32 %v17989_v30, %v17974_v29  ;;  %v9243_v54 = vld [vmem:[#allocation3 + $0x50] sm:$0x1]  ;;  %v7460_v29 = vld [vmem:[#allocation3 + $0x8c] sm:$0x1] }
 0x483   : > { %v8170_v58 = vrot.slane %v8168_v15, 5  ;;  %v7717_v24 = vor.u32 %v7715_v7, %v7714_v25  ;;  %v7718_v33 = vrot.slane %v7714_v25, 4  ;;  %v7725_v40 = vor.u32 %v7723_v47, %v7722_v31  ;;  %v10008_v15 = vpop.permute.xlu1 %10007  ;;  %v9035_v60 = vld [vmem:[#allocation3 + $0x48] sm:$0xe] }
 0x484   : > { %v7727_v34 = vrot.slane %v7722_v31, 4  ;;  %v12578_v0 = vcombine.low %v8755_v1, %v8765_v13  ;;  %v8165_v51 = vor.u32 %v8164_v55, %v8161_v20  ;;  %v8174_v49 = vrot.slane %v8172_v44, 4  ;;  %v9928_v20 = vpop.permute.xlu0 %9927 }
 0x485   : > { %v8180_v62 = vrot.slane %v8178_v57, 5  ;;  %v7942_v22 = vsel %vm14842_vm12, %v7717_v24, %v7941_v21  ;;  %v7726_v27 = vsel %vm14847_vm14, %v7718_v33, %v7725_v40  ;;  %v9359_v42 = vrot.slane %v9358_v35, 4 }
 0x486   : > { %v7946_v11 = vsel %vm14684_vm13, %v7727_v34, %v7945_v46  ;;  %7943 = vst [vmem:[#allocation3 + $0x78] sm:$0xf] %v7942_v22  ;;  %7944 = vst.msk [vmem:[#allocation3 + $0x7c] sm:$0xf] %vm3550_vm0, %v7726_v27  ;;  %10191 = vrot.lane.b32.xlu1 %v12578_v0, %s13223_s30  ;;  %v8166_v30 = vrot.slane %v8165_v51, 4  ;;  %v8175_v1 = vor.u32 %v8174_v49, %v8170_v58  ;;  %v9361_v7 = vshll.u32 %v17966_v59, 16 }
 0x487   : > { %7947 = vst [vmem:[#allocation3 + $0x80] sm:$0x1] %v7946_v11  ;;  %v9367_v47 = vrot.slane %v9365_v2, 4  ;;  %v9371_v25 = vshll.u32 %v9243_v54, 16  ;;  %v7275_v31 = vmul.f32 %v17910_v53, %v17959_v4  ;;  %v10521_v44 = vsel %vm3041_vm9, %v12510_v5, %v9928_v20 }
 0x488   : > { %v7276_v57 = vmul.f32 %v17910_v53, %v17968_v23  ;;  %v18110_v21 = vpop.f32.mrb[68].mxu1  ;;  %v8171_v59 = vsel %vm13401_vm5, %v8166_v30, %v8170_v58  ;;  %v8176_v2 = vrot.slane %v8175_v1, 4  ;;  %v9363_v46 = vrot.slane %v9361_v7, 5  ;;  %v8635_v23 = vld [vmem:[#allocation3 + $0x50] sm:$0x1] }
 0x489   : > { %v7461_v13 = vsel %vm14724_vm3, 0, %v7460_v29  ;;  %v7235_v4 = vpop.f32.mrb[69].mxu1  ;;  %v9373_v55 = vrot.slane %v9371_v25, 5  ;;  %v7314_v48 = vadd.f32 %v17927_v26, %v7275_v31  ;;  %v10568_v5 = vsel %vm20015_vm11, %v10521_v44, %v10008_v15  ;;  %v8003_v25 = vld [vmem:[#allocation3 + $0x4c] sm:$0xf] }
 0x48a   : > { %v7315_v32 = vadd.f32 %v17927_v26, %v7276_v57  ;;  %7462 = vst [vmem:[#allocation3 + $0x8c] sm:$0x1] %v7461_v13  ;;  %v18119_v35 = vpop.f32.mrb[70].mxu1  ;;  %v8181_v58 = vsel %vm13401_vm5, %v8176_v2, %v8180_v62  ;;  %v9364_v24 = vsel %vm13401_vm5, %v9359_v42, %v9363_v46  ;;  %v9368_v33 = vor.u32 %v9367_v47, %v9363_v46  ;;  %v10104_v57 = vpop.permute.xlu0 %10103 }
 0x48b   : > { %v12483_v40 = vrot.slane %v9035_v60, 9  ;;  %v7238_v34 = vpop.f32.mrb[71].mxu1  ;;  %v12531_v0 = vcombine.low %v8171_v59, %v8181_v58  ;;  %v7346_v51 = vmax.f32 %v7314_v48, 0.0  ;;  %v9131_v54 = vrot.slane %v17986_v41, 5  ;;  %v8428_v60 = vld [vmem:[#allocation3 + $0x48] sm:$0xe] }
 0x48c   : > { %v7347_v49 = vmax.f32 %v7315_v32, 0.0  ;;  %v9369_v22 = vrot.slane %v9368_v33, 4  ;;  %v9134_v27 = vrot.slane %v8635_v23, 5  ;;  %v8773_v11 = vor.u32 %v18013_v52, %v18011_v28  ;;  %v7948_v59 = vld [vmem:[#allocation3 + $0x84] sm:$0xf] }
 0x48d   : > { %v8776_v29 = vshll.u32 %v17986_v41, 16  ;;  %9937 = vrot.lane.b32.xlu1 %v12531_v0, %s13214_s20  ;;  %v12736_v62 = vpack.c.bf16 %v7346_v51, %v7346_v51  ;;  %v9132_v42 = vsel %vm13357_vm2, %v12483_v40, %v9131_v54  ;;  %v9133_v1 = vrot.slane %v9131_v54, 4  ;;  %v8002_v58 = vld [vmem:[#allocation3 + $0x48] sm:$0xf] }
 0x48e   : > { %v12737_v30 = vpack.c.bf16 %v7347_v49, %v7347_v49  ;;  %v9374_v7 = vsel %vm13401_vm5, %v9369_v22, %v9373_v55  ;;  %v8774_v47 = vrot.slane %v8773_v11, 4  ;;  %v8782_v15 = vrot.slane %v8780_v37, 4  ;;  %v8028_v55 = vld [vmem:[#allocation3 + $0x50] sm:$0x1] }
 0x48f   : > { %v8778_v20 = vrot.slane %v8776_v29, 5  ;;  %v12626_v28 = vcombine.low %v9364_v24, %v9374_v7  ;;  %v7729_v52 = vshrl.u32 %v12736_v62, 16  ;;  %v7732_v31 = vshll.u32 %v12736_v62, 16  ;;  %v7415_v7 = vld [vmem:[#allocation3 + $0x90] sm:$0x1] }
 0x490   : > { %v7737_v44 = vshrl.u32 %v12737_v30, 16  ;;  %v7740_v2 = vshll.u32 %v12737_v30, 16  ;;  %v9135_v46 = vsel %vm13357_vm2, %v9133_v1, %v9134_v27  ;;  %v8786_v32 = vshll.u32 %v8635_v23, 16 }
 0x491   : > { %v8779_v13 = vsel %vm13401_vm5, %v8774_v47, %v8778_v20  ;;  %v8783_v4 = vor.u32 %v8782_v15, %v8778_v20  ;;  %10447 = vrot.lane.b32.xlu0 %v12626_v28, %s13222_s29  ;;  %v7731_v41 = vrot.slane %v7729_v52, 7  ;;  %v12595_v48 = vcombine.low %v9132_v42, %v9135_v46  ;;  %v7952_v24 = vld [vmem:[#allocation3 + $0x8c] sm:$0x1]  ;;  %v7463_v52 = vld [vmem:[#allocation3 + $0x98] sm:$0x1] }
 0x492   : > { %v7739_v37 = vrot.slane %v7737_v44, 7  ;;  %v18142_v40 = vsel %vm6786_vm4, %v10568_v5, %v10104_v57  ;;  %v12468_v34 = vrot.slane %v8428_v60, 9  ;;  %v8530_v0 = vrot.slane %v8003_v25, 5 }
 0x493   : > { %v8784_v33 = vrot.slane %v8783_v4, 4  ;;  %v7734_v51 = vor.u32 %v7732_v31, %v7731_v41  ;;  %v7735_v49 = vrot.slane %v7731_v41, 4  ;;  %10273 = vrot.lane.b32.xlu1 %v12595_v48, %s13221_s27  ;;  %v8788_v27 = vrot.slane %v8786_v32, 5  ;;  %v18164_v32 = vld [vmem:[#allocation3 + $0x5c] sm:$0x1] }
 0x494   : > { %v7742_v54 = vor.u32 %v7740_v2, %v7739_v37  ;;  %v7744_v22 = vrot.slane %v7739_v37, 4  ;;  %v8531_v11 = vsel %vm13357_vm2, %v12468_v34, %v8530_v0  ;;  %v8532_v29 = vrot.slane %v8530_v0, 4  ;;  %v9036_v2 = vld [vmem:[#allocation3 + $0x54] sm:$0xe] }
 0x495   : > { %v8533_v23 = vrot.slane %v8028_v55, 5  ;;  %v18147_v62 = vpop.f32.mrb[72].mxu1  ;;  %v7949_v5 = vsel %vm14842_vm12, %v7734_v51, %v7948_v59  ;;  %v8183_v1 = vshrl.u32 %v8002_v58, 16  ;;  %v8789_v47 = vsel %vm13401_vm5, %v8784_v33, %v8788_v27  ;;  %v9219_v33 = vld [vmem:[#allocation3 + $0x60] sm:$0xf] }
 0x496   : > { %v7743_v30 = vsel %vm14847_vm14, %v7735_v49, %v7742_v54  ;;  %v7953_v42 = vsel %vm14684_vm13, %v7744_v22, %v7952_v24  ;;  %7950 = vst [vmem:[#allocation3 + $0x84] sm:$0xf] %v7949_v5  ;;  %v8186_v15 = vshll.u32 %v8002_v58, 16  ;;  %v8192_v28 = vshll.u32 %v8003_v25, 16  ;;  %v7243_v31 = vpop.f32.mrb[73].mxu1 }
 0x497   : > { %7951 = vst.msk [vmem:[#allocation3 + $0x88] sm:$0xf] %vm3550_vm0, %v7743_v30  ;;  %7954 = vst [vmem:[#allocation3 + $0x8c] sm:$0x1] %v7953_v42  ;;  %v8534_v20 = vsel %vm13357_vm2, %v8532_v29, %v8533_v23  ;;  %v12579_v44 = vcombine.low %v8779_v13, %v8789_v47  ;;  %v8185_v60 = vrot.slane %v8183_v1, 4  ;;  %v8196_v59 = vshrl.u32 %v8003_v25, 16 }
 0x498   : > { %v12548_v57 = vcombine.low %v8531_v11, %v8534_v20  ;;  %v18160_v46 = vpop.f32.mrb[74].mxu1  ;;  %v8188_v4 = vrot.slane %v8186_v15, 5  ;;  %v8194_v41 = vrot.slane %v8192_v28, 5  ;;  %v8202_v37 = vshll.u32 %v8028_v55, 16  ;;  %v18178_v29 = vld [vmem:[#allocation3 + $0x64] sm:$0xf] }
 0x499   : > { %v7277_v48 = vmul.f32 %v17910_v53, %v18009_v8  ;;  %v7246_v24 = vpop.f32.mrb[75].mxu1  ;;  %10193 = vrot.lane.b32.xlu0 %v12579_v44, %s13223_s30  ;;  %v8198_v13 = vrot.slane %v8196_v59, 4  ;;  %v7416_v25 = vsel %vm14684_vm13, 0, %v7415_v7  ;;  %v7278_v58 = vmul.f32 %v17910_v53, %v18027_v50  ;;  %v18195_v59 = vld [vmem:[#allocation3 + $0x58] sm:$0xf] }
 0x49a   : > { %10019 = vrot.lane.b32.xlu1 %v12548_v57, %s13217_s28  ;;  %v7464_v55 = vsel %vm14724_vm3, 0, %v7463_v52  ;;  %v8189_v34 = vor.u32 %v8188_v4, %v8185_v60  ;;  %v8204_v8 = vrot.slane %v8202_v37, 5  ;;  %7417 = vst [vmem:[#allocation3 + $0x90] sm:$0x1] %v7416_v25  ;;  %v12484_v51 = vrot.slane %v9036_v2, 9 }
 0x49b   : > { %v7316_v0 = vadd.f32 %v17927_v26, %v7277_v48  ;;  %7465 = vst [vmem:[#allocation3 + $0x98] sm:$0x1] %v7464_v55  ;;  %v8199_v49 = vor.u32 %v8198_v13, %v8194_v41  ;;  %v7317_v54 = vadd.f32 %v17927_v26, %v7278_v58  ;;  %v9138_v22 = vrot.slane %v18060_v6, 5  ;;  %v18188_v52 = vld [vmem:[#allocation3 + $0x64] sm:$0xf] }
 0x49c   : > { %v9141_v27 = vrot.slane %v18164_v32, 5  ;;  %v8190_v11 = vrot.slane %v8189_v34, 4  ;;  %v9400_v23 = vshrl.u32 %v9219_v33, 16  ;;  %v9403_v5 = vshll.u32 %v9219_v33, 16  ;;  %v8429_v2 = vld [vmem:[#allocation3 + $0x54] sm:$0xe] }
 0x49d   : > { %v7348_v50 = vmax.f32 %v7316_v0, 0.0  ;;  %v8200_v30 = vrot.slane %v8199_v49, 4  ;;  %v7349_v42 = vmax.f32 %v7317_v54, 0.0  ;;  %v9139_v1 = vsel %vm13357_vm2, %v12484_v51, %v9138_v22  ;;  %v18197_v24 = vld [vmem:[#allocation3 + $0x5c] sm:$0x1] }
 0x49e   : > { %v9140_v7 = vrot.slane %v9138_v22, 4  ;;  %v8195_v47 = vsel %vm13401_vm5, %v8190_v11, %v8194_v41  ;;  %v18184_v15 = vrot.slane %v9400_v23, 4  ;;  %v18186_v28 = vrot.slane %v9403_v5, 5  ;;  %v8612_v13 = vld [vmem:[#allocation3 + $0x60] sm:$0xf] }
 0x49f   : > { %v12738_v20 = vpack.c.bf16 %v7348_v50, %v7348_v50  ;;  %v8205_v31 = vsel %vm13401_vm5, %v8200_v30, %v8204_v8  ;;  %v12739_v44 = vpack.c.bf16 %v7349_v42, %v7349_v42  ;;  %v12612_v60 = vcombine.low %v9219_v33, %v18178_v29  ;;  %v7418_v42 = vld [vmem:[#allocation3 + $0x9c] sm:$0x1] }
 0x4a0   : > { %v9142_v57 = vsel %vm13357_vm2, %v9140_v7, %v9141_v27  ;;  %v12532_v4 = vcombine.low %v8195_v47, %v8205_v31  ;;  %v12565_v55 = vcombine.low %v8612_v13, %v18188_v52  ;;  %v7279_v34 = vmul.f32 %v17910_v53, %v18046_v16  ;;  %v7466_v31 = vld [vmem:[#allocation3 + $0xa4] sm:$0x1] }
 0x4a1   : > { %v7746_v41 = vshrl.u32 %v12738_v20, 16  ;;  %v7749_v37 = vshll.u32 %v12738_v20, 16  ;;  %v12596_v48 = vcombine.low %v9139_v1, %v9142_v57  ;;  %v7754_v25 = vshrl.u32 %v12739_v44, 16  ;;  %10371 = vrot.lane.b32.xlu1 %v12612_v60, %s13219_s18  ;;  %v7955_v49 = vld [vmem:[#allocation3 + $0x90] sm:$0xf] }
 0x4a2   : > { %v7757_v58 = vshll.u32 %v12739_v44, 16  ;;  %9939 = vrot.lane.b32.xlu0 %v12532_v4, %s13214_s20  ;;  %v9413_v8 = vshrl.u32 %v18178_v29, 16  ;;  %v12469_v0 = vrot.slane %v8429_v2, 9  ;;  %v8537_v51 = vrot.slane %v18195_v59, 5  ;;  %v7959_v5 = vld [vmem:[#allocation3 + $0x98] sm:$0x1] }
 0x4a3   : > { %v7748_v33 = vrot.slane %v7746_v41, 7  ;;  %v7756_v54 = vrot.slane %v7754_v25, 7  ;;  %v8540_v22 = vrot.slane %v18197_v24, 5  ;;  %v8815_v27 = vshrl.u32 %v8612_v13, 16  ;;  %v9244_v4 = vld [vmem:[#allocation3 + $0x5c] sm:$0x1] }
 0x4a4   : > { %v8818_v11 = vshll.u32 %v8612_v13, 16  ;;  %v8538_v16 = vsel %vm13357_vm2, %v12469_v0, %v8537_v51  ;;  %v8539_v30 = vrot.slane %v8537_v51, 4  ;;  %v8828_v60 = vshrl.u32 %v18188_v52, 16  ;;  %v9221_v41 = vld [vmem:[#allocation3 + $0x6c] sm:$0xf] }
 0x4a5   : > { %v7751_v50 = vor.u32 %v7749_v37, %v7748_v33  ;;  %v7752_v23 = vrot.slane %v7748_v33, 4  ;;  %v7759_v1 = vor.u32 %v7757_v58, %v7756_v54  ;;  %v7761_v7 = vrot.slane %v7756_v54, 4  ;;  %10117 = vrot.lane.b32.xlu1 %v12565_v55, %s13220_s21  ;;  %v18234_v0 = vld [vmem:[#allocation3 + $0x70] sm:$0xf] }
 0x4a6   : > { %v18209_v47 = vrot.slane %v8815_v27, 4  ;;  %v18211_v20 = vrot.slane %v8818_v11, 5  ;;  %10275 = vrot.lane.b32.xlu0 %v12596_v48, %s13221_s27  ;;  %v8541_v57 = vsel %vm13357_vm2, %v8539_v30, %v8540_v22  ;;  %v7318_v2 = vadd.f32 %v17927_v26, %v7279_v34 }
 0x4a7   : > { %v7956_v44 = vsel %vm14842_vm12, %v7751_v50, %v7955_v49  ;;  %v7760_v37 = vsel %vm14847_vm14, %v7752_v23, %v7759_v1  ;;  %v7960_v13 = vsel %vm14684_vm13, %v7761_v7, %v7959_v5  ;;  %v12549_v25 = vcombine.low %v8538_v16, %v8541_v57 }
 0x4a8   : > { %7957 = vst [vmem:[#allocation3 + $0x90] sm:$0xf] %v7956_v44  ;;  %v7419_v48 = vsel %vm14684_vm13, 0, %v7418_v42  ;;  %7958 = vst.msk [vmem:[#allocation3 + $0x94] sm:$0xf] %vm3550_vm0, %v7760_v37  ;;  %v7350_v58 = vmax.f32 %v7318_v2, 0.0  ;;  %v7280_v55 = vmul.f32 %v17910_v53, %v18054_v39  ;;  %v9382_v33 = vor.u32 %v18040_v45, %v18038_v56 }
 0x4a9   : > { %7961 = vst [vmem:[#allocation3 + $0x98] sm:$0x1] %v7960_v13  ;;  %7420 = vst [vmem:[#allocation3 + $0x9c] sm:$0x1] %v7419_v48  ;;  %v7467_v34 = vsel %vm14724_vm3, 0, %v7466_v31  ;;  %v9385_v51 = vshll.u32 %v18025_v9, 16  ;;  %v12613_v45 = vcombine.low %v9221_v41, %v18234_v0  ;;  %v8797_v44 = vor.u32 %v18077_v43, %v18075_v3 }
 0x4aa   : > { %7468 = vst [vmem:[#allocation3 + $0xa4] sm:$0x1] %v7467_v34  ;;  %v9391_v49 = vrot.slane %v9389_v63, 4  ;;  %v9395_v54 = vshll.u32 %v9244_v4, 16  ;;  %v9424_v22 = vshrl.u32 %v9221_v41, 16  ;;  %10021 = vrot.lane.b32.xlu0 %v12549_v25, %s13217_s28  ;;  %v12740_v27 = vpack.c.bf16 %v7350_v58, %v7350_v58 }
 0x4ab   : > { %v7319_v39 = vadd.f32 %v17927_v26, %v7280_v55  ;;  %v9383_v11 = vrot.slane %v9382_v33, 4  ;;  %v9427_v50 = vshll.u32 %v9221_v41, 16  ;;  %v9387_v23 = vrot.slane %v9385_v51, 5  ;;  %v8614_v63 = vld [vmem:[#allocation3 + $0x6c] sm:$0xf]  ;;  %v18256_v55 = vpop.permute.xlu1 %10359 }
 0x4ac   : > { %v9397_v5 = vrot.slane %v9395_v54, 5  ;;  %v18241_v56 = vrot.slane %v9424_v22, 4  ;;  %v7763_v16 = vshrl.u32 %v12740_v27, 16  ;;  %v7766_v30 = vshll.u32 %v12740_v27, 16  ;;  %v18258_v51 = vld [vmem:[#allocation3 + $0x70] sm:$0xf] }
 0x4ad   : > { %v7351_v42 = vmax.f32 %v7319_v39, 0.0  ;;  %v18244_v9 = vrot.slane %v9427_v50, 5  ;;  %v9388_v1 = vsel %vm13401_vm5, %v9383_v11, %v9387_v23  ;;  %v9392_v7 = vor.u32 %v9391_v49, %v9387_v23  ;;  %v18260_v49 = vpop.permute.xlu0 %10263  ;;  %v7421_v50 = vld [vmem:[#allocation3 + $0xa8] sm:$0x1]  ;;  %v7469_v23 = vld [vmem:[#allocation3 + $0xb0] sm:$0x1] }
 0x4ae   : > { %v9437_v31 = vshrl.u32 %v18234_v0, 16  ;;  %v7765_v57 = vrot.slane %v7763_v16, 7  ;;  %10373 = vrot.lane.b32.xlu0 %v12613_v45, %s13219_s18  ;;  %v8800_v4 = vshll.u32 %v18060_v6, 16  ;;  %v8806_v41 = vrot.slane %v8804_v36, 4 }
 0x4af   : > { %v12741_v2 = vpack.c.bf16 %v7351_v42, %v7351_v42  ;;  %v9393_v13 = vrot.slane %v9392_v7, 4  ;;  %v8798_v25 = vrot.slane %v8797_v44, 4  ;;  %v8810_v48 = vshll.u32 %v18164_v32, 16  ;;  %v8004_v7 = vld [vmem:[#allocation3 + $0x54] sm:$0xf] }
 0x4b0   : > { %v7962_v37 = vld [vmem:[#allocation3 + $0x9c] sm:$0xf]  ;;  %v8839_v58 = vshrl.u32 %v8614_v63, 16  ;;  %v7768_v34 = vor.u32 %v7766_v30, %v7765_v57  ;;  %v7769_v33 = vrot.slane %v7765_v57, 4  ;;  %v8802_v36 = vrot.slane %v8800_v4, 5 }
 0x4b1   : > { %v7771_v3 = vshrl.u32 %v12741_v2, 16  ;;  %v7774_v43 = vshll.u32 %v12741_v2, 16  ;;  %v9398_v6 = vsel %vm13401_vm5, %v9393_v13, %v9397_v5  ;;  %v8812_v54 = vrot.slane %v8810_v48, 5  ;;  %v7966_v45 = vld [vmem:[#allocation3 + $0xa4] sm:$0x1] }
 0x4b2   : > { %v18264_v22 = vrot.slane %v8839_v58, 4  ;;  %v7963_v32 = vsel %vm14842_vm12, %v7768_v34, %v7962_v37  ;;  %v12627_v39 = vcombine.low %v9388_v1, %v9398_v6  ;;  %v8842_v11 = vshll.u32 %v8614_v63, 16  ;;  %v18296_v34 = vpop.permute.xlu0 %10009 }
 0x4b3   : > { %v7773_v27 = vrot.slane %v7771_v3, 7  ;;  %7964 = vst [vmem:[#allocation3 + $0x9c] sm:$0xf] %v7963_v32  ;;  %v8803_v16 = vsel %vm13401_vm5, %v8798_v25, %v8802_v36  ;;  %v8807_v30 = vor.u32 %v8806_v41, %v8802_v36  ;;  %v12566_v5 = vcombine.low %v8614_v63, %v18258_v51  ;;  %v18283_v63 = vld [vmem:[%s19619_s5] ss:$0 sm:$0xff]  ;;  %v18289_v25 = vpop.permute.xlu1 %10105 }
 0x4b4   : > { %v8852_v42 = vshrl.u32 %v18258_v51, 16  ;;  %10449 = vrot.lane.b32.xlu1 %v12627_v39, %s13222_s29  ;;  %v18273_v2 = vrot.slane %v8842_v11, 5  ;;  %v7281_v1 = vmul.f32 %v17910_v53, %v18080_v38  ;;  %v7422_v41 = vsel %vm14684_vm13, 0, %v7421_v50 }
 0x4b5   : > { %v7776_v44 = vor.u32 %v7774_v43, %v7773_v27  ;;  %v7778_v57 = vrot.slane %v7773_v27, 4  ;;  %v8808_v4 = vrot.slane %v8807_v30, 4  ;;  %10119 = vrot.lane.b32.xlu0 %v12566_v5, %s13220_s21  ;;  %v7282_v37 = vmul.f32 %v18283_v63, %v18083_v12  ;;  %7423 = vst [vmem:[#allocation3 + $0xa8] sm:$0x1] %v7422_v41 }
 0x4b6   : > { %v7470_v13 = vsel %vm14724_vm3, 0, %v7469_v23  ;;  %v7320_v48 = vadd.f32 %v17927_v26, %v7281_v1  ;;  %v8207_v58 = vshrl.u32 %v8004_v7, 16  ;;  %v8210_v43 = vshll.u32 %v8004_v7, 16 }
 0x4b7   : > { %v7777_v53 = vsel %vm14847_vm14, %v7769_v33, %v7776_v44  ;;  %v7967_v38 = vsel %vm14684_vm13, %v7778_v57, %v7966_v45  ;;  %7471 = vst [vmem:[#allocation3 + $0xb0] sm:$0x1] %v7470_v13  ;;  %v8813_v12 = vsel %vm13401_vm5, %v8808_v4, %v8812_v54  ;;  %v18304_v33 = vld [vmem:[%s19620_s6] ss:$0 sm:$0xff]  ;;  %v8216_v26 = vshll.u32 %v18195_v59, 16  ;;  %v18316_v1 = vpop.permute.xlu1 %10183  ;;  %v18318_v4 = vpop.permute.xlu0 %10361 }
 0x4b8   : > { %7965 = vst.msk [vmem:[#allocation3 + $0xa0] sm:$0xf] %vm3550_vm0, %v7777_v53  ;;  %7968 = vst [vmem:[#allocation3 + $0xa4] sm:$0x1] %v7967_v38  ;;  %v7321_v3 = vadd.f32 %v18304_v33, %v7282_v37  ;;  %v12580_v6 = vcombine.low %v8803_v16, %v8813_v12  ;;  %v7352_v36 = vmax.f32 %v7320_v48, 0.0  ;;  %v8209_v32 = vrot.slane %v8207_v58, 4 }
 0x4b9   : > { %v8220_v27 = vshrl.u32 %v18195_v59, 16  ;;  %v8212_v11 = vrot.slane %v8210_v43, 5  ;;  %v8218_v50 = vrot.slane %v8216_v26, 5  ;;  %v8226_v54 = vshll.u32 %v18197_v24, 16  ;;  %v9245_v57 = vld [vmem:[#allocation3 + $0x68] sm:$0x1] }
 0x4ba   : > { %v7353_v39 = vmax.f32 %v7321_v3, 0.0  ;;  %10195 = vrot.lane.b32.xlu1 %v12580_v6, %s13223_s30  ;;  %v12742_v23 = vpack.c.bf16 %v7352_v36, %v7352_v36  ;;  %v9406_v30 = vor.u32 %v18186_v28, %v18184_v15  ;;  %v9409_v5 = vshll.u32 %v18178_v29, 16  ;;  %v9037_v53 = vld [vmem:[#allocation3 + $0x60] sm:$0xe] }
 0x4bb   : > { %v8222_v45 = vrot.slane %v8220_v27, 4  ;;  %v8213_v16 = vor.u32 %v8212_v11, %v8209_v32  ;;  %v8228_v44 = vrot.slane %v8226_v54, 5  ;;  %v9415_v59 = vrot.slane %v9413_v8, 4 }
 0x4bc   : > { %v12743_v7 = vpack.c.bf16 %v7353_v39, %v7353_v39  ;;  %v7780_v24 = vshrl.u32 %v12742_v23, 16  ;;  %v7783_v41 = vshll.u32 %v12742_v23, 16  ;;  %v9407_v13 = vrot.slane %v9406_v30, 4  ;;  %v7969_v3 = vld [vmem:[#allocation3 + $0xa8] sm:$0xf]  ;;  %v18331_v30 = vpop.permute.xlu1 %9929 }
 0x4bd   : > { %v8223_v37 = vor.u32 %v8222_v45, %v8218_v50  ;;  %v8821_v28 = vor.u32 %v18211_v20, %v18209_v47  ;;  %v7283_v48 = vmul.f32 %v18283_v63, %v18110_v21  ;;  %v8214_v29 = vrot.slane %v8213_v16, 4  ;;  %v8637_v21 = vld [vmem:[#allocation3 + $0x68] sm:$0x1] }
 0x4be   : > { %v7788_v38 = vshrl.u32 %v12743_v7, 16  ;;  %v7791_v15 = vshll.u32 %v12743_v7, 16  ;;  %v7782_v58 = vrot.slane %v7780_v24, 7  ;;  %v9411_v12 = vrot.slane %v9409_v5, 5  ;;  %v7973_v39 = vld [vmem:[#allocation3 + $0xb0] sm:$0x1]  ;;  %v18333_v5 = vpop.permute.xlu0 %10107 }
 0x4bf   : > { %v8224_v8 = vrot.slane %v8223_v37, 4  ;;  %v9419_v26 = vshll.u32 %v9245_v57, 16  ;;  %v12485_v6 = vrot.slane %v9037_v53, 9  ;;  %v9145_v36 = vrot.slane %v18188_v52, 5 }
 0x4c0   : > { %v7790_v43 = vrot.slane %v7788_v38, 7  ;;  %v7785_v32 = vor.u32 %v7783_v41, %v7782_v58  ;;  %v7786_v27 = vrot.slane %v7782_v58, 4  ;;  %v8219_v11 = vsel %vm13401_vm5, %v8214_v29, %v8218_v50  ;;  %v7472_v58 = vld [vmem:[#allocation3 + $0xbc] sm:$0x1] }
 0x4c1   : > { %v8229_v47 = vsel %vm13401_vm5, %v8224_v8, %v8228_v44  ;;  %v9412_v45 = vsel %vm13401_vm5, %v9407_v13, %v9411_v12  ;;  %v9416_v16 = vor.u32 %v9415_v59, %v9411_v12  ;;  %v9421_v57 = vrot.slane %v9419_v26, 5  ;;  %v7424_v44 = vld [vmem:[#allocation3 + $0xb4] sm:$0x1]  ;;  %v8430_v26 = vld [vmem:[#allocation3 + $0x60] sm:$0xe] }
 0x4c2   : > { %v7793_v20 = vor.u32 %v7791_v15, %v7790_v43  ;;  %v7795_v54 = vrot.slane %v7790_v43, 4  ;;  %v12533_v23 = vcombine.low %v8219_v11, %v8229_v47  ;;  %v7970_v7 = vsel %vm14842_vm12, %v7785_v32, %v7969_v3  ;;  %v18353_v43 = vld [vmem:[#allocation3 + $0x64] sm:$0xf]  ;;  %v8006_v32 = vld [vmem:[#allocation3 + $0x60] sm:$0xf]  ;;  %v18361_v47 = vpop.permute.xlu1 %10265 }
 0x4c3   : > { %v9146_v50 = vsel %vm13357_vm2, %v12485_v6, %v9145_v36  ;;  %7971 = vst [vmem:[#allocation3 + $0xa8] sm:$0xf] %v7970_v7  ;;  %v9147_v37 = vrot.slane %v9145_v36, 4  ;;  %v9148_v13 = vrot.slane %v8637_v21, 5  ;;  %v9417_v59 = vrot.slane %v9416_v16, 4 }
 0x4c4   : > { %v7794_v24 = vsel %vm14847_vm14, %v7786_v27, %v7793_v20  ;;  %v7974_v41 = vsel %vm14684_vm13, %v7795_v54, %v7973_v39  ;;  %9941 = vrot.lane.b32.xlu1 %v12533_v23, %s13214_s20  ;;  %v8822_v53 = vrot.slane %v8821_v28, 4  ;;  %v8824_v38 = vshll.u32 %v18188_v52, 16 }
 0x4c5   : > { %7972 = vst.msk [vmem:[#allocation3 + $0xac] sm:$0xf] %vm3550_vm0, %v7794_v24  ;;  %7975 = vst [vmem:[#allocation3 + $0xb0] sm:$0x1] %v7974_v41  ;;  %v8830_v15 = vrot.slane %v8828_v60, 4  ;;  %v9149_v29 = vsel %vm13357_vm2, %v9147_v37, %v9148_v13  ;;  %v8834_v8 = vshll.u32 %v8637_v21, 16  ;;  %v7322_v12 = vadd.f32 %v18304_v33, %v7283_v48  ;;  %v18363_v21 = vpop.permute.xlu0 %10439 }
 0x4c6   : > { %v7425_v3 = vsel %vm14684_vm13, 0, %v7424_v44  ;;  %v9422_v28 = vsel %vm13401_vm5, %v9417_v59, %v9421_v57  ;;  %v12597_v6 = vcombine.low %v9146_v50, %v9149_v29  ;;  %v8826_v36 = vrot.slane %v8824_v38, 5  ;;  %v8030_v60 = vld [vmem:[#allocation3 + $0x68] sm:$0x1] }
 0x4c7   : > { %7426 = vst [vmem:[#allocation3 + $0xb4] sm:$0x1] %v7425_v3  ;;  %v7284_v52 = vmul.f32 %v18283_v63, %v18119_v35  ;;  %v12628_v27 = vcombine.low %v9412_v45, %v9422_v28  ;;  %v8836_v39 = vrot.slane %v8834_v8, 5  ;;  %v7354_v48 = vmax.f32 %v7322_v12, 0.0  ;;  %v9038_v28 = vld [vmem:[#allocation3 + $0x6c] sm:$0xe] }
 0x4c8   : > { %v7473_v11 = vsel %vm14724_vm3, 0, %v7472_v58  ;;  %10277 = vrot.lane.b32.xlu1 %v12597_v6, %s13221_s27  ;;  %v8827_v20 = vsel %vm13401_vm5, %v8822_v53, %v8826_v36  ;;  %v8831_v54 = vor.u32 %v8830_v15, %v8826_v36  ;;  %v12470_v23 = vrot.slane %v8430_v26, 9  ;;  %v18380_v6 = vpop.permute.xlu1 %10011 }
 0x4c9   : > { %v7323_v35 = vadd.f32 %v18304_v33, %v7284_v52  ;;  %7474 = vst [vmem:[#allocation3 + $0xbc] sm:$0x1] %v7473_v11  ;;  %10451 = vrot.lane.b32.xlu0 %v12628_v27, %s13222_s29  ;;  %v12744_v45 = vpack.c.bf16 %v7354_v48, %v7354_v48  ;;  %v8544_v7 = vrot.slane %v18353_v43, 5  ;;  %v8547_v16 = vrot.slane %v8030_v60, 5  ;;  %v18382_v36 = vpop.permute.xlu0 %10185  ;;  %v18384_v11 = vld [vmem:[#allocation3 + $0x74] sm:$0x1] }
 0x4ca   : > { %v8231_v57 = vshrl.u32 %v8006_v32, 16  ;;  %v8832_v50 = vrot.slane %v8831_v54, 4  ;;  %v8234_v24 = vshll.u32 %v8006_v32, 16  ;;  %v8240_v41 = vshll.u32 %v18353_v43, 16 }
 0x4cb   : > { %v7355_v44 = vmax.f32 %v7323_v35, 0.0  ;;  %v7797_v37 = vshrl.u32 %v12744_v45, 16  ;;  %v7800_v13 = vshll.u32 %v12744_v45, 16  ;;  %v8545_v59 = vsel %vm13357_vm2, %v12470_v23, %v8544_v7  ;;  %v9223_v45 = vld [vmem:[#allocation3 + $0x78] sm:$0xf] }
 0x4cc   : > { %v8546_v53 = vrot.slane %v8544_v7, 4  ;;  %v8837_v38 = vsel %vm13401_vm5, %v8832_v50, %v8836_v39  ;;  %v8233_v58 = vrot.slane %v8231_v57, 4  ;;  %v8236_v29 = vrot.slane %v8234_v24, 5 }
 0x4cd   : > { %v12745_v15 = vpack.c.bf16 %v7355_v44, %v7355_v44  ;;  %v12581_v8 = vcombine.low %v8827_v20, %v8837_v38  ;;  %v7799_v12 = vrot.slane %v7797_v37, 7  ;;  %v18378_v26 = vrot.slane %v8240_v41, 5  ;;  %v18390_v44 = vld [vmem:[#allocation3 + $0x7c] sm:$0xf] }
 0x4ce   : > { %v8548_v3 = vsel %vm13357_vm2, %v8546_v53, %v8547_v16  ;;  %v7976_v52 = vld [vmem:[#allocation3 + $0xb4] sm:$0xf]  ;;  %v8237_v39 = vor.u32 %v8236_v29, %v8233_v58  ;;  %v8244_v35 = vshrl.u32 %v18353_v43, 16  ;;  %v8250_v23 = vshll.u32 %v8030_v60, 16  ;;  %v18395_v43 = vpop.permute.xlu1 %10363  ;;  %v18404_v58 = vld [vmem:[#allocation3 + $0x70] sm:$0xf] }
 0x4cf   : > { %v7805_v32 = vshrl.u32 %v12745_v15, 16  ;;  %v7808_v27 = vshll.u32 %v12745_v15, 16  ;;  %v12550_v48 = vcombine.low %v8545_v59, %v8548_v3  ;;  %10197 = vrot.lane.b32.xlu0 %v12581_v8, %s13223_s30  ;;  %v7802_v20 = vor.u32 %v7800_v13, %v7799_v12  ;;  %v18406_v29 = vld [vmem:[#allocation3 + $0x74] sm:$0x1] }
 0x4d0   : > { %v7803_v54 = vrot.slane %v7799_v12, 4  ;;  %v8238_v16 = vrot.slane %v8237_v39, 4  ;;  %v12486_v57 = vrot.slane %v9038_v28, 9  ;;  %v9152_v50 = vrot.slane %v18258_v51, 5  ;;  %v7980_v41 = vld [vmem:[#allocation3 + $0xbc] sm:$0x1] }
 0x4d1   : > { %v7807_v7 = vrot.slane %v7805_v32, 7  ;;  %10023 = vrot.lane.b32.xlu1 %v12550_v48, %s13217_s28  ;;  %v7977_v24 = vsel %vm14842_vm12, %v7802_v20, %v7976_v52  ;;  %v8246_v37 = vrot.slane %v8244_v35, 4  ;;  %v8252_v13 = vrot.slane %v8250_v23, 5  ;;  %v8431_v52 = vld [vmem:[#allocation3 + $0x6c] sm:$0xe]  ;;  %v18409_v32 = vpop.permute.xlu0 %9931 }
 0x4d2   : > { %v9155_v59 = vrot.slane %v18384_v11, 5  ;;  %7978 = vst [vmem:[#allocation3 + $0xb4] sm:$0xf] %v7977_v24  ;;  %v8243_v38 = vsel %vm13401_vm5, %v8238_v16, %v18378_v26  ;;  %v18402_v15 = vsel %vm13357_vm2, %v12486_v57, %v9152_v50  ;;  %v9154_v12 = vrot.slane %v9152_v50, 4  ;;  %v8616_v35 = vld [vmem:[#allocation3 + $0x78] sm:$0xf] }
 0x4d3   : > { %v7810_v60 = vor.u32 %v7808_v27, %v7807_v7  ;;  %v7812_v53 = vrot.slane %v7807_v7, 4  ;;  %v8247_v8 = vor.u32 %v8246_v37, %v18378_v26  ;;  %v9448_v3 = vshrl.u32 %v9223_v45, 16  ;;  %v18417_v23 = vld [vmem:[#allocation3 + $0x7c] sm:$0xf] }
 0x4d4   : > { %v9451_v28 = vshll.u32 %v9223_v45, 16  ;;  %v12614_v39 = vcombine.low %v9223_v45, %v18390_v44  ;;  %v9461_v20 = vshrl.u32 %v18390_v44, 16  ;;  %v9156_v7 = vsel %vm13357_vm2, %v9154_v12, %v9155_v59 }
 0x4d5   : > { %v7811_v27 = vsel %vm14847_vm14, %v7803_v54, %v7810_v60  ;;  %v7981_v48 = vsel %vm14684_vm13, %v7812_v53, %v7980_v41  ;;  %v8248_v26 = vrot.slane %v8247_v8, 4  ;;  %v18422_v16 = vrot.slane %v9448_v3, 4  ;;  %v7427_v53 = vld [vmem:[#allocation3 + $0xc0] sm:$0x1]  ;;  %v18433_v8 = vpop.permute.xlu1 %10109 }
 0x4d6   : > { %7979 = vst.msk [vmem:[#allocation3 + $0xb8] sm:$0xf] %vm3550_vm0, %v7811_v27  ;;  %7982 = vst [vmem:[#allocation3 + $0xbc] sm:$0x1] %v7981_v48  ;;  %v18424_v54 = vrot.slane %v9451_v28, 5  ;;  %v12598_v57 = vcombine.low %v18402_v15, %v9156_v7  ;;  %10375 = vrot.lane.b32.xlu1 %v12614_v39, %s13219_s18  ;;  %v12471_v45 = vrot.slane %v8431_v52, 9  ;;  %v12567_v59 = vcombine.low %v8616_v35, %v18417_v23 }
 0x4d7   : > { %v8551_v50 = vrot.slane %v18404_v58, 5  ;;  %v8554_v24 = vrot.slane %v18406_v29, 5  ;;  %v8253_v41 = vsel %vm13401_vm5, %v8248_v26, %v8252_v13  ;;  %v8863_v37 = vshrl.u32 %v8616_v35, 16  ;;  %v9246_v39 = vld [vmem:[#allocation3 + $0x74] sm:$0x1] }
 0x4d8   : > { %v8866_v60 = vshll.u32 %v8616_v35, 16  ;;  %v12534_v12 = vcombine.low %v8243_v38, %v8253_v41  ;;  %v8876_v28 = vshrl.u32 %v18417_v23, 16  ;;  %v10632_v13 = vsel %vm6819_vm6, %v18142_v40, %v18316_v1  ;;  %v18447_v35 = vld [vmem:[#allocation3 + $0x84] sm:$0xf]  ;;  %v18449_v38 = vpop.permute.xlu0 %10267  ;;  %v18463_v1 = vld [vmem:[#allocation3 + $0x88] sm:$0xf] }
 0x4d9   : > { %v8552_v15 = vsel %vm13357_vm2, %v12471_v45, %v8551_v50  ;;  %v8553_v3 = vrot.slane %v8551_v50, 4  ;;  %v18438_v52 = vrot.slane %v8863_v37, 4  ;;  %v7285_v48 = vmul.f32 %v18283_v63, %v18147_v62 }
 0x4da   : > { %v18440_v27 = vrot.slane %v8866_v60, 5  ;;  %9943 = vrot.lane.b32.xlu0 %v12534_v12, %s13214_s20  ;;  %10121 = vrot.lane.b32.xlu1 %v12567_v59, %s13220_s21  ;;  %v18457_v7 = vsel %vm6852_vm7, %v10632_v13, %v18260_v49  ;;  %v7428_v40 = vsel %vm14684_vm13, 0, %v7427_v53  ;;  %v9430_v62 = vor.u32 %v18244_v9, %v18241_v56  ;;  %v7475_v53 = vld [vmem:[#allocation3 + $0xc8] sm:$0x1] }
 0x4db   : > { %v8555_v26 = vsel %vm13357_vm2, %v8553_v3, %v8554_v24  ;;  %v7324_v50 = vadd.f32 %v18304_v33, %v7285_v48  ;;  %7429 = vst [vmem:[#allocation3 + $0xc0] sm:$0x1] %v7428_v40  ;;  %v9433_v24 = vshll.u32 %v18234_v0, 16  ;;  %v9439_v41 = vrot.slane %v9437_v31, 4  ;;  %v18474_v3 = vpop.permute.xlu1 %10441 }
 0x4dc   : > { %v12551_v45 = vcombine.low %v8552_v15, %v8555_v26  ;;  %v9431_v37 = vrot.slane %v9430_v62, 4  ;;  %v9443_v49 = vshll.u32 %v9246_v39, 16  ;;  %v9472_v60 = vshrl.u32 %v18447_v35, 16  ;;  %v18487_v62 = vpop.permute.xlu0 %10013 }
 0x4dd   : > { %v9475_v59 = vshll.u32 %v18447_v35, 16  ;;  %v7356_v12 = vmax.f32 %v7324_v50, 0.0  ;;  %v9435_v56 = vrot.slane %v9433_v24, 5  ;;  %v12615_v9 = vcombine.low %v18447_v35, %v18463_v1  ;;  %v13097_v50 = vld [vmem:[#allocation3 + $0x10] sm:$0xf] }
 0x4de   : > { %v9485_v15 = vshrl.u32 %v18463_v1, 16  ;;  %10279 = vrot.lane.b32.xlu0 %v12598_v57, %s13221_s27  ;;  %v9445_v0 = vrot.slane %v9443_v49, 5  ;;  %v18477_v31 = vrot.slane %v9472_v60, 4  ;;  %v7286_v48 = vmul.f32 %v18283_v63, %v18160_v46  ;;  %v13098_v24 = vld [vmem:[#allocation3 + $0xc] sm:$0xf] }
 0x4df   : > { %v18479_v13 = vrot.slane %v9475_v59, 5  ;;  %v12746_v39 = vpack.c.bf16 %v7356_v12, %v7356_v12  ;;  %v9436_v26 = vsel %vm13401_vm5, %v9431_v37, %v9435_v56  ;;  %v9440_v40 = vor.u32 %v9439_v41, %v9435_v56  ;;  %v8618_v56 = vld [vmem:[#allocation3 + $0x84] sm:$0xf] }
 0x4e0   : > { %v7476_v35 = vsel %vm14724_vm3, 0, %v7475_v53  ;;  %v7325_v57 = vadd.f32 %v18304_v33, %v7286_v48  ;;  %v12511_v49 = vcombine.low %v13098_v24, %v13097_v50  ;;  %v8845_v60 = vor.u32 %v18273_v2, %v18264_v22  ;;  %vm20016_vm3 = vmmov %vm19745_vm1  ;;  %v18511_v50 = vld [vmem:[#allocation3 + $0x88] sm:$0xf] }
 0x4e1   : > { %7477 = vst [vmem:[#allocation3 + $0xc8] sm:$0x1] %v7476_v35  ;;  %v8848_v46 = vshll.u32 %v18258_v51, 16  ;;  %v7814_v63 = vshrl.u32 %v12746_v39, 16  ;;  %v7817_v59 = vshll.u32 %v12746_v39, 16  ;;  %v9441_v37 = vrot.slane %v9440_v40, 4 }
 0x4e2   : > { %v8854_v14 = vrot.slane %v8852_v42, 4  ;;  %10025 = vrot.lane.b32.xlu0 %v12551_v45, %s13217_s28  ;;  %v7357_v41 = vmax.f32 %v7325_v57, 0.0  ;;  %v10524_v33 = vsel %vm3041_vm9, %v12511_v49, %v18331_v30  ;;  %v8846_v53 = vrot.slane %v8845_v60, 4  ;;  %v18505_v42 = vpop.permute.xlu0 %10365  ;;  %v18507_v45 = vpop.permute.xlu1 %10187  ;;  %v7983_v39 = vld [vmem:[#allocation3 + $0xc0] sm:$0xf] }
 0x4e3   : > { %v8850_v12 = vrot.slane %v8848_v46, 5  ;;  %v7816_v48 = vrot.slane %v7814_v63, 7  ;;  %v9446_v22 = vsel %vm13401_vm5, %v9441_v37, %v9445_v0  ;;  %v18502_v2 = vsel %vm20016_vm3, %v10524_v33, %v18296_v34 }
 0x4e4   : > { %v8858_v51 = vshll.u32 %v18384_v11, 16  ;;  %v12629_v40 = vcombine.low %v9436_v26, %v9446_v22  ;;  %v12747_v30 = vpack.c.bf16 %v7357_v41, %v7357_v41  ;;  %v8887_v34 = vshrl.u32 %v8618_v56, 16  ;;  %v8008_v26 = vld [vmem:[#allocation3 + $0x6c] sm:$0xf] }
 0x4e5   : > { %v8851_v35 = vsel %vm13401_vm5, %v8846_v53, %v8850_v12  ;;  %v8855_v57 = vor.u32 %v8854_v14, %v8850_v12  ;;  %v7819_v0 = vor.u32 %v7817_v59, %v7816_v48  ;;  %v7820_v24 = vrot.slane %v7816_v48, 4 }
 0x4e6   : > { %v8860_v49 = vrot.slane %v8858_v51, 5  ;;  %10453 = vrot.lane.b32.xlu1 %v12629_v40, %s13222_s29  ;;  %10377 = vrot.lane.b32.xlu0 %v12615_v9, %s13219_s18  ;;  %v7822_v11 = vshrl.u32 %v12747_v30, 16  ;;  %v7825_v60 = vshll.u32 %v12747_v30, 16  ;;  %v8890_v63 = vshll.u32 %v8618_v56, 16  ;;  %v18532_v40 = vpop.permute.xlu1 %9933 }
 0x4e7   : > { %v8856_v46 = vrot.slane %v8855_v57, 4  ;;  %v7984_v37 = vsel %vm14842_vm12, %v7819_v0, %v7983_v39  ;;  %v18517_v41 = vrot.slane %v8887_v34, 4  ;;  %v12568_v14 = vcombine.low %v8618_v56, %v18511_v50  ;;  %v18530_v39 = vpop.permute.xlu0 %10111  ;;  %v9247_v34 = vld [vmem:[#allocation3 + $0x80] sm:$0x1]  ;;  %vm20017_vm12 = vmmov %vm19745_vm1 }
 0x4e8   : > { %v8900_v59 = vshrl.u32 %v18511_v50, 16  ;;  %7985 = vst [vmem:[#allocation3 + $0xc0] sm:$0xf] %v7984_v37  ;;  %v7824_v33 = vrot.slane %v7822_v11, 7  ;;  %v18523_v9 = vrot.slane %v8890_v63, 5  ;;  %v10696_v12 = vsel %vm6885_vm8, %v18457_v7, %v18256_v55 }
 0x4e9   : > { %v8861_v53 = vsel %vm13401_vm5, %v8856_v46, %v8860_v49  ;;  %v7987_v48 = vld [vmem:[#allocation3 + $0xc8] sm:$0x1]  ;;  %v10728_v22 = vsel %vm6918_vm10, %v10696_v12, %v18363_v21  ;;  %v8255_v51 = vshrl.u32 %v8008_v26, 16  ;;  %v8258_v56 = vshll.u32 %v8008_v26, 16  ;;  %v9640_v55 = vld [vmem:[#allocation3 + $0x24] sm:$0xe] }
 0x4ea   : > { %v12582_v18 = vcombine.low %v8851_v35, %v8861_v53  ;;  %v7827_v30 = vor.u32 %v7825_v60, %v7824_v33  ;;  %v7829_v57 = vrot.slane %v7824_v33, 4  ;;  %10123 = vrot.lane.b32.xlu0 %v12568_v14, %s13220_s21  ;;  %v8264_v0 = vshll.u32 %v18404_v58, 16  ;;  %10928 = vmatmul.mubr.bf16.vlgmr.msra.gmra.mrb[20].mxu0 %v10728_v22  ;;  %v9039_v33 = vld [vmem:[#allocation3 + $0x78] sm:$0xe]  ;;  %v13099_v12 = vld [vmem:[#allocation3 + $0x28] sm:$0xf] }
 0x4eb   : > { %v8268_v49 = vshrl.u32 %v18404_v58, 16  ;;  %v8257_v7 = vrot.slane %v8255_v51, 4  ;;  %v8260_v21 = vrot.slane %v8258_v56, 5  ;;  %v8274_v35 = vshll.u32 %v18406_v29, 16  ;;  %v18549_v51 = vpop.permute.xlu0 %10443  ;;  %v18551_v56 = vpop.permute.xlu1 %10269 }
 0x4ec   : > { %10199 = vrot.lane.b32.xlu1 %v12582_v18, %s13223_s30  ;;  %v9454_v11 = vor.u32 %v18424_v54, %v18422_v16  ;;  %v7828_v60 = vsel %vm14847_vm14, %v7820_v24, %v7827_v30  ;;  %v7988_v46 = vsel %vm14684_vm13, %v7829_v57, %v7987_v48  ;;  %v8266_v63 = vrot.slane %v8264_v0, 5  ;;  %v13100_v18 = vld [vmem:[#allocation3 + $0x2c] sm:$0x1]  ;;  %vm20018_vm14 = vmmov %vm19745_vm1 }
 0x4ed   : > { %v8270_v58 = vrot.slane %v8268_v49, 4  ;;  %7986 = vst.msk [vmem:[#allocation3 + $0xc4] sm:$0xf] %vm3550_vm0, %v7828_v60  ;;  %7989 = vst [vmem:[#allocation3 + $0xc8] sm:$0x1] %v7988_v46  ;;  %v8261_v26 = vor.u32 %v8260_v21, %v8257_v7  ;;  %v8276_v37 = vrot.slane %v8274_v35, 5  ;;  %v10602_v0 = vsel %vm6786_vm4, %v18502_v2, %v18289_v25 }
 0x4ee   : > { %v9455_v14 = vrot.slane %v9454_v11, 4  ;;  %v9457_v29 = vshll.u32 %v18390_v44, 16  ;;  %v9463_v16 = vrot.slane %v9461_v20, 4  ;;  %v9467_v61 = vshll.u32 %v9247_v34, 16  ;;  %v8639_v44 = vld [vmem:[#allocation3 + $0x80] sm:$0x1]  ;;  %vm20019_vm0 = vmmov %vm19745_vm1 }
 0x4ef   : > { %v8271_v53 = vor.u32 %v8270_v58, %v8266_v63  ;;  %v12495_v54 = vrot.slane %v9640_v55, 9  ;;  %v8262_v24 = vrot.slane %v8261_v26, 4  ;;  %v9712_v48 = vrot.slane %v13099_v12, 5  ;;  %vm20024_vm13 = vmmov %vm20019_vm0 }
 0x4f0   : > { %v9459_v10 = vrot.slane %v9457_v29, 5  ;;  %v9715_v22 = vrot.slane %v13100_v18, 5  ;;  %v9469_v57 = vrot.slane %v9467_v61, 5  ;;  %v12487_v20 = vrot.slane %v9039_v33, 9  ;;  %v8432_v29 = vld [vmem:[#allocation3 + $0x78] sm:$0xe]  ;;  %vm20025_vm15 = vmmov %vm20019_vm0 }
 0x4f1   : > { %v8272_v30 = vrot.slane %v8271_v53, 4  ;;  %v8267_v49 = vsel %vm13401_vm5, %v8262_v24, %v8266_v63  ;;  %v9713_v21 = vsel %vm13357_vm2, %v12495_v54, %v9712_v48  ;;  %v9714_v34 = vrot.slane %v9712_v48, 4  ;;  %v8032_v61 = vld [vmem:[#allocation3 + $0x80] sm:$0x1]  ;;  %v8010_v54 = vld [vmem:[#allocation3 + $0x78] sm:$0xf]  ;;  %v18583_v24 = vpop.permute.xlu0 %10189  ;;  %vm20028_vm1 = vmmov %vm20019_vm0 }
 0x4f2   : > { %v9460_v55 = vsel %vm13401_vm5, %v9455_v14, %v9459_v10  ;;  %v9464_v7 = vor.u32 %v9463_v16, %v9459_v10  ;;  %v10634_v11 = vsel %vm6819_vm6, %v10602_v0, %v18382_v36  ;;  %v9159_v25 = vrot.slane %v18417_v23, 5  ;;  %v8011_v36 = vld [vmem:[#allocation3 + $0x7c] sm:$0xf]  ;;  %v18585_v10 = vpop.permute.xlu1 %10015  ;;  %vm20029_vm11 = vmmov %vm20019_vm0 }
 0x4f3   : > { %v8277_v35 = vsel %vm13401_vm5, %v8272_v30, %v8276_v37  ;;  %v18569_v46 = vsel %vm6852_vm7, %v10634_v11, %v18361_v47  ;;  %v9162_v63 = vrot.slane %v8639_v44, 5  ;;  %v9716_v58 = vsel %vm13357_vm2, %v9714_v34, %v9715_v22  ;;  %v13101_v30 = vld [vmem:[#allocation3 + $0x1c] sm:$0xf]  ;;  %v9227_v34 = vld [vmem:[#allocation3 + $0x90] sm:$0xf]  ;;  %vm20030_vm3 = vmmov %vm20019_vm0 }
 0x4f4   : > { %v12535_v2 = vcombine.low %v8267_v49, %v8277_v35  ;;  %v9465_v60 = vrot.slane %v9464_v7, 4  ;;  %v9160_v26 = vsel %vm13357_vm2, %v12487_v20, %v9159_v25  ;;  %v9161_v37 = vrot.slane %v9159_v25, 4 }
 0x4f5   : > { %v8869_v14 = vor.u32 %v18440_v27, %v18438_v52  ;;  %v12639_v47 = vcombine.low %v9713_v21, %v9716_v58  ;;  %v8872_v53 = vshll.u32 %v18417_v23, 16  ;;  %v8878_v16 = vrot.slane %v8876_v28, 4 }
 0x4f6   : > { %9945 = vrot.lane.b32.xlu1 %v12535_v2, %s13214_s20  ;;  %v9470_v33 = vsel %vm13401_vm5, %v9465_v60, %v9469_v57  ;;  %v9163_v27 = vsel %vm13357_vm2, %v9161_v37, %v9162_v63  ;;  %v8882_v48 = vshll.u32 %v8639_v44, 16  ;;  %v13102_v57 = vld [vmem:[#allocation3 + $0x18] sm:$0xf]  ;;  %v12472_v28 = vrot.slane %v8432_v29, 9  ;;  %v18604_v29 = vpop.permute.xlu0 %9935 }
 0x4f7   : > { %v12630_v52 = vcombine.low %v9460_v55, %v9470_v33  ;;  %v8870_v12 = vrot.slane %v8869_v14, 4  ;;  %12664 = vmatprep.mubr.msk.bf16.mxu0 %vm3041_vm9, %v12639_v47  ;;  %v12599_v18 = vcombine.low %v9160_v26, %v9163_v27  ;;  %v8874_v22 = vrot.slane %v8872_v53, 5  ;;  %v18602_v14 = vld [vmem:[#allocation3 + $0x8c] sm:$0x1]  ;;  %v18610_v47 = vld [vmem:[#allocation3 + $0x94] sm:$0xf] }
 0x4f8   : > { %v12512_v23 = vcombine.low %v13102_v57, %v13101_v30  ;;  %v8884_v0 = vrot.slane %v8882_v48, 5  ;;  %v8558_v20 = vrot.slane %v8011_v36, 5  ;;  %v8561_v49 = vrot.slane %v8032_v61, 5  ;;  %v8620_v48 = vld [vmem:[#allocation3 + $0x90] sm:$0xf] }
 0x4f9   : > { %10455 = vrot.lane.b32.xlu0 %v12630_v52, %s13222_s29  ;;  %v8279_v7 = vshrl.u32 %v8010_v54, 16  ;;  %v8875_v55 = vsel %vm13401_vm5, %v8870_v12, %v8874_v22  ;;  %v8879_v44 = vor.u32 %v8878_v16, %v8874_v22  ;;  %v8282_v35 = vshll.u32 %v8010_v54, 16  ;;  %v9040_v12 = vld [vmem:[#allocation3 + $0x84] sm:$0xe] }
 0x4fa   : > { %10281 = vrot.lane.b32.xlu1 %v12599_v18, %s13221_s27  ;;  %v10527_v21 = vsel %vm3041_vm9, %v12512_v23, %v18409_v32  ;;  %v8559_v25 = vsel %vm13357_vm2, %v12472_v28, %v8558_v20  ;;  %v8560_v2 = vrot.slane %v8558_v20, 4  ;;  %v8288_v26 = vshll.u32 %v8011_v36, 16  ;;  %v18606_v32 = vpop.permute.xlu1 %10367  ;;  %v18616_v23 = vld [vmem:[#allocation3 + $0x94] sm:$0xf] }
 0x4fb   : > { %v18598_v11 = vsel %vm20017_vm12, %v10527_v21, %v18380_v6  ;;  %v8281_v60 = vrot.slane %v8279_v7, 4  ;;  %v8880_v63 = vrot.slane %v8879_v44, 4  ;;  %v8284_v58 = vrot.slane %v8282_v35, 5  ;;  %v8433_v35 = vld [vmem:[#allocation3 + $0x84] sm:$0xe]  ;;  %vm20031_vm12 = vmmov %vm20019_vm0 }
 0x4fc   : > { %v8292_v37 = vshrl.u32 %v8011_v36, 16  ;;  %v8562_v33 = vsel %vm13357_vm2, %v8560_v2, %v8561_v49  ;;  %v8298_v6 = vshll.u32 %v8032_v61, 16  ;;  %v9496_v53 = vshrl.u32 %v9227_v34, 16  ;;  %v18623_v49 = vld [vmem:[#allocation3 + $0x88] sm:$0xf] }
 0x4fd   : > { %v9499_v16 = vshll.u32 %v9227_v34, 16  ;;  %v8885_v54 = vsel %vm13401_vm5, %v8880_v63, %v8884_v0  ;;  %v12552_v52 = vcombine.low %v8559_v25, %v8562_v33  ;;  %v8285_v27 = vor.u32 %v8284_v58, %v8281_v60  ;;  %v18631_v63 = vld [vmem:[#allocation3 + $0x8c] sm:$0x1]  ;;  %v18633_v58 = vpop.permute.xlu0 %10271 }
 0x4fe   : > { %v8290_v36 = vrot.slane %v8288_v26, 5  ;;  %v12583_v18 = vcombine.low %v8875_v55, %v8885_v54  ;;  %v8294_v22 = vrot.slane %v8292_v37, 4  ;;  %v8300_v30 = vrot.slane %v8298_v6, 5  ;;  %v18635_v26 = vpop.permute.xlu1 %10113 }
 0x4ff   : > { %v18614_v57 = vrot.slane %v9496_v53, 4  ;;  %10027 = vrot.lane.b32.xlu1 %v12552_v52, %s13217_s28  ;;  %v8286_v61 = vrot.slane %v8285_v27, 4  ;;  %v18619_v28 = vrot.slane %v9499_v16, 5  ;;  %v12616_v20 = vcombine.low %v9227_v34, %v18610_v47 }
 0x500   : > { %v9509_v0 = vshrl.u32 %v18610_v47, 16  ;;  %10201 = vrot.lane.b32.xlu0 %v12583_v18, %s13223_s30  ;;  %v8295_v7 = vor.u32 %v8294_v22, %v8290_v36  ;;  %v12488_v55 = vrot.slane %v9040_v12, 9  ;;  %v9166_v44 = vrot.slane %v18511_v50, 5 }
 0x501   : > { %v9169_v21 = vrot.slane %v18602_v14, 5  ;;  %v8291_v25 = vsel %vm13401_vm5, %v8286_v61, %v8290_v36  ;;  %v8911_v2 = vshrl.u32 %v8620_v48, 16  ;;  %v8914_v60 = vshll.u32 %v8620_v48, 16  ;;  %v9248_v36 = vld [vmem:[#allocation3 + $0x8c] sm:$0x1] }
 0x502   : > { %v12569_v34 = vcombine.low %v8620_v48, %v18616_v23  ;;  %v8296_v37 = vrot.slane %v8295_v7, 4  ;;  %v9167_v33 = vsel %vm13357_vm2, %v12488_v55, %v9166_v44  ;;  %v9168_v6 = vrot.slane %v9166_v44, 4  ;;  %v18653_v61 = vld [vmem:[#allocation3 + $0x9c] sm:$0xf] }
 0x503   : > { %v8924_v53 = vshrl.u32 %v18616_v23, 16  ;;  %10379 = vrot.lane.b32.xlu1 %v12616_v20, %s13219_s18  ;;  %v18641_v16 = vrot.slane %v8911_v2, 4  ;;  %v18643_v54 = vrot.slane %v8914_v60, 5  ;;  %v12473_v52 = vrot.slane %v8433_v35, 9  ;;  %v18655_v20 = vld [vmem:[#allocation3 + $0xa0] sm:$0xf] }
 0x504   : > { %v8565_v27 = vrot.slane %v18623_v49, 5  ;;  %v8301_v12 = vsel %vm13401_vm5, %v8296_v37, %v8300_v30  ;;  %v9170_v48 = vsel %vm13357_vm2, %v9168_v6, %v9169_v21  ;;  %v8568_v18 = vrot.slane %v18631_v63, 5  ;;  %v18671_v6 = vpop.permute.xlu1 %10445 }
 0x505   : > { %v9478_v22 = vor.u32 %v18479_v13, %v18477_v31  ;;  %v12536_v7 = vcombine.low %v8291_v25, %v8301_v12  ;;  %v12600_v55 = vcombine.low %v9167_v33, %v9170_v48  ;;  %v9481_v30 = vshll.u32 %v18463_v1, 16  ;;  %v18669_v33 = vpop.permute.xlu0 %10017 }
 0x506   : > { %v8566_v44 = vsel %vm13357_vm2, %v12473_v52, %v8565_v27  ;;  %v8567_v35 = vrot.slane %v8565_v27, 4  ;;  %v9487_v21 = vrot.slane %v9485_v15, 4  ;;  %v9491_v60 = vshll.u32 %v9248_v36, 16 }
 0x507   : > { %v9479_v2 = vrot.slane %v9478_v22, 4  ;;  %9947 = vrot.lane.b32.xlu0 %v12536_v7, %s13214_s20  ;;  %10125 = vrot.lane.b32.xlu1 %v12569_v34, %s13220_s21  ;;  %v9520_v13 = vshrl.u32 %v18653_v61, 16  ;;  %v9523_v25 = vshll.u32 %v18653_v61, 16  ;;  %v9483_v15 = vrot.slane %v9481_v30, 5  ;;  %v18675_v34 = vld [vmem:[#allocation3 + $0x9c] sm:$0xf] }
 0x508   : > { %v8569_v31 = vsel %vm13357_vm2, %v8567_v35, %v8568_v18  ;;  %v9493_v52 = vrot.slane %v9491_v60, 5  ;;  %v12617_v27 = vcombine.low %v18653_v61, %v18655_v20  ;;  %v8893_v48 = vor.u32 %v18523_v9, %v18517_v41  ;;  %v18684_v22 = vld [vmem:[#allocation3 + $0xa0] sm:$0xf]  ;;  %v9641_v9 = vld [vmem:[#allocation3 + $0x30] sm:$0xe] }
 0x509   : > { %v12553_v1 = vcombine.low %v8566_v44, %v8569_v31  ;;  %v18677_v36 = vrot.slane %v9520_v13, 4  ;;  %v18679_v12 = vrot.slane %v9523_v25, 5  ;;  %v8896_v18 = vshll.u32 %v18511_v50, 16 }
 0x50a   : > { %v9484_v7 = vsel %vm13401_vm5, %v9479_v2, %v9483_v15  ;;  %v9488_v44 = vor.u32 %v9487_v21, %v9483_v15  ;;  %v8902_v61 = vrot.slane %v8900_v59, 4  ;;  %v8906_v35 = vshll.u32 %v18602_v14, 16  ;;  %v8012_v21 = vld [vmem:[#allocation3 + $0x84] sm:$0xf]  ;;  %v18703_v15 = vpop.permute.xlu0 %10369 }
 0x50b   : > { %10283 = vrot.lane.b32.xlu0 %v12600_v55, %s13221_s27  ;;  %v8894_v30 = vrot.slane %v8893_v48, 4  ;;  %v8898_v60 = vrot.slane %v8896_v18, 5  ;;  %v8935_v31 = vshrl.u32 %v18675_v34, 16  ;;  %v8938_v41 = vshll.u32 %v18675_v34, 16  ;;  %v18705_v48 = vpop.permute.xlu1 %10191 }
 0x50c   : > { %v9489_v13 = vrot.slane %v9488_v44, 4  ;;  %v8908_v25 = vrot.slane %v8906_v35, 5  ;;  %v12570_v2 = vcombine.low %v18675_v34, %v18684_v22  ;;  %v10698_v34 = vsel %vm6885_vm8, %v18569_v46, %v18318_v4  ;;  %v13103_v35 = vld [vmem:[#allocation3 + $0x34] sm:$0xf] }
 0x50d   : > { %v8899_v50 = vsel %vm13401_vm5, %v8894_v30, %v8898_v60  ;;  %v8903_v59 = vor.u32 %v8902_v61, %v8898_v60  ;;  %v18699_v14 = vrot.slane %v8935_v31, 4  ;;  %v18701_v55 = vrot.slane %v8938_v41, 5  ;;  %v13104_v41 = vld [vmem:[#allocation3 + $0x38] sm:$0x1] }
 0x50e   : > { %v9494_v18 = vsel %vm13401_vm5, %v9489_v13, %v9493_v52  ;;  %v12496_v44 = vrot.slane %v9641_v9, 9  ;;  %v9719_v30 = vrot.slane %v13103_v35, 5  ;;  %v10731_v31 = vsel %vm6918_vm10, %v10698_v34, %v18474_v3 }
 0x50f   : > { %10029 = vrot.lane.b32.xlu0 %v12553_v1, %s13217_s28  ;;  %v12631_v61 = vcombine.low %v9484_v7, %v9494_v18  ;;  %v8904_v60 = vrot.slane %v8903_v59, 4  ;;  %v9722_v37 = vrot.slane %v13104_v41, 5  ;;  %10936 = vmatmul.mubr.bf16.gmra.mrb[24].mxu0 %v10731_v31  ;;  %v10604_v4 = vsel %vm6786_vm4, %v18598_v11, %v18333_v5  ;;  %v9249_v11 = vld [vmem:[#allocation3 + $0x98] sm:$0x1]  ;;  %v13105_v41 = vld [vmem:[#allocation3 + $0x28] sm:$0xf] }
 0x510   : > { %v9720_v52 = vsel %vm13357_vm2, %v12496_v44, %v9719_v30  ;;  %v9721_v13 = vrot.slane %v9719_v30, 4  ;;  %v8303_v46 = vshrl.u32 %v8012_v21, 16  ;;  %v10636_v3 = vsel %vm6819_vm6, %v10604_v4, %v18507_v45  ;;  %v9041_v45 = vld [vmem:[#allocation3 + $0x90] sm:$0xe] }
 0x511   : > { %10457 = vrot.lane.b32.xlu1 %v12631_v61, %s13222_s29  ;;  %v8909_v1 = vsel %vm13401_vm5, %v8904_v60, %v8908_v25  ;;  %v8306_v7 = vshll.u32 %v8012_v21, 16  ;;  %v8312_v9 = vshll.u32 %v18623_v49, 16  ;;  %v10668_v34 = vsel %vm6852_vm7, %v10636_v3, %v18449_v38  ;;  %v18732_v21 = vpop.permute.xlu0 %10115  ;;  %v18734_v61 = vpop.permute.xlu1 %9937 }
 0x512   : > { %v12584_v59 = vcombine.low %v8899_v50, %v8909_v1  ;;  %v9723_v18 = vsel %vm13357_vm2, %v9721_v13, %v9722_v37  ;;  %v8305_v5 = vrot.slane %v8303_v46, 4  ;;  %v8316_v30 = vshrl.u32 %v18623_v49, 16  ;;  %v8641_v1 = vld [vmem:[#allocation3 + $0x98] sm:$0x1] }
 0x513   : > { %10381 = vrot.lane.b32.xlu0 %v12617_v27, %s13219_s18  ;;  %v12640_v44 = vcombine.low %v9720_v52, %v9723_v18  ;;  %v8308_v35 = vrot.slane %v8306_v7, 5  ;;  %v8314_v25 = vrot.slane %v8312_v9, 5  ;;  %v8322_v50 = vshll.u32 %v18631_v63, 16  ;;  %v13106_v52 = vld [vmem:[#allocation3 + $0x24] sm:$0xf] }
 0x514   : > { %v9502_v37 = vor.u32 %v18619_v28, %v18614_v57  ;;  %v9505_v38 = vshll.u32 %v18610_v47, 16  ;;  %v9511_v27 = vrot.slane %v9509_v0, 4  ;;  %v8318_v60 = vrot.slane %v8316_v30, 4 }
 0x515   : > { %10203 = vrot.lane.b32.xlu1 %v12584_v59, %s13223_s30  ;;  %12665 = vmatprep.mubr.msk.bf16.mxu0 %vm3041_vm9, %v12640_v44  ;;  %v8309_v49 = vor.u32 %v8308_v35, %v8305_v5  ;;  %v9515_v31 = vshll.u32 %v9249_v11, 16  ;;  %v12513_v13 = vcombine.low %v13106_v52, %v13105_v41  ;;  %v8324_v4 = vrot.slane %v8322_v50, 5  ;;  %v18756_v35 = vpop.permute.xlu0 %10447  ;;  %v8434_v41 = vld [vmem:[#allocation3 + $0x90] sm:$0xe] }
 0x516   : > { %v9503_v63 = vrot.slane %v9502_v37, 4  ;;  %v9507_v46 = vrot.slane %v9505_v38, 5  ;;  %v12489_v57 = vrot.slane %v9041_v45, 9  ;;  %v8319_v47 = vor.u32 %v8318_v60, %v8314_v25 }
 0x517   : > { %10127 = vrot.lane.b32.xlu0 %v12570_v2, %s13220_s21  ;;  %v8310_v28 = vrot.slane %v8309_v49, 4  ;;  %v9517_v0 = vrot.slane %v9515_v31, 5  ;;  %v10530_v3 = vsel %vm3041_vm9, %v12513_v13, %v18532_v40  ;;  %v9173_v18 = vrot.slane %v18616_v23, 5  ;;  %v18758_v40 = vpop.permute.xlu1 %10273 }
 0x518   : > { %v9508_v7 = vsel %vm13401_vm5, %v9503_v63, %v9507_v46  ;;  %v9512_v9 = vor.u32 %v9511_v27, %v9507_v46  ;;  %v10574_v59 = vsel %vm20018_vm14, %v10530_v3, %v18487_v62  ;;  %v8320_v11 = vrot.slane %v8319_v47, 4  ;;  %v8015_v46 = vld [vmem:[#allocation3 + $0x94] sm:$0xf]  ;;  %v8014_v47 = vld [vmem:[#allocation3 + $0x90] sm:$0xf]  ;;  %vm20032_vm14 = vmmov %vm20019_vm0 }
 0x519   : > { %v8315_v5 = vsel %vm13401_vm5, %v8310_v28, %v8314_v25  ;;  %v9176_v2 = vrot.slane %v8641_v1, 5  ;;  %v8917_v44 = vor.u32 %v18643_v54, %v18641_v16  ;;  %v9174_v45 = vsel %vm13357_vm2, %v12489_v57, %v9173_v18  ;;  %v9642_v16 = vld [vmem:[#allocation3 + $0x3c] sm:$0xe] }
 0x51a   : > { %v9513_v30 = vrot.slane %v9512_v9, 4  ;;  %v9175_v50 = vrot.slane %v9173_v18, 4  ;;  %v8920_v62 = vshll.u32 %v18616_v23, 16  ;;  %v8325_v37 = vsel %vm13401_vm5, %v8320_v11, %v8324_v4  ;;  %v8034_v23 = vld [vmem:[#allocation3 + $0x98] sm:$0x1]  ;;  %v18781_v18 = vpop.permute.xlu0 %10193 }
 0x51b   : > { %v8918_v25 = vrot.slane %v8917_v44, 4  ;;  %v8926_v38 = vrot.slane %v8924_v53, 4  ;;  %v8930_v27 = vshll.u32 %v8641_v1, 16  ;;  %v12537_v54 = vcombine.low %v8315_v5, %v8325_v37  ;;  %v18783_v5 = vpop.permute.xlu1 %10019 }
 0x51c   : > { %v9518_v49 = vsel %vm13401_vm5, %v9513_v30, %v9517_v0  ;;  %v9177_v60 = vsel %vm13357_vm2, %v9175_v50, %v9176_v2  ;;  %v8922_v31 = vrot.slane %v8920_v62, 5  ;;  %v10700_v4 = vsel %vm6885_vm8, %v10668_v34, %v18395_v43  ;;  %v13107_v0 = vld [vmem:[#allocation3 + $0x40] sm:$0xf] }
 0x51d   : > { %v12632_v52 = vcombine.low %v9508_v7, %v9518_v49  ;;  %v12601_v13 = vcombine.low %v9174_v45, %v9177_v60  ;;  %v8932_v63 = vrot.slane %v8930_v27, 5  ;;  %9949 = vrot.lane.b32.xlu1 %v12537_v54, %s13214_s20  ;;  %v10734_v57 = vsel %vm6918_vm10, %v10700_v4, %v18549_v51  ;;  %v13108_v7 = vld [vmem:[#allocation3 + $0x44] sm:$0x1]  ;;  %v9231_v54 = vld [vmem:[#allocation3 + $0xa8] sm:$0xf] }
 0x51e   : > { %v8923_v53 = vsel %vm13401_vm5, %v8918_v25, %v8922_v31  ;;  %v8927_v1 = vor.u32 %v8926_v38, %v8922_v31  ;;  %v12497_v28 = vrot.slane %v9642_v16, 9  ;;  %10944 = vmatmul.mubr.bf16.gmra.mrb[28].mxu0 %v10734_v57  ;;  %v9726_v3 = vrot.slane %v13107_v0, 5  ;;  %v13109_v4 = vld [vmem:[#allocation3 + $0x34] sm:$0xf]  ;;  %v9042_v57 = vld [vmem:[#allocation3 + $0x9c] sm:$0xe] }
 0x51f   : > { %10459 = vrot.lane.b32.xlu0 %v12632_v52, %s13222_s29  ;;  %v9729_v43 = vrot.slane %v13108_v7, 5  ;;  %v10606_v34 = vsel %vm6786_vm4, %v10574_v59, %v18433_v8  ;;  %v12474_v9 = vrot.slane %v8434_v41, 9  ;;  %v8572_v2 = vrot.slane %v8015_v46, 5  ;;  %v18802_v41 = vld [vmem:[#allocation3 + $0xac] sm:$0xf] }
 0x520   : > { %v8928_v11 = vrot.slane %v8927_v1, 4  ;;  %v10638_v51 = vsel %vm6819_vm6, %v10606_v34, %v18583_v24  ;;  %v8575_v44 = vrot.slane %v8034_v23, 5  ;;  %v9727_v30 = vsel %vm13357_vm2, %v12497_v28, %v9726_v3  ;;  %v18805_v28 = vpop.permute.xlu0 %9939 }
 0x521   : > { %v9728_v45 = vrot.slane %v9726_v3, 4  ;;  %v18791_v50 = vsel %vm6852_vm7, %v10638_v51, %v18551_v56  ;;  %v8327_v8 = vshrl.u32 %v8014_v47, 16  ;;  %10285 = vrot.lane.b32.xlu1 %v12601_v13, %s13221_s27  ;;  %v8573_v62 = vsel %vm13357_vm2, %v12474_v9, %v8572_v2  ;;  %v8624_v51 = vld [vmem:[#allocation3 + $0xa8] sm:$0xf] }
 0x522   : > { %v8933_v59 = vsel %vm13401_vm5, %v8928_v11, %v8932_v63  ;;  %v8574_v24 = vrot.slane %v8572_v2, 4  ;;  %v8330_v37 = vshll.u32 %v8014_v47, 16  ;;  %v8336_v16 = vshll.u32 %v8015_v46, 16  ;;  %v18807_v47 = vpop.permute.xlu1 %10371 }
 0x523   : > { %v12585_v25 = vcombine.low %v8923_v53, %v8933_v59  ;;  %v9730_v38 = vsel %vm13357_vm2, %v9728_v45, %v9729_v43  ;;  %v8329_v27 = vrot.slane %v8327_v8, 4  ;;  %v8340_v31 = vshrl.u32 %v8015_v46, 16  ;;  %v13110_v53 = vld [vmem:[#allocation3 + $0x30] sm:$0xf]  ;;  %v18810_v43 = vld [vmem:[#allocation3 + $0xa4] sm:$0x1] }
 0x524   : > { %v12641_v56 = vcombine.low %v9727_v30, %v9730_v38  ;;  %v8576_v49 = vsel %vm13357_vm2, %v8574_v24, %v8575_v44  ;;  %v8332_v60 = vrot.slane %v8330_v37, 5  ;;  %v8338_v13 = vrot.slane %v8336_v16, 5  ;;  %v18823_v8 = vld [vmem:[#allocation3 + $0xac] sm:$0xf]  ;;  %v8435_v59 = vld [vmem:[#allocation3 + $0x9c] sm:$0xe] }
 0x525   : > { %10205 = vrot.lane.b32.xlu0 %v12585_v25, %s13223_s30  ;;  %v12554_v52 = vcombine.low %v8573_v62, %v8576_v49  ;;  %v8346_v63 = vshll.u32 %v8034_v23, 16  ;;  %v12514_v1 = vcombine.low %v13110_v53, %v13109_v4  ;;  %v8342_v3 = vrot.slane %v8340_v31, 4  ;;  %v18829_v25 = vld [vmem:[#allocation3 + $0xa0] sm:$0xf] }
 0x526   : > { %12666 = vmatprep.mubr.msk.bf16.mxu0 %vm3041_vm9, %v12641_v56  ;;  %v8333_v0 = vor.u32 %v8332_v60, %v8329_v27  ;;  %v9544_v46 = vshrl.u32 %v9231_v54, 16  ;;  %v9547_v7 = vshll.u32 %v9231_v54, 16  ;;  %v12618_v9 = vcombine.low %v9231_v54, %v18802_v41  ;;  %v18833_v54 = vld [vmem:[#allocation3 + $0xa4] sm:$0x1] }
 0x527   : > { %10031 = vrot.lane.b32.xlu1 %v12554_v52, %s13217_s28  ;;  %v8348_v34 = vrot.slane %v8346_v63, 5  ;;  %v10533_v23 = vsel %vm3041_vm9, %v12514_v1, %v18604_v29  ;;  %v9557_v11 = vshrl.u32 %v18802_v41, 16  ;;  %v8343_v44 = vor.u32 %v8342_v3, %v8338_v13  ;;  %v18840_v52 = vld [vmem:[#allocation3 + $0xa4] sm:$0x1]  ;;  %v18842_v63 = vpop.permute.xlu0 %10275 }
 0x528   : > { %v8334_v2 = vrot.slane %v8333_v0, 4  ;;  %v18819_v30 = vsel %vm20019_vm0, %v10533_v23, %v18585_v10  ;;  %v18821_v45 = vrot.slane %v9544_v46, 4  ;;  %v18825_v62 = vrot.slane %v9547_v7, 5  ;;  %v18852_v0 = vld [vmem:[#allocation3 + $0xb4] sm:$0xf] }
 0x529   : > { %v12490_v24 = vrot.slane %v9042_v57, 9  ;;  %v9180_v29 = vrot.slane %v18684_v22, 5  ;;  %v9183_v37 = vrot.slane %v18810_v43, 5  ;;  %v8344_v27 = vrot.slane %v8343_v44, 4 }
 0x52a   : > { %v8339_v38 = vsel %vm13401_vm5, %v8334_v2, %v8338_v13  ;;  %v8959_v10 = vshrl.u32 %v8624_v51, 16  ;;  %v8962_v16 = vshll.u32 %v8624_v51, 16  ;;  %v12571_v60 = vcombine.low %v8624_v51, %v18823_v8  ;;  %v18844_v13 = vpop.permute.xlu1 %10117 }
 0x52b   : > { %10383 = vrot.lane.b32.xlu1 %v12618_v9, %s13219_s18  ;;  %v9181_v56 = vsel %vm13357_vm2, %v12490_v24, %v9180_v29  ;;  %v9182_v49 = vrot.slane %v9180_v29, 4  ;;  %v8972_v31 = vshrl.u32 %v18823_v8, 16  ;;  %v8349_v4 = vsel %vm13401_vm5, %v8344_v27, %v8348_v34  ;;  %v18858_v9 = vld [vmem:[#allocation3 + $0xb8] sm:$0xf] }
 0x52c   : > { %v18848_v53 = vrot.slane %v8959_v10, 4  ;;  %v18850_v1 = vrot.slane %v8962_v16, 5  ;;  %v12475_v57 = vrot.slane %v8435_v59, 9  ;;  %v12538_v3 = vcombine.low %v8339_v38, %v8349_v4  ;;  %20020 = vst [vmem:[#allocation65_spill] sm:$0xff] %v18858_v9  ;;  %v18881_v4 = vld [vmem:[#allocation3 + $0xb8] sm:$0xf] }
 0x52d   : > { %v9184_v46 = vsel %vm13357_vm2, %v9182_v49, %v9183_v37  ;;  %v8579_v7 = vrot.slane %v18829_v25, 5  ;;  %v8582_v23 = vrot.slane %v18833_v54, 5  ;;  %v9526_v34 = vor.u32 %v18679_v12, %v18677_v36 }
 0x52e   : > { %v12602_v51 = vcombine.low %v9181_v56, %v9184_v46  ;;  %v9529_v2 = vshll.u32 %v18655_v20, 16  ;;  %v20021_v44 = vshrl.u32 %v18655_v20, 16  ;;  %9951 = vrot.lane.b32.xlu0 %v12538_v3, %s13214_s20  ;;  %v9539_v37 = vshll.u32 %v18840_v52, 16  ;;  %v18885_v3 = vpop.permute.xlu1 %10449 }
 0x52f   : > { %10129 = vrot.lane.b32.xlu1 %v12571_v60, %s13220_s21  ;;  %v8580_v24 = vsel %vm13357_vm2, %v12475_v57, %v8579_v7  ;;  %v8581_v29 = vrot.slane %v8579_v7, 4  ;;  %v9568_v38 = vshrl.u32 %v18852_v0, 16  ;;  %v9527_v27 = vrot.slane %v9526_v34, 4  ;;  %v18879_v60 = vld [vmem:[#allocation3 + $0xb4] sm:$0xf]  ;;  %v18883_v57 = vpop.permute.xlu0 %10021 }
 0x530   : > { %v9535_v59 = vrot.slane %v20021_v44, 4  ;;  %v9531_v10 = vrot.slane %v9529_v2, 5  ;;  %v9571_v36 = vshll.u32 %v18852_v0, 16  ;;  %v9581_v12 = vshrl.u32 %v18858_v9, 16 }
 0x531   : > { %v8583_v20 = vsel %vm13357_vm2, %v8581_v29, %v8582_v23  ;;  %v9541_v16 = vrot.slane %v9539_v37, 5  ;;  %v18875_v56 = vrot.slane %v9568_v38, 4  ;;  %v12619_v49 = vcombine.low %v18852_v0, %v18858_v9 }
 0x532   : > { %v12555_v46 = vcombine.low %v8580_v24, %v8583_v20  ;;  %v9532_v7 = vsel %vm13401_vm5, %v9527_v27, %v9531_v10  ;;  %v9536_v34 = vor.u32 %v9535_v59, %v9531_v10  ;;  %v18889_v23 = vrot.slane %v9571_v36, 5  ;;  %10287 = vrot.lane.b32.xlu0 %v12602_v51, %s13221_s27 }
 0x533   : > { %v8941_v0 = vor.u32 %v18701_v55, %v18699_v14  ;;  %v8944_v2 = vshll.u32 %v18684_v22, 16  ;;  %v20022_v44 = vshrl.u32 %v18684_v22, 16  ;;  %v8954_v37 = vshll.u32 %v18810_v43, 16  ;;  %v9643_v55 = vld [vmem:[#allocation3 + $0x48] sm:$0xe] }
 0x534   : > { %v9537_v38 = vrot.slane %v9536_v34, 4  ;;  %v8983_v24 = vshrl.u32 %v18879_v60, 16  ;;  %v8986_v27 = vshll.u32 %v18879_v60, 16  ;;  %v12572_v14 = vcombine.low %v18879_v60, %v18881_v4 }
 0x535   : > { %v8950_v29 = vrot.slane %v20022_v44, 4  ;;  %v8942_v10 = vrot.slane %v8941_v0, 4  ;;  %v8946_v36 = vrot.slane %v8944_v2, 5  ;;  %v8956_v51 = vrot.slane %v8954_v37, 5  ;;  %v18912_v44 = vld [vmem:[#allocation3 + $0x9c] sm:$0xf]  ;;  %v18919_v37 = vpop.permute.xlu0 %10373 }
 0x536   : > { %v9542_v22 = vsel %vm13401_vm5, %v9537_v38, %v9541_v16  ;;  %v18905_v20 = vrot.slane %v8983_v24, 4  ;;  %v18907_v43 = vrot.slane %v8986_v27, 5  ;;  %v10702_v34 = vsel %vm6885_vm8, %v18791_v50, %v18505_v42  ;;  %20023 = vst [vmem:[#allocation74_spill] sm:$0xff] %v18912_v44  ;;  %10033 = vrot.lane.b32.xlu0 %v12555_v46, %s13217_s28  ;;  %v18921_v38 = vpop.permute.xlu1 %10195  ;;  %v13111_v27 = vld [vmem:[#allocation3 + $0x4c] sm:$0xf] }
 0x537   : > { %v12633_v0 = vcombine.low %v9532_v7, %v9542_v22  ;;  %v8947_v60 = vsel %vm13401_vm5, %v8942_v10, %v8946_v36  ;;  %v8951_v2 = vor.u32 %v8950_v29, %v8946_v36  ;;  %v10737_v16 = vsel %vm6918_vm10, %v10702_v34, %v18671_v6  ;;  %v13112_v50 = vld [vmem:[#allocation3 + $0x50] sm:$0x1] }
 0x538   : > { %10952 = vmatmul.mubr.bf16.gmra.mrb[32].mxu0 %v10737_v16  ;;  %v12498_v24 = vrot.slane %v9643_v55, 9  ;;  %v9733_v42 = vrot.slane %v13111_v27, 5  ;;  %v9736_v59 = vrot.slane %v13112_v50, 5  ;;  %v10608_v46 = vsel %vm6786_vm4, %v18819_v30, %v18530_v39 }
 0x539   : > { %10461 = vrot.lane.b32.xlu1 %v12633_v0, %s13222_s29  ;;  %v8952_v7 = vrot.slane %v8951_v2, 4  ;;  %v10640_v6 = vsel %vm6819_vm6, %v10608_v46, %v18705_v48  ;;  %v8351_v29 = vshrl.u32 %v18912_v44, 16  ;;  %v8354_v10 = vshll.u32 %v18912_v44, 16  ;;  %v18940_v2 = vld [vmem:[#allocation3 + $0xb0] sm:$0x1] }
 0x53a   : > { %v9734_v36 = vsel %vm13357_vm2, %v12498_v24, %v9733_v42  ;;  %v9735_v55 = vrot.slane %v9733_v42, 4  ;;  %v10672_v22 = vsel %vm6852_vm7, %v10640_v6, %v18633_v58  ;;  %v8360_v34 = vshll.u32 %v18829_v25, 16  ;;  %10385 = vrot.lane.b32.xlu0 %v12619_v49, %s13219_s18  ;;  %v18949_v6 = vpop.permute.xlu1 %9941 }
 0x53b   : > { %v8957_v39 = vsel %vm13401_vm5, %v8952_v7, %v8956_v51  ;;  %v8353_v30 = vrot.slane %v8351_v29, 4  ;;  %v8356_v48 = vrot.slane %v8354_v10, 5  ;;  %v8364_v0 = vshrl.u32 %v18829_v25, 16  ;;  %v9043_v51 = vld [vmem:[#allocation3 + $0xa8] sm:$0xe]  ;;  %v18947_v7 = vpop.permute.xlu0 %10119 }
 0x53c   : > { %v12586_v16 = vcombine.low %v8947_v60, %v8957_v39  ;;  %v9737_v24 = vsel %vm13357_vm2, %v9735_v55, %v9736_v59  ;;  %v8362_v27 = vrot.slane %v8360_v34, 5  ;;  %v8370_v58 = vshll.u32 %v18833_v54, 16  ;;  %v8643_v29 = vld [vmem:[#allocation3 + $0xb0] sm:$0x1]  ;;  %v13114_v55 = vld [vmem:[#allocation3 + $0x3c] sm:$0xf] }
 0x53d   : > { %v12642_v42 = vcombine.low %v9734_v36, %v9737_v24  ;;  %v8357_v50 = vor.u32 %v8356_v48, %v8353_v30  ;;  %v8366_v46 = vrot.slane %v8364_v0, 4  ;;  %v9550_v49 = vor.u32 %v18825_v62, %v18821_v45  ;;  %v13113_v36 = vld [vmem:[#allocation3 + $0x40] sm:$0xf] }
 0x53e   : > { %10207 = vrot.lane.b32.xlu1 %v12586_v16, %s13223_s30  ;;  %v8372_v25 = vrot.slane %v8370_v58, 5  ;;  %v9553_v60 = vshll.u32 %v18802_v41, 16  ;;  %v9559_v59 = vrot.slane %v9557_v11, 4  ;;  %v9563_v54 = vshll.u32 %v18940_v2, 16  ;;  %10131 = vrot.lane.b32.xlu0 %v12572_v14, %s13220_s21 }
 0x53f   : > { %12667 = vmatprep.mubr.msk.bf16.mxu0 %vm3041_vm9, %v12642_v42  ;;  %v8358_v45 = vrot.slane %v8357_v50, 4  ;;  %v8367_v62 = vor.u32 %v8366_v46, %v8362_v27  ;;  %v9551_v10 = vrot.slane %v9550_v49, 4  ;;  %v12515_v34 = vcombine.low %v13114_v55, %v13113_v36 }
 0x540   : > { %v9555_v39 = vrot.slane %v9553_v60, 5  ;;  %v9565_v30 = vrot.slane %v9563_v54, 5  ;;  %v12491_v48 = vrot.slane %v9043_v51, 9  ;;  %v9187_v0 = vrot.slane %v18823_v8, 5  ;;  %v18974_v51 = vpop.permute.xlu0 %10451  ;;  %v18976_v60 = vpop.permute.xlu1 %10277 }
 0x541   : > { %v8363_v41 = vsel %vm13401_vm5, %v8358_v45, %v8362_v27  ;;  %v8368_v11 = vrot.slane %v8367_v62, 4  ;;  %v10536_v14 = vsel %vm3041_vm9, %v12515_v34, %v18734_v61  ;;  %v9190_v16 = vrot.slane %v8643_v29, 5  ;;  %v9644_v62 = vld [vmem:[#allocation3 + $0x54] sm:$0xe] }
 0x542   : > { %v9556_v24 = vsel %vm13401_vm5, %v9551_v10, %v9555_v39  ;;  %v9560_v58 = vor.u32 %v9559_v59, %v9555_v39  ;;  %v10578_v42 = vsel %vm20024_vm13, %v10536_v14, %v18669_v33  ;;  %v9188_v50 = vsel %vm13357_vm2, %v12491_v48, %v9187_v0  ;;  %vm20037_vm13 = vmmov %vm20019_vm0 }
 0x543   : > { %v8373_v46 = vsel %vm13401_vm5, %v8368_v11, %v8372_v25  ;;  %v9189_v49 = vrot.slane %v9187_v0, 4  ;;  %v8965_v27 = vor.u32 %v18850_v1, %v18848_v53  ;;  %v8968_v61 = vshll.u32 %v18823_v8, 16  ;;  %v8436_v1 = vld [vmem:[#allocation3 + $0xa8] sm:$0xe]  ;;  %v13115_v11 = vld [vmem:[#allocation3 + $0x58] sm:$0xf] }
 0x544   : > { %v12539_v59 = vcombine.low %v8363_v41, %v8373_v46  ;;  %v9561_v54 = vrot.slane %v9560_v58, 4  ;;  %v8974_v33 = vrot.slane %v8972_v31, 4  ;;  %v8978_v45 = vshll.u32 %v8643_v29, 16  ;;  %v18989_v31 = vld [vmem:[#allocation3 + $0xac] sm:$0xf] }
 0x545   : > { %v9191_v25 = vsel %vm13357_vm2, %v9189_v49, %v9190_v16  ;;  %v8966_v10 = vrot.slane %v8965_v27, 4  ;;  %v8970_v36 = vrot.slane %v8968_v61, 5  ;;  %v10704_v53 = vsel %vm6885_vm8, %v10672_v22, %v18606_v32  ;;  %v8036_v29 = vld [vmem:[#allocation3 + $0xb0] sm:$0x1]  ;;  %v18993_v22 = vld [vmem:[#allocation3 + $0xa8] sm:$0xf]  ;;  %v19001_v27 = vpop.permute.xlu0 %10197  ;;  %v19003_v61 = vpop.permute.xlu1 %10023 }
 0x546   : > { %9953 = vrot.lane.b32.xlu1 %v12539_v59, %s13214_s20  ;;  %v9566_v55 = vsel %vm13401_vm5, %v9561_v54, %v9565_v30  ;;  %v12603_v34 = vcombine.low %v9188_v50, %v9191_v25  ;;  %v8980_v39 = vrot.slane %v8978_v45, 5  ;;  %v10740_v8 = vsel %vm6918_vm10, %v10704_v53, %v18756_v35  ;;  %v13116_v30 = vld [vmem:[#allocation3 + $0x5c] sm:$0x1] }
 0x547   : > { %v12634_v48 = vcombine.low %v9556_v24, %v9566_v55  ;;  %v8971_v0 = vsel %vm13401_vm5, %v8966_v10, %v8970_v36  ;;  %v8975_v41 = vor.u32 %v8974_v33, %v8970_v36  ;;  %10960 = vmatmul.mubr.bf16.gmra.mrb[36].mxu0 %v10740_v8  ;;  %v12499_v32 = vrot.slane %v9644_v62, 9  ;;  %v19024_v8 = vld [vmem:[#allocation3 + $0xc4] sm:$0xf] }
 0x548   : > { %v9740_v14 = vrot.slane %v13115_v11, 5  ;;  %v9743_v16 = vrot.slane %v13116_v30, 5  ;;  %v10610_v58 = vsel %vm6786_vm4, %v10578_v42, %v18635_v26  ;;  %v12476_v35 = vrot.slane %v8436_v1, 9  ;;  %v13118_v11 = vld [vmem:[#allocation3 + $0x48] sm:$0xf] }
 0x549   : > { %10463 = vrot.lane.b32.xlu0 %v12634_v48, %s13222_s29  ;;  %v8976_v50 = vrot.slane %v8975_v41, 4  ;;  %v10642_v24 = vsel %vm6819_vm6, %v10610_v58, %v18781_v18  ;;  %v8586_v46 = vrot.slane %v18989_v31, 5  ;;  %v8589_v49 = vrot.slane %v8036_v29, 5  ;;  %v9044_v30 = vld [vmem:[#allocation3 + $0xb4] sm:$0xe] }
 0x54a   : > { %10289 = vrot.lane.b32.xlu1 %v12603_v34, %s13221_s27  ;;  %v9741_v59 = vsel %vm13357_vm2, %v12499_v32, %v9740_v14  ;;  %v9742_v26 = vrot.slane %v9740_v14, 4  ;;  %v19010_v42 = vsel %vm6852_vm7, %v10642_v24, %v18758_v40  ;;  %v8375_v54 = vshrl.u32 %v18993_v22, 16  ;;  %v9235_v40 = vld [vmem:[#allocation3 + $0xc0] sm:$0xf]  ;;  %v13117_v32 = vld [vmem:[#allocation3 + $0x4c] sm:$0xf] }
 0x54b   : > { %v8981_v18 = vsel %vm13401_vm5, %v8976_v50, %v8980_v39  ;;  %v8587_v33 = vsel %vm13357_vm2, %v12476_v35, %v8586_v46  ;;  %v8588_v45 = vrot.slane %v8586_v46, 4  ;;  %v8378_v62 = vshll.u32 %v18993_v22, 16  ;;  %v19028_v24 = vld [vmem:[#allocation3 + $0xbc] sm:$0x1] }
 0x54c   : > { %v12587_v25 = vcombine.low %v8971_v0, %v8981_v18  ;;  %v9744_v10 = vsel %vm13357_vm2, %v9742_v26, %v9743_v16  ;;  %v8377_v36 = vrot.slane %v8375_v54, 4  ;;  %v8384_v53 = vshll.u32 %v18989_v31, 16  ;;  %v19030_v46 = vpop.permute.xlu0 %9943  ;;  %v8628_v18 = vld [vmem:[#allocation3 + $0xc0] sm:$0xf] }
 0x54d   : > { %v12643_v1 = vcombine.low %v9741_v59, %v9744_v10  ;;  %v8590_v55 = vsel %vm13357_vm2, %v8588_v45, %v8589_v49  ;;  %v8380_v34 = vrot.slane %v8378_v62, 5  ;;  %v8388_v39 = vshrl.u32 %v18989_v31, 16  ;;  %v19032_v49 = vpop.permute.xlu1 %10375  ;;  %v19043_v10 = vld [vmem:[#allocation3 + $0xc4] sm:$0xf] }
 0x54e   : > { %10209 = vrot.lane.b32.xlu0 %v12587_v25, %s13223_s30  ;;  %v12556_v48 = vcombine.low %v8587_v33, %v8590_v55  ;;  %v8386_v0 = vrot.slane %v8384_v53, 5  ;;  %v8394_v41 = vshll.u32 %v8036_v29, 16  ;;  %v12516_v14 = vcombine.low %v13118_v11, %v13117_v32  ;;  %v8437_v55 = vld [vmem:[#allocation3 + $0xb4] sm:$0xe] }
 0x54f   : > { %12668 = vmatprep.mubr.msk.bf16.mxu0 %vm3041_vm9, %v12643_v1  ;;  %v8381_v16 = vor.u32 %v8380_v34, %v8377_v36  ;;  %v8390_v58 = vrot.slane %v8388_v39, 4  ;;  %v9592_v35 = vshrl.u32 %v9235_v40, 16  ;;  %v9595_v50 = vshll.u32 %v9235_v40, 16  ;;  %v19045_v36 = vld [vmem:[#allocation3 + $0xb8] sm:$0xf] }
 0x550   : > { %10035 = vrot.lane.b32.xlu1 %v12556_v48, %s13217_s28  ;;  %v8396_v59 = vrot.slane %v8394_v41, 5  ;;  %v10539_v29 = vsel %vm3041_vm9, %v12516_v14, %v18805_v28  ;;  %v12620_v26 = vcombine.low %v9235_v40, %v19024_v8  ;;  %v9605_v54 = vshrl.u32 %v19024_v8, 16 }
 0x551   : > { %v8382_v33 = vrot.slane %v8381_v16, 4  ;;  %v8391_v45 = vor.u32 %v8390_v58, %v8386_v0  ;;  %v19041_v62 = vsel %vm20025_vm15, %v10539_v29, %v18783_v5  ;;  %v9594_v25 = vrot.slane %v9592_v35, 4  ;;  %v19051_v5 = vld [vmem:[#allocation3 + $0xbc] sm:$0x1]  ;;  %v19062_v29 = vpop.permute.xlu0 %10279  ;;  %vm20038_vm15 = vmmov %vm20019_vm0 }
 0x552   : > { %v9597_v53 = vrot.slane %v9595_v50, 5  ;;  %v12492_v1 = vrot.slane %v9044_v30, 9  ;;  %v9194_v28 = vrot.slane %v18881_v4, 5  ;;  %v9197_v40 = vrot.slane %v19028_v24, 5  ;;  %v19060_v50 = vld [vmem:[#allocation3 + $0xbc] sm:$0x1] }
 0x553   : > { %v8387_v34 = vsel %vm13401_vm5, %v8382_v33, %v8386_v0  ;;  %v8392_v39 = vrot.slane %v8391_v45, 4  ;;  %v9007_v48 = vshrl.u32 %v8628_v18, 16  ;;  %v9010_v41 = vshll.u32 %v8628_v18, 16  ;;  %20026 = vst [vmem:[#allocation75_spill] sm:$0xff] %v19060_v50  ;;  %v19064_v33 = vpop.permute.xlu1 %10121 }
 0x554   : > { %10387 = vrot.lane.b32.xlu1 %v12620_v26, %s13219_s18  ;;  %v9195_v32 = vsel %vm13357_vm2, %v12492_v1, %v9194_v28  ;;  %v9196_v11 = vrot.slane %v9194_v28, 4  ;;  %v12573_v14 = vcombine.low %v8628_v18, %v19043_v10  ;;  %v9020_v30 = vshrl.u32 %v19043_v10, 16 }
 0x555   : > { %v8397_v16 = vsel %vm13401_vm5, %v8392_v39, %v8396_v59  ;;  %v9009_v58 = vrot.slane %v9007_v48, 4  ;;  %v9012_v0 = vrot.slane %v9010_v41, 5  ;;  %v12477_v35 = vrot.slane %v8437_v55, 9  ;;  %v19075_v48 = vld [vmem:[#allocation3 + $0xc8] sm:$0x1] }
 0x556   : > { %v12540_v26 = vcombine.low %v8387_v34, %v8397_v16  ;;  %v9198_v45 = vsel %vm13357_vm2, %v9196_v11, %v9197_v40  ;;  %v8593_v18 = vrot.slane %v19045_v36, 5  ;;  %v8596_v1 = vrot.slane %v19051_v5, 5 }
 0x557   : > { %v12604_v28 = vcombine.low %v9195_v32, %v9198_v45  ;;  %v9574_v59 = vor.u32 %v18889_v23, %v18875_v56  ;;  %v9577_v55 = vshll.u32 %v18858_v9, 16  ;;  %v9583_v39 = vrot.slane %v9581_v12, 4 }
 0x558   : > { %9955 = vrot.lane.b32.xlu0 %v12540_v26, %s13214_s20  ;;  %10133 = vrot.lane.b32.xlu1 %v12573_v14, %s13220_s21  ;;  %v8594_v40 = vsel %vm13357_vm2, %v12477_v35, %v8593_v18  ;;  %v8595_v34 = vrot.slane %v8593_v18, 4  ;;  %v9587_v41 = vshll.u32 %v19060_v50, 16  ;;  %v9598_v32 = vor.u32 %v9597_v53, %v9594_v25  ;;  %v19088_v50 = vpop.permute.xlu0 %10025  ;;  %v19090_v25 = vpop.permute.xlu1 %10453  ;;  %s19571_s21 = scalar_lea.hbm %s19624_s10, %s12681_s11 }
 0x559   : > { %v9575_v11 = vrot.slane %v9574_v59, 4  ;;  %v9579_v56 = vrot.slane %v9577_v55, 5  ;;  %v9601_v23 = vshll.u32 %v19024_v8, 16  ;;  %v9607_v16 = vrot.slane %v9605_v54, 4 }
 0x55a   : > { %v8597_v12 = vsel %vm13357_vm2, %v8595_v34, %v8596_v1  ;;  %v9589_v45 = vrot.slane %v9587_v41, 5  ;;  %v9599_v44 = vrot.slane %v9598_v32, 4  ;;  %v9611_v26 = vshll.u32 %v19075_v48, 16 }
 0x55b   : > { %v12557_v14 = vcombine.low %v8594_v40, %v8597_v12  ;;  %v9580_v35 = vsel %vm13401_vm5, %v9575_v11, %v9579_v56  ;;  %v9584_v18 = vor.u32 %v9583_v39, %v9579_v56  ;;  %v9603_v9 = vrot.slane %v9601_v23, 5  ;;  %v19101_v56 = vld [vmem:[#allocation3 + $0xc8] sm:$0x1] }
 0x55c   : > { %10291 = vrot.lane.b32.xlu0 %v12604_v28, %s13221_s27  ;;  %v9613_v54 = vrot.slane %v9611_v26, 5  ;;  %v8989_v53 = vor.u32 %v18907_v43, %v18905_v20  ;;  %v8992_v1 = vshll.u32 %v18881_v4, 16  ;;  %v20027_v59 = vshrl.u32 %v18881_v4, 16  ;;  %v9645_v26 = vld [vmem:[#allocation3 + $0x60] sm:$0xe] }
 0x55d   : > { %v9585_v40 = vrot.slane %v9584_v18, 4  ;;  %v9604_v39 = vsel %vm13401_vm5, %v9599_v44, %v9603_v9  ;;  %v9608_v34 = vor.u32 %v9607_v16, %v9603_v9  ;;  %v9002_v41 = vshll.u32 %v19028_v24, 16 }
 0x55e   : > { %v8998_v55 = vrot.slane %v20027_v59, 4  ;;  %v8990_v32 = vrot.slane %v8989_v53, 4  ;;  %v8994_v11 = vrot.slane %v8992_v1, 5  ;;  %v9013_v28 = vor.u32 %v9012_v0, %v9009_v58  ;;  %v19117_v53 = vpop.permute.xlu0 %10377 }
 0x55f   : > { %v9016_v23 = vshll.u32 %v19043_v10, 16  ;;  %v9590_v20 = vsel %vm13401_vm5, %v9585_v40, %v9589_v45  ;;  %v9609_v43 = vrot.slane %v9608_v34, 4  ;;  %v9004_v4 = vrot.slane %v9002_v41, 5 }
 0x560   : > { %v9022_v12 = vrot.slane %v9020_v30, 4  ;;  %10037 = vrot.lane.b32.xlu0 %v12557_v14, %s13217_s28  ;;  %v12635_v44 = vcombine.low %v9580_v35, %v9590_v20  ;;  %v8995_v9 = vsel %vm13401_vm5, %v8990_v32, %v8994_v11  ;;  %v8999_v24 = vor.u32 %v8998_v55, %v8994_v11  ;;  %v19115_v30 = vld [vmem:[#allocation3 + $0xb4] sm:$0xf]  ;;  %v19119_v14 = vpop.permute.xlu1 %10199  ;;  %v13120_v32 = vld [vmem:[#allocation3 + $0x68] sm:$0x1] }
 0x561   : > { %v9014_v16 = vrot.slane %v9013_v28, 4  ;;  %v9614_v58 = vsel %vm13401_vm5, %v9609_v43, %v9613_v54  ;;  %v9018_v0 = vrot.slane %v9016_v23, 5  ;;  %v9026_v18 = vshll.u32 %v19101_v56, 16 }
 0x562   : > { %v10706_v45 = vsel %vm6885_vm8, %v19010_v42, %v18703_v15  ;;  %10465 = vrot.lane.b32.xlu1 %v12635_v44, %s13222_s29  ;;  %v12636_v35 = vcombine.low %v9604_v39, %v9614_v58  ;;  %v9000_v1 = vrot.slane %v8999_v24, 4  ;;  %v12500_v59 = vrot.slane %v9645_v26, 9  ;;  %v13119_v15 = vld [vmem:[#allocation3 + $0x64] sm:$0xf] }
 0x563   : > { %v10743_v54 = vsel %vm6918_vm10, %v10706_v45, %v18885_v3  ;;  %v9019_v55 = vsel %vm13401_vm5, %v9014_v16, %v9018_v0  ;;  %v9023_v40 = vor.u32 %v9022_v12, %v9018_v0  ;;  %v9028_v34 = vrot.slane %v9026_v18, 5  ;;  %v9045_v16 = vld [vmem:[#allocation3 + $0xc0] sm:$0xe] }
 0x564   : > { %10968 = vmatmul.mubr.bf16.gmra.mrb[40].mxu0 %v10743_v54  ;;  %v9747_v42 = vrot.slane %v13119_v15, 5  ;;  %10467 = vrot.lane.b32.xlu0 %v12636_v35, %s13222_s29  ;;  %v9005_v41 = vsel %vm13401_vm5, %v9000_v1, %v9004_v4  ;;  %v9750_v39 = vrot.slane %v13120_v32, 5  ;;  %v10612_v3 = vsel %vm6786_vm4, %v19041_v62, %v18732_v21  ;;  %v19157_v32 = vld [vmem:[#allocation3 + $0xd0] sm:$0xf] }
 0x565   : > { %v8399_v11 = vshrl.u32 %v19115_v30, 16  ;;  %v12588_v28 = vcombine.low %v8995_v9, %v9005_v41  ;;  %v9024_v23 = vrot.slane %v9023_v40, 4  ;;  %v10644_v12 = vsel %vm6819_vm6, %v10612_v3, %v18921_v38  ;;  %v19147_v38 = vpop.permute.xlu0 %10123  ;;  %v13122_v40 = vld [vmem:[#allocation3 + $0x54] sm:$0xf]  ;;  %v9237_v41 = vld [vmem:[#allocation3 + $0xcc] sm:$0xf] }
 0x566   : > { %v9748_v20 = vsel %vm13357_vm2, %v12500_v59, %v9747_v42  ;;  %v9749_v43 = vrot.slane %v9747_v42, 4  ;;  %v8402_v4 = vshll.u32 %v19115_v30, 16  ;;  %v8408_v44 = vshll.u32 %v19045_v36, 16  ;;  %v13121_v59 = vld [vmem:[#allocation3 + $0x58] sm:$0xf] }
 0x567   : > { %v8401_v26 = vrot.slane %v8399_v11, 4  ;;  %10211 = vrot.lane.b32.xlu1 %v12588_v28, %s13223_s30  ;;  %v9029_v21 = vsel %vm13401_vm5, %v9024_v23, %v9028_v34  ;;  %v10676_v9 = vsel %vm6852_vm7, %v10644_v12, %v18842_v63  ;;  %v8412_v24 = vshrl.u32 %v19045_v36, 16 }
 0x568   : > { %v9751_v62 = vsel %vm13357_vm2, %v9749_v43, %v9750_v39  ;;  %v19149_v58 = vpop.permute.xlu1 %9945  ;;  %v12589_v0 = vcombine.low %v9019_v55, %v9029_v21  ;;  %v8404_v45 = vrot.slane %v8402_v4, 5  ;;  %v8410_v35 = vrot.slane %v8408_v44, 5 }
 0x569   : > { %v12644_v18 = vcombine.low %v9748_v20, %v9751_v62  ;;  %v8414_v1 = vrot.slane %v8412_v24, 4  ;;  %v8418_v54 = vshll.u32 %v19051_v5, 16  ;;  %v12517_v34 = vcombine.low %v13122_v40, %v13121_v59 }
 0x56a   : > { %10213 = vrot.lane.b32.xlu0 %v12589_v0, %s13223_s30  ;;  %v8405_v63 = vor.u32 %v8404_v45, %v8401_v26  ;;  %v12493_v15 = vrot.slane %v9045_v16, 9  ;;  %v9201_v42 = vrot.slane %v19043_v10, 5  ;;  %v10708_v55 = vsel %vm6885_vm8, %v10676_v9, %v18807_v47  ;;  %v19180_v16 = vld [vmem:[#allocation3 + $0xd4] sm:$0x1]  ;;  %v13123_v45 = vld [vmem:[#allocation3 + $0x70] sm:$0xf] }
 0x56b   : > { %12669 = vmatprep.mubr.msk.bf16.mxu0 %vm3041_vm9, %v12644_v18  ;;  %v8415_v39 = vor.u32 %v8414_v1, %v8410_v35  ;;  %v10542_v5 = vsel %vm3041_vm9, %v12517_v34, %v18949_v6  ;;  %v9204_v3 = vrot.slane %v19101_v56, 5  ;;  %v10746_v11 = vsel %vm6918_vm10, %v10708_v55, %v18974_v51  ;;  %v9646_v6 = vld [vmem:[#allocation3 + $0x6c] sm:$0xe]  ;;  %v19169_v44 = vpop.permute.xlu0 %10455  ;;  %s13150_s30 = sshll.u32 %s13224_s17, 4  ;;  %s13151_s30 = int_to_ptr.vmem [resolvable:$false] %s13150_s30 }
 0x56c   : > { %v19164_v28 = vpop.permute.xlu1 %10281  ;;  %v8406_v23 = vrot.slane %v8405_v63, 4  ;;  %v8420_v20 = vrot.slane %v8418_v54, 5  ;;  %v10582_v10 = vsel %vm20028_vm1, %v10542_v5, %v18883_v57  ;;  %v9203_v47 = vrot.slane %v9201_v42, 4  ;;  %10976 = vmatmul.mubr.bf16.gmra.mrb[44].mxu0 %v10746_v11  ;;  %v13126_v11 = vld [vmem:[#allocation3 + $0x60] sm:$0xf]  ;;  %s13152_s25 = scalar_lea.vmem %s13151_s30, 32 }
 0x56d   : > { %v8416_v43 = vrot.slane %v8415_v39, 4  ;;  %v9616_v12 = vshrl.u32 %v9237_v41, 16  ;;  %v9619_v26 = vshll.u32 %v9237_v41, 16  ;;  %v9629_v4 = vshrl.u32 %v19157_v32, 16 }
 0x56e   : > { %v8411_v51 = vsel %vm13401_vm5, %v8406_v23, %v8410_v35  ;;  %v9202_v56 = vsel %vm13357_vm2, %v12493_v15, %v9201_v42  ;;  %v12621_v21 = vcombine.low %v9237_v41, %v19157_v32  ;;  %v9205_v62 = vsel %vm13357_vm2, %v9203_v47, %v9204_v3  ;;  %v13124_v42 = vld [vmem:[#allocation3 + $0x74] sm:$0x1] }
 0x56f   : > { %v8421_v57 = vsel %vm13401_vm5, %v8416_v43, %v8420_v20  ;;  %v9618_v9 = vrot.slane %v9616_v12, 4  ;;  %v9621_v24 = vrot.slane %v9619_v26, 5  ;;  %v12501_v18 = vrot.slane %v9646_v6, 9  ;;  %v9647_v20 = vld [vmem:[#allocation3 + $0x78] sm:$0xe] }
 0x570   : > { %v12541_v0 = vcombine.low %v8411_v51, %v8421_v57  ;;  %10389 = vrot.lane.b32.xlu0 %v12621_v21, %s13219_s18  ;;  %v9754_v35 = vrot.slane %v13123_v45, 5  ;;  %v10614_v1 = vsel %vm6786_vm4, %v10582_v10, %v18844_v13  ;;  %v9625_v40 = vshll.u32 %v19157_v32, 16  ;;  %v13127_v57 = vld [vmem:[#allocation3 + $0x7c] sm:$0xf] }
 0x571   : > { %v10646_v54 = vsel %vm6819_vm6, %v10614_v1, %v19001_v27  ;;  %v9622_v59 = vor.u32 %v9621_v24, %v9618_v9  ;;  %v9631_v34 = vrot.slane %v9629_v4, 4  ;;  %v19188_v63 = vpop.permute.xlu1 %10027  ;;  %v9757_v55 = vrot.slane %v13124_v42, 5  ;;  %v13125_v27 = vld [vmem:[#allocation3 + $0x64] sm:$0xf]  ;;  %v13128_v9 = vld [vmem:[#allocation3 + $0x70] sm:$0xf] }
 0x572   : > { %9957 = vrot.lane.b32.xlu1 %v12541_v0, %s13214_s20  ;;  %v9756_v15 = vrot.slane %v9754_v35, 4  ;;  %v10678_v41 = vsel %vm6852_vm7, %v10646_v54, %v18976_v60  ;;  %v9635_v39 = vshll.u32 %v19180_v16, 16  ;;  %v12605_v13 = vcombine.low %v9202_v56, %v9205_v62  ;;  %v10202_v10 = vpop.permute.xlu0 %10201  ;;  %v13129_v24 = vld [vmem:[#allocation3 + $0x6c] sm:$0xf]  ;;  %v13131_v1 = vld [vmem:[#allocation3 + $0x80] sm:$0x1] }
 0x573   : > { %v9623_v5 = vrot.slane %v9622_v59, 4  ;;  %v9627_v3 = vrot.slane %v9625_v40, 5  ;;  %v12518_v23 = vcombine.low %v13126_v11, %v13125_v27  ;;  %v9755_v47 = vsel %vm13357_vm2, %v12501_v18, %v9754_v35  ;;  %v13130_v18 = vld [vmem:[#allocation3 + $0x88] sm:$0xf]  ;;  %s11778_s20 = sshll.u32 %s351_s12, 4  ;;  %s19573_s20 = int_to_ptr.vmem [resolvable:$true] %s11778_s20 }
 0x574   : > { %v9758_v43 = vsel %vm13357_vm2, %v9756_v15, %v9757_v55  ;;  %v9637_v12 = vrot.slane %v9635_v39, 5  ;;  %v10710_v60 = vsel %vm6885_vm8, %v10678_v41, %v18919_v37  ;;  %v12502_v21 = vrot.slane %v9647_v20, 9  ;;  %v9648_v55 = vld [vmem:[#allocation3 + $0x84] sm:$0xe]  ;;  %p13153_p0 = scmp.lt.s32.totalorder %s19573_s20, %s13151_s30 }
 0x575   : > { %v12645_v26 = vcombine.low %v9755_v47, %v9758_v43  ;;  %v9632_v4 = vor.u32 %v9631_v34, %v9627_v3  ;;  %v10545_v6 = vsel %vm3041_vm9, %v12518_v23, %v19030_v46  ;;  %v10749_v51 = vsel %vm6918_vm10, %v10710_v60, %v19090_v25  ;;  %v19212_v35 = vpop.permute.xlu1 %10379 }
 0x576   : > { %10293 = vrot.lane.b32.xlu1 %v12605_v13, %s13221_s27  ;;  %v10584_v56 = vsel %vm20029_vm11, %v10545_v6, %v19003_v61  ;;  %v9761_v62 = vrot.slane %v13127_v57, 5  ;;  %v12519_v0 = vcombine.low %v13129_v24, %v13128_v9  ;;  %v9628_v37 = vsel %vm13401_vm5, %v9623_v5, %v9627_v3  ;;  %v13132_v3 = vld [vmem:[#allocation3 + $0x8c] sm:$0x1]  ;;  %s11766_s27 = scalar_lea.sflag [#allocation5], %s350_s26 }
 0x577   : > { %12670 = vmatprep.mubr.msk.bf16.mxu0 %vm3041_vm9, %v12645_v26  ;;  %v9633_v46 = vrot.slane %v9632_v4, 4  ;;  %v10616_v25 = vsel %vm6786_vm4, %v10584_v56, %v18947_v7  ;;  %v9768_v45 = vrot.slane %v13130_v18, 5  ;;  %v9764_v54 = vrot.slane %v13131_v1, 5  ;;  %v13134_v26 = vld [vmem:[#allocation3 + $0x7c] sm:$0xf] }
 0x578   : > { %10984 = vmatmul.mubr.bf16.gmra.mrb[48].mxu0 %v10749_v51  ;;  %v9763_v61 = vrot.slane %v9761_v62, 4  ;;  %v10648_v59 = vsel %vm6819_vm6, %v10616_v25, %v19119_v14  ;;  %v10548_v40 = vsel %vm3041_vm9, %v12519_v0, %v19149_v58  ;;  %v9762_v7 = vsel %vm13357_vm2, %v12502_v21, %v9761_v62  ;;  %v13135_v4 = vld [vmem:[#allocation3 + $0x78] sm:$0xf]  ;;  %v9649_v21 = vld [vmem:[#allocation3 + $0x90] sm:$0xe] }
 0x579   : > { %v9638_v34 = vsel %vm13401_vm5, %v9633_v46, %v9637_v12  ;;  %v10680_v15 = vsel %vm6852_vm7, %v10648_v59, %v19062_v29  ;;  %v10586_v42 = vsel %vm20030_vm3, %v10548_v40, %v19088_v50  ;;  %v9948_v41 = vpop.permute.xlu0 %9947  ;;  %v9770_v13 = vrot.slane %v9768_v45, 4  ;;  %v13133_v50 = vld [vmem:[#allocation3 + $0x94] sm:$0xf]  ;;  %v19238_v43 = vpop.permute.xlu1 %10125  ;;  %v13136_v62 = vld [vmem:[#allocation3 + $0x98] sm:$0x1] }
 0x57a   : > { %v12637_v39 = vcombine.low %v9628_v37, %v9638_v34  ;;  %v9765_v14 = vsel %vm13357_vm2, %v9763_v61, %v9764_v54  ;;  %v10712_v58 = vsel %vm6885_vm8, %v10680_v15, %v19032_v49  ;;  %v9771_v27 = vrot.slane %v13132_v3, 5  ;;  %v9654_v25 = vld [vmem:[#allocation3 + $0xcc] sm:$0xe]  ;;  %v9653_v61 = vld [vmem:[#allocation3 + $0xc0] sm:$0xe] }
 0x57b   : > { %v12646_v5 = vcombine.low %v9762_v7, %v9765_v14  ;;  %v10618_v11 = vsel %vm6786_vm4, %v10586_v42, %v19064_v33  ;;  %v12503_v29 = vrot.slane %v9648_v55, 9  ;;  %v9775_v23 = vrot.slane %v13133_v50, 5 }
 0x57c   : > { %10469 = vrot.lane.b32.xlu1 %v12637_v39, %s13222_s29  ;;  %v10752_v20 = vsel %vm6918_vm10, %v10712_v58, %v19169_v44  ;;  %v9772_v49 = vsel %vm13357_vm2, %v9770_v13, %v9771_v27  ;;  %v10650_v33 = vsel %vm6819_vm6, %v10618_v11, %v10202_v10  ;;  %v12520_v6 = vcombine.low %v13135_v4, %v13134_v26  ;;  %v9650_v11 = vld [vmem:[#allocation3 + $0x9c] sm:$0xe]  ;;  %s13146_s29 = scalar_lea.vmem %s19573_s20, 16 }
 0x57d   : > { %12671 = vmatprep.mubr.msk.bf16.mxu0 %vm3041_vm9, %v12646_v5  ;;  %v10284_v47 = vpop.permute.xlu0 %10283  ;;  %v9769_v12 = vsel %vm13357_vm2, %v12503_v29, %v9768_v45  ;;  %v9777_v51 = vrot.slane %v9775_v23, 4  ;;  %v10682_v44 = vsel %vm6852_vm7, %v10650_v33, %v19164_v28  ;;  %v9778_v9 = vrot.slane %v13136_v62, 5  ;;  %p13147_p11 = scmp.ne.s32.totalorder %s19573_s20, %s13146_s29  ;;  %p13154_p1 = scmp.lt.s32.totalorder %s13152_s25, %s13146_s29 }
 0x57e   : > { %v12647_v60 = vcombine.low %v9769_v12, %v9772_v49  ;;  %v10551_v57 = vsel %vm3041_vm9, %v12520_v6, %v9948_v41  ;;  %v10714_v10 = vsel %vm6885_vm8, %v10682_v44, %v19117_v53  ;;  %v12504_v0 = vrot.slane %v9649_v21, 9  ;;  %v13137_v53 = vld [vmem:[#allocation3 + $0xa0] sm:$0xf]  ;;  %v13138_v6 = vld [vmem:[#allocation3 + $0x88] sm:$0xf] }
 0x57f   : > { %v9779_v37 = vsel %vm13357_vm2, %v9777_v51, %v9778_v9  ;;  %v12524_v46 = vcombine.low %v18993_v22, %v18989_v31  ;;  %v10588_v28 = vsel %vm20031_vm12, %v10551_v57, %v19188_v63  ;;  %v9782_v54 = vrot.slane %v13137_v53, 5  ;;  %v13139_v51 = vld [vmem:[#allocation3 + $0x84] sm:$0xf]  ;;  %p13148_p12 = pnand %p13147_p11, %p13318_p5  ;;  %p13155_p2 = por %p13154_p1, %p13153_p0 }
 0x580   : > { %10992 = vmatmul.mubr.bf16.gmra.mrb[52].mxu0 %v10752_v20  ;;  %v9776_v1 = vsel %vm13357_vm2, %v12504_v0, %v9775_v23  ;;  %v9803_v59 = vrot.slane %v19024_v8, 5  ;;  %v12525_v40 = vcombine.low %v19115_v30, %v19045_v36  ;;  %v12509_v15 = vrot.slane %v9654_v25, 9 }
 0x581   : > { %12672 = vmatprep.mubr.msk.bf16.mxu0 %vm3041_vm9, %v12647_v60  ;;  %v10030_v56 = vpop.permute.xlu0 %10029  ;;  %v12648_v34 = vcombine.low %v9776_v1, %v9779_v37  ;;  %v9810_v63 = vrot.slane %v19157_v32, 5  ;;  %v9813_v42 = vrot.slane %v19180_v16, 5  ;;  %v10620_v55 = vsel %vm6786_vm4, %v10588_v28, %v19147_v38  ;;  %p13149_p13 = pneg %p13148_p12 }
 0x582   : > { %v12508_v41 = vrot.slane %v9653_v61, 9  ;;  %v9805_v39 = vrot.slane %v9803_v59, 4  ;;  %v9806_v14 = vrot.slane %v19075_v48, 5  ;;  %v9784_v48 = vrot.slane %v9782_v54, 4  ;;  %v9651_v61 = vld [vmem:[#allocation3 + $0xa8] sm:$0xe] }
 0x583   : > { %v10458_v24 = vpop.permute.xlu1 %10457  ;;  %v19272_v58 = vsel %vm13357_vm2, %v12509_v15, %v9810_v63  ;;  %v9812_v13 = vrot.slane %v9810_v63, 4  ;;  %v9785_v50 = vrot.slane %v18840_v52, 5  ;;  %v12505_v20 = vrot.slane %v9650_v11, 9  ;;  %v11134_v15 = vld [vmem:[#allocation2 + $0xc] sm:$0xf]  ;;  %p13156_p3 = pnand %p13155_p2, %p13149_p13 }
 0x584   : > { %v10755_v45 = vsel %vm6918_vm10, %v10714_v10, %v10458_v24  ;;  %v19276_v32 = vsel %vm13357_vm2, %v12508_v41, %v9803_v59  ;;  %v19280_v38 = vsel %vm13357_vm2, %v9805_v39, %v9806_v14  ;;  %v13140_v24 = vld [vmem:[#allocation3 + $0xac] sm:$0xf]  ;;  %v9792_v1 = vrot.slane %v18940_v2, 5  ;;  %v11135_v14 = vld [vmem:[#allocation2 + $0x10] sm:$0xf] }
 0x585   : > { %v19255_v18 = vpop.permute.xlu0 %10381  ;;  %v12652_v5 = vcombine.low %v19276_v32, %v19280_v38  ;;  %v19288_v3 = vsel %vm13357_vm2, %v9812_v13, %v9813_v42  ;;  %v9786_v49 = vsel %vm13357_vm2, %v9784_v48, %v9785_v50  ;;  %v9783_v60 = vsel %vm13357_vm2, %v12505_v20, %v9782_v54 }
 0x586   : > { %v12653_v29 = vcombine.low %v19272_v58, %v19288_v3  ;;  %v12649_v26 = vcombine.low %v9783_v60, %v9786_v49  ;;  %v9789_v10 = vrot.slane %v13140_v24, 5  ;;  %v11186_v13 = vshll.u32 %v11134_v15, 16 }
 0x587   : > { %v10204_v7 = vpop.permute.xlu1 %10203  ;;  %v11192_v11 = vshll.u32 %v11135_v14, 16 }
 0x588   : > { %11000 = vmatmul.mubr.bf16.gmra.mrb[56].mxu0 %v10755_v45  ;;  %v10652_v8 = vsel %vm6819_vm6, %v10620_v55, %v10204_v7  ;;  %v9791_v45 = vrot.slane %v9789_v10, 4  ;;  %v13142_v7 = vld [vmem:[#allocation3 + $0x90] sm:$0xf] }
 0x589   : > { %12673 = vmatprep.mubr.msk.bf16.mxu0 %vm3041_vm9, %v12648_v34  ;;  %v19282_v16 = vpop.permute.xlu0 %10127  ;;  %v10684_v27 = vsel %vm6852_vm7, %v10652_v8, %v10284_v47  ;;  %v13141_v34 = vld [vmem:[#allocation3 + $0x94] sm:$0xf]  ;;  %v11183_v8 = vshrl.u32 %v11134_v15, 16 }
 0x58a   : > { %v10716_v23 = vsel %vm6885_vm8, %v10684_v27, %v19212_v35  ;;  %v12521_v35 = vcombine.low %v13139_v51, %v13138_v6  ;;  %v9793_v59 = vsel %vm13357_vm2, %v9791_v45, %v9792_v1  ;;  %v11136_v51 = vld [vmem:[#allocation2 + $0x14] sm:$0x1] }
 0x58b   : > { %v11185_v49 = vrot.slane %v11183_v8, 4 }
 0x58f   : > { %v9950_v12 = vpop.permute.xlu1 %9949 }
 0x590   : > { %v10554_v21 = vsel %vm3041_vm9, %v12521_v35, %v9950_v12  ;;  %v11188_v12 = vrot.slane %v11186_v13, 5 }
 0x591   : > { %v10460_v33 = vpop.permute.xlu0 %10459  ;;  %v10590_v57 = vsel %vm20032_vm14, %v10554_v21, %v10030_v56  ;;  %v12506_v56 = vrot.slane %v9651_v61, 9  ;;  %v20034_v21 = vld [vmem:[#allocation75_spill] sm:$0xff] }
 0x592   : > { %v10758_v47 = vsel %vm6918_vm10, %v10716_v23, %v10460_v33  ;;  %v10622_v0 = vsel %vm6786_vm4, %v10590_v57, %v19238_v43  ;;  %v12522_v43 = vcombine.low %v13142_v7, %v13141_v34  ;;  %v20033_v23 = vld [vmem:[#allocation65_spill] sm:$0xff]  ;;  %v9799_v57 = vrot.slane %v20034_v21, 5  ;;  %v19347_v7 = vld [vmem:[%s19623_s9] ss:$0 sm:$0xff] }
 0x593   : > { %11008 = vmatmul.mubr.bf16.gmra.mrb[60].mxu0 %v10758_v47  ;;  %v10286_v4 = vpop.permute.xlu1 %10285  ;;  %v9790_v55 = vsel %vm13357_vm2, %v12506_v56, %v9789_v10  ;;  %v9796_v20 = vrot.slane %v20033_v23, 5  ;;  %v11194_v47 = vrot.slane %v11192_v11, 5  ;;  %v11202_v10 = vshll.u32 %v11136_v51, 16 }
 0x594   : > { %12674 = vmatprep.mubr.msk.bf16.mxu0 %vm3041_vm9, %v12649_v26  ;;  %v12650_v39 = vcombine.low %v9790_v55, %v9793_v59 }
 0x595   : > { %v9798_v6 = vrot.slane %v9796_v20, 4 }
 0x597   : > { %v10206_v44 = vpop.permute.xlu0 %10205 }
 0x598   : > { %v10654_v37 = vsel %vm6819_vm6, %v10622_v0, %v10206_v44  ;;  %v9652_v44 = vld [vmem:[#allocation3 + $0xb4] sm:$0xe] }
 0x599   : > { %v10032_v52 = vpop.permute.xlu1 %10031  ;;  %v10686_v53 = vsel %vm6852_vm7, %v10654_v37, %v10286_v4  ;;  %v9800_v37 = vsel %vm13357_vm2, %v9798_v6, %v9799_v57 }
 0x59a   : > { %v10718_v42 = vsel %vm6885_vm8, %v10686_v53, %v19255_v18  ;;  %v11196_v18 = vshrl.u32 %v11135_v14, 16 }
 0x59c   : > { %v11198_v26 = vrot.slane %v11196_v18, 4  ;;  %v13143_v18 = vld [vmem:[#allocation3 + $0xa0] sm:$0xf] }
 0x59d   : > { %v10384_v62 = vpop.permute.xlu1 %10383 }
 0x5a0   : > { %v9952_v9 = vpop.permute.xlu0 %9951 }
 0x5a1   : > { %v19307_v28 = vpop.permute.xlu1 %10129  ;;  %v10557_v2 = vsel %vm3041_vm9, %v12522_v43, %v9952_v9  ;;  %v11199_v9 = vor.u32 %v11198_v26, %v11194_v47  ;;  %v11204_v43 = vrot.slane %v11202_v10, 5 }
 0x5a2   : > { %v10592_v48 = vsel %vm20019_vm0, %v10557_v2, %v10032_v52  ;;  %v11189_v52 = vor.u32 %v11188_v12, %v11185_v49 }
 0x5a3   : > { %v10624_v33 = vsel %vm6786_vm4, %v10592_v48, %v19282_v16  ;;  %v12507_v16 = vrot.slane %v9652_v44, 9  ;;  %v11200_v53 = vrot.slane %v11199_v9, 4 }
 0x5a4   : > { %v10288_v25 = vpop.permute.xlu0 %10287  ;;  %v11190_v45 = vrot.slane %v11189_v52, 4 }
 0x5a5   : > { %v9797_v1 = vsel %vm13357_vm2, %v12507_v16, %v9796_v20  ;;  %v11205_v55 = vsel %vm13401_vm5, %v11200_v53, %v11204_v43  ;;  %vm20036_vm2 = vmmov %vm20019_vm0 }
 0x5a6   : > { %v12651_v59 = vcombine.low %v9797_v1, %v9800_v37  ;;  %v11195_v17 = vsel %vm13401_vm5, %v11190_v45, %v11194_v47  ;;  %v11599_v11 = vunpack.c.l.bf16 %v11205_v55  ;;  %v11139_v55 = vld [vmem:[#allocation2 + $0x20] sm:$0x1] }
 0x5a8   : > { %v19311_v54 = vpop.permute.xlu0 %10033 }
 0x5ab   : > { %v10462_v63 = vpop.permute.xlu1 %10461 }
 0x5ac   : > { %v10761_v41 = vsel %vm6918_vm10, %v10718_v42, %v10462_v63  ;;  %v19323_v27 = vpop.permute.xlu0 %10385 }
 0x5ad   : > { %11016 = vmatmul.mubr.bf16.gmra.mrb[64].mxu0 %v10761_v41  ;;  %v11598_v41 = vunpack.c.l.bf16 %v11195_v17 }
 0x5ae   : > { %12675 = vmatprep.mubr.msk.bf16.mxu0 %vm3041_vm9, %v12650_v39 }
 0x5b0   : > { %v10208_v50 = vpop.permute.xlu1 %10207  ;;  %v19329_v4 = vpop.permute.xlu0 %10131 }
 0x5b1   : > { %v10656_v60 = vsel %vm6819_vm6, %v10624_v33, %v10208_v50  ;;  %v20035_v50 = vld [vmem:[#allocation74_spill] sm:$0xff] }
 0x5b2   : > { %v10688_v35 = vsel %vm6852_vm7, %v10656_v60, %v10288_v25  ;;  %v19341_v25 = vld [vmem:[%s19622_s8] ss:$0 sm:$0xff]  ;;  %v12523_v23 = vcombine.low %v20035_v50, %v13143_v18 }
 0x5b3   : > { %v10720_v0 = vsel %vm6885_vm8, %v10688_v35, %v10384_v62 }
 0x5b8   : > { %v9954_v24 = vpop.permute.xlu1 %9953 }
 0x5b9   : > { %v10560_v33 = vsel %vm3041_vm9, %v12523_v23, %v9954_v24  ;;  %v11137_v24 = vld [vmem:[#allocation2 + $0x18] sm:$0xf] }
 0x5ba   : > { %v10594_v47 = vsel %vm20036_vm2, %v10560_v33, %v19311_v54  ;;  %v11207_v16 = vshrl.u32 %v11137_v24, 16  ;;  %v11210_v37 = vshll.u32 %v11137_v24, 16 }
 0x5bb   : > { %v10464_v61 = vpop.permute.xlu0 %10463  ;;  %v10626_v44 = vsel %vm6786_vm4, %v10594_v47, %v19307_v28 }
 0x5bc   : > { %v10764_v56 = vsel %vm6918_vm10, %v10720_v0, %v10464_v61  ;;  %v10290_v34 = vpop.permute.xlu1 %10289  ;;  %v11138_v0 = vld [vmem:[#allocation2 + $0x1c] sm:$0xf]  ;;  %v11209_v31 = vrot.slane %v11207_v16, 4  ;;  %v11212_v22 = vrot.slane %v11210_v37, 5 }
 0x5bd   : > { %11024 = vmatmul.mubr.bf16.gmra.mrb[68].mxu0 %v10764_v56  ;;  %v10929_v62 = vpop.f32.mrb[20].mxu0  ;;  %v11216_v1 = vshll.u32 %v11138_v0, 16  ;;  %v11220_v53 = vshrl.u32 %v11138_v0, 16 }
 0x5be   : > { %12676 = vmatprep.mubr.msk.bf16.mxu0 %vm3041_vm9, %v12651_v59  ;;  %v11063_v15 = vmul.f32 %v19341_v25, %v10929_v62  ;;  %v10931_v63 = vpop.f32.mrb[21].mxu0 }
 0x5bf   : > { %v10932_v42 = vpop.f32.mrb[22].mxu0  ;;  %v11222_v62 = vrot.slane %v11220_v53, 4 }
 0x5c0   : > { %v11102_v2 = vadd.f32 %v19347_v7, %v11063_v15  ;;  %v11064_v39 = vmul.f32 %v19341_v25, %v10932_v42  ;;  %v10934_v14 = vpop.f32.mrb[23].mxu0  ;;  %v10210_v20 = vpop.permute.xlu0 %10209  ;;  %v11213_v15 = vor.u32 %v11212_v22, %v11209_v31 }
 0x5c1   : > { %v10658_v21 = vsel %vm6819_vm6, %v10626_v44, %v10210_v20 }
 0x5c2   : > { %v10036_v8 = vpop.permute.xlu1 %10035  ;;  %v11630_v13 = vadd.f32 %v11598_v41, %v11102_v2  ;;  %v11103_v48 = vadd.f32 %v19347_v7, %v11064_v39  ;;  %v10690_v10 = vsel %vm6852_vm7, %v10658_v21, %v10290_v34  ;;  %v11226_v2 = vshll.u32 %v11139_v55, 16  ;;  %v11141_v41 = vld [vmem:[#allocation2 + $0x28] sm:$0xf] }
 0x5c3   : > { %v10722_v61 = vsel %vm6885_vm8, %v10690_v10, %v19323_v27  ;;  %v11218_v27 = vrot.slane %v11216_v1, 5  ;;  %v11240_v18 = vshll.u32 %v11141_v41, 16  ;;  %v11244_v50 = vshrl.u32 %v11141_v41, 16 }
 0x5c4   : > { %v11662_v49 = vmax.f32 %v11630_v13, 0.0  ;;  %v11631_v12 = vadd.f32 %v11599_v11, %v11103_v48  ;;  %v11228_v11 = vrot.slane %v11226_v2, 5 }
 0x5c5   : > { %v11223_v38 = vor.u32 %v11222_v62, %v11218_v27  ;;  %v11242_v36 = vrot.slane %v11240_v18, 5  ;;  %v11246_v30 = vrot.slane %v11244_v50, 4 }
 0x5c6   : > { %v11663_v60 = vmax.f32 %v11631_v12, 0.0  ;;  %v10388_v26 = vpop.permute.xlu1 %10387  ;;  %v11694_v6 = vsel %vm3041_vm9, %v11662_v49, 0.0 }
 0x5c7   : > { %v11224_v39 = vrot.slane %v11223_v38, 4 }
 0x5c8   : > { %v11695_v52 = vsel %vm3041_vm9, %v11663_v60, 0.0 }
 0x5c9   : > { %v19364_v51 = vadd.f32 %v11695_v52, %v11694_v6 }
 0x5ca   : > { %v9956_v35 = vpop.permute.xlu0 %9955  ;;  %v10134_v57 = vpop.permute.xlu1 %10133 }
 0x5cb   : > { %v10563_v54 = vsel %vm3041_vm9, %v12524_v46, %v9956_v35 }
 0x5cc   : > { %v10596_v56 = vsel %vm20037_vm13, %v10563_v54, %v10036_v8 }
 0x5cd   : > { %v10628_v34 = vsel %vm6786_vm4, %v10596_v56, %v19329_v4  ;;  %v11214_v4 = vrot.slane %v11213_v15, 4 }
 0x5ce   : > { %v10292_v9 = vpop.permute.xlu0 %10291 }
 0x5cf   : > { %v11219_v48 = vsel %vm13401_vm5, %v11214_v4, %v11218_v27 }
 0x5d2   : > { %v10038_v59 = vpop.permute.xlu0 %10037 }
 0x5d4   : > { %v10466_v45 = vpop.permute.xlu1 %10465 }
 0x5d5   : > { %v10767_v28 = vsel %vm6918_vm10, %v10722_v61, %v10466_v45  ;;  %v11142_v61 = vld [vmem:[#allocation2 + $0x2c] sm:$0x1] }
 0x5d6   : > { %11032 = vmatmul.mubr.bf16.gmra.mrb[72].mxu0 %v10767_v28  ;;  %v10468_v63 = vpop.permute.xlu0 %10467 }
 0x5d7   : > { %12677 = vmatprep.mubr.msk.bf16.mxu0 %vm3041_vm9, %v12652_v5  ;;  %v11140_v5 = vld [vmem:[#allocation2 + $0x24] sm:$0xf] }
 0x5d8   : > { %v11231_v14 = vshrl.u32 %v11140_v5, 16  ;;  %v11234_v8 = vshll.u32 %v11140_v5, 16 }
 0x5d9   : > { %v10212_v46 = vpop.permute.xlu1 %10211 }
 0x5da   : > { %v10660_v17 = vsel %vm6819_vm6, %v10628_v34, %v10212_v46  ;;  %v11233_v12 = vrot.slane %v11231_v14, 4  ;;  %v11236_v33 = vrot.slane %v11234_v8, 5  ;;  %v11250_v46 = vshll.u32 %v11142_v61, 16  ;;  %v11143_v14 = vld [vmem:[#allocation2 + $0x30] sm:$0xf] }
 0x5db   : > { %v10692_v43 = vsel %vm6852_vm7, %v10660_v17, %v10292_v9  ;;  %v11255_v50 = vshrl.u32 %v11143_v14, 16 }
 0x5dc   : > { %v10724_v42 = vsel %vm6885_vm8, %v10692_v43, %v10388_v26  ;;  %v11600_v26 = vunpack.c.l.bf16 %v11219_v48  ;;  %v10214_v35 = vpop.permute.xlu0 %10213  ;;  %v11237_v16 = vor.u32 %v11236_v33, %v11233_v12  ;;  %v11252_v15 = vrot.slane %v11250_v46, 5  ;;  %v11144_v48 = vld [vmem:[#allocation2 + $0x34] sm:$0xf] }
 0x5dd   : > { %v10770_v32 = vsel %vm6918_vm10, %v10724_v42, %v10468_v63  ;;  %v11257_v12 = vrot.slane %v11255_v50, 4 }
 0x5de   : > { %11040 = vmatmul.mubr.bf16.gmra.mrb[76].mxu0 %v10770_v32  ;;  %v11238_v22 = vrot.slane %v11237_v16, 4 }
 0x5df   : > { %12678 = vmatprep.mubr.msk.bf16.mxu0 %vm3041_vm9, %v12653_v29  ;;  %v11229_v29 = vsel %vm13401_vm5, %v11224_v39, %v11228_v11 }
 0x5e0   : > { %v11601_v10 = vunpack.c.l.bf16 %v11229_v29  ;;  %v11243_v43 = vsel %vm13401_vm5, %v11238_v22, %v11242_v36 }
 0x5e1   : > { %v11602_v38 = vunpack.c.l.bf16 %v11243_v43 }
 0x5e2   : > { %v10937_v13 = vpop.f32.mrb[24].mxu0  ;;  %v10390_v45 = vpop.permute.xlu0 %10389 }
 0x5e3   : > { %v11065_v20 = vmul.f32 %v19341_v25, %v10937_v13  ;;  %v10939_v49 = vpop.f32.mrb[25].mxu0 }
 0x5e4   : > { %v9958_v23 = vpop.permute.xlu1 %9957  ;;  %v10940_v3 = vpop.f32.mrb[26].mxu0  ;;  %v11264_v49 = vshll.u32 %v11144_v48, 16 }
 0x5e5   : > { %v10566_v58 = vsel %vm3041_vm9, %v12525_v40, %v9958_v23  ;;  %v11104_v47 = vadd.f32 %v19347_v7, %v11065_v20  ;;  %v11066_v6 = vmul.f32 %v19341_v25, %v10940_v3  ;;  %v10942_v52 = vpop.f32.mrb[27].mxu0  ;;  %v11258_v23 = vshll.u32 %v11143_v14, 16 }
 0x5e6   : > { %v10598_v60 = vsel %vm20038_vm15, %v10566_v58, %v10038_v59  ;;  %v11268_v58 = vshrl.u32 %v11144_v48, 16 }
 0x5e7   : > { %v10630_v44 = vsel %vm6786_vm4, %v10598_v60, %v10134_v57  ;;  %v11632_v9 = vadd.f32 %v11600_v26, %v11104_v47  ;;  %v11105_v24 = vadd.f32 %v19347_v7, %v11066_v6  ;;  %v11247_v57 = vor.u32 %v11246_v30, %v11242_v36  ;;  %v11145_v6 = vld [vmem:[#allocation2 + $0x38] sm:$0x1] }
 0x5e8   : > { %v10294_v40 = vpop.permute.xlu1 %10293  ;;  %v10662_v21 = vsel %vm6819_vm6, %v10630_v44, %v10214_v35  ;;  %v11260_v33 = vrot.slane %v11258_v23, 5  ;;  %v11266_v60 = vrot.slane %v11264_v49, 5  ;;  %v11270_v47 = vrot.slane %v11268_v58, 4  ;;  %v11146_v44 = vld [vmem:[#allocation2 + $0x3c] sm:$0xf] }
 0x5e9   : > { %v11664_v0 = vmax.f32 %v11632_v9, 0.0  ;;  %v11633_v54 = vadd.f32 %v11601_v10, %v11105_v24  ;;  %v10694_v37 = vsel %vm6852_vm7, %v10662_v21, %v10294_v40  ;;  %v11248_v62 = vrot.slane %v11247_v57, 4  ;;  %v11147_v40 = vld [vmem:[#allocation2 + $0x40] sm:$0xf] }
 0x5ea   : > { %v10726_v56 = vsel %vm6885_vm8, %v10694_v37, %v10390_v45  ;;  %v11261_v26 = vor.u32 %v11260_v33, %v11257_v12  ;;  %v11271_v52 = vor.u32 %v11270_v47, %v11266_v60  ;;  %v11274_v35 = vshll.u32 %v11145_v6, 16 }
 0x5eb   : > { %v11697_v28 = vsel %vm3041_vm9, %v11664_v0, 0.0  ;;  %v11665_v1 = vmax.f32 %v11633_v54, 0.0  ;;  %v11253_v55 = vsel %vm13401_vm5, %v11248_v62, %v11252_v15  ;;  %v11279_v21 = vshrl.u32 %v11146_v44, 16 }
 0x5ec   : > { %v11698_v53 = vadd.f32 %v11697_v28, %v19364_v51  ;;  %v11603_v39 = vunpack.c.l.bf16 %v11253_v55  ;;  %v11262_v36 = vrot.slane %v11261_v26, 4  ;;  %v11272_v30 = vrot.slane %v11271_v52, 4  ;;  %v11149_v26 = vld [vmem:[#allocation2 + $0x48] sm:$0xf]  ;;  %v11150_v52 = vld [vmem:[#allocation2 + $0x4c] sm:$0xf] }
 0x5ed   : > { %v11699_v31 = vsel %vm3041_vm9, %v11665_v1, 0.0  ;;  %v11276_v9 = vrot.slane %v11274_v35, 5  ;;  %v11282_v24 = vshll.u32 %v11146_v44, 16  ;;  %v11288_v45 = vshll.u32 %v11147_v40, 16 }
 0x5ee   : > { %v10470_v59 = vpop.permute.xlu1 %10469  ;;  %v11700_v27 = vadd.f32 %v11699_v31, %v11698_v53  ;;  %v11267_v0 = vsel %vm13401_vm5, %v11262_v36, %v11266_v60  ;;  %v11292_v61 = vshrl.u32 %v11147_v40, 16  ;;  %v11281_v1 = vrot.slane %v11279_v21, 4 }
 0x5ef   : > { %v10773_v34 = vsel %vm6918_vm10, %v10726_v56, %v10470_v59  ;;  %v11277_v37 = vsel %vm13401_vm5, %v11272_v30, %v11276_v9  ;;  %v11604_v53 = vunpack.c.l.bf16 %v11267_v0  ;;  %v11284_v31 = vrot.slane %v11282_v24, 5 }
 0x5f0   : > { %11048 = vmatmul.mubr.bf16.gmra.mrb[80].mxu0 %v10773_v34  ;;  %v11605_v22 = vunpack.c.l.bf16 %v11277_v37  ;;  %v11294_v62 = vrot.slane %v11292_v61, 4  ;;  %v11303_v36 = vshrl.u32 %v11149_v26, 16  ;;  %v11306_v30 = vshll.u32 %v11149_v26, 16 }
 0x5f1   : > { %v10945_v17 = vpop.f32.mrb[28].mxu0  ;;  %v11285_v15 = vor.u32 %v11284_v31, %v11281_v1  ;;  %v11312_v40 = vshll.u32 %v11150_v52, 16  ;;  %v11316_v21 = vshrl.u32 %v11150_v52, 16 }
 0x5f2   : > { %v11067_v63 = vmul.f32 %v19341_v25, %v10945_v17  ;;  %v10947_v51 = vpop.f32.mrb[29].mxu0  ;;  %v11305_v9 = vrot.slane %v11303_v36, 4  ;;  %v11308_v24 = vrot.slane %v11306_v30, 5 }
 0x5f3   : > { %v10948_v42 = vpop.f32.mrb[30].mxu0  ;;  %v11318_v0 = vrot.slane %v11316_v21, 4 }
 0x5f4   : > { %v11106_v32 = vadd.f32 %v19347_v7, %v11067_v63  ;;  %v11068_v5 = vmul.f32 %v19341_v25, %v10948_v42  ;;  %v10950_v4 = vpop.f32.mrb[31].mxu0  ;;  %v11148_v63 = vld [vmem:[#allocation2 + $0x44] sm:$0x1]  ;;  %v11309_v37 = vor.u32 %v11308_v24, %v11305_v9 }
 0x5f5   : > { %v11298_v4 = vshll.u32 %v11148_v63, 16  ;;  %v11154_v63 = vld [vmem:[#allocation2 + $0x5c] sm:$0x1] }
 0x5f6   : > { %v11634_v2 = vadd.f32 %v11602_v38, %v11106_v32  ;;  %v11107_v41 = vadd.f32 %v19347_v7, %v11068_v5  ;;  %v11286_v5 = vrot.slane %v11285_v15, 4 }
 0x5f8   : > { %v11666_v8 = vmax.f32 %v11634_v2, 0.0  ;;  %v11635_v13 = vadd.f32 %v11603_v39, %v11107_v41 }
 0x5fa   : > { %v11701_v11 = vsel %vm3041_vm9, %v11666_v8, 0.0  ;;  %v11667_v18 = vmax.f32 %v11635_v13, 0.0  ;;  %v11300_v8 = vrot.slane %v11298_v4, 5  ;;  %v11156_v4 = vld [vmem:[#allocation2 + $0x64] sm:$0xf] }
 0x5fb   : > { %v11702_v20 = vadd.f32 %v11701_v11, %v11700_v27  ;;  %v11290_v27 = vrot.slane %v11288_v45, 5  ;;  %v11151_v45 = vld [vmem:[#allocation2 + $0x50] sm:$0x1] }
 0x5fc   : > { %v11703_v3 = vsel %vm3041_vm9, %v11667_v18, 0.0 }
 0x5fd   : > { %v11704_v29 = vadd.f32 %v11703_v3, %v11702_v20  ;;  %v11295_v55 = vor.u32 %v11294_v62, %v11290_v27  ;;  %v11291_v14 = vsel %vm13401_vm5, %v11286_v5, %v11290_v27 }
 0x5fe   : > { %v11606_v23 = vunpack.c.l.bf16 %v11291_v14 }
 0x5ff   : > { %v11296_v41 = vrot.slane %v11295_v55, 4 }
 0x601   : > { %v11301_v18 = vsel %vm13401_vm5, %v11296_v41, %v11300_v8  ;;  %v11346_v8 = vshll.u32 %v11154_v63, 16  ;;  %v11161_v63 = vld [vmem:[#allocation2 + $0x78] sm:$0xf] }
 0x60b   : > { %v10953_v10 = vpop.f32.mrb[32].mxu0 }
 0x60c   : > { %v11069_v54 = vmul.f32 %v19341_v25, %v10953_v10  ;;  %v10955_v16 = vpop.f32.mrb[33].mxu0  ;;  %v11314_v10 = vrot.slane %v11312_v40, 5 }
 0x60d   : > { %v10956_v28 = vpop.f32.mrb[34].mxu0  ;;  %v11153_v16 = vld [vmem:[#allocation2 + $0x58] sm:$0xf] }
 0x60e   : > { %v11108_v57 = vadd.f32 %v19347_v7, %v11069_v54  ;;  %v11070_v56 = vmul.f32 %v19341_v25, %v10956_v28  ;;  %v10958_v59 = vpop.f32.mrb[35].mxu0  ;;  %v11152_v54 = vld [vmem:[#allocation2 + $0x54] sm:$0xf]  ;;  %v11319_v1 = vor.u32 %v11318_v0, %v11314_v10  ;;  %v11159_v0 = vld [vmem:[#allocation2 + $0x70] sm:$0xf] }
 0x60f   : > { %v11327_v61 = vshrl.u32 %v11152_v54, 16  ;;  %v11330_v28 = vshll.u32 %v11152_v54, 16  ;;  %v11310_v59 = vrot.slane %v11309_v37, 4 }
 0x610   : > { %v11636_v46 = vadd.f32 %v11604_v53, %v11108_v57  ;;  %v11109_v34 = vadd.f32 %v19347_v7, %v11070_v56  ;;  %v11336_v57 = vshll.u32 %v11153_v16, 16  ;;  %v11340_v53 = vshrl.u32 %v11153_v16, 16 }
 0x611   : > { %v11322_v56 = vshll.u32 %v11151_v45, 16  ;;  %v11329_v31 = vrot.slane %v11327_v61, 4 }
 0x612   : > { %v11668_v17 = vmax.f32 %v11636_v46, 0.0  ;;  %v11637_v43 = vadd.f32 %v11605_v22, %v11109_v34  ;;  %v11332_v22 = vrot.slane %v11330_v28, 5  ;;  %v11320_v46 = vrot.slane %v11319_v1, 4 }
 0x613   : > { %v11338_v34 = vrot.slane %v11336_v57, 5  ;;  %v11342_v27 = vrot.slane %v11340_v53, 4  ;;  %v11324_v62 = vrot.slane %v11322_v56, 5  ;;  %v11157_v56 = vld [vmem:[#allocation2 + $0x68] sm:$0x1] }
 0x614   : > { %v11705_v51 = vsel %vm3041_vm9, %v11668_v17, 0.0  ;;  %v11669_v42 = vmax.f32 %v11637_v43, 0.0  ;;  %v11315_v43 = vsel %vm13401_vm5, %v11310_v59, %v11314_v10  ;;  %v11333_v15 = vor.u32 %v11332_v22, %v11329_v31 }
 0x615   : > { %v11706_v32 = vadd.f32 %v11705_v51, %v11704_v29  ;;  %v11607_v29 = vunpack.c.l.bf16 %v11301_v18  ;;  %v11325_v55 = vsel %vm13401_vm5, %v11320_v46, %v11324_v62  ;;  %v11343_v5 = vor.u32 %v11342_v27, %v11338_v34 }
 0x616   : > { %v11707_v38 = vsel %vm3041_vm9, %v11669_v42, 0.0  ;;  %v11608_v41 = vunpack.c.l.bf16 %v11315_v43  ;;  %v11384_v22 = vshll.u32 %v11159_v0, 16  ;;  %v11388_v62 = vshrl.u32 %v11159_v0, 16 }
 0x617   : > { %v11708_v2 = vadd.f32 %v11707_v38, %v11706_v32  ;;  %v11155_v32 = vld [vmem:[#allocation2 + $0x60] sm:$0xf] }
 0x618   : > { %v11354_v18 = vshll.u32 %v11155_v32, 16 }
 0x61a   : > { %v10961_v39 = vpop.f32.mrb[36].mxu0  ;;  %v11356_v26 = vrot.slane %v11354_v18, 5 }
 0x61b   : > { %v11071_v13 = vmul.f32 %v19341_v25, %v10961_v39  ;;  %v10963_v48 = vpop.f32.mrb[37].mxu0 }
 0x61c   : > { %v10964_v11 = vpop.f32.mrb[38].mxu0  ;;  %v11334_v48 = vrot.slane %v11333_v15, 4  ;;  %v11370_v15 = vshll.u32 %v11157_v56, 16 }
 0x61d   : > { %v11110_v50 = vadd.f32 %v19347_v7, %v11071_v13  ;;  %v11072_v20 = vmul.f32 %v19341_v25, %v10964_v11  ;;  %v10966_v49 = vpop.f32.mrb[39].mxu0  ;;  %v11609_v13 = vunpack.c.l.bf16 %v11325_v55  ;;  %v11351_v11 = vshrl.u32 %v11155_v32, 16 }
 0x61e   : > { %v11364_v49 = vshrl.u32 %v11156_v4, 16  ;;  %v11386_v55 = vrot.slane %v11384_v22, 5  ;;  %v11165_v22 = vld [vmem:[#allocation2 + $0x88] sm:$0xf] }
 0x61f   : > { %v11638_v58 = vadd.f32 %v11606_v23, %v11110_v50  ;;  %v11111_v3 = vadd.f32 %v19347_v7, %v11072_v20  ;;  %v11360_v20 = vshll.u32 %v11156_v4, 16  ;;  %v11390_v4 = vrot.slane %v11388_v62, 4 }
 0x620   : > { %v11366_v40 = vrot.slane %v11364_v49, 4 }
 0x621   : > { %v11670_v12 = vmax.f32 %v11638_v58, 0.0  ;;  %v11639_v33 = vadd.f32 %v11607_v29, %v11111_v3  ;;  %v11158_v58 = vld [vmem:[#allocation2 + $0x6c] sm:$0xf]  ;;  %v11344_v3 = vrot.slane %v11343_v5, 4  ;;  %v11362_v30 = vrot.slane %v11360_v20, 5 }
 0x622   : > { %v11378_v54 = vshll.u32 %v11158_v58, 16 }
 0x623   : > { %v11709_v60 = vsel %vm3041_vm9, %v11670_v12, 0.0  ;;  %v11671_v47 = vmax.f32 %v11639_v33, 0.0  ;;  %v11348_v33 = vrot.slane %v11346_v8, 5  ;;  %v11367_v59 = vor.u32 %v11366_v40, %v11362_v30 }
 0x624   : > { %v11710_v6 = vadd.f32 %v11709_v60, %v11708_v2  ;;  %v11339_v60 = vsel %vm13401_vm5, %v11334_v48, %v11338_v34  ;;  %v11380_v27 = vrot.slane %v11378_v54, 5  ;;  %v11372_v8 = vrot.slane %v11370_v15, 5 }
 0x625   : > { %v11711_v35 = vsel %vm3041_vm9, %v11671_v47, 0.0  ;;  %v11353_v47 = vrot.slane %v11351_v11, 4  ;;  %v11349_v10 = vsel %vm13401_vm5, %v11344_v3, %v11348_v33  ;;  %v11610_v37 = vunpack.c.l.bf16 %v11339_v60 }
 0x626   : > { %v19443_v44 = vadd.f32 %v11711_v35, %v11710_v6  ;;  %v11375_v6 = vshrl.u32 %v11158_v58, 16  ;;  %v11391_v3 = vor.u32 %v11390_v4, %v11386_v55 }
 0x627   : > { %v11357_v53 = vor.u32 %v11356_v26, %v11353_v47 }
 0x628   : > { %v11377_v31 = vrot.slane %v11375_v6, 4 }
 0x62a   : > { %v11381_v5 = vor.u32 %v11380_v27, %v11377_v31 }
 0x62c   : > { %v11382_v58 = vrot.slane %v11381_v5, 4 }
 0x637   : > { %v10969_v17 = vpop.f32.mrb[40].mxu0 }
 0x638   : > { %v11073_v51 = vmul.f32 %v19341_v25, %v10969_v17  ;;  %v10971_v42 = vpop.f32.mrb[41].mxu0 }
 0x639   : > { %v10972_v38 = vpop.f32.mrb[42].mxu0  ;;  %v11368_v42 = vrot.slane %v11367_v59, 4 }
 0x63a   : > { %v11112_v2 = vadd.f32 %v19347_v7, %v11073_v51  ;;  %v11074_v39 = vmul.f32 %v19341_v25, %v10972_v38  ;;  %v10974_v14 = vpop.f32.mrb[43].mxu0  ;;  %v11358_v51 = vrot.slane %v11357_v53, 4 }
 0x63b   : > { %v11373_v49 = vsel %vm13401_vm5, %v11368_v42, %v11372_v8 }
 0x63c   : > { %v11640_v50 = vadd.f32 %v11608_v41, %v11112_v2  ;;  %v11113_v23 = vadd.f32 %v19347_v7, %v11074_v39  ;;  %v11399_v41 = vshrl.u32 %v11161_v63, 16  ;;  %v11402_v39 = vshll.u32 %v11161_v63, 16 }
 0x63d   : > { %v11363_v18 = vsel %vm13401_vm5, %v11358_v51, %v11362_v30  ;;  %v11613_v30 = vunpack.c.l.bf16 %v11373_v49 }
 0x63e   : > { %v11672_v29 = vmax.f32 %v11640_v50, 0.0  ;;  %v11641_v12 = vadd.f32 %v11609_v13, %v11113_v23  ;;  %v11162_v13 = vld [vmem:[#allocation2 + $0x7c] sm:$0xf]  ;;  %v11160_v50 = vld [vmem:[#allocation2 + $0x74] sm:$0x1]  ;;  %v11404_v33 = vrot.slane %v11402_v39, 5  ;;  %v11612_v6 = vunpack.c.l.bf16 %v11363_v18 }
 0x63f   : > { %v10977_v36 = vpop.f32.mrb[44].mxu0  ;;  %v11408_v60 = vshll.u32 %v11162_v13, 16  ;;  %v11412_v47 = vshrl.u32 %v11162_v13, 16 }
 0x640   : > { %v11713_v52 = vsel %vm3041_vm9, %v11672_v29, 0.0  ;;  %v11673_v35 = vmax.f32 %v11641_v12, 0.0  ;;  %v11075_v9 = vmul.f32 %v19341_v25, %v10977_v36  ;;  %v10979_v24 = vpop.f32.mrb[45].mxu0  ;;  %v11401_v12 = vrot.slane %v11399_v41, 4 }
 0x641   : > { %v11714_v21 = vadd.f32 %v11713_v52, %v19443_v44  ;;  %v10980_v45 = vpop.f32.mrb[46].mxu0  ;;  %v11611_v44 = vunpack.c.l.bf16 %v11349_v10  ;;  %v11394_v36 = vshll.u32 %v11160_v50, 16  ;;  %v11392_v24 = vrot.slane %v11391_v3, 4 }
 0x642   : > { %v11715_v16 = vsel %vm3041_vm9, %v11673_v35, 0.0  ;;  %v11114_v28 = vadd.f32 %v19347_v7, %v11075_v9  ;;  %v11076_v1 = vmul.f32 %v19341_v25, %v10980_v45  ;;  %v10982_v57 = vpop.f32.mrb[47].mxu0  ;;  %v11387_v9 = vsel %vm13401_vm5, %v11382_v58, %v11386_v55 }
 0x643   : > { %v11716_v61 = vadd.f32 %v11715_v16, %v11714_v21  ;;  %v11405_v10 = vor.u32 %v11404_v33, %v11401_v12  ;;  %v11410_v0 = vrot.slane %v11408_v60, 5  ;;  %v11414_v54 = vrot.slane %v11412_v47, 4  ;;  %v11163_v57 = vld [vmem:[#allocation2 + $0x80] sm:$0x1] }
 0x644   : > { %v11642_v46 = vadd.f32 %v11610_v37, %v11114_v28  ;;  %v11115_v34 = vadd.f32 %v19347_v7, %v11076_v1  ;;  %v11396_v45 = vrot.slane %v11394_v36, 5  ;;  %v11614_v1 = vunpack.c.l.bf16 %v11387_v9 }
 0x645   : > { %v11406_v27 = vrot.slane %v11405_v10, 4  ;;  %v11415_v62 = vor.u32 %v11414_v54, %v11410_v0  ;;  %v11436_v41 = vshrl.u32 %v11165_v22, 16 }
 0x646   : > { %v11674_v17 = vmax.f32 %v11642_v46, 0.0  ;;  %v11643_v43 = vadd.f32 %v11611_v44, %v11115_v34  ;;  %v11397_v31 = vsel %vm13401_vm5, %v11392_v24, %v11396_v45 }
 0x647   : > { %v11411_v39 = vsel %vm13401_vm5, %v11406_v27, %v11410_v0 }
 0x648   : > { %v11717_v32 = vsel %vm3041_vm9, %v11674_v17, 0.0  ;;  %v11675_v38 = vmax.f32 %v11643_v43, 0.0  ;;  %v11616_v33 = vunpack.c.l.bf16 %v11411_v39 }
 0x649   : > { %v11718_v2 = vadd.f32 %v11717_v32, %v11716_v61  ;;  %v11164_v61 = vld [vmem:[#allocation2 + $0x84] sm:$0xf]  ;;  %v11418_v32 = vshll.u32 %v11163_v57, 16 }
 0x64a   : > { %v11719_v14 = vsel %vm3041_vm9, %v11675_v38, 0.0  ;;  %v11423_v17 = vshrl.u32 %v11164_v61, 16  ;;  %v11426_v42 = vshll.u32 %v11164_v61, 16  ;;  %v11432_v38 = vshll.u32 %v11165_v22, 16 }
 0x64b   : > { %v11720_v48 = vadd.f32 %v11719_v14, %v11718_v2  ;;  %v10985_v11 = vpop.f32.mrb[48].mxu0  ;;  %v11615_v2 = vunpack.c.l.bf16 %v11397_v31  ;;  %v11416_v14 = vrot.slane %v11415_v62, 4  ;;  %v11420_v50 = vrot.slane %v11418_v32, 5  ;;  %v11167_v32 = vld [vmem:[#allocation2 + $0x90] sm:$0xf] }
 0x64c   : > { %v11077_v23 = vmul.f32 %v19341_v25, %v10985_v11  ;;  %v10987_v20 = vpop.f32.mrb[49].mxu0  ;;  %v11428_v11 = vrot.slane %v11426_v42, 5  ;;  %v11450_v39 = vshll.u32 %v11167_v32, 16 }
 0x64d   : > { %v10988_v29 = vpop.f32.mrb[50].mxu0  ;;  %v11421_v47 = vsel %vm13401_vm5, %v11416_v14, %v11420_v50 }
 0x64e   : > { %v11116_v26 = vadd.f32 %v19347_v7, %v11077_v23  ;;  %v11078_v52 = vmul.f32 %v19341_v25, %v10988_v29  ;;  %v10990_v35 = vpop.f32.mrb[51].mxu0  ;;  %v11434_v23 = vrot.slane %v11432_v38, 5  ;;  %v11438_v29 = vrot.slane %v11436_v41, 4 }
 0x64f   : > { %v11617_v24 = vunpack.c.l.bf16 %v11421_v47  ;;  %v11447_v41 = vshrl.u32 %v11167_v32, 16 }
 0x650   : > { %v11644_v40 = vadd.f32 %v11612_v6, %v11116_v26  ;;  %v11117_v21 = vadd.f32 %v19347_v7, %v11078_v52  ;;  %v11439_v10 = vor.u32 %v11438_v29, %v11434_v23 }
 0x652   : > { %v11676_v16 = vmax.f32 %v11644_v40, 0.0  ;;  %v11645_v37 = vadd.f32 %v11613_v30, %v11117_v21  ;;  %v11166_v40 = vld [vmem:[#allocation2 + $0x8c] sm:$0x1] }
 0x653   : > { %v10993_v28 = vpop.f32.mrb[52].mxu0 }
 0x654   : > { %v11721_v53 = vsel %vm3041_vm9, %v11676_v16, 0.0  ;;  %v11677_v44 = vmax.f32 %v11645_v37, 0.0  ;;  %v11079_v56 = vmul.f32 %v19341_v25, %v10993_v28  ;;  %v10995_v59 = vpop.f32.mrb[53].mxu0  ;;  %v11442_v37 = vshll.u32 %v11166_v40, 16 }
 0x655   : > { %v11722_v46 = vadd.f32 %v11721_v53, %v11720_v48  ;;  %v10996_v34 = vpop.f32.mrb[54].mxu0  ;;  %v11425_v48 = vrot.slane %v11423_v17, 4  ;;  %v11440_v28 = vrot.slane %v11439_v10, 4 }
 0x656   : > { %v11723_v43 = vsel %vm3041_vm9, %v11677_v44, 0.0  ;;  %v11118_v15 = vadd.f32 %v19347_v7, %v11079_v56  ;;  %v11080_v63 = vmul.f32 %v19341_v25, %v10996_v34  ;;  %v10998_v51 = vpop.f32.mrb[55].mxu0  ;;  %v11444_v56 = vrot.slane %v11442_v37, 5 }
 0x657   : > { %v11724_v55 = vadd.f32 %v11723_v43, %v11722_v46  ;;  %v11429_v36 = vor.u32 %v11428_v11, %v11425_v48  ;;  %v11449_v11 = vrot.slane %v11447_v41, 4 }
 0x658   : > { %v11646_v5 = vadd.f32 %v11614_v1, %v11118_v15  ;;  %v11119_v4 = vadd.f32 %v19347_v7, %v11080_v63  ;;  %v11445_v34 = vsel %vm13401_vm5, %v11440_v28, %v11444_v56 }
 0x659   : > { %v11430_v16 = vrot.slane %v11429_v36, 4  ;;  %v11619_v51 = vunpack.c.l.bf16 %v11445_v34 }
 0x65a   : > { %v11678_v8 = vmax.f32 %v11646_v5, 0.0  ;;  %v11647_v13 = vadd.f32 %v11615_v2, %v11119_v4  ;;  %v11168_v4 = vld [vmem:[#allocation2 + $0x94] sm:$0xf] }
 0x65b   : > { %v11001_v18 = vpop.f32.mrb[56].mxu0  ;;  %v11435_v44 = vsel %vm13401_vm5, %v11430_v16, %v11434_v23  ;;  %v11460_v48 = vshrl.u32 %v11168_v4, 16 }
 0x65c   : > { %v11725_v20 = vsel %vm3041_vm9, %v11678_v8, 0.0  ;;  %v11679_v49 = vmax.f32 %v11647_v13, 0.0  ;;  %v11081_v58 = vmul.f32 %v19341_v25, %v11001_v18  ;;  %v11003_v3 = vpop.f32.mrb[57].mxu0  ;;  %v11618_v62 = vunpack.c.l.bf16 %v11435_v44 }
 0x65d   : > { %v11726_v12 = vadd.f32 %v11725_v20, %v11724_v55  ;;  %v11004_v60 = vpop.f32.mrb[58].mxu0  ;;  %v11456_v13 = vshll.u32 %v11168_v4, 16  ;;  %v11452_v18 = vrot.slane %v11450_v39, 5  ;;  %v11462_v23 = vrot.slane %v11460_v48, 4 }
 0x65e   : > { %v11727_v26 = vsel %vm3041_vm9, %v11679_v49, 0.0  ;;  %v11120_v6 = vadd.f32 %v19347_v7, %v11081_v58  ;;  %v11082_v52 = vmul.f32 %v19341_v25, %v11004_v60  ;;  %v11006_v35 = vpop.f32.mrb[59].mxu0  ;;  %v11169_v49 = vld [vmem:[#allocation2 + $0x98] sm:$0x1]  ;;  %v11171_v60 = vld [vmem:[#allocation2 + $0xa0] sm:$0xf] }
 0x65f   : > { %v11728_v30 = vadd.f32 %v11727_v26, %v11726_v12  ;;  %v11458_v50 = vrot.slane %v11456_v13, 5  ;;  %v11453_v20 = vor.u32 %v11452_v18, %v11449_v11  ;;  %v11466_v29 = vshll.u32 %v11169_v49, 16  ;;  %v11170_v12 = vld [vmem:[#allocation2 + $0x9c] sm:$0xf]  ;;  %v11173_v11 = vld [vmem:[#allocation2 + $0xa8] sm:$0xf] }
 0x660   : > { %v11648_v21 = vadd.f32 %v11616_v33, %v11120_v6  ;;  %v11121_v9 = vadd.f32 %v19347_v7, %v11082_v52  ;;  %v11471_v52 = vshrl.u32 %v11170_v12, 16  ;;  %v11474_v35 = vshll.u32 %v11170_v12, 16 }
 0x661   : > { %v11463_v58 = vor.u32 %v11462_v23, %v11458_v50  ;;  %v11454_v3 = vrot.slane %v11453_v20, 4  ;;  %v11468_v6 = vrot.slane %v11466_v29, 5  ;;  %v11174_v23 = vld [vmem:[#allocation2 + $0xac] sm:$0xf] }
 0x662   : > { %v11680_v0 = vmax.f32 %v11648_v21, 0.0  ;;  %v11649_v54 = vadd.f32 %v11617_v24, %v11121_v9  ;;  %v11480_v9 = vshll.u32 %v11171_v60, 16  ;;  %v11484_v24 = vshrl.u32 %v11171_v60, 16 }
 0x663   : > { %v11464_v33 = vrot.slane %v11463_v58, 4  ;;  %v11459_v26 = vsel %vm13401_vm5, %v11454_v3, %v11458_v50  ;;  %v11473_v37 = vrot.slane %v11471_v52, 4  ;;  %v11495_v58 = vshrl.u32 %v11173_v11, 16 }
 0x664   : > { %v11729_v45 = vsel %vm3041_vm9, %v11680_v0, 0.0  ;;  %v11681_v61 = vmax.f32 %v11649_v54, 0.0  ;;  %v11620_v0 = vunpack.c.l.bf16 %v11459_v26  ;;  %v11498_v3 = vshll.u32 %v11173_v11, 16 }
 0x665   : > { %v11730_v1 = vadd.f32 %v11729_v45, %v11728_v30  ;;  %v11469_v21 = vsel %vm13401_vm5, %v11464_v33, %v11468_v6  ;;  %v11476_v45 = vrot.slane %v11474_v35, 5  ;;  %v11504_v33 = vshll.u32 %v11174_v23, 16  ;;  %v11176_v6 = vld [vmem:[#allocation2 + $0xb4] sm:$0xf]  ;;  %v11175_v35 = vld [vmem:[#allocation2 + $0xb0] sm:$0x1] }
 0x666   : > { %v11731_v57 = vsel %vm3041_vm9, %v11681_v61, 0.0  ;;  %v11009_v53 = vpop.f32.mrb[60].mxu0  ;;  %v11508_v60 = vshrl.u32 %v11174_v23, 16  ;;  %v11500_v26 = vrot.slane %v11498_v3, 5 }
 0x667   : > { %v11732_v59 = vadd.f32 %v11731_v57, %v11730_v1  ;;  %v11083_v31 = vmul.f32 %v19341_v25, %v11009_v53  ;;  %v11011_v22 = vpop.f32.mrb[61].mxu0  ;;  %v11621_v1 = vunpack.c.l.bf16 %v11469_v21  ;;  %v11482_v57 = vrot.slane %v11480_v9, 5 }
 0x668   : > { %v11012_v46 = vpop.f32.mrb[62].mxu0  ;;  %v11486_v53 = vrot.slane %v11484_v24, 4  ;;  %v11510_v52 = vrot.slane %v11508_v60, 4  ;;  %v11522_v21 = vshll.u32 %v11176_v6, 16  ;;  %v11514_v24 = vshll.u32 %v11175_v35, 16 }
 0x669   : > { %v11122_v27 = vadd.f32 %v19347_v7, %v11083_v31  ;;  %v11084_v17 = vmul.f32 %v19341_v25, %v11012_v46  ;;  %v11014_v43 = vpop.f32.mrb[63].mxu0  ;;  %v11477_v31 = vor.u32 %v11476_v45, %v11473_v37 }
 0x66a   : > { %v11524_v37 = vrot.slane %v11522_v21, 5 }
 0x66b   : > { %v11650_v15 = vadd.f32 %v11618_v62, %v11122_v27  ;;  %v11123_v63 = vadd.f32 %v19347_v7, %v11084_v17  ;;  %v11487_v27 = vor.u32 %v11486_v53, %v11482_v57 }
 0x66d   : > { %v11682_v42 = vmax.f32 %v11650_v15, 0.0  ;;  %v11651_v55 = vadd.f32 %v11619_v51, %v11123_v63  ;;  %v11478_v15 = vrot.slane %v11477_v31, 4  ;;  %v11488_v63 = vrot.slane %v11487_v27, 4 }
 0x66f   : > { %v11733_v38 = vsel %vm3041_vm9, %v11682_v42, 0.0  ;;  %v11683_v5 = vmax.f32 %v11651_v55, 0.0  ;;  %v11483_v55 = vsel %vm13401_vm5, %v11478_v15, %v11482_v57  ;;  %v11178_v57 = vld [vmem:[#allocation2 + $0xbc] sm:$0x1] }
 0x670   : > { %v11734_v2 = vadd.f32 %v11733_v38, %v11732_v59  ;;  %v11172_v59 = vld [vmem:[#allocation2 + $0xa4] sm:$0x1]  ;;  %v11622_v41 = vunpack.c.l.bf16 %v11483_v55 }
 0x671   : > { %v11735_v14 = vsel %vm3041_vm9, %v11683_v5, 0.0  ;;  %v11490_v62 = vshll.u32 %v11172_v59, 16  ;;  %v19531_v59 = vld [vmem:[%s19622_s8] ss:$0 sm:$0xff] }
 0x672   : > { %v11736_v8 = vadd.f32 %v11735_v14, %v11734_v2 }
 0x673   : > { %v11492_v51 = vrot.slane %v11490_v62, 5  ;;  %v11538_v62 = vshll.u32 %v11178_v57, 16 }
 0x675   : > { %v11493_v4 = vsel %vm13401_vm5, %v11488_v63, %v11492_v51 }
 0x676   : > { %v11623_v48 = vunpack.c.l.bf16 %v11493_v4  ;;  %v11540_v4 = vrot.slane %v11538_v62, 5 }
 0x680   : > { %v11017_v47 = vpop.f32.mrb[64].mxu0 }
 0x681   : > { %v11085_v36 = vmul.f32 %v19341_v25, %v11017_v47  ;;  %v11019_v30 = vpop.f32.mrb[65].mxu0  ;;  %v11497_v47 = vrot.slane %v11495_v58, 4 }
 0x682   : > { %v11020_v40 = vpop.f32.mrb[66].mxu0 }
 0x683   : > { %v11124_v10 = vadd.f32 %v19347_v7, %v11085_v36  ;;  %v11086_v54 = vmul.f32 %v19341_v25, %v11020_v40  ;;  %v11022_v16 = vpop.f32.mrb[67].mxu0  ;;  %v11177_v36 = vld [vmem:[#allocation2 + $0xb8] sm:$0xf]  ;;  %v11501_v30 = vor.u32 %v11500_v26, %v11497_v47  ;;  %v11519_v40 = vshrl.u32 %v11176_v6, 16 }
 0x685   : > { %v11652_v61 = vadd.f32 %v11620_v0, %v11124_v10  ;;  %v11125_v28 = vadd.f32 %v19347_v7, %v11086_v54  ;;  %v11528_v10 = vshll.u32 %v11177_v36, 16  ;;  %v11532_v0 = vshrl.u32 %v11177_v36, 16 }
 0x686   : > { %v11502_v54 = vrot.slane %v11501_v30, 4  ;;  %v11521_v16 = vrot.slane %v11519_v40, 4 }
 0x687   : > { %v11684_v44 = vmax.f32 %v11652_v61, 0.0  ;;  %v11653_v56 = vadd.f32 %v11621_v1, %v11125_v28  ;;  %v11516_v61 = vrot.slane %v11514_v24, 5  ;;  %v11530_v28 = vrot.slane %v11528_v10, 5 }
 0x688   : > { %v11534_v1 = vrot.slane %v11532_v0, 4 }
 0x689   : > { %v11737_v22 = vsel %vm3041_vm9, %v11684_v44, 0.0  ;;  %v11685_v46 = vmax.f32 %v11653_v56, 0.0  ;;  %v11525_v56 = vor.u32 %v11524_v37, %v11521_v16 }
 0x68a   : > { %v11738_v34 = vadd.f32 %v11737_v22, %v11736_v8  ;;  %v11535_v27 = vor.u32 %v11534_v1, %v11530_v28 }
 0x68b   : > { %v11739_v17 = vsel %vm3041_vm9, %v11685_v46, 0.0 }
 0x68c   : > { %v11740_v43 = vadd.f32 %v11739_v17, %v11738_v34  ;;  %v19539_v17 = vld [vmem:[%s19623_s9] ss:$0 sm:$0xff] }
 0x690   : > { %v11025_v42 = vpop.f32.mrb[68].mxu0 }
 0x691   : > { %v11087_v32 = vmul.f32 %v19341_v25, %v11025_v42  ;;  %v11027_v38 = vpop.f32.mrb[69].mxu0  ;;  %v11526_v42 = vrot.slane %v11525_v56, 4 }
 0x692   : > { %v11028_v5 = vpop.f32.mrb[70].mxu0 }
 0x693   : > { %v11126_v2 = vadd.f32 %v19347_v7, %v11087_v32  ;;  %v11088_v39 = vmul.f32 %v19341_v25, %v11028_v5  ;;  %v11030_v14 = vpop.f32.mrb[71].mxu0  ;;  %v11536_v5 = vrot.slane %v11535_v27, 4 }
 0x695   : > { %v11654_v8 = vadd.f32 %v11622_v41, %v11126_v2  ;;  %v11127_v13 = vadd.f32 %v19347_v7, %v11088_v39  ;;  %v11506_v7 = vrot.slane %v11504_v33, 5  ;;  %v11179_v39 = vld [vmem:[#allocation2 + $0xc0] sm:$0xf] }
 0x696   : > { %v11543_v58 = vshrl.u32 %v11179_v39, 16  ;;  %v11546_v3 = vshll.u32 %v11179_v39, 16 }
 0x697   : > { %v11686_v18 = vmax.f32 %v11654_v8, 0.0  ;;  %v11655_v50 = vadd.f32 %v11623_v48, %v11127_v13  ;;  %v11511_v9 = vor.u32 %v11510_v52, %v11506_v7  ;;  %v11507_v44 = vsel %vm13401_vm5, %v11502_v54, %v11506_v7  ;;  %v11181_v54 = vld [vmem:[#allocation2 + $0xc8] sm:$0x1] }
 0x698   : > { %v11624_v15 = vunpack.c.l.bf16 %v11507_v44  ;;  %v11531_v8 = vsel %vm13401_vm5, %v11526_v42, %v11530_v28  ;;  %v11545_v36 = vrot.slane %v11543_v58, 4  ;;  %v11548_v30 = vrot.slane %v11546_v3, 5 }
 0x699   : > { %v11741_v20 = vsel %vm3041_vm9, %v11686_v18, 0.0  ;;  %v11687_v49 = vmax.f32 %v11655_v50, 0.0  ;;  %v11512_v45 = vrot.slane %v11511_v9, 4  ;;  %v11180_v50 = vld [vmem:[#allocation2 + $0xc4] sm:$0xf]  ;;  %v11626_v33 = vunpack.c.l.bf16 %v11531_v8 }
 0x69a   : > { %v11742_v29 = vadd.f32 %v11741_v20, %v11740_v43  ;;  %v11552_v6 = vshll.u32 %v11180_v50, 16  ;;  %v11556_v7 = vshrl.u32 %v11180_v50, 16  ;;  %v11549_v37 = vor.u32 %v11548_v30, %v11545_v36 }
 0x69b   : > { %v11743_v12 = vsel %vm3041_vm9, %v11687_v49, 0.0  ;;  %v11517_v34 = vsel %vm13401_vm5, %v11512_v45, %v11516_v61  ;;  %v11541_v49 = vsel %vm13401_vm5, %v11536_v5, %v11540_v4  ;;  %v11562_v1 = vshll.u32 %v11181_v54, 16 }
 0x69c   : > { %v11744_v25 = vadd.f32 %v11743_v12, %v11742_v29  ;;  %v11625_v38 = vunpack.c.l.bf16 %v11517_v34  ;;  %v11627_v35 = vunpack.c.l.bf16 %v11541_v49  ;;  %v11554_v9 = vrot.slane %v11552_v6, 5 }
 0x69d   : > { %v11558_v24 = vrot.slane %v11556_v7, 4  ;;  %v11550_v57 = vrot.slane %v11549_v37, 4  ;;  %v11564_v44 = vrot.slane %v11562_v1, 5 }
 0x69f   : > { %v11559_v28 = vor.u32 %v11558_v24, %v11554_v9 }
 0x6a9   : > { %v11033_v53 = vpop.f32.mrb[72].mxu0 }
 0x6aa   : > { %v11089_v31 = vmul.f32 %v19531_v59, %v11033_v53  ;;  %v11035_v22 = vpop.f32.mrb[73].mxu0  ;;  %v11560_v53 = vrot.slane %v11559_v28, 4 }
 0x6ab   : > { %v11036_v46 = vpop.f32.mrb[74].mxu0 }
 0x6ac   : > { %v11128_v43 = vadd.f32 %v19539_v17, %v11089_v31  ;;  %v11090_v63 = vmul.f32 %v19531_v59, %v11036_v46  ;;  %v11038_v51 = vpop.f32.mrb[75].mxu0  ;;  %v11555_v31 = vsel %vm13401_vm5, %v11550_v57, %v11554_v9  ;;  %v11565_v27 = vsel %vm13401_vm5, %v11560_v53, %v11564_v44 }
 0x6ad   : > { %vm20039_vm5 = vcmask 122880  }
 0x6ae   : > { %v11656_v55 = vadd.f32 %v11624_v15, %v11128_v43  ;;  %v11129_v32 = vadd.f32 %v19539_v17, %v11090_v63  ;;  %v11628_v43 = vunpack.c.l.bf16 %v11555_v31 }
 0x6b0   : > { %v11688_v2 = vmax.f32 %v11656_v55, 0.0  ;;  %v11657_v41 = vadd.f32 %v11625_v38, %v11129_v32  ;;  %v11629_v55 = vunpack.c.l.bf16 %v11565_v27 }
 0x6b1   : > { %v11041_v14 = vpop.f32.mrb[76].mxu0 }
 0x6b2   : > { %v11745_v13 = vsel %vm3041_vm9, %v11688_v2, 0.0  ;;  %v11689_v48 = vmax.f32 %v11657_v41, 0.0  ;;  %v11091_v11 = vmul.f32 %v19531_v59, %v11041_v14  ;;  %v11043_v18 = vpop.f32.mrb[77].mxu0 }
 0x6b3   : > { %v11746_v23 = vadd.f32 %v11745_v13, %v11744_v25  ;;  %v11044_v20 = vpop.f32.mrb[78].mxu0 }
 0x6b4   : > { %v11747_v29 = vsel %vm3041_vm9, %v11689_v48, 0.0  ;;  %v11130_v12 = vadd.f32 %v19539_v17, %v11091_v11  ;;  %v11092_v60 = vmul.f32 %v19531_v59, %v11044_v20  ;;  %v11046_v47 = vpop.f32.mrb[79].mxu0 }
 0x6b5   : > { %v11748_v26 = vadd.f32 %v11747_v29, %v11746_v23 }
 0x6b6   : > { %v11658_v52 = vadd.f32 %v11626_v33, %v11130_v12  ;;  %v11131_v25 = vadd.f32 %v19539_v17, %v11092_v60 }
 0x6b8   : > { %v11690_v40 = vmax.f32 %v11658_v52, 0.0  ;;  %v11659_v21 = vadd.f32 %v11627_v35, %v11131_v25 }
 0x6ba   : > { %v11749_v10 = vsel %vm3041_vm9, %v11690_v40, 0.0  ;;  %v11691_v0 = vmax.f32 %v11659_v21, 0.0 }
 0x6bb   : > { %v11750_v16 = vadd.f32 %v11749_v10, %v11748_v26 }
 0x6bc   : > { %v11751_v45 = vsel %vm3041_vm9, %v11691_v0, 0.0 }
 0x6bd   : > { %v11752_v61 = vadd.f32 %v11751_v45, %v11750_v16 }
 0x6c3   : > { %v11049_v56 = vpop.f32.mrb[80].mxu0 }
 0x6c4   : > { %v11093_v22 = vmul.f32 %v19531_v59, %v11049_v56  ;;  %v11051_v46 = vpop.f32.mrb[81].mxu0 }
 0x6c5   : > { %v11052_v34 = vpop.f32.mrb[82].mxu0 }
 0x6c6   : > { %v11132_v62 = vadd.f32 %v19539_v17, %v11093_v22  ;;  %v11094_v15 = vmul.f32 %v19531_v59, %v11052_v34  ;;  %v11054_v63 = vpop.f32.mrb[83].mxu0 }
 0x6c8   : > { %v11660_v51 = vadd.f32 %v11628_v43, %v11132_v62  ;;  %v11133_v42 = vadd.f32 %v19539_v17, %v11094_v15 }
 0x6ca   : > { %v11692_v32 = vmax.f32 %v11660_v51, 0.0  ;;  %v11661_v38 = vadd.f32 %v11629_v55, %v11133_v42 }
 0x6cc   : > { %v11753_v5 = vsel %vm3041_vm9, %v11692_v32, 0.0  ;;  %v11693_v4 = vmax.f32 %v11661_v38, 0.0 }
 0x6cd   : > { %v11754_v2 = vadd.f32 %v11753_v5, %v11752_v61 }
 0x6ce   : > { %v11755_v19 = vsel %vm3041_vm9, %v11693_v4, 0.0 }
 0x6cf   : > { %v11756_v41 = vadd.f32 %v11755_v19, %v11754_v2 }
 0x6d1   : > { %v11757_v39 = vrot.slane %v11756_v41, 4 }
 0x6d3   : > { %v11758_v14 = vadd.f32 %v11757_v39, %v11756_v41 }
 0x6d5   : > { %v11759_v59 = vrot.slane %v11758_v14, 2 }
 0x6d7   : > { %v11760_v8 = vadd.f32 %v11759_v59, %v11758_v14 }
 0x6d9   : > { %v11761_v13 = vrot.slane %v11760_v8, 1 }
 0x6db   : > { %v11762_v17 = vadd.f32 %v11761_v13, %v11760_v8 }
 0x6dd   : > { %v11763_v48 = vmul.f32 0.00390625, %v11762_v17 }
 0x6df   : > { %11764 = vst.msk [vmem:[%s351_s12] sm:$0x1] %vm20039_vm5, %v11763_v48 }
 0x6e0   : > { %13159 = shalt.err (!%p13156_p3)
}
 0x6e1   : > { %s13160_s26 = scalar_lea.hbm %s19571_s21, 16  ;;  %s13164_s28 = scalar_lea.hbm %s19624_s10, 32 }
 0x6e2   : > { %p13161_p4 = scmp.ne.s32.totalorder %s19571_s21, %s13160_s26  ;;  %p13165_p9 = scmp.lt.u32.totalorder %s19571_s21, %s19624_s10 }
 0x6e3   : > { %p13166_p10 = scmp.lt.u32.totalorder %s13164_s28, %s13160_s26  ;;  %p13168_p12 = scmp.lt.u32.totalorder %s13160_s26, %s19571_s21 }
 0x6e4   : > { %p13162_p7 = pnand %p13161_p4, %p13318_p5 }
 0x6e5   : > { %p13167_p11 = por %p13166_p10, %p13165_p9 }
 0x6e6   : > { %p13163_p8 = pneg %p13162_p7 }
 0x6e7   : > { %p13169_p13 = por %p13168_p12, %p13167_p11 }
 0x6e9   : > { %p13170_p0 = pnand %p13169_p13, %p13163_p8 }
 0x6eb   : > { %13173 = shalt.err (!%p13170_p0)
}
 0x6ec   : > { %12814 = dma.vmem_to_hbm [thread:$0]  (%p13318_p5), %s19573_s20, 16, %s19571_s21, %s11766_s27  }
 0x6ed PF: > { %p12820_p1 = scmp.ge.s32.totalorder %s13208_s16, 2  ;;  %s11790_s29 = sand.u32 1, %s13196_s13  }
 0x6ee   : > { %s11791_s30 = scalar_lea.sflag [#allocation5], %s11790_s29 }
 0x6ef   : > { %p12817_p2 = pnand %p12820_p1, %p13322_p6 }
 0x6f1   : > { %13191 = dma.done.wait (!%p12817_p2), %s11791_s30, 16  }
 0x6f2   : > { %13193 = vsyncadd (!%p12817_p2), %s11791_s30, 4294967280  ;;  %p20_p3 = scmp.ge.s32.totalorder %s13305_s19, 4   ;;  %s20040_s13 = smov %s13200_s14 }
 0x6f3   : > { %s20041_s14 = smov %s13204_s15  ;;  %s20042_s15 = smov %s13316_s22 }
 0x6f4   : > { %s20043_s16 = smov %s13305_s19  ;;  %22 = sbr.rel (!%p20_p3) target bundleno = 3 (0x3), region = 103 }
 0x6fb   :  { %11795 = vsyncpa [#allocation5], 1 }
 0x6fc   :  { %11797 = vsyncpa [#allocation5 + $0x1], 1 }

</bundles_post_ra>
